<compile_context>
chip_gen: v7x
topology: tpu7x:2x2x1
jax: 0.10.0
libtpu: 0.0.40
codegen_flags: <defaults>
</compile_context>

<pallas_src>
import functools

import jax
import jax.numpy as jnp
from jax.experimental import pallas as pl
from jax.experimental.pallas import tpu as pltpu


# ----------------------------------------------------------------------------
# Shared tile conv: sum of K*K tile-batched MXU matmuls (M = TOH*OW)
# ----------------------------------------------------------------------------
def _conv_tile(x_ref, w_ref, oh0, toh, ow, stride):
    """Conv output for output rows [oh0, oh0+toh) as a (toh*ow, Cp) f32 value.

    x_ref: (1, Hp, Wp, Cin) bf16 padded NHWC image; w_ref: (K, K, Cin, Cp) bf16.
    """
    k = w_ref.shape[0]
    cin = w_ref.shape[2]
    cp = w_ref.shape[3]
    acc = jnp.zeros((toh * ow, cp), jnp.float32)
    for kh in range(k):                      # static K*K, fully unrolled
        for kw in range(k):
            if stride == 1:
                patch = x_ref[0, pl.ds(oh0 + kh, toh), pl.ds(kw, ow), :]
            else:
                # TODO(synk): stride > 1 strided-window loads are untested on
                # TPU lowering (demo exercises stride == 1 only).
                patch = x_ref[0, pl.ds(oh0 * stride + kh, toh, stride),
                              pl.ds(kw, ow, stride), :]
            acc = acc + jnp.dot(patch.reshape(toh * ow, cin), w_ref[kh, kw],
                                preferred_element_type=jnp.float32)
    return acc


# ----------------------------------------------------------------------------
# Pass 1: conv (recomputed, never stored) + per-batch BN batch statistics
# ----------------------------------------------------------------------------
def _conv_stats_kernel(x_ref, w_ref, sum_ref, ssq_ref, *, toh, ow, stride):
    t = pl.program_id(1)

    @pl.when(t == 0)
    def _init():
        sum_ref[...] = jnp.zeros_like(sum_ref)
        ssq_ref[...] = jnp.zeros_like(ssq_ref)

    oh0 = pl.multiple_of(t * toh, toh)
    acc = _conv_tile(x_ref, w_ref, oh0, toh, ow, stride)       # (M, Cp) f32
    cp = acc.shape[1]
    sum_ref[...] += jnp.sum(acc, axis=0, keepdims=True).reshape(1, 1, cp)
    ssq_ref[...] += jnp.sum(acc * acc, axis=0, keepdims=True).reshape(1, 1, cp)


# ----------------------------------------------------------------------------
# Pass 2: recompute conv, apply folded BN scale/shift + ReLU, write final out
# ----------------------------------------------------------------------------
def _conv_apply_kernel(x_ref, w_ref, scale_ref, shift_ref, o_ref, *, stride):
    _, toh, ow, cout = o_ref.shape
    t = pl.program_id(1)
    oh0 = pl.multiple_of(t * toh, toh)
    acc = _conv_tile(x_ref, w_ref, oh0, toh, ow, stride)       # (M, Cp) f32
    y = jnp.maximum(acc * scale_ref[...] + shift_ref[...], jnp.float32(0.0))
    # Write only the real channels (padded lanes are exactly zero anyway).
    o_ref[0] = y[:, :cout].reshape(toh, ow, cout)


# ----------------------------------------------------------------------------
# Wrapper helpers
# ----------------------------------------------------------------------------
def _round_up(v, m):
    return ((v + m - 1) // m) * m


def _vmem_limit_bytes():
    """Generation-aware VMEM budget, leaving headroom for compiler scratch."""
    try:
        cap = pltpu.get_tpu_info().vmem_capacity_bytes
    except Exception:
        cap = 64 << 20
    # ~45 MiB on v7x (64 MiB physical), ~90 MiB on v5e/v6e (128 MiB physical).
    return int(max(32 << 20, min(cap * 0.7, cap - (16 << 20))))


def _pick_toh(oh, ow, cp, cout, hp, wp, cin, k, budget_bytes):
    """Largest divisor of OH whose per-step VMEM working set fits the budget.

    TODO(synk): use pl.cdiv + a masked tail tile so awkward OH values do not
    degenerate toward toh == 1.
    """
    # Double-buffered pipeline blocks: bf16 input image, bf16 weight,
    # f32 scale/shift, f32 output tile (unpadded channels).  The in-kernel f32
    # accumulator and bf16 patch slices live once (not pipelined).
    fixed = 2 * (hp * wp * cin * 2 + k * k * cin * cp * 2 + 2 * cp * 4)
    best = 1
    for t in range(1, oh + 1):
        if oh % t:
            continue
        if t * ow > 512:          # cap the MXU M dim (vreg / spill pressure)
            continue
        per_tile = 2 * t * ow * cout * 4 + t * ow * cp * 4 + 2 * t * ow * cin * 2
        if fixed + per_tile <= budget_bytes:
            best = t
    return best


@functools.partial(jax.jit, static_argnames=("k_size", "stride", "padding", "eps"))
def conv2d_bn_relu(x, weight, bias, gamma, beta, *, k_size, stride, padding,
                   eps=1e-5):
    """Forward of conv2DBatchNormRelu: Conv2d -> BatchNorm2d(train) -> ReLU.

    x: (N, Cin, H, W) f32; weight: (Cout, Cin, K, K); bias/gamma/beta: (Cout,).
    Returns (N, Cout, OH, OW) f32.
    """
    # Conv bias intentionally unused: BatchNorm subtracts the per-channel batch
    # mean, which cancels any per-channel constant exactly, so the module
    # output is identical and the statistics are better conditioned.
    del bias
    n, cin, h, w = x.shape
    cout = weight.shape[0]
    k = k_size
    oh = (h + 2 * padding - k) // stride + 1
    ow = (w + 2 * padding - k) // stride + 1
    hp = h + 2 * padding
    wp = w + 2 * padding
    cp = _round_up(cout, 128)       # minimal lane-dense padding for the MXU N dim

    # NCHW -> spatially padded NHWC, pre-cast to bf16 (halves input DMA/VMEM).
    xp = jnp.pad(x, ((0, 0), (0, 0), (padding, padding), (padding, padding)))
    xp = jnp.transpose(xp, (0, 2, 3, 1)).astype(jnp.bfloat16)   # (N, Hp, Wp, Cin)

    # (Cout, Cin, K, K) -> (K, K, Cin, Cp), zero-padded channels, bf16 for MXU.
    wt = jnp.transpose(weight, (2, 3, 1, 0))
    wt = jnp.pad(wt, ((0, 0), (0, 0), (0, 0), (0, cp - cout))).astype(jnp.bfloat16)

    vmem_limit = _vmem_limit_bytes()
    toh = _pick_toh(oh, ow, cp, cout, hp, wp, cin, k, int(vmem_limit * 0.8))
    grid = (n, oh // toh)

    conv_flops = 2 * n * oh * ow * k * k * cin * cp
    in_bytes = xp.size * 2 + wt.size * 2

    # ---- Pass 1: conv + per-batch BN statistics (no y intermediate in HBM).
    sums, ssqs = pl.pallas_call(
        functools.partial(_conv_stats_kernel, toh=toh, ow=ow, stride=stride),
        out_shape=(
            jax.ShapeDtypeStruct((n, 1, cp), jnp.float32),
            jax.ShapeDtypeStruct((n, 1, cp), jnp.float32),
        ),
        grid_spec=pltpu.PrefetchScalarGridSpec(
            num_scalar_prefetch=0,
            grid=grid,
            in_specs=[
                # Full padded image per batch; constant over the row-tile axis
                # so it is DMA'd once per image.
                # TODO(synk): for very large Hp*Wp*Cin, switch to a manual
                # row-window DMA (memory_space=pl.ANY + make_async_copy) to
                # bound resident input to O(toh+K) rows (matters on v7x 64 MiB).
                pl.BlockSpec((1, hp, wp, cin), lambda b, t: (b, 0, 0, 0)),
                pl.BlockSpec((k, k, cin, cp), lambda b, t: (0, 0, 0, 0)),
            ],
            out_specs=[
                pl.BlockSpec((1, 1, cp), lambda b, t: (b, 0, 0)),
                pl.BlockSpec((1, 1, cp), lambda b, t: (b, 0, 0)),
            ],
        ),
        compiler_params=pltpu.CompilerParams(
            # Stats are per-batch-image and only revisited along the row-tile
            # axis, so the batch axis may be split across TensorCores.
            dimension_semantics=("parallel", "arbitrary"),
            vmem_limit_bytes=vmem_limit),
        cost_estimate=pl.CostEstimate(
            flops=conv_flops + 3 * n * oh * ow * cp, transcendentals=0,
            bytes_accessed=in_bytes + 2 * n * cp * 4),
    )(xp, wt)

    # ---- Tiny glue: fold training-mode BatchNorm into one scale/shift.
    count = jnp.float32(n * oh * ow)
    s = jnp.sum(sums, axis=0)                    # (1, Cp)
    q = jnp.sum(ssqs, axis=0)                    # (1, Cp)
    mean = s / count
    var = jnp.maximum(q / count - mean * mean, 0.0)   # biased var (BN train norm)
    invstd = jax.lax.rsqrt(var + eps)
    gamma_p = jnp.pad(gamma, (0, cp - cout)).reshape(1, cp)
    beta_p = jnp.pad(beta, (0, cp - cout)).reshape(1, cp)
    scale = gamma_p * invstd
    shift = beta_p - mean * scale
    # TODO(synk): running_mean/running_var momentum updates (PyTorch training
    # buffer side effects) are not produced here.

    # ---- Pass 2: recompute conv, apply folded BN affine + ReLU, write the
    # final unpadded-channel output directly.
    out_nhwc = pl.pallas_call(
        functools.partial(_conv_apply_kernel, stride=stride),
        out_shape=jax.ShapeDtypeStruct((n, oh, ow, cout), jnp.float32),
        grid_spec=pltpu.PrefetchScalarGridSpec(
            num_scalar_prefetch=0,
            grid=grid,
            in_specs=[
                pl.BlockSpec((1, hp, wp, cin), lambda b, t: (b, 0, 0, 0)),
                pl.BlockSpec((k, k, cin, cp), lambda b, t: (0, 0, 0, 0)),
                pl.BlockSpec((1, cp), lambda b, t: (0, 0)),
                pl.BlockSpec((1, cp), lambda b, t: (0, 0)),
            ],
            out_specs=pl.BlockSpec((1, toh, ow, cout), lambda b, t: (b, t, 0, 0)),
        ),
        compiler_params=pltpu.CompilerParams(
            dimension_semantics=("parallel", "parallel"),
            vmem_limit_bytes=vmem_limit),
        cost_estimate=pl.CostEstimate(
            flops=conv_flops + 3 * n * oh * ow * cp, transcendentals=0,
            bytes_accessed=in_bytes + 2 * cp * 4 + n * oh * ow * cout * 4),
    )(xp, wt, scale, shift)

    # NHWC -> NCHW (PyTorch layout).  Kept outside the kernel on purpose: with
    # OW < 128 an in-kernel NCHW out_spec would force masked lane stores.
    # TODO(synk): when OW >= 128, fold this transpose into pass 2's out_spec.
    return jnp.transpose(out_nhwc, (0, 3, 1, 2))


# ----------------------------------------------------------------------------
# Pure-JAX reference and demo
# ----------------------------------------------------------------------------
def _reference(x, weight, bias, gamma, beta, *, stride, padding, eps=1e-5,
               conv_dtype=jnp.float32):
    y = jax.lax.conv_general_dilated(
        x.astype(conv_dtype), weight.astype(conv_dtype),
        window_strides=(stride, stride),
        padding=[(padding, padding), (padding, padding)],
        dimension_numbers=("NCHW", "OIHW", "NCHW"),
        preferred_element_type=jnp.float32)
    y = y + bias[None, :, None, None]
    mean = y.mean(axis=(0, 2, 3))
    var = y.var(axis=(0, 2, 3))                  # biased, BN train-mode norm
    yn = (y - mean[None, :, None, None]) / jnp.sqrt(var[None, :, None, None] + eps)
    yn = gamma[None, :, None, None] * yn + beta[None, :, None, None]
    return jnp.maximum(yn, 0.0)


if __name__ == "__main__":
    # Module config: conv2DBatchNormRelu(in_channels=4, n_filters=8, k_size=3,
    #                                    stride=1, padding=1, bias=True)
    N, Cin, H, W = 2, 4, 16, 16
    Cout, K, stride, padding = 8, 3, 1, 1

    key = jax.random.PRNGKey(0)
    kx, kw_, kb, kg, kbeta = jax.random.split(key, 5)
    x = jax.random.normal(kx, (N, Cin, H, W), dtype=jnp.float32)
    weight = jax.random.normal(kw_, (Cout, Cin, K, K), dtype=jnp.float32) * 0.1
    bias = jax.random.normal(kb, (Cout,), dtype=jnp.float32) * 0.1
    gamma = 1.0 + 0.1 * jax.random.normal(kg, (Cout,), dtype=jnp.float32)
    beta = 0.1 * jax.random.normal(kbeta, (Cout,), dtype=jnp.float32)

    out = conv2d_bn_relu(x, weight, bias, gamma, beta,
                         k_size=K, stride=stride, padding=padding)
    out = jax.block_until_ready(out)
    assert out.shape == (N, Cout, H, W)

    # Tight check against a reference that also runs the conv with bf16 inputs
    # (same MXU input precision, f32 accumulation) ...
    ref_bf16 = _reference(x, weight, bias, gamma, beta, stride=stride,
                          padding=padding, conv_dtype=jnp.bfloat16)
    err = float(jnp.max(jnp.abs(out - ref_bf16)))
    assert jnp.allclose(out, ref_bf16, rtol=2e-3, atol=2e-3), err

    # ... and a looser sanity check against the full-f32 reference.
    ref_f32 = _reference(x, weight, bias, gamma, beta, stride=stride,
                         padding=padding, conv_dtype=jnp.float32)
    err32 = float(jnp.max(jnp.abs(out - ref_f32)))
    assert jnp.allclose(out, ref_f32, rtol=5e-2, atol=5e-2), err32

    print("KERNEL_OK")
</pallas_src>

<mosaic_0001>
module attributes {stable_mosaic.version = 11 : i64} {
  func.func @_conv_stats_kernel(%arg0: i32, %arg1: i32, %arg2: memref<1x18x18x4xbf16, #tpu.memory_space<vmem>>, %arg3: memref<3x3x4x128xbf16, #tpu.memory_space<vmem>>, %arg4: memref<1x1x128xf32, #tpu.memory_space<vmem>>, %arg5: memref<1x1x128xf32, #tpu.memory_space<vmem>>) attributes {dimension_semantics = [#tpu.dimension_semantics<parallel>, #tpu.dimension_semantics<arbitrary>], iteration_bounds = array<i64: 2, 1>, scalar_prefetch = 0 : i64, scratch_operands = 0 : i64, tpu.core_type = #tpu.core_type<tc>, window_params = [{transform_indices = @transform_0, window_bounds = array<i64: 1, 18, 18, 4>}, {pipeline_mode = #tpu.pipeline_mode<synchronous>, transform_indices = @transform_1, window_bounds = array<i64: 3, 3, 4, 128>}, {transform_indices = @transform_2, window_bounds = array<i64: 1, 1, 128>}, {transform_indices = @transform_3, window_bounds = array<i64: 1, 1, 128>}]} {
    %c0_i32 = arith.constant 0 : i32
    %0 = arith.cmpi eq, %arg1, %c0_i32 : i32
    %1 = arith.extui %0 : i1 to i32
    %c0_i32_0 = arith.constant 0 : i32
    %2 = arith.cmpi ne, %1, %c0_i32_0 : i32
    scf.if %2 {
      %cst_91 = arith.constant 0.000000e+00 : f32
      %100 = vector.broadcast %cst_91 : f32 to vector<1x1x128xf32>
      %c0_92 = arith.constant 0 : index
      %c0_93 = arith.constant 0 : index
      %c0_94 = arith.constant 0 : index
      %101 = vector.load %arg4[%c0_92, %c0_93, %c0_94] : memref<1x1x128xf32, #tpu.memory_space<vmem>>, vector<1x1x128xf32>
      tpu.vector_store %arg4[%c0_92, %c0_93, %c0_94], %100 {strides = array<i32>} : memref<1x1x128xf32, #tpu.memory_space<vmem>>, vector<1x1x128xf32>,
      %cst_95 = arith.constant 0.000000e+00 : f32
      %102 = vector.broadcast %cst_95 : f32 to vector<1x1x128xf32>
      %c0_96 = arith.constant 0 : index
      %c0_97 = arith.constant 0 : index
      %c0_98 = arith.constant 0 : index
      %103 = vector.load %arg5[%c0_96, %c0_97, %c0_98] : memref<1x1x128xf32, #tpu.memory_space<vmem>>, vector<1x1x128xf32>
      tpu.vector_store %arg5[%c0_96, %c0_97, %c0_98], %102 {strides = array<i32>} : memref<1x1x128xf32, #tpu.memory_space<vmem>>, vector<1x1x128xf32>,
    } else {
    }
    %c16_i32 = arith.constant 16 : i32
    %3 = arith.muli %arg1, %c16_i32 : i32
    %4 = tpu.assume_multiple %3, 16 : i32
    %cst = arith.constant 0.000000e+00 : f32
    %5 = vector.broadcast %cst : f32 to vector<256x128xf32>
    %c0_i32_1 = arith.constant 0 : i32
    %6 = arith.addi %4, %c0_i32_1 : i32
    %c0 = arith.constant 0 : index
    %7 = arith.index_cast %6 : i32 to index
    %c0_2 = arith.constant 0 : index
    %c0_3 = arith.constant 0 : index
    %8 = vector.load %arg2[%c0, %7, %c0_2, %c0_3] : memref<1x18x18x4xbf16, #tpu.memory_space<vmem>>, vector<1x16x16x4xbf16>
    %9 = vector.shape_cast %8 : vector<1x16x16x4xbf16> to vector<16x16x4xbf16>
    %10 = vector.shape_cast %9 : vector<16x16x4xbf16> to vector<256x4xbf16>
    %c0_4 = arith.constant 0 : index
    %c0_5 = arith.constant 0 : index
    %c0_6 = arith.constant 0 : index
    %c0_7 = arith.constant 0 : index
    %11 = vector.load %arg3[%c0_4, %c0_5, %c0_6, %c0_7] : memref<3x3x4x128xbf16, #tpu.memory_space<vmem>>, vector<1x1x4x128xbf16>
    %12 = vector.shape_cast %11 : vector<1x1x4x128xbf16> to vector<4x128xbf16>
    %cst_8 = arith.constant dense<0.000000e+00> : vector<256x128xf32>
    %13 = tpu.matmul %10, %12, %cst_8 {dimension_numbers = #tpu.dot_dimension_numbers<[1], [0], [0], [1], [0, 0, 1, 1], [], []>} : vector<256x4xbf16>, vector<4x128xbf16>, vector<256x128xf32> -> vector<256x128xf32>
    %14 = arith.addf %5, %13 : vector<256x128xf32>
    %c0_i32_9 = arith.constant 0 : i32
    %15 = arith.addi %4, %c0_i32_9 : i32
    %c0_10 = arith.constant 0 : index
    %16 = arith.index_cast %15 : i32 to index
    %c1 = arith.constant 1 : index
    %c0_11 = arith.constant 0 : index
    %17 = vector.load %arg2[%c0_10, %16, %c1, %c0_11] : memref<1x18x18x4xbf16, #tpu.memory_space<vmem>>, vector<1x16x16x4xbf16>
    %18 = vector.shape_cast %17 : vector<1x16x16x4xbf16> to vector<16x16x4xbf16>
    %19 = vector.shape_cast %18 : vector<16x16x4xbf16> to vector<256x4xbf16>
    %c0_12 = arith.constant 0 : index
    %c1_13 = arith.constant 1 : index
    %c0_14 = arith.constant 0 : index
    %c0_15 = arith.constant 0 : index
    %20 = vector.load %arg3[%c0_12, %c1_13, %c0_14, %c0_15] : memref<3x3x4x128xbf16, #tpu.memory_space<vmem>>, vector<1x1x4x128xbf16>
    %21 = vector.shape_cast %20 : vector<1x1x4x128xbf16> to vector<4x128xbf16>
    %cst_16 = arith.constant dense<0.000000e+00> : vector<256x128xf32>
    %22 = tpu.matmul %19, %21, %cst_16 {dimension_numbers = #tpu.dot_dimension_numbers<[1], [0], [0], [1], [0, 0, 1, 1], [], []>} : vector<256x4xbf16>, vector<4x128xbf16>, vector<256x128xf32> -> vector<256x128xf32>
    %23 = arith.addf %14, %22 : vector<256x128xf32>
    %c0_i32_17 = arith.constant 0 : i32
    %24 = arith.addi %4, %c0_i32_17 : i32
    %c0_18 = arith.constant 0 : index
    %25 = arith.index_cast %24 : i32 to index
    %c2 = arith.constant 2 : index
    %c0_19 = arith.constant 0 : index
    %26 = vector.load %arg2[%c0_18, %25, %c2, %c0_19] : memref<1x18x18x4xbf16, #tpu.memory_space<vmem>>, vector<1x16x16x4xbf16>
    %27 = vector.shape_cast %26 : vector<1x16x16x4xbf16> to vector<16x16x4xbf16>
    %28 = vector.shape_cast %27 : vector<16x16x4xbf16> to vector<256x4xbf16>
    %c0_20 = arith.constant 0 : index
    %c2_21 = arith.constant 2 : index
    %c0_22 = arith.constant 0 : index
    %c0_23 = arith.constant 0 : index
    %29 = vector.load %arg3[%c0_20, %c2_21, %c0_22, %c0_23] : memref<3x3x4x128xbf16, #tpu.memory_space<vmem>>, vector<1x1x4x128xbf16>
    %30 = vector.shape_cast %29 : vector<1x1x4x128xbf16> to vector<4x128xbf16>
    %cst_24 = arith.constant dense<0.000000e+00> : vector<256x128xf32>
    %31 = tpu.matmul %28, %30, %cst_24 {dimension_numbers = #tpu.dot_dimension_numbers<[1], [0], [0], [1], [0, 0, 1, 1], [], []>} : vector<256x4xbf16>, vector<4x128xbf16>, vector<256x128xf32> -> vector<256x128xf32>
    %32 = arith.addf %23, %31 : vector<256x128xf32>
    %c1_i32 = arith.constant 1 : i32
    %33 = arith.addi %4, %c1_i32 : i32
    %c0_25 = arith.constant 0 : index
    %34 = arith.index_cast %33 : i32 to index
    %c0_26 = arith.constant 0 : index
    %c0_27 = arith.constant 0 : index
    %35 = vector.load %arg2[%c0_25, %34, %c0_26, %c0_27] : memref<1x18x18x4xbf16, #tpu.memory_space<vmem>>, vector<1x16x16x4xbf16>
    %36 = vector.shape_cast %35 : vector<1x16x16x4xbf16> to vector<16x16x4xbf16>
    %37 = vector.shape_cast %36 : vector<16x16x4xbf16> to vector<256x4xbf16>
    %c1_28 = arith.constant 1 : index
    %c0_29 = arith.constant 0 : index
    %c0_30 = arith.constant 0 : index
    %c0_31 = arith.constant 0 : index
    %38 = vector.load %arg3[%c1_28, %c0_29, %c0_30, %c0_31] : memref<3x3x4x128xbf16, #tpu.memory_space<vmem>>, vector<1x1x4x128xbf16>
    %39 = vector.shape_cast %38 : vector<1x1x4x128xbf16> to vector<4x128xbf16>
    %cst_32 = arith.constant dense<0.000000e+00> : vector<256x128xf32>
    %40 = tpu.matmul %37, %39, %cst_32 {dimension_numbers = #tpu.dot_dimension_numbers<[1], [0], [0], [1], [0, 0, 1, 1], [], []>} : vector<256x4xbf16>, vector<4x128xbf16>, vector<256x128xf32> -> vector<256x128xf32>
    %41 = arith.addf %32, %40 : vector<256x128xf32>
    %c1_i32_33 = arith.constant 1 : i32
    %42 = arith.addi %4, %c1_i32_33 : i32
    %c0_34 = arith.constant 0 : index
    %43 = arith.index_cast %42 : i32 to index
    %c1_35 = arith.constant 1 : index
    %c0_36 = arith.constant 0 : index
    %44 = vector.load %arg2[%c0_34, %43, %c1_35, %c0_36] : memref<1x18x18x4xbf16, #tpu.memory_space<vmem>>, vector<1x16x16x4xbf16>
    %45 = vector.shape_cast %44 : vector<1x16x16x4xbf16> to vector<16x16x4xbf16>
    %46 = vector.shape_cast %45 : vector<16x16x4xbf16> to vector<256x4xbf16>
    %c1_37 = arith.constant 1 : index
    %c1_38 = arith.constant 1 : index
    %c0_39 = arith.constant 0 : index
    %c0_40 = arith.constant 0 : index
    %47 = vector.load %arg3[%c1_37, %c1_38, %c0_39, %c0_40] : memref<3x3x4x128xbf16, #tpu.memory_space<vmem>>, vector<1x1x4x128xbf16>
    %48 = vector.shape_cast %47 : vector<1x1x4x128xbf16> to vector<4x128xbf16>
    %cst_41 = arith.constant dense<0.000000e+00> : vector<256x128xf32>
    %49 = tpu.matmul %46, %48, %cst_41 {dimension_numbers = #tpu.dot_dimension_numbers<[1], [0], [0], [1], [0, 0, 1, 1], [], []>} : vector<256x4xbf16>, vector<4x128xbf16>, vector<256x128xf32> -> vector<256x128xf32>
    %50 = arith.addf %41, %49 : vector<256x128xf32>
    %c1_i32_42 = arith.constant 1 : i32
    %51 = arith.addi %4, %c1_i32_42 : i32
    %c0_43 = arith.constant 0 : index
    %52 = arith.index_cast %51 : i32 to index
    %c2_44 = arith.constant 2 : index
    %c0_45 = arith.constant 0 : index
    %53 = vector.load %arg2[%c0_43, %52, %c2_44, %c0_45] : memref<1x18x18x4xbf16, #tpu.memory_space<vmem>>, vector<1x16x16x4xbf16>
    %54 = vector.shape_cast %53 : vector<1x16x16x4xbf16> to vector<16x16x4xbf16>
    %55 = vector.shape_cast %54 : vector<16x16x4xbf16> to vector<256x4xbf16>
    %c1_46 = arith.constant 1 : index
    %c2_47 = arith.constant 2 : index
    %c0_48 = arith.constant 0 : index
    %c0_49 = arith.constant 0 : index
    %56 = vector.load %arg3[%c1_46, %c2_47, %c0_48, %c0_49] : memref<3x3x4x128xbf16, #tpu.memory_space<vmem>>, vector<1x1x4x128xbf16>
    %57 = vector.shape_cast %56 : vector<1x1x4x128xbf16> to vector<4x128xbf16>
    %cst_50 = arith.constant dense<0.000000e+00> : vector<256x128xf32>
    %58 = tpu.matmul %55, %57, %cst_50 {dimension_numbers = #tpu.dot_dimension_numbers<[1], [0], [0], [1], [0, 0, 1, 1], [], []>} : vector<256x4xbf16>, vector<4x128xbf16>, vector<256x128xf32> -> vector<256x128xf32>
    %59 = arith.addf %50, %58 : vector<256x128xf32>
    %c2_i32 = arith.constant 2 : i32
    %60 = arith.addi %4, %c2_i32 : i32
    %c0_51 = arith.constant 0 : index
    %61 = arith.index_cast %60 : i32 to index
    %c0_52 = arith.constant 0 : index
    %c0_53 = arith.constant 0 : index
    %62 = vector.load %arg2[%c0_51, %61, %c0_52, %c0_53] : memref<1x18x18x4xbf16, #tpu.memory_space<vmem>>, vector<1x16x16x4xbf16>
    %63 = vector.shape_cast %62 : vector<1x16x16x4xbf16> to vector<16x16x4xbf16>
    %64 = vector.shape_cast %63 : vector<16x16x4xbf16> to vector<256x4xbf16>
    %c2_54 = arith.constant 2 : index
    %c0_55 = arith.constant 0 : index
    %c0_56 = arith.constant 0 : index
    %c0_57 = arith.constant 0 : index
    %65 = vector.load %arg3[%c2_54, %c0_55, %c0_56, %c0_57] : memref<3x3x4x128xbf16, #tpu.memory_space<vmem>>, vector<1x1x4x128xbf16>
    %66 = vector.shape_cast %65 : vector<1x1x4x128xbf16> to vector<4x128xbf16>
    %cst_58 = arith.constant dense<0.000000e+00> : vector<256x128xf32>
    %67 = tpu.matmul %64, %66, %cst_58 {dimension_numbers = #tpu.dot_dimension_numbers<[1], [0], [0], [1], [0, 0, 1, 1], [], []>} : vector<256x4xbf16>, vector<4x128xbf16>, vector<256x128xf32> -> vector<256x128xf32>
    %68 = arith.addf %59, %67 : vector<256x128xf32>
    %c2_i32_59 = arith.constant 2 : i32
    %69 = arith.addi %4, %c2_i32_59 : i32
    %c0_60 = arith.constant 0 : index
    %70 = arith.index_cast %69 : i32 to index
    %c1_61 = arith.constant 1 : index
    %c0_62 = arith.constant 0 : index
    %71 = vector.load %arg2[%c0_60, %70, %c1_61, %c0_62] : memref<1x18x18x4xbf16, #tpu.memory_space<vmem>>, vector<1x16x16x4xbf16>
    %72 = vector.shape_cast %71 : vector<1x16x16x4xbf16> to vector<16x16x4xbf16>
    %73 = vector.shape_cast %72 : vector<16x16x4xbf16> to vector<256x4xbf16>
    %c2_63 = arith.constant 2 : index
    %c1_64 = arith.constant 1 : index
    %c0_65 = arith.constant 0 : index
    %c0_66 = arith.constant 0 : index
    %74 = vector.load %arg3[%c2_63, %c1_64, %c0_65, %c0_66] : memref<3x3x4x128xbf16, #tpu.memory_space<vmem>>, vector<1x1x4x128xbf16>
    %75 = vector.shape_cast %74 : vector<1x1x4x128xbf16> to vector<4x128xbf16>
    %cst_67 = arith.constant dense<0.000000e+00> : vector<256x128xf32>
    %76 = tpu.matmul %73, %75, %cst_67 {dimension_numbers = #tpu.dot_dimension_numbers<[1], [0], [0], [1], [0, 0, 1, 1], [], []>} : vector<256x4xbf16>, vector<4x128xbf16>, vector<256x128xf32> -> vector<256x128xf32>
    %77 = arith.addf %68, %76 : vector<256x128xf32>
    %c2_i32_68 = arith.constant 2 : i32
    %78 = arith.addi %4, %c2_i32_68 : i32
    %c0_69 = arith.constant 0 : index
    %79 = arith.index_cast %78 : i32 to index
    %c2_70 = arith.constant 2 : index
    %c0_71 = arith.constant 0 : index
    %80 = vector.load %arg2[%c0_69, %79, %c2_70, %c0_71] : memref<1x18x18x4xbf16, #tpu.memory_space<vmem>>, vector<1x16x16x4xbf16>
    %81 = vector.shape_cast %80 : vector<1x16x16x4xbf16> to vector<16x16x4xbf16>
    %82 = vector.shape_cast %81 : vector<16x16x4xbf16> to vector<256x4xbf16>
    %c2_72 = arith.constant 2 : index
    %c2_73 = arith.constant 2 : index
    %c0_74 = arith.constant 0 : index
    %c0_75 = arith.constant 0 : index
    %83 = vector.load %arg3[%c2_72, %c2_73, %c0_74, %c0_75] : memref<3x3x4x128xbf16, #tpu.memory_space<vmem>>, vector<1x1x4x128xbf16>
    %84 = vector.shape_cast %83 : vector<1x1x4x128xbf16> to vector<4x128xbf16>
    %cst_76 = arith.constant dense<0.000000e+00> : vector<256x128xf32>
    %85 = tpu.matmul %82, %84, %cst_76 {dimension_numbers = #tpu.dot_dimension_numbers<[1], [0], [0], [1], [0, 0, 1, 1], [], []>} : vector<256x4xbf16>, vector<4x128xbf16>, vector<256x128xf32> -> vector<256x128xf32>
    %86 = arith.addf %77, %85 : vector<256x128xf32>
    %c0_77 = arith.constant 0 : index
    %c0_78 = arith.constant 0 : index
    %c0_79 = arith.constant 0 : index
    %87 = vector.load %arg4[%c0_77, %c0_78, %c0_79] : memref<1x1x128xf32, #tpu.memory_space<vmem>>, vector<1x1x128xf32>
    %cst_80 = arith.constant dense<0.000000e+00> : vector<128xf32>
    %88 = vector.multi_reduction <add>, %86, %cst_80 [0] : vector<256x128xf32> to vector<128xf32>
    %89 = vector.shape_cast %88 : vector<128xf32> to vector<1x128xf32>
    %90 = vector.shape_cast %89 : vector<1x128xf32> to vector<1x1x128xf32>
    %91 = arith.addf %87, %90 : vector<1x1x128xf32>
    %c0_81 = arith.constant 0 : index
    %c0_82 = arith.constant 0 : index
    %c0_83 = arith.constant 0 : index
    %92 = vector.load %arg4[%c0_81, %c0_82, %c0_83] : memref<1x1x128xf32, #tpu.memory_space<vmem>>, vector<1x1x128xf32>
    tpu.vector_store %arg4[%c0_81, %c0_82, %c0_83], %91 {strides = array<i32>} : memref<1x1x128xf32, #tpu.memory_space<vmem>>, vector<1x1x128xf32>,
    %c0_84 = arith.constant 0 : index
    %c0_85 = arith.constant 0 : index
    %c0_86 = arith.constant 0 : index
    %93 = vector.load %arg5[%c0_84, %c0_85, %c0_86] : memref<1x1x128xf32, #tpu.memory_space<vmem>>, vector<1x1x128xf32>
    %94 = arith.mulf %86, %86 : vector<256x128xf32>
    %cst_87 = arith.constant dense<0.000000e+00> : vector<128xf32>
    %95 = vector.multi_reduction <add>, %94, %cst_87 [0] : vector<256x128xf32> to vector<128xf32>
    %96 = vector.shape_cast %95 : vector<128xf32> to vector<1x128xf32>
    %97 = vector.shape_cast %96 : vector<1x128xf32> to vector<1x1x128xf32>
    %98 = arith.addf %93, %97 : vector<1x1x128xf32>
    %c0_88 = arith.constant 0 : index
    %c0_89 = arith.constant 0 : index
    %c0_90 = arith.constant 0 : index
    %99 = vector.load %arg5[%c0_88, %c0_89, %c0_90] : memref<1x1x128xf32, #tpu.memory_space<vmem>>, vector<1x1x128xf32>
    tpu.vector_store %arg5[%c0_88, %c0_89, %c0_90], %98 {strides = array<i32>} : memref<1x1x128xf32, #tpu.memory_space<vmem>>, vector<1x1x128xf32>,
    return
  }
  func.func @transform_0(%arg0: i32, %arg1: i32) -> (i32, i32, i32, i32) {
    %c0_i32 = arith.constant 0 : i32
    %c0_i32_0 = arith.constant 0 : i32
    %c0_i32_1 = arith.constant 0 : i32
    %c0_i32_2 = arith.constant 0 : i32
    return %arg0, %c0_i32, %c0_i32_0, %c0_i32_1 : i32, i32, i32, i32
  }
  func.func @transform_1(%arg0: i32, %arg1: i32) -> (i32, i32, i32, i32) {
    %c0_i32 = arith.constant 0 : i32
    %c0_i32_0 = arith.constant 0 : i32
    %c0_i32_1 = arith.constant 0 : i32
    %c0_i32_2 = arith.constant 0 : i32
    %c0_i32_3 = arith.constant 0 : i32
    return %c0_i32, %c0_i32_0, %c0_i32_1, %c0_i32_2 : i32, i32, i32, i32
  }
  func.func @transform_2(%arg0: i32, %arg1: i32) -> (i32, i32, i32) {
    %c0_i32 = arith.constant 0 : i32
    %c0_i32_0 = arith.constant 0 : i32
    %c0_i32_1 = arith.constant 0 : i32
    return %arg0, %c0_i32, %c0_i32_0 : i32, i32, i32
  }
  func.func @transform_3(%arg0: i32, %arg1: i32) -> (i32, i32, i32) {
    %c0_i32 = arith.constant 0 : i32
    %c0_i32_0 = arith.constant 0 : i32
    %c0_i32_1 = arith.constant 0 : i32
    return %arg0, %c0_i32, %c0_i32_0 : i32, i32, i32
  }
}

module attributes {stable_mosaic.version = 11 : i64} {
  func.func @_conv_apply_kernel(%arg0: i32, %arg1: i32, %arg2: memref<1x18x18x4xbf16, #tpu.memory_space<vmem>>, %arg3: memref<3x3x4x128xbf16, #tpu.memory_space<vmem>>, %arg4: memref<1x128xf32, #tpu.memory_space<vmem>>, %arg5: memref<1x128xf32, #tpu.memory_space<vmem>>, %arg6: memref<1x16x16x8xf32, #tpu.memory_space<vmem>>) attributes {dimension_semantics = [#tpu.dimension_semantics<parallel>, #tpu.dimension_semantics<parallel>], iteration_bounds = array<i64: 2, 1>, scalar_prefetch = 0 : i64, scratch_operands = 0 : i64, tpu.core_type = #tpu.core_type<tc>, window_params = [{transform_indices = @transform_0, window_bounds = array<i64: 1, 18, 18, 4>}, {pipeline_mode = #tpu.pipeline_mode<synchronous>, transform_indices = @transform_1, window_bounds = array<i64: 3, 3, 4, 128>}, {pipeline_mode = #tpu.pipeline_mode<synchronous>, transform_indices = @transform_2, window_bounds = array<i64: 1, 128>}, {pipeline_mode = #tpu.pipeline_mode<synchronous>, transform_indices = @transform_3, window_bounds = array<i64: 1, 128>}, {transform_indices = @transform_4, window_bounds = array<i64: 1, 16, 16, 8>}]} {
    %c16_i32 = arith.constant 16 : i32
    %0 = arith.muli %arg1, %c16_i32 : i32
    %1 = tpu.assume_multiple %0, 16 : i32
    %cst = arith.constant 0.000000e+00 : f32
    %2 = vector.broadcast %cst : f32 to vector<256x128xf32>
    %c0_i32 = arith.constant 0 : i32
    %3 = arith.addi %1, %c0_i32 : i32
    %c0 = arith.constant 0 : index
    %4 = arith.index_cast %3 : i32 to index
    %c0_0 = arith.constant 0 : index
    %c0_1 = arith.constant 0 : index
    %5 = vector.load %arg2[%c0, %4, %c0_0, %c0_1] : memref<1x18x18x4xbf16, #tpu.memory_space<vmem>>, vector<1x16x16x4xbf16>
    %6 = vector.shape_cast %5 : vector<1x16x16x4xbf16> to vector<16x16x4xbf16>
    %7 = vector.shape_cast %6 : vector<16x16x4xbf16> to vector<256x4xbf16>
    %c0_2 = arith.constant 0 : index
    %c0_3 = arith.constant 0 : index
    %c0_4 = arith.constant 0 : index
    %c0_5 = arith.constant 0 : index
    %8 = vector.load %arg3[%c0_2, %c0_3, %c0_4, %c0_5] : memref<3x3x4x128xbf16, #tpu.memory_space<vmem>>, vector<1x1x4x128xbf16>
    %9 = vector.shape_cast %8 : vector<1x1x4x128xbf16> to vector<4x128xbf16>
    %cst_6 = arith.constant dense<0.000000e+00> : vector<256x128xf32>
    %10 = tpu.matmul %7, %9, %cst_6 {dimension_numbers = #tpu.dot_dimension_numbers<[1], [0], [0], [1], [0, 0, 1, 1], [], []>} : vector<256x4xbf16>, vector<4x128xbf16>, vector<256x128xf32> -> vector<256x128xf32>
    %11 = arith.addf %2, %10 : vector<256x128xf32>
    %c0_i32_7 = arith.constant 0 : i32
    %12 = arith.addi %1, %c0_i32_7 : i32
    %c0_8 = arith.constant 0 : index
    %13 = arith.index_cast %12 : i32 to index
    %c1 = arith.constant 1 : index
    %c0_9 = arith.constant 0 : index
    %14 = vector.load %arg2[%c0_8, %13, %c1, %c0_9] : memref<1x18x18x4xbf16, #tpu.memory_space<vmem>>, vector<1x16x16x4xbf16>
    %15 = vector.shape_cast %14 : vector<1x16x16x4xbf16> to vector<16x16x4xbf16>
    %16 = vector.shape_cast %15 : vector<16x16x4xbf16> to vector<256x4xbf16>
    %c0_10 = arith.constant 0 : index
    %c1_11 = arith.constant 1 : index
    %c0_12 = arith.constant 0 : index
    %c0_13 = arith.constant 0 : index
    %17 = vector.load %arg3[%c0_10, %c1_11, %c0_12, %c0_13] : memref<3x3x4x128xbf16, #tpu.memory_space<vmem>>, vector<1x1x4x128xbf16>
    %18 = vector.shape_cast %17 : vector<1x1x4x128xbf16> to vector<4x128xbf16>
    %cst_14 = arith.constant dense<0.000000e+00> : vector<256x128xf32>
    %19 = tpu.matmul %16, %18, %cst_14 {dimension_numbers = #tpu.dot_dimension_numbers<[1], [0], [0], [1], [0, 0, 1, 1], [], []>} : vector<256x4xbf16>, vector<4x128xbf16>, vector<256x128xf32> -> vector<256x128xf32>
    %20 = arith.addf %11, %19 : vector<256x128xf32>
    %c0_i32_15 = arith.constant 0 : i32
    %21 = arith.addi %1, %c0_i32_15 : i32
    %c0_16 = arith.constant 0 : index
    %22 = arith.index_cast %21 : i32 to index
    %c2 = arith.constant 2 : index
    %c0_17 = arith.constant 0 : index
    %23 = vector.load %arg2[%c0_16, %22, %c2, %c0_17] : memref<1x18x18x4xbf16, #tpu.memory_space<vmem>>, vector<1x16x16x4xbf16>
    %24 = vector.shape_cast %23 : vector<1x16x16x4xbf16> to vector<16x16x4xbf16>
    %25 = vector.shape_cast %24 : vector<16x16x4xbf16> to vector<256x4xbf16>
    %c0_18 = arith.constant 0 : index
    %c2_19 = arith.constant 2 : index
    %c0_20 = arith.constant 0 : index
    %c0_21 = arith.constant 0 : index
    %26 = vector.load %arg3[%c0_18, %c2_19, %c0_20, %c0_21] : memref<3x3x4x128xbf16, #tpu.memory_space<vmem>>, vector<1x1x4x128xbf16>
    %27 = vector.shape_cast %26 : vector<1x1x4x128xbf16> to vector<4x128xbf16>
    %cst_22 = arith.constant dense<0.000000e+00> : vector<256x128xf32>
    %28 = tpu.matmul %25, %27, %cst_22 {dimension_numbers = #tpu.dot_dimension_numbers<[1], [0], [0], [1], [0, 0, 1, 1], [], []>} : vector<256x4xbf16>, vector<4x128xbf16>, vector<256x128xf32> -> vector<256x128xf32>
    %29 = arith.addf %20, %28 : vector<256x128xf32>
    %c1_i32 = arith.constant 1 : i32
    %30 = arith.addi %1, %c1_i32 : i32
    %c0_23 = arith.constant 0 : index
    %31 = arith.index_cast %30 : i32 to index
    %c0_24 = arith.constant 0 : index
    %c0_25 = arith.constant 0 : index
    %32 = vector.load %arg2[%c0_23, %31, %c0_24, %c0_25] : memref<1x18x18x4xbf16, #tpu.memory_space<vmem>>, vector<1x16x16x4xbf16>
    %33 = vector.shape_cast %32 : vector<1x16x16x4xbf16> to vector<16x16x4xbf16>
    %34 = vector.shape_cast %33 : vector<16x16x4xbf16> to vector<256x4xbf16>
    %c1_26 = arith.constant 1 : index
    %c0_27 = arith.constant 0 : index
    %c0_28 = arith.constant 0 : index
    %c0_29 = arith.constant 0 : index
    %35 = vector.load %arg3[%c1_26, %c0_27, %c0_28, %c0_29] : memref<3x3x4x128xbf16, #tpu.memory_space<vmem>>, vector<1x1x4x128xbf16>
    %36 = vector.shape_cast %35 : vector<1x1x4x128xbf16> to vector<4x128xbf16>
    %cst_30 = arith.constant dense<0.000000e+00> : vector<256x128xf32>
    %37 = tpu.matmul %34, %36, %cst_30 {dimension_numbers = #tpu.dot_dimension_numbers<[1], [0], [0], [1], [0, 0, 1, 1], [], []>} : vector<256x4xbf16>, vector<4x128xbf16>, vector<256x128xf32> -> vector<256x128xf32>
    %38 = arith.addf %29, %37 : vector<256x128xf32>
    %c1_i32_31 = arith.constant 1 : i32
    %39 = arith.addi %1, %c1_i32_31 : i32
    %c0_32 = arith.constant 0 : index
    %40 = arith.index_cast %39 : i32 to index
    %c1_33 = arith.constant 1 : index
    %c0_34 = arith.constant 0 : index
    %41 = vector.load %arg2[%c0_32, %40, %c1_33, %c0_34] : memref<1x18x18x4xbf16, #tpu.memory_space<vmem>>, vector<1x16x16x4xbf16>
    %42 = vector.shape_cast %41 : vector<1x16x16x4xbf16> to vector<16x16x4xbf16>
    %43 = vector.shape_cast %42 : vector<16x16x4xbf16> to vector<256x4xbf16>
    %c1_35 = arith.constant 1 : index
    %c1_36 = arith.constant 1 : index
    %c0_37 = arith.constant 0 : index
    %c0_38 = arith.constant 0 : index
    %44 = vector.load %arg3[%c1_35, %c1_36, %c0_37, %c0_38] : memref<3x3x4x128xbf16, #tpu.memory_space<vmem>>, vector<1x1x4x128xbf16>
    %45 = vector.shape_cast %44 : vector<1x1x4x128xbf16> to vector<4x128xbf16>
    %cst_39 = arith.constant dense<0.000000e+00> : vector<256x128xf32>
    %46 = tpu.matmul %43, %45, %cst_39 {dimension_numbers = #tpu.dot_dimension_numbers<[1], [0], [0], [1], [0, 0, 1, 1], [], []>} : vector<256x4xbf16>, vector<4x128xbf16>, vector<256x128xf32> -> vector<256x128xf32>
    %47 = arith.addf %38, %46 : vector<256x128xf32>
    %c1_i32_40 = arith.constant 1 : i32
    %48 = arith.addi %1, %c1_i32_40 : i32
    %c0_41 = arith.constant 0 : index
    %49 = arith.index_cast %48 : i32 to index
    %c2_42 = arith.constant 2 : index
    %c0_43 = arith.constant 0 : index
    %50 = vector.load %arg2[%c0_41, %49, %c2_42, %c0_43] : memref<1x18x18x4xbf16, #tpu.memory_space<vmem>>, vector<1x16x16x4xbf16>
    %51 = vector.shape_cast %50 : vector<1x16x16x4xbf16> to vector<16x16x4xbf16>
    %52 = vector.shape_cast %51 : vector<16x16x4xbf16> to vector<256x4xbf16>
    %c1_44 = arith.constant 1 : index
    %c2_45 = arith.constant 2 : index
    %c0_46 = arith.constant 0 : index
    %c0_47 = arith.constant 0 : index
    %53 = vector.load %arg3[%c1_44, %c2_45, %c0_46, %c0_47] : memref<3x3x4x128xbf16, #tpu.memory_space<vmem>>, vector<1x1x4x128xbf16>
    %54 = vector.shape_cast %53 : vector<1x1x4x128xbf16> to vector<4x128xbf16>
    %cst_48 = arith.constant dense<0.000000e+00> : vector<256x128xf32>
    %55 = tpu.matmul %52, %54, %cst_48 {dimension_numbers = #tpu.dot_dimension_numbers<[1], [0], [0], [1], [0, 0, 1, 1], [], []>} : vector<256x4xbf16>, vector<4x128xbf16>, vector<256x128xf32> -> vector<256x128xf32>
    %56 = arith.addf %47, %55 : vector<256x128xf32>
    %c2_i32 = arith.constant 2 : i32
    %57 = arith.addi %1, %c2_i32 : i32
    %c0_49 = arith.constant 0 : index
    %58 = arith.index_cast %57 : i32 to index
    %c0_50 = arith.constant 0 : index
    %c0_51 = arith.constant 0 : index
    %59 = vector.load %arg2[%c0_49, %58, %c0_50, %c0_51] : memref<1x18x18x4xbf16, #tpu.memory_space<vmem>>, vector<1x16x16x4xbf16>
    %60 = vector.shape_cast %59 : vector<1x16x16x4xbf16> to vector<16x16x4xbf16>
    %61 = vector.shape_cast %60 : vector<16x16x4xbf16> to vector<256x4xbf16>
    %c2_52 = arith.constant 2 : index
    %c0_53 = arith.constant 0 : index
    %c0_54 = arith.constant 0 : index
    %c0_55 = arith.constant 0 : index
    %62 = vector.load %arg3[%c2_52, %c0_53, %c0_54, %c0_55] : memref<3x3x4x128xbf16, #tpu.memory_space<vmem>>, vector<1x1x4x128xbf16>
    %63 = vector.shape_cast %62 : vector<1x1x4x128xbf16> to vector<4x128xbf16>
    %cst_56 = arith.constant dense<0.000000e+00> : vector<256x128xf32>
    %64 = tpu.matmul %61, %63, %cst_56 {dimension_numbers = #tpu.dot_dimension_numbers<[1], [0], [0], [1], [0, 0, 1, 1], [], []>} : vector<256x4xbf16>, vector<4x128xbf16>, vector<256x128xf32> -> vector<256x128xf32>
    %65 = arith.addf %56, %64 : vector<256x128xf32>
    %c2_i32_57 = arith.constant 2 : i32
    %66 = arith.addi %1, %c2_i32_57 : i32
    %c0_58 = arith.constant 0 : index
    %67 = arith.index_cast %66 : i32 to index
    %c1_59 = arith.constant 1 : index
    %c0_60 = arith.constant 0 : index
    %68 = vector.load %arg2[%c0_58, %67, %c1_59, %c0_60] : memref<1x18x18x4xbf16, #tpu.memory_space<vmem>>, vector<1x16x16x4xbf16>
    %69 = vector.shape_cast %68 : vector<1x16x16x4xbf16> to vector<16x16x4xbf16>
    %70 = vector.shape_cast %69 : vector<16x16x4xbf16> to vector<256x4xbf16>
    %c2_61 = arith.constant 2 : index
    %c1_62 = arith.constant 1 : index
    %c0_63 = arith.constant 0 : index
    %c0_64 = arith.constant 0 : index
    %71 = vector.load %arg3[%c2_61, %c1_62, %c0_63, %c0_64] : memref<3x3x4x128xbf16, #tpu.memory_space<vmem>>, vector<1x1x4x128xbf16>
    %72 = vector.shape_cast %71 : vector<1x1x4x128xbf16> to vector<4x128xbf16>
    %cst_65 = arith.constant dense<0.000000e+00> : vector<256x128xf32>
    %73 = tpu.matmul %70, %72, %cst_65 {dimension_numbers = #tpu.dot_dimension_numbers<[1], [0], [0], [1], [0, 0, 1, 1], [], []>} : vector<256x4xbf16>, vector<4x128xbf16>, vector<256x128xf32> -> vector<256x128xf32>
    %74 = arith.addf %65, %73 : vector<256x128xf32>
    %c2_i32_66 = arith.constant 2 : i32
    %75 = arith.addi %1, %c2_i32_66 : i32
    %c0_67 = arith.constant 0 : index
    %76 = arith.index_cast %75 : i32 to index
    %c2_68 = arith.constant 2 : index
    %c0_69 = arith.constant 0 : index
    %77 = vector.load %arg2[%c0_67, %76, %c2_68, %c0_69] : memref<1x18x18x4xbf16, #tpu.memory_space<vmem>>, vector<1x16x16x4xbf16>
    %78 = vector.shape_cast %77 : vector<1x16x16x4xbf16> to vector<16x16x4xbf16>
    %79 = vector.shape_cast %78 : vector<16x16x4xbf16> to vector<256x4xbf16>
    %c2_70 = arith.constant 2 : index
    %c2_71 = arith.constant 2 : index
    %c0_72 = arith.constant 0 : index
    %c0_73 = arith.constant 0 : index
    %80 = vector.load %arg3[%c2_70, %c2_71, %c0_72, %c0_73] : memref<3x3x4x128xbf16, #tpu.memory_space<vmem>>, vector<1x1x4x128xbf16>
    %81 = vector.shape_cast %80 : vector<1x1x4x128xbf16> to vector<4x128xbf16>
    %cst_74 = arith.constant dense<0.000000e+00> : vector<256x128xf32>
    %82 = tpu.matmul %79, %81, %cst_74 {dimension_numbers = #tpu.dot_dimension_numbers<[1], [0], [0], [1], [0, 0, 1, 1], [], []>} : vector<256x4xbf16>, vector<4x128xbf16>, vector<256x128xf32> -> vector<256x128xf32>
    %83 = arith.addf %74, %82 : vector<256x128xf32>
    %c0_75 = arith.constant 0 : index
    %c0_76 = arith.constant 0 : index
    %84 = vector.load %arg4[%c0_75, %c0_76] : memref<1x128xf32, #tpu.memory_space<vmem>>, vector<1x128xf32>
    %85 = vector.broadcast %84 : vector<1x128xf32> to vector<256x128xf32>
    %86 = arith.mulf %83, %85 : vector<256x128xf32>
    %c0_77 = arith.constant 0 : index
    %c0_78 = arith.constant 0 : index
    %87 = vector.load %arg5[%c0_77, %c0_78] : memref<1x128xf32, #tpu.memory_space<vmem>>, vector<1x128xf32>
    %88 = vector.broadcast %87 : vector<1x128xf32> to vector<256x128xf32>
    %89 = arith.addf %86, %88 : vector<256x128xf32>
    %cst_79 = arith.constant 0.000000e+00 : f32
    %90 = vector.broadcast %cst_79 : f32 to vector<256x128xf32>
    %91 = arith.maximumf %89, %90 : vector<256x128xf32>
    %92 = vector.extract_strided_slice %91 {offsets = [0, 0], sizes = [256, 8], strides = [1, 1]} : vector<256x128xf32> to vector<256x8xf32>
    %93 = vector.shape_cast %92 : vector<256x8xf32> to vector<16x16x8xf32>
    %c0_80 = arith.constant 0 : index
    %c0_81 = arith.constant 0 : index
    %c0_82 = arith.constant 0 : index
    %c0_83 = arith.constant 0 : index
    %94 = vector.load %arg6[%c0_80, %c0_81, %c0_82, %c0_83] : memref<1x16x16x8xf32, #tpu.memory_space<vmem>>, vector<1x16x16x8xf32>
    %95 = vector.shape_cast %94 : vector<1x16x16x8xf32> to vector<16x16x8xf32>
    %96 = vector.shape_cast %93 : vector<16x16x8xf32> to vector<1x16x16x8xf32>
    tpu.vector_store %arg6[%c0_80, %c0_81, %c0_82, %c0_83], %96 {strides = array<i32>} : memref<1x16x16x8xf32, #tpu.memory_space<vmem>>, vector<1x16x16x8xf32>,
    return
  }
  func.func @transform_0(%arg0: i32, %arg1: i32) -> (i32, i32, i32, i32) {
    %c0_i32 = arith.constant 0 : i32
    %c0_i32_0 = arith.constant 0 : i32
    %c0_i32_1 = arith.constant 0 : i32
    %c0_i32_2 = arith.constant 0 : i32
    return %arg0, %c0_i32, %c0_i32_0, %c0_i32_1 : i32, i32, i32, i32
  }
  func.func @transform_1(%arg0: i32, %arg1: i32) -> (i32, i32, i32, i32) {
    %c0_i32 = arith.constant 0 : i32
    %c0_i32_0 = arith.constant 0 : i32
    %c0_i32_1 = arith.constant 0 : i32
    %c0_i32_2 = arith.constant 0 : i32
    %c0_i32_3 = arith.constant 0 : i32
    return %c0_i32, %c0_i32_0, %c0_i32_1, %c0_i32_2 : i32, i32, i32, i32
  }
  func.func @transform_2(%arg0: i32, %arg1: i32) -> (i32, i32) {
    %c0_i32 = arith.constant 0 : i32
    %c0_i32_0 = arith.constant 0 : i32
    %c0_i32_1 = arith.constant 0 : i32
    return %c0_i32, %c0_i32_0 : i32, i32
  }
  func.func @transform_3(%arg0: i32, %arg1: i32) -> (i32, i32) {
    %c0_i32 = arith.constant 0 : i32
    %c0_i32_0 = arith.constant 0 : i32
    %c0_i32_1 = arith.constant 0 : i32
    return %c0_i32, %c0_i32_0 : i32, i32
  }
  func.func @transform_4(%arg0: i32, %arg1: i32) -> (i32, i32, i32, i32) {
    %c0_i32 = arith.constant 0 : i32
    %c0_i32_0 = arith.constant 0 : i32
    %c0_i32_1 = arith.constant 0 : i32
    return %arg0, %arg1, %c0_i32, %c0_i32_0 : i32, i32, i32, i32
  }
}

</mosaic_0001>

<bundles_post_ra>
// kernel: conv2d_bn_relu.2
= control target key start
LH: loop header
LB: loop body
LE: loop exit
PB: predicated region body
PF: predicated region fallthrough
CT: control target
= control target key end

     0   :  { %s6413_s12 = smov 0   ;;  %s6415_s13 = smov 0   ;;  %s8167_s0 = inlined_call_operand.vmem [shape: bf16[2,18,18,4], index: 0, kind: input, shape index: {}]   ;;  %s8168_s1 = inlined_call_operand.vmem [shape: bf16[3,3,4,128], index: 1, kind: input, shape index: {}]   ;;  %s8169_s2 = inlined_call_operand.vmem [shape: f32[2,1,128], index: 2, kind: output, shape index: {0}]   ;;  %s8170_s3 = inlined_call_operand.vmem [shape: f32[2,1,128], index: 3, kind: output, shape index: {1}]  }
   0x1   :  { %s6417_s14 = smov 0  }
   0x2 LB: > { %s26_s15 = sadd.s32 1, %s6386_s13  ;;  %p4970_p0 = scmp.ge.s32.totalorder %s6390_s14, 1  ;;  %s6390_s14 = sphi %s6417_s14, %s14_s14   ;;  %s6386_s13 = sphi %s6415_s13, %s8239_s13   ;;  %s6382_s12 = sphi %s6413_s12, %s8238_s12  }
   0x3   : > { %p28_p1 = scmp.ge.s32.totalorder %s26_s15, 2  ;;  %p152_p2 = scmp.lt.s32.totalorder %s6390_s14, 3 }
   0x5   : > { %s8241_s15 = smov (%p28_p1, %s26_s15), 0  ;;  %p153_p3 = pnand %p4970_p0, %p152_p2 }
   0x7   : > { %156 = sbr.rel (%p153_p3) target bundleno = 606 (0x25e), region = 28 }
   0xe   : > { %v4972_v0 = vld [vmem:[%s8168_s1 + $0x2] sm:$0x3]  ;;  %vm734_vm0 = vcmask 1041408   ;;  %v5199_v1 = vld [vmem:[%s8168_s1 + $0x8] sm:$0x3]  ;;  %p177_p4 = scmp.lt.s32.totalorder %s6382_s12, 1 }
   0xf   : > { %6227 = vmatprep.subr.msk.bf16.mxu1 %vm734_vm0, %v4972_v0  ;;  %6231 = vmatprep.subr.msk.bf16.mxu0 %vm734_vm0, %v5199_v1  ;;  %v736_v2 = vsel %vm734_vm0, %v4972_v0, 0  ;;  %v6441_v3 = vsel %vm734_vm0, %v5199_v1, 0  ;;  %v231_v4 = vld [vmem:[%s8168_s1] sm:$0x3]  ;;  %v5264_v5 = vld [vmem:[%s8168_s1 + $0xa] sm:$0x3] }
  0x10   : > { %8184 = vst [vmem:[#allocation2_spill] sm:$0xff] %v6441_v3  ;;  %5664 = vmatpush3.bf16.msra.mxu1 %v736_v2  ;;  %5800 = vmatpush3.bf16.msra.mxu0 %v6441_v3  ;;  %s8243_s12 = smov (!%p177_p4, %s6382_s12), 1  ;;  %vm248_vm1 = vsmask.f32 3328  ;;  %vm249_vm2 = vsmask.f32 7440 }
  0x11   : > { %6228 = vmatprep.subr.msk.bf16.mxu1 %vm734_vm0, %v231_v4  ;;  %6233 = vmatprep.subr.msk.bf16.mxu0 %vm734_vm0, %v5264_v5  ;;  %s6237_s24 = smul.u32 216, %s8243_s12  ;;  %vm685_vm3 = vcmask 31744   ;;  %v6471_v17 = vsel %vm734_vm0, %v231_v4, 0  ;;  %v6477_v26 = vld [vmem:[%s8168_s1 + $0xc] sm:$0x3]  ;;  %vm6484_vm4 = vmor %vm248_vm1, %vm249_vm2  ;;  %v6490_v37 = vsel %vm734_vm0, %v5264_v5, 0  ;;  %s8138_s21 = scalar_lea.vmem %s8169_s2, %s8243_s12 }
  0x12   : > { %v6494_v41 = vsel %vm734_vm0, %v6477_v26, 0  ;;  %vm1239_vm5 = vcmask 1042432   ;;  %vm1240_vm6 = vcmask 1046532   ;;  %v6392_v32 = vmov 0.0  }
  0x13   : > { %s6458_s27 = scalar_lea.vmem %s8167_s0, %s6237_s24  ;;  %vm6710_vm7 = vmor %vm1239_vm5, %vm1240_vm6  ;;  %s8144_s24 = scalar_lea.vmem %s8170_s3, %s8243_s12  ;;  %193 = vst [vmem:[%s8138_s21] sm:$0x1] %v6392_v32 }
  0x14   : > { %v199_v6 = vld [vmem:[%s6458_s27] sm:$0xf]  ;;  %v200_v7 = vld [vmem:[%s6458_s27 + $0x4] sm:$0xf]  ;;  %v232_v8 = vld [vmem:[%s6458_s27 + $0x8] sm:$0x1] }
  0x15   : > { %v252_v9 = vshrl.u32 %v199_v6, 16  ;;  %v255_v10 = vshll.u32 %v199_v6, 16  ;;  %v261_v11 = vshll.u32 %v200_v7, 16  ;;  %v265_v12 = vshrl.u32 %v200_v7, 16  ;;  %v5151_v13 = vld [vmem:[%s6458_s27 + $0xc] sm:$0xf] }
  0x16   : > { %v271_v14 = vshll.u32 %v232_v8, 16  ;;  %v6465_v15 = vld [vmem:[%s6458_s27 + $0x10] sm:$0xf]  ;;  %v6468_v16 = vld [vmem:[%s6458_s27 + $0x14] sm:$0x1]  ;;  %v2059_v23 = vshrl.u32 %v5151_v13, 16 }
  0x17   : > { %v254_v18 = vrot.slane %v252_v9, 4  ;;  %v257_v19 = vrot.slane %v255_v10, 5  ;;  %v263_v20 = vrot.slane %v261_v11, 5  ;;  %v267_v21 = vrot.slane %v265_v12, 4  ;;  %v201_v31 = vld [vmem:[%s6458_s27 + $0xc] sm:$0xf] }
  0x18   : > { %v273_v22 = vrot.slane %v271_v14, 5  ;;  %v2062_v24 = vshll.u32 %v5151_v13, 16  ;;  %v2068_v25 = vshll.u32 %v6465_v15, 16  ;;  %v2072_v29 = vshrl.u32 %v6465_v15, 16  ;;  %v202_v36 = vld [vmem:[%s6458_s27 + $0x10] sm:$0xf] }
  0x19   : > { %v258_v27 = vor.u32 %v257_v19, %v254_v18  ;;  %v268_v28 = vor.u32 %v267_v21, %v263_v20  ;;  %v2078_v30 = vshll.u32 %v6468_v16, 16  ;;  %v2061_v33 = vrot.slane %v2059_v23, 4  ;;  %v233_v44 = vld [vmem:[%s6458_s27 + $0x14] sm:$0x1]  ;;  %v5154_v55 = vld [vmem:[%s6458_s27 + $0x18] sm:$0xf] }
  0x1a   : > { %v2064_v34 = vrot.slane %v2062_v24, 5  ;;  %v2070_v35 = vrot.slane %v2068_v25, 5  ;;  %v2074_v40 = vrot.slane %v2072_v29, 4  ;;  %v276_v45 = vshrl.u32 %v201_v31, 16  ;;  %v6503_v60 = vld [vmem:[%s6458_s27 + $0x1c] sm:$0xf] }
  0x1b   : > { %v259_v38 = vrot.slane %v258_v27, 4  ;;  %v269_v39 = vrot.slane %v268_v28, 4  ;;  %v2080_v43 = vrot.slane %v2078_v30, 5  ;;  %v279_v46 = vshll.u32 %v201_v31, 16  ;;  %v6511_v1 = vld [vmem:[%s6458_s27 + $0x20] sm:$0x1] }
  0x1c   : > { %v2065_v42 = vor.u32 %v2064_v34, %v2061_v33  ;;  %v2075_v49 = vor.u32 %v2074_v40, %v2070_v35  ;;  %v285_v50 = vshll.u32 %v202_v36, 16  ;;  %v278_v53 = vrot.slane %v276_v45, 4  ;;  %v203_v18 = vld [vmem:[%s6458_s27 + $0x18] sm:$0xf]  ;;  %v204_v23 = vld [vmem:[%s6458_s27 + $0x1c] sm:$0xf] }
  0x1d   : > { %v264_v47 = vsel %vm6484_vm4, %v259_v38, %v263_v20  ;;  %v274_v48 = vsel %vm6484_vm4, %v269_v39, %v273_v22  ;;  %v281_v54 = vrot.slane %v279_v46, 5  ;;  %v289_v58 = vshrl.u32 %v202_v36, 16  ;;  %v234_v31 = vld [vmem:[%s6458_s27 + $0x20] sm:$0x1]  ;;  %v5157_v40 = vld [vmem:[%s6458_s27 + $0x24] sm:$0xf] }
  0x1e   : > { %v4973_v51 = vcombine.low %v264_v47, %v274_v48  ;;  %v2066_v52 = vrot.slane %v2065_v42, 4  ;;  %v2076_v56 = vrot.slane %v2075_v49, 4  ;;  %v287_v57 = vrot.slane %v285_v50, 5  ;;  %v6534_v46 = vld [vmem:[%s6458_s27 + $0x28] sm:$0xf]  ;;  %194 = vst [vmem:[%s8144_s24] sm:$0x1] %v6392_v32 }
  0x1f   : > { %v295_v59 = vshll.u32 %v233_v44, 16  ;;  %v2802_v62 = vrot.slane %v6465_v15, 5  ;;  %v2805_v63 = vrot.slane %v6468_v16, 5  ;;  %v282_v0 = vor.u32 %v281_v54, %v278_v53  ;;  %v6543_v54 = vld [vmem:[%s6458_s27 + $0x2c] sm:$0x1] }
  0x20   : > { %5665 = vmatprep.mubr.msk.bf16.mxu1 %vm685_vm3, %v4973_v51  ;;  %v2071_v61 = vsel %vm6484_vm4, %v2066_v52, %v2070_v35  ;;  %v2081_v2 = vsel %vm6484_vm4, %v2076_v56, %v2080_v43  ;;  %v291_v4 = vrot.slane %v289_v58, 4  ;;  %v2083_v6 = vshrl.u32 %v5154_v55, 16  ;;  %v5053_v51 = vld [vmem:[%s8168_s1 + $0x4] sm:$0x3]  ;;  %v6743_v16 = vld [vmem:[%s6458_s27 + $0x7c] sm:$0xf] }
  0x21   : > { %v297_v5 = vrot.slane %v295_v59, 5  ;;  %v5200_v7 = vcombine.low %v2071_v61, %v2081_v2  ;;  %v283_v8 = vrot.slane %v282_v0, 4  ;;  %v2086_v9 = vshll.u32 %v5154_v55, 16  ;;  %v205_v0 = vld [vmem:[%s6458_s27 + $0x24] sm:$0xf] }
  0x22   : > { %v2092_v10 = vshll.u32 %v6503_v60, 16  ;;  %v292_v11 = vor.u32 %v291_v4, %v287_v57  ;;  %v2085_v12 = vrot.slane %v2083_v6, 4  ;;  %v2096_v13 = vshrl.u32 %v6503_v60, 16 }
  0x23   : > { %v2102_v14 = vshll.u32 %v6511_v1, 16  ;;  %5801 = vmatprep.mubr.msk.bf16.mxu0 %vm685_vm3, %v5200_v7  ;;  %v288_v19 = vsel %vm6484_vm4, %v283_v8, %v287_v57  ;;  %v2088_v20 = vrot.slane %v2086_v9, 5  ;;  %v2809_v22 = vrot.slane %v6503_v60, 5  ;;  %v206_v7 = vld [vmem:[%s6458_s27 + $0x28] sm:$0xf] }
  0x24   : > { %v2094_v21 = vrot.slane %v2092_v10, 5  ;;  %v293_v24 = vrot.slane %v292_v11, 4  ;;  %v2098_v25 = vrot.slane %v2096_v13, 4  ;;  %v2812_v28 = vrot.slane %v6511_v1, 5  ;;  %v235_v13 = vld [vmem:[%s6458_s27 + $0x2c] sm:$0x1] }
  0x25   : > { %v2104_v27 = vrot.slane %v2102_v14, 5  ;;  %v2089_v29 = vor.u32 %v2088_v20, %v2085_v12  ;;  %v6527_v30 = vrot.slane %v2809_v22, 4  ;;  %v300_v33 = vshrl.u32 %v203_v18, 16 }
  0x26   : > { %v303_v34 = vshll.u32 %v203_v18, 16  ;;  %v298_v35 = vsel %vm6484_vm4, %v293_v24, %v297_v5  ;;  %v2099_v36 = vor.u32 %v2098_v25, %v2094_v21  ;;  %v309_v38 = vshll.u32 %v204_v23, 16  ;;  %v5160_v24 = vld [vmem:[%s6458_s27 + $0x30] sm:$0xf] }
  0x27   : > { %v313_v39 = vshrl.u32 %v204_v23, 16  ;;  %v4974_v42 = vcombine.low %v288_v19, %v298_v35  ;;  %v2090_v43 = vrot.slane %v2089_v29, 4  ;;  %v302_v44 = vrot.slane %v300_v33, 4  ;;  %v6563_v33 = vld [vmem:[%s6458_s27 + $0x34] sm:$0xf] }
  0x28   : > { %v305_v45 = vrot.slane %v303_v34, 5  ;;  %v2100_v47 = vrot.slane %v2099_v36, 4  ;;  %v311_v48 = vrot.slane %v309_v38, 5  ;;  %v319_v50 = vshll.u32 %v234_v31, 16 }
  0x29   : > { %v315_v49 = vrot.slane %v313_v39, 4  ;;  %5666 = vmatmul.mubr.msk.bf16.vlgmr.msra.gmra.mrb[0].mxu1 %vm685_vm3, %v4974_v42  ;;  %v2095_v52 = vsel %vm6484_vm4, %v2090_v43, %v2094_v21  ;;  %v2107_v55 = vshrl.u32 %v5157_v40, 16  ;;  %v2110_v56 = vshll.u32 %v5157_v40, 16  ;;  %v6571_v40 = vld [vmem:[%s6458_s27 + $0x38] sm:$0x1] }
  0x2a   : > { %v306_v53 = vor.u32 %v305_v45, %v302_v44  ;;  %5698 = vmatpush3.bf16.msra.mxu1 %v6471_v17  ;;  %v2105_v57 = vsel %vm6484_vm4, %v2100_v47, %v2104_v27  ;;  %v321_v59 = vrot.slane %v319_v50, 5  ;;  %v2116_v61 = vshll.u32 %v6534_v46, 16 }
  0x2b   : > { %v316_v58 = vor.u32 %v315_v49, %v311_v48  ;;  %v5201_v2 = vcombine.low %v2095_v52, %v2105_v57  ;;  %v2109_v5 = vrot.slane %v2107_v55, 4  ;;  %v2112_v6 = vrot.slane %v2110_v56, 5  ;;  %6229 = vmatprep.subr.msk.bf16.mxu1 %vm734_vm0, %v5053_v51  ;;  %v207_v52 = vld [vmem:[%s6458_s27 + $0x30] sm:$0xf] }
  0x2c   : > { %v307_v4 = vrot.slane %v306_v53, 4  ;;  %v2118_v9 = vrot.slane %v2116_v61, 5  ;;  %v2120_v17 = vshrl.u32 %v6534_v46, 16  ;;  %v2126_v10 = vshll.u32 %v6543_v54, 16 }
  0x2d   : > { %v317_v8 = vrot.slane %v316_v58, 4  ;;  %5802 = vmatmul.mubr.msk.bf16.vlgmr.msra.gmra.mrb[0].mxu0 %vm685_vm3, %v5201_v2  ;;  %v2113_v12 = vor.u32 %v2112_v6, %v2109_v5  ;;  %v324_v14 = vshrl.u32 %v205_v0, 16  ;;  %v327_v18 = vshll.u32 %v205_v0, 16  ;;  %v208_v58 = vld [vmem:[%s6458_s27 + $0x34] sm:$0xf] }
  0x2e   : > { %v312_v11 = vsel %vm6484_vm4, %v307_v4, %v311_v48  ;;  %5834 = vmatpush3.bf16.msra.mxu0 %v6490_v37  ;;  %v2122_v20 = vrot.slane %v2120_v17, 4  ;;  %v2128_v21 = vrot.slane %v2126_v10, 5  ;;  %v333_v23 = vshll.u32 %v206_v7, 16  ;;  %v236_v4 = vld [vmem:[%s6458_s27 + $0x38] sm:$0x1] }
  0x2f   : > { %v322_v19 = vsel %vm6484_vm4, %v317_v8, %v321_v59  ;;  %v2114_v27 = vrot.slane %v2113_v12, 4  ;;  %v326_v29 = vrot.slane %v324_v14, 4  ;;  %v329_v31 = vrot.slane %v327_v18, 5  ;;  %6234 = vmatprep.subr.msk.bf16.mxu0 %vm734_vm0, %v6477_v26  ;;  %v5163_v12 = vld [vmem:[%s6458_s27 + $0x3c] sm:$0xf] }
  0x30   : > { %v4975_v25 = vcombine.low %v312_v11, %v322_v19  ;;  %v2123_v34 = vor.u32 %v2122_v20, %v2118_v9  ;;  %v335_v35 = vrot.slane %v333_v23, 5  ;;  %v337_v37 = vshrl.u32 %v206_v7, 16  ;;  %v6588_v20 = vld [vmem:[%s6458_s27 + $0x40] sm:$0xf] }
  0x31   : > { %v343_v36 = vshll.u32 %v235_v13, 16  ;;  %v2119_v38 = vsel %vm6484_vm4, %v2114_v27, %v2118_v9  ;;  %v330_v39 = vor.u32 %v329_v31, %v326_v29  ;;  %v2131_v42 = vshrl.u32 %v5160_v24, 16 }
  0x32   : > { %5669 = vmatprep.mubr.msk.bf16.mxu1 %vm685_vm3, %v4975_v25  ;;  %v2134_v43 = vshll.u32 %v5160_v24, 16  ;;  %v2124_v44 = vrot.slane %v2123_v34, 4  ;;  %v339_v45 = vrot.slane %v337_v37, 4  ;;  %v2140_v26 = vshll.u32 %v6563_v33, 16  ;;  %v6593_v34 = vld [vmem:[%s6458_s27 + $0x44] sm:$0x1] }
  0x33   : > { %v345_v47 = vrot.slane %v343_v36, 5  ;;  %v331_v48 = vrot.slane %v330_v39, 4  ;;  %v2133_v49 = vrot.slane %v2131_v42, 4  ;;  %v2144_v51 = vshrl.u32 %v6563_v33, 16  ;;  %v209_v42 = vld [vmem:[%s6458_s27 + $0x3c] sm:$0xf] }
  0x34   : > { %v2136_v50 = vrot.slane %v2134_v43, 5  ;;  %v2129_v53 = vsel %vm6484_vm4, %v2124_v44, %v2128_v21  ;;  %v340_v55 = vor.u32 %v339_v45, %v335_v35  ;;  %v2142_v56 = vrot.slane %v2140_v26, 5  ;;  %v210_v26 = vld [vmem:[%s6458_s27 + $0x40] sm:$0xf] }
  0x35   : > { %v2150_v57 = vshll.u32 %v6571_v40, 16  ;;  %v5202_v59 = vcombine.low %v2119_v38, %v2129_v53  ;;  %v336_v61 = vsel %vm6484_vm4, %v331_v48, %v335_v35  ;;  %v2146_v2 = vrot.slane %v2144_v51, 4 }
  0x36   : > { %v2137_v0 = vor.u32 %v2136_v50, %v2133_v49  ;;  %v341_v5 = vrot.slane %v340_v55, 4  ;;  %v348_v7 = vshrl.u32 %v207_v52, 16  ;;  %v351_v8 = vshll.u32 %v207_v52, 16 }
  0x37   : > { %v2152_v6 = vrot.slane %v2150_v57, 5  ;;  %5805 = vmatprep.mubr.msk.bf16.mxu0 %vm685_vm3, %v5202_v59  ;;  %v2147_v17 = vor.u32 %v2146_v2, %v2142_v56  ;;  %v357_v10 = vshll.u32 %v208_v58, 16  ;;  %v361_v11 = vshrl.u32 %v208_v58, 16  ;;  %v5166_v2 = vld [vmem:[%s6458_s27 + $0x48] sm:$0xf] }
  0x38   : > { %v2138_v9 = vrot.slane %v2137_v0, 4  ;;  %v346_v13 = vsel %vm6484_vm4, %v341_v5, %v345_v47  ;;  %v350_v14 = vrot.slane %v348_v7, 4  ;;  %v353_v18 = vrot.slane %v351_v8, 5  ;;  %v6611_v8 = vld [vmem:[%s6458_s27 + $0x4c] sm:$0xf] }
  0x39   : > { %v367_v19 = vshll.u32 %v236_v4, 16  ;;  %v4976_v21 = vcombine.low %v336_v61, %v346_v13  ;;  %v2148_v24 = vrot.slane %v2147_v17, 4  ;;  %v359_v25 = vrot.slane %v357_v10, 5  ;;  %v237_v61 = vld [vmem:[%s6458_s27 + $0x44] sm:$0x1] }
  0x3a   : > { %v2143_v23 = vsel %vm6484_vm4, %v2138_v9, %v2142_v56  ;;  %v354_v27 = vor.u32 %v353_v18, %v350_v14  ;;  %v363_v29 = vrot.slane %v361_v11, 4  ;;  %v2155_v35 = vshrl.u32 %v5163_v12, 16 }
  0x3b   : > { %v369_v31 = vrot.slane %v367_v19, 5  ;;  %5670 = vmatmul.mubr.msk.bf16.gmra.mrb[4].mxu1 %vm685_vm3, %v4976_v21  ;;  %v2153_v37 = vsel %vm6484_vm4, %v2148_v24, %v2152_v6  ;;  %v2158_v36 = vshll.u32 %v5163_v12, 16  ;;  %v2164_v38 = vshll.u32 %v6588_v20, 16 }
  0x3c   : > { %v2168_v39 = vshrl.u32 %v6588_v20, 16  ;;  %v5203_v43 = vcombine.low %v2143_v23, %v2153_v37  ;;  %v355_v44 = vrot.slane %v354_v27, 4  ;;  %v364_v45 = vor.u32 %v363_v29, %v359_v25  ;;  %v6619_v23 = vld [vmem:[%s6458_s27 + $0x50] sm:$0x1]  ;;  %v6623_v27 = vld [vmem:[%s6458_s27 + $0x48] sm:$0xf] }
  0x3d   : > { %v2157_v47 = vrot.slane %v2155_v35, 4  ;;  %v2160_v48 = vrot.slane %v2158_v36, 5  ;;  %v2166_v49 = vrot.slane %v2164_v38, 5  ;;  %v2174_v51 = vshll.u32 %v6593_v34, 16  ;;  %v6626_v36 = vld [vmem:[%s6458_s27 + $0x4c] sm:$0xf] }
  0x3e   : > { %v2170_v50 = vrot.slane %v2168_v39, 4  ;;  %5806 = vmatmul.mubr.msk.bf16.gmra.mrb[4].mxu0 %vm685_vm3, %v5203_v43  ;;  %v360_v52 = vsel %vm6484_vm4, %v355_v44, %v359_v25  ;;  %v365_v53 = vrot.slane %v364_v45, 4  ;;  %v372_v55 = vshrl.u32 %v209_v42, 16 }
  0x3f   : > { %v375_v56 = vshll.u32 %v209_v42, 16  ;;  %v2161_v57 = vor.u32 %v2160_v48, %v2157_v47  ;;  %v2176_v59 = vrot.slane %v2174_v51, 5  ;;  %v381_v0 = vshll.u32 %v210_v26, 16 }
  0x40   : > { %v2171_v58 = vor.u32 %v2170_v50, %v2166_v49  ;;  %v370_v4 = vsel %vm6484_vm4, %v365_v53, %v369_v31  ;;  %v374_v5 = vrot.slane %v372_v55, 4  ;;  %v385_v7 = vshrl.u32 %v210_v26, 16  ;;  %v238_v26 = vld [vmem:[%s6458_s27 + $0x50] sm:$0x1]  ;;  %v5169_v53 = vld [vmem:[%s6458_s27 + $0x54] sm:$0xf] }
  0x41   : > { %v377_v6 = vrot.slane %v375_v56, 5  ;;  %v4977_v9 = vcombine.low %v360_v52, %v370_v4  ;;  %v2162_v17 = vrot.slane %v2161_v57, 4  ;;  %v383_v11 = vrot.slane %v381_v0, 5  ;;  %v6642_v4 = vld [vmem:[%s6458_s27 + $0x58] sm:$0xf] }
  0x42   : > { %v2172_v10 = vrot.slane %v2171_v58, 4  ;;  %v387_v13 = vrot.slane %v385_v7, 4  ;;  %v391_v14 = vshll.u32 %v237_v61, 16  ;;  %v2179_v18 = vshrl.u32 %v5166_v2, 16 }
  0x43   : > { %v378_v12 = vor.u32 %v377_v6, %v374_v5  ;;  %5673 = vmatprep.mubr.msk.bf16.mxu1 %vm685_vm3, %v4977_v9  ;;  %v2167_v19 = vsel %vm6484_vm4, %v2162_v17, %v2166_v49  ;;  %v2182_v24 = vshll.u32 %v5166_v2, 16  ;;  %v2188_v25 = vshll.u32 %v6611_v8, 16 }
  0x44   : > { %v2177_v21 = vsel %vm6484_vm4, %v2172_v10, %v2176_v59  ;;  %v388_v35 = vor.u32 %v387_v13, %v383_v11  ;;  %v393_v37 = vrot.slane %v391_v14, 5  ;;  %v2181_v38 = vrot.slane %v2179_v18, 4 }
  0x45   : > { %v5204_v29 = vcombine.low %v2167_v19, %v2177_v21  ;;  %v379_v31 = vrot.slane %v378_v12, 4  ;;  %v2184_v39 = vrot.slane %v2182_v24, 5  ;;  %v2190_v42 = vrot.slane %v2188_v25, 5  ;;  %v6648_v12 = vld [vmem:[%s6458_s27 + $0x5c] sm:$0x1] }
  0x46   : > { %v2192_v43 = vshrl.u32 %v6611_v8, 16  ;;  %v389_v45 = vrot.slane %v388_v35, 4  ;;  %v2198_v47 = vshll.u32 %v6619_v23, 16  ;;  %v396_v48 = vshrl.u32 %v6623_v27, 16  ;;  %v6652_v24 = vld [vmem:[%s6458_s27 + $0x54] sm:$0xf] }
  0x47   : > { %5809 = vmatprep.mubr.msk.bf16.mxu0 %vm685_vm3, %v5204_v29  ;;  %v384_v44 = vsel %vm6484_vm4, %v379_v31, %v383_v11  ;;  %v2185_v49 = vor.u32 %v2184_v39, %v2181_v38  ;;  %v399_v51 = vshll.u32 %v6623_v27, 16  ;;  %v405_v52 = vshll.u32 %v6626_v36, 16 }
  0x48   : > { %v2194_v50 = vrot.slane %v2192_v43, 4  ;;  %v394_v55 = vsel %vm6484_vm4, %v389_v45, %v393_v37  ;;  %v2200_v56 = vrot.slane %v2198_v47, 5  ;;  %v398_v57 = vrot.slane %v396_v48, 4  ;;  %v6658_v37 = vld [vmem:[%s6458_s27 + $0x58] sm:$0xf] }
  0x49   : > { %v409_v58 = vshrl.u32 %v6626_v36, 16  ;;  %v4978_v59 = vcombine.low %v384_v44, %v394_v55  ;;  %v2186_v61 = vrot.slane %v2185_v49, 4  ;;  %v401_v2 = vrot.slane %v399_v51, 5 }
  0x4a   : > { %v2195_v0 = vor.u32 %v2194_v50, %v2190_v42  ;;  %v407_v5 = vrot.slane %v405_v52, 5  ;;  %v415_v7 = vshll.u32 %v238_v26, 16  ;;  %v2203_v9 = vshrl.u32 %v5169_v53, 16  ;;  %v239_v26 = vld [vmem:[%s6458_s27 + $0x5c] sm:$0x1] }
  0x4b   : > { %v411_v6 = vrot.slane %v409_v58, 4  ;;  %5674 = vmatmul.mubr.msk.bf16.gmra.mrb[8].mxu1 %vm685_vm3, %v4978_v59  ;;  %v2191_v17 = vsel %vm6484_vm4, %v2186_v61, %v2190_v42  ;;  %v402_v11 = vor.u32 %v401_v2, %v398_v57  ;;  %v2206_v13 = vshll.u32 %v5169_v53, 16  ;;  %v5172_v53 = vld [vmem:[%s6458_s27 + $0x60] sm:$0xf]  ;;  %v6672_v59 = vld [vmem:[%s6458_s27 + $0x64] sm:$0xf] }
  0x4c   : > { %v2196_v10 = vrot.slane %v2195_v0, 4  ;;  %v417_v18 = vrot.slane %v415_v7, 5  ;;  %v2205_v19 = vrot.slane %v2203_v9, 4  ;;  %v2212_v21 = vshll.u32 %v6642_v4, 16  ;;  %v6679_v9 = vld [vmem:[%s6458_s27 + $0x68] sm:$0x1] }
  0x4d   : > { %v412_v14 = vor.u32 %v411_v6, %v407_v5  ;;  %v403_v29 = vrot.slane %v402_v11, 4  ;;  %v2208_v31 = vrot.slane %v2206_v13, 5  ;;  %v2216_v35 = vshrl.u32 %v6642_v4, 16 }
  0x4e   : > { %v2201_v25 = vsel %vm6484_vm4, %v2196_v10, %v2200_v56  ;;  %v2214_v42 = vrot.slane %v2212_v21, 5  ;;  %v2222_v43 = vshll.u32 %v6648_v12, 16  ;;  %v420_v48 = vshrl.u32 %v6652_v24, 16 }
  0x4f   : > { %v5205_v38 = vcombine.low %v2191_v17, %v2201_v25  ;;  %v413_v39 = vrot.slane %v412_v14, 4  ;;  %v408_v44 = vsel %vm6484_vm4, %v403_v29, %v407_v5  ;;  %v2209_v45 = vor.u32 %v2208_v31, %v2205_v19  ;;  %v6683_v19 = vld [vmem:[%s6458_s27 + $0x60] sm:$0xf] }
  0x50   : > { %v2218_v47 = vrot.slane %v2216_v35, 4  ;;  %v2224_v50 = vrot.slane %v2222_v43, 5  ;;  %v423_v51 = vshll.u32 %v6652_v24, 16  ;;  %v429_v52 = vshll.u32 %v6658_v37, 16  ;;  %v6689_v35 = vld [vmem:[%s6458_s27 + $0x64] sm:$0xf] }
  0x51   : > { %5810 = vmatmul.mubr.msk.bf16.gmra.mrb[8].mxu0 %vm685_vm3, %v5205_v38  ;;  %v418_v49 = vsel %vm6484_vm4, %v413_v39, %v417_v18  ;;  %v2210_v56 = vrot.slane %v2209_v45, 4  ;;  %v422_v58 = vrot.slane %v420_v48, 4  ;;  %v433_v2 = vshrl.u32 %v6658_v37, 16 }
  0x52   : > { %v4979_v55 = vcombine.low %v408_v44, %v418_v49  ;;  %v2219_v57 = vor.u32 %v2218_v47, %v2214_v42  ;;  %v425_v61 = vrot.slane %v423_v51, 5  ;;  %v431_v0 = vrot.slane %v429_v52, 5 }
  0x53   : > { %v439_v5 = vshll.u32 %v239_v26, 16  ;;  %v2215_v6 = vsel %vm6484_vm4, %v2210_v56, %v2214_v42  ;;  %v2227_v17 = vshrl.u32 %v5172_v53, 16  ;;  %v2230_v10 = vshll.u32 %v5172_v53, 16 }
  0x54   : > { %5677 = vmatprep.mubr.msk.bf16.mxu1 %vm685_vm3, %v4979_v55  ;;  %v2220_v7 = vrot.slane %v2219_v57, 4  ;;  %v426_v11 = vor.u32 %v425_v61, %v422_v58  ;;  %v435_v13 = vrot.slane %v433_v2, 4  ;;  %v2236_v18 = vshll.u32 %v6672_v59, 16  ;;  %v5232_v58 = vld [vmem:[%s6458_s27 + $0xc] sm:$0xe] }
  0x55   : > { %v441_v14 = vrot.slane %v439_v5, 5  ;;  %v2229_v25 = vrot.slane %v2227_v17, 4  ;;  %v2232_v29 = vrot.slane %v2230_v10, 5  ;;  %v2240_v31 = vshrl.u32 %v6672_v59, 16 }
  0x56   : > { %v2225_v21 = vsel %vm6484_vm4, %v2220_v7, %v2224_v50  ;;  %v427_v39 = vrot.slane %v426_v11, 4  ;;  %v436_v42 = vor.u32 %v435_v13, %v431_v0  ;;  %v2238_v43 = vrot.slane %v2236_v18, 5  ;;  %v240_v50 = vld [vmem:[%s6458_s27 + $0x68] sm:$0x1] }
  0x57   : > { %v5206_v38 = vcombine.low %v2215_v6, %v2225_v21  ;;  %v2233_v44 = vor.u32 %v2232_v29, %v2229_v25  ;;  %v2242_v45 = vrot.slane %v2240_v31, 4  ;;  %v2246_v47 = vshll.u32 %v6679_v9, 16  ;;  %v6717_v29 = vld [vmem:[%s6458_s27 + $0x70] sm:$0xf] }
  0x58   : > { %v444_v26 = vshrl.u32 %v6683_v19, 16  ;;  %v432_v48 = vsel %vm6484_vm4, %v427_v39, %v431_v0  ;;  %v437_v49 = vrot.slane %v436_v42, 4  ;;  %v447_v51 = vshll.u32 %v6683_v19, 16  ;;  %v6704_v0 = vld [vmem:[%s6458_s27 + $0x6c] sm:$0xf] }
  0x59   : > { %5813 = vmatprep.mubr.msk.bf16.mxu0 %vm685_vm3, %v5206_v38  ;;  %v453_v52 = vshll.u32 %v6689_v35, 16  ;;  %v2234_v53 = vrot.slane %v2233_v44, 4  ;;  %v2243_v55 = vor.u32 %v2242_v45, %v2238_v43  ;;  %v2248_v56 = vrot.slane %v2246_v47, 5 }
  0x5a   : > { %v446_v57 = vrot.slane %v444_v26, 4  ;;  %v442_v61 = vsel %vm6484_vm4, %v437_v49, %v441_v14  ;;  %v449_v2 = vrot.slane %v447_v51, 5  ;;  %v457_v6 = vshrl.u32 %v6689_v35, 16  ;;  %v241_v26 = vld [vmem:[%s6458_s27 + $0x74] sm:$0x1] }
  0x5b   : > { %v455_v5 = vrot.slane %v453_v52, 5  ;;  %v4980_v7 = vcombine.low %v432_v48, %v442_v61  ;;  %v2239_v17 = vsel %vm6484_vm4, %v2234_v53, %v2238_v43  ;;  %v2244_v10 = vrot.slane %v2243_v55, 4  ;;  %v5233_v48 = vld [vmem:[%s6458_s27 + $0x18] sm:$0xe] }
  0x5c   : > { %v463_v11 = vshll.u32 %v240_v50, 16  ;;  %v450_v14 = vor.u32 %v449_v2, %v446_v57  ;;  %v459_v18 = vrot.slane %v457_v6, 4  ;;  %v5248_v21 = vrot.slane %v5232_v58, 9  ;;  %v6736_v53 = vld [vmem:[%s6458_s27 + $0x78] sm:$0xf] }
  0x5d   : > { %v2804_v25 = vrot.slane %v2802_v62, 4  ;;  %5678 = vmatmul.mubr.msk.bf16.gmra.mrb[12].mxu1 %vm685_vm3, %v4980_v7  ;;  %v2249_v31 = vsel %vm6484_vm4, %v2244_v10, %v2248_v56  ;;  %v468_v39 = vshrl.u32 %v6704_v0, 16  ;;  %v471_v42 = vshll.u32 %v6704_v0, 16  ;;  %v242_v57 = vld [vmem:[%s6458_s27 + $0x80] sm:$0x1] }
  0x5e   : > { %v465_v38 = vrot.slane %v463_v11, 5  ;;  %v5207_v43 = vcombine.low %v2239_v17, %v2249_v31  ;;  %v451_v44 = vrot.slane %v450_v14, 4  ;;  %v460_v45 = vor.u32 %v459_v18, %v455_v5  ;;  %v5234_v10 = vld [vmem:[%s6458_s27 + $0x24] sm:$0xe] }
  0x5f   : > { %v2803_v47 = vsel %vm6710_vm7, %v5248_v21, %v2802_v62  ;;  %v2806_v49 = vsel %vm6710_vm7, %v2804_v25, %v2805_v63  ;;  %v470_v50 = vrot.slane %v468_v39, 4  ;;  %v473_v51 = vrot.slane %v471_v42, 5  ;;  %v6762_v39 = vld [vmem:[%s6458_s27 + $0x84] sm:$0xf] }
  0x60   : > { %v477_v52 = vshll.u32 %v6717_v29, 16  ;;  %5814 = vmatmul.mubr.msk.bf16.gmra.mrb[12].mxu0 %vm685_vm3, %v5207_v43  ;;  %v456_v15 = vsel %vm6484_vm4, %v451_v44, %v455_v5  ;;  %v461_v62 = vrot.slane %v460_v45, 4  ;;  %v5265_v55 = vcombine.low %v2803_v47, %v2806_v49  ;;  %v6770_v43 = vld [vmem:[%s6458_s27 + $0x88] sm:$0xf] }
  0x61   : > { %v481_v56 = vshrl.u32 %v6717_v29, 16  ;;  %v474_v63 = vor.u32 %v473_v51, %v470_v50  ;;  %v487_v61 = vshll.u32 %v241_v26, 16  ;;  %v5249_v2 = vrot.slane %v5233_v48, 9 }
  0x62   : > { %v479_v58 = vrot.slane %v477_v52, 5  ;;  %v466_v6 = vsel %vm6484_vm4, %v461_v62, %v465_v38  ;;  %5835 = vmatprep.mubr.msk.bf16.mxu0 %vm685_vm3, %v5265_v55  ;;  %v2813_v5 = vsel %vm6710_vm7, %v6527_v30, %v2812_v28  ;;  %v492_v17 = vshrl.u32 %v6736_v53, 16  ;;  %v243_v52 = vld [vmem:[%s6458_s27 + $0x8c] sm:$0x1] }
  0x63   : > { %v483_v7 = vrot.slane %v481_v56, 4  ;;  %v4981_v11 = vcombine.low %v456_v15, %v466_v6  ;;  %v475_v14 = vrot.slane %v474_v63, 4  ;;  %v489_v18 = vrot.slane %v487_v61, 5 }
  0x64   : > { %v2810_v21 = vsel %vm6710_vm7, %v5249_v2, %v2809_v22  ;;  %v494_v38 = vrot.slane %v492_v17, 4  ;;  %v495_v1 = vshll.u32 %v6736_v53, 16  ;;  %v501_v30 = vshll.u32 %v6743_v16, 16  ;;  %v6775_v22 = vld [vmem:[%s8168_s1 + $0xe] sm:$0x3] }
  0x65   : > { %v484_v25 = vor.u32 %v483_v7, %v479_v58  ;;  %v5266_v31 = vcombine.low %v2810_v21, %v2813_v5  ;;  %5681 = vmatprep.mubr.msk.bf16.mxu1 %vm685_vm3, %v4981_v11  ;;  %v480_v28 = vsel %vm6484_vm4, %v475_v14, %v479_v58  ;;  %v505_v60 = vshrl.u32 %v6743_v16, 16  ;;  %v6794_v5 = vld [vmem:[%s6458_s27 + $0x90] sm:$0xf] }
  0x66   : > { %v511_v42 = vshll.u32 %v242_v57, 16  ;;  %v497_v45 = vrot.slane %v495_v1, 5  ;;  %v5250_v47 = vrot.slane %v5234_v10, 9  ;;  %v2816_v26 = vrot.slane %v6534_v46, 5  ;;  %v5235_v57 = vld [vmem:[%s6458_s27 + $0x30] sm:$0xe] }
  0x67   : > { %v485_v44 = vrot.slane %v484_v25, 4  ;;  %v503_v48 = vrot.slane %v501_v30, 5  ;;  %v507_v49 = vrot.slane %v505_v60, 4  ;;  %v2819_v51 = vrot.slane %v6543_v54, 5  ;;  %v6806_v30 = vld [vmem:[%s6458_s27 + $0x94] sm:$0xf] }
  0x68   : > { %v513_v50 = vrot.slane %v511_v42, 5  ;;  %5836 = vmatmul.mubr.msk.bf16.vlgmr.msra.gmra.mrb[0].mxu0 %vm685_vm3, %v5266_v31  ;;  %v498_v62 = vor.u32 %v497_v45, %v494_v38  ;;  %v2817_v55 = vsel %vm6710_vm7, %v5250_v47, %v2816_v26  ;;  %v2818_v56 = vrot.slane %v2816_v26, 4  ;;  %v244_v60 = vld [vmem:[%s6458_s27 + $0x98] sm:$0x1]  ;;  %v5236_v26 = vld [vmem:[%s6458_s27 + $0x3c] sm:$0xe] }
  0x69   : > { %v490_v15 = vsel %vm6484_vm4, %v485_v44, %v489_v18  ;;  %5868 = vmatpush3.bf16.msra.mxu0 %v6494_v41  ;;  %v508_v46 = vor.u32 %v507_v49, %v503_v48  ;;  %v516_v58 = vshrl.u32 %v6762_v39, 16  ;;  %v519_v54 = vshll.u32 %v6762_v39, 16 }
  0x6a   : > { %v4982_v63 = vcombine.low %v480_v28, %v490_v15  ;;  %v499_v61 = vrot.slane %v498_v62, 4  ;;  %v2820_v2 = vsel %vm6710_vm7, %v2818_v56, %v2819_v51  ;;  %v525_v6 = vshll.u32 %v6770_v43, 16  ;;  %6235 = vmatprep.subr.msk.bf16.mxu0 %vm734_vm0, %v6775_v22 }
  0x6b   : > { %v529_v7 = vshrl.u32 %v6770_v43, 16  ;;  %v509_v41 = vrot.slane %v508_v46, 4  ;;  %v5267_v17 = vcombine.low %v2817_v55, %v2820_v2  ;;  %v518_v10 = vrot.slane %v516_v58, 4  ;;  %v6826_v46 = vld [vmem:[%s6458_s27 + $0xa0] sm:$0xf] }
  0x6c   : > { %5682 = vmatmul.mubr.msk.bf16.gmra.mrb[16].mxu1 %vm685_vm3, %v4982_v63  ;;  %v521_v11 = vrot.slane %v519_v54, 5  ;;  %v504_v14 = vsel %vm6484_vm4, %v499_v61, %v503_v48  ;;  %v527_v18 = vrot.slane %v525_v6, 5  ;;  %v535_v25 = vshll.u32 %v243_v52, 16  ;;  %v6815_v52 = vld [vmem:[%s6458_s27 + $0x9c] sm:$0xf] }
  0x6d   : > { %v531_v21 = vrot.slane %v529_v7, 4  ;;  %v514_v31 = vsel %vm6484_vm4, %v509_v41, %v513_v50  ;;  %5839 = vmatprep.mubr.msk.bf16.mxu0 %vm685_vm3, %v5267_v17  ;;  %v5251_v1 = vrot.slane %v5235_v57, 9  ;;  %v2823_v28 = vrot.slane %v6563_v33, 5 }
  0x6e   : > { %v522_v38 = vor.u32 %v521_v11, %v518_v10  ;;  %v4983_v42 = vcombine.low %v504_v14, %v514_v31  ;;  %v537_v45 = vrot.slane %v535_v25, 5  ;;  %v2826_v47 = vrot.slane %v6571_v40, 5  ;;  %v245_v10 = vld [vmem:[%s6458_s27 + $0xa4] sm:$0x1]  ;;  %v5237_v11 = vld [vmem:[%s6458_s27 + $0x48] sm:$0xe] }
  0x6f   : > { %v532_v44 = vor.u32 %v531_v21, %v527_v18  ;;  %v2824_v49 = vsel %vm6710_vm7, %v5251_v1, %v2823_v28  ;;  %v2825_v50 = vrot.slane %v2823_v28, 4  ;;  %v540_v51 = vshrl.u32 %v6794_v5, 16 }
  0x70   : > { %v523_v48 = vrot.slane %v522_v38, 4  ;;  %5685 = vmatprep.mubr.msk.bf16.mxu1 %vm685_vm3, %v4983_v42  ;;  %v543_v15 = vshll.u32 %v6794_v5, 16  ;;  %v549_v62 = vshll.u32 %v6806_v30, 16  ;;  %v553_v40 = vshrl.u32 %v6806_v30, 16 }
  0x71   : > { %v533_v33 = vrot.slane %v532_v44, 4  ;;  %v2827_v56 = vsel %vm6710_vm7, %v2825_v50, %v2826_v47  ;;  %v542_v57 = vrot.slane %v540_v51, 4  ;;  %v559_v63 = vshll.u32 %v244_v60, 16 }
  0x72   : > { %v528_v55 = vsel %vm6484_vm4, %v523_v48, %v527_v18  ;;  %v5268_v54 = vcombine.low %v2824_v49, %v2827_v56  ;;  %v545_v61 = vrot.slane %v543_v15, 5  ;;  %v551_v2 = vrot.slane %v549_v62, 5  ;;  %v6852_v56 = vld [vmem:[%s6458_s27 + $0xac] sm:$0xf] }
  0x73   : > { %v538_v58 = vsel %vm6484_vm4, %v533_v33, %v537_v45  ;;  %v555_v7 = vrot.slane %v553_v40, 4  ;;  %v561_v41 = vrot.slane %v559_v63, 5  ;;  %v5252_v17 = vrot.slane %v5236_v26, 9  ;;  %v6847_v33 = vld [vmem:[%s6458_s27 + $0xa8] sm:$0xf] }
  0x74   : > { %v4984_v6 = vcombine.low %v528_v55, %v538_v58  ;;  %5840 = vmatmul.mubr.msk.bf16.gmra.mrb[4].mxu0 %vm685_vm3, %v5268_v54  ;;  %v546_v14 = vor.u32 %v545_v61, %v542_v57  ;;  %v2830_v18 = vrot.slane %v6588_v20, 5  ;;  %v2833_v21 = vrot.slane %v6593_v34, 5  ;;  %v246_v61 = vld [vmem:[%s6458_s27 + $0xb0] sm:$0x1] }
  0x75   : > { %v564_v25 = vshrl.u32 %v6815_v52, 16  ;;  %v556_v31 = vor.u32 %v555_v7, %v551_v2  ;;  %v567_v38 = vshll.u32 %v6815_v52, 16  ;;  %v573_v1 = vshll.u32 %v6826_v46, 16 }
  0x76   : > { %5686 = vmatmul.mubr.msk.bf16.gmra.mrb[20].mxu1 %vm685_vm3, %v4984_v6  ;;  %v577_v28 = vshrl.u32 %v6826_v46, 16  ;;  %v547_v60 = vrot.slane %v546_v14, 4  ;;  %v2831_v42 = vsel %vm6710_vm7, %v5252_v17, %v2830_v18  ;;  %v2832_v20 = vrot.slane %v2830_v18, 4  ;;  %v6867_v14 = vld [vmem:[%s6458_s27 + $0xb4] sm:$0xf] }
  0x77   : > { %v566_v44 = vrot.slane %v564_v25, 4  ;;  %v557_v34 = vrot.slane %v556_v31, 4  ;;  %v569_v45 = vrot.slane %v567_v38, 5  ;;  %v575_v47 = vrot.slane %v573_v1, 5 }
  0x78   : > { %v579_v26 = vrot.slane %v577_v28, 4  ;;  %v552_v48 = vsel %vm6484_vm4, %v547_v60, %v551_v2  ;;  %v2834_v49 = vsel %vm6710_vm7, %v2832_v20, %v2833_v21  ;;  %v583_v50 = vshll.u32 %v245_v10, 16  ;;  %v5238_v2 = vld [vmem:[%s6458_s27 + $0x54] sm:$0xe] }
  0x79   : > { %v5253_v51 = vrot.slane %v5237_v11, 9  ;;  %v562_v15 = vsel %vm6484_vm4, %v557_v34, %v561_v41  ;;  %v5269_v62 = vcombine.low %v2831_v42, %v2834_v49  ;;  %v570_v40 = vor.u32 %v569_v45, %v566_v44  ;;  %v6876_v42 = vld [vmem:[%s6458_s27 + $0xb8] sm:$0xf]  ;;  %v247_v49 = vld [vmem:[%s6458_s27 + $0xbc] sm:$0x1] }
  0x7a   : > { %v580_v55 = vor.u32 %v579_v26, %v575_v47  ;;  %v4985_v57 = vcombine.low %v552_v48, %v562_v15  ;;  %v585_v63 = vrot.slane %v583_v50, 5  ;;  %v2837_v58 = vrot.slane %v6611_v8, 5 }
  0x7b   : > { %v2840_v54 = vrot.slane %v6619_v23, 5  ;;  %5843 = vmatprep.mubr.msk.bf16.mxu0 %vm685_vm3, %v5269_v62  ;;  %v571_v6 = vrot.slane %v570_v40, 4  ;;  %v588_v41 = vshrl.u32 %v6847_v33, 16  ;;  %v591_v17 = vshll.u32 %v6847_v33, 16 }
  0x7c   : > { %v581_v7 = vrot.slane %v580_v55, 4  ;;  %5689 = vmatprep.mubr.msk.bf16.mxu1 %vm685_vm3, %v4985_v57  ;;  %v2838_v10 = vsel %vm6710_vm7, %v5253_v51, %v2837_v58  ;;  %v2839_v11 = vrot.slane %v2837_v58, 4  ;;  %v597_v8 = vshll.u32 %v6852_v56, 16  ;;  %v5239_v55 = vld [vmem:[%s6458_s27 + $0x60] sm:$0xe] }
  0x7d   : > { %v601_v23 = vshrl.u32 %v6852_v56, 16  ;;  %v576_v18 = vsel %vm6484_vm4, %v571_v6, %v575_v47  ;;  %v590_v25 = vrot.slane %v588_v41, 4  ;;  %v593_v31 = vrot.slane %v591_v17, 5  ;;  %v5240_v6 = vld [vmem:[%s6458_s27 + $0x6c] sm:$0xe] }
  0x7e   : > { %v586_v21 = vsel %vm6484_vm4, %v581_v7, %v585_v63  ;;  %v2841_v1 = vsel %vm6710_vm7, %v2839_v11, %v2840_v54  ;;  %v599_v28 = vrot.slane %v597_v8, 5  ;;  %v607_v34 = vshll.u32 %v246_v61, 16  ;;  %v5176_v11 = vld [vmem:[%s6458_s27 + $0x70] sm:$0xf]  ;;  %v5177_v8 = vld [vmem:[%s6458_s27 + $0x74] sm:$0x1] }
  0x7f   : > { %v4986_v38 = vcombine.low %v576_v18, %v586_v21  ;;  %v603_v60 = vrot.slane %v601_v23, 4  ;;  %v5270_v20 = vcombine.low %v2838_v10, %v2841_v1  ;;  %v594_v44 = vor.u32 %v593_v31, %v590_v25 }
  0x80   : > { %v5254_v45 = vrot.slane %v5238_v2, 9  ;;  %v2844_v26 = vrot.slane %v6642_v4, 5  ;;  %v2847_v48 = vrot.slane %v6648_v12, 5  ;;  %v612_v50 = vshrl.u32 %v6867_v14, 16 }
  0x81   : > { %5690 = vmatmul.mubr.msk.bf16.gmra.mrb[24].mxu1 %vm685_vm3, %v4986_v38  ;;  %v604_v47 = vor.u32 %v603_v60, %v599_v28  ;;  %5844 = vmatmul.mubr.msk.bf16.gmra.mrb[8].mxu0 %vm685_vm3, %v5270_v20  ;;  %v595_v51 = vrot.slane %v594_v44, 4  ;;  %v609_v15 = vrot.slane %v607_v34, 5  ;;  %v615_v62 = vshll.u32 %v6867_v14, 16 }
  0x82   : > { %v621_v40 = vshll.u32 %v6876_v42, 16  ;;  %v2845_v4 = vsel %vm6710_vm7, %v5254_v45, %v2844_v26  ;;  %v2846_v12 = vrot.slane %v2844_v26, 4  ;;  %v614_v63 = vrot.slane %v612_v50, 4 }
  0x83   : > { %v605_v57 = vrot.slane %v604_v47, 4  ;;  %v600_v58 = vsel %vm6484_vm4, %v595_v51, %v599_v28  ;;  %v617_v54 = vrot.slane %v615_v62, 5  ;;  %v625_v2 = vshrl.u32 %v6876_v42, 16  ;;  %v5241_v47 = vld [vmem:[%s6458_s27 + $0x78] sm:$0xe] }
  0x84   : > { %v623_v61 = vrot.slane %v621_v40, 5  ;;  %v2848_v41 = vsel %vm6710_vm7, %v2846_v12, %v2847_v48  ;;  %v631_v17 = vshll.u32 %v247_v49, 16  ;;  %v5255_v10 = vrot.slane %v5239_v55, 9  ;;  %v6311_v51 = vld [vmem:[%s6458_s27] sm:$0xf] }
  0x85   : > { %v610_v7 = vsel %vm6484_vm4, %v605_v57, %v609_v15  ;;  %v5271_v18 = vcombine.low %v2845_v4, %v2848_v41  ;;  %v618_v21 = vor.u32 %v617_v54, %v614_v63  ;;  %v627_v25 = vrot.slane %v625_v2, 4  ;;  %v6914_v15 = vld [vmem:[%s6458_s27 + $0x4] sm:$0xf]  ;;  %v6918_v40 = vld [vmem:[%s6458_s27 + $0x7c] sm:$0xf] }
  0x86   : > { %v4987_v23 = vcombine.low %v600_v58, %v610_v7  ;;  %v633_v31 = vrot.slane %v631_v17, 5  ;;  %v2851_v38 = vrot.slane %v6672_v59, 5  ;;  %v2854_v1 = vrot.slane %v6679_v9, 5  ;;  %v6921_v55 = vld [vmem:[%s6458_s27 + $0x80] sm:$0x1] }
  0x87   : > { %v5256_v28 = vrot.slane %v5240_v6, 9  ;;  %5847 = vmatprep.mubr.msk.bf16.mxu0 %vm685_vm3, %v5271_v18  ;;  %v619_v60 = vrot.slane %v618_v21, 4  ;;  %v628_v20 = vor.u32 %v627_v25, %v623_v61  ;;  %v2858_v44 = vrot.slane %v5176_v11, 5  ;;  %v5182_v57 = vld [vmem:[%s6458_s27 + $0x88] sm:$0xf] }
  0x88   : > { %5693 = vmatprep.mubr.msk.bf16.mxu1 %vm685_vm3, %v4987_v23  ;;  %v2861_v34 = vrot.slane %v5177_v8, 5  ;;  %v2852_v45 = vsel %vm6710_vm7, %v5255_v10, %v2851_v38  ;;  %v2853_v59 = vrot.slane %v2851_v38, 4  ;;  %v5005_v62 = vcombine.low %v6311_v51, %v6914_v15  ;;  %v5183_v54 = vld [vmem:[%s6458_s27 + $0x8c] sm:$0x1]  ;;  %v5185_v17 = vld [vmem:[%s6458_s27 + $0x94] sm:$0xf] }
  0x89   : > { %v624_v9 = vsel %vm6484_vm4, %v619_v60, %v623_v61  ;;  %v629_v26 = vrot.slane %v628_v20, 4  ;;  %v2859_v48 = vsel %vm6710_vm7, %v5256_v28, %v2858_v44  ;;  %v2860_v49 = vrot.slane %v2858_v44, 4  ;;  %v5242_v61 = vld [vmem:[%s6458_s27 + $0x84] sm:$0xe]  ;;  %v5243_v23 = vld [vmem:[%s6458_s27 + $0x90] sm:$0xe] }
  0x8a   : > { %v2855_v50 = vsel %vm6710_vm7, %v2853_v59, %v2854_v1  ;;  %v5257_v58 = vrot.slane %v5241_v47, 9  ;;  %v2865_v7 = vrot.slane %v6918_v40, 5  ;;  %v2868_v41 = vrot.slane %v6921_v55, 5  ;;  %v5186_v25 = vld [vmem:[%s6458_s27 + $0x98] sm:$0x1] }
  0x8b   : > { %v634_v4 = vsel %vm6484_vm4, %v629_v26, %v633_v31  ;;  %v5272_v12 = vcombine.low %v2852_v45, %v2855_v50  ;;  %v2862_v63 = vsel %vm6710_vm7, %v2860_v49, %v2861_v34  ;;  %v5258_v10 = vrot.slane %v5242_v61, 9  ;;  %v5188_v31 = vld [vmem:[%s6458_s27 + $0xa0] sm:$0xf]  ;;  %v5189_v60 = vld [vmem:[%s6458_s27 + $0xa4] sm:$0x1] }
  0x8c   : > { %v4988_v2 = vcombine.low %v624_v9, %v634_v4  ;;  %v5273_v6 = vcombine.low %v2859_v48, %v2862_v63  ;;  %v2872_v11 = vrot.slane %v5182_v57, 5  ;;  %v2875_v8 = vrot.slane %v5183_v54, 5  ;;  %v5244_v20 = vld [vmem:[%s6458_s27 + $0x9c] sm:$0xe]  ;;  %v6313_v44 = vld [vmem:[%s6458_s27 + $0xc] sm:$0xf] }
  0x8d   : > { %5848 = vmatmul.mubr.msk.bf16.gmra.mrb[12].mxu0 %vm685_vm3, %v5272_v12  ;;  %v2866_v18 = vsel %vm6710_vm7, %v5257_v58, %v2865_v7  ;;  %v2867_v21 = vrot.slane %v2865_v7, 4  ;;  %v2879_v28 = vrot.slane %v5185_v17, 5  ;;  %v6948_v34 = vld [vmem:[%s6458_s27 + $0x10] sm:$0xf]  ;;  %v6315_v47 = vld [vmem:[%s6458_s27 + $0x18] sm:$0xf] }
  0x8e   : > { %5694 = vmatmul.mubr.msk.bf16.gmra.mrb[28].mxu1 %vm685_vm3, %v4988_v2  ;;  %5851 = vmatprep.mubr.msk.bf16.mxu0 %vm685_vm3, %v5273_v6  ;;  %v2873_v38 = vsel %vm6710_vm7, %v5258_v10, %v2872_v11  ;;  %v2874_v1 = vrot.slane %v2872_v11, 4  ;;  %v5006_v45 = vcombine.low %v6313_v44, %v6948_v34  ;;  %v6955_v9 = vld [vmem:[%s6458_s27 + $0x1c] sm:$0xf]  ;;  %v5259_v48 = vrot.slane %v5243_v23, 9  ;;  %v5191_v57 = vld [vmem:[%s6458_s27 + $0xac] sm:$0xf] }
  0x8f   : > { %5699 = vmatprep.mubr.msk.bf16.mxu1 %vm685_vm3, %v5005_v62  ;;  %v2869_v59 = vsel %vm6710_vm7, %v2867_v21, %v2868_v41  ;;  %v5007_v26 = vcombine.low %v6315_v47, %v6955_v9  ;;  %v2881_v51 = vrot.slane %v2879_v28, 4  ;;  %v2882_v62 = vrot.slane %v5186_v25, 5  ;;  %v6317_v54 = vld [vmem:[%s8168_s1 + $0x4] sm:$0x3]  ;;  %v5194_v2 = vld [vmem:[%s6458_s27 + $0xb8] sm:$0xf] }
  0x90   : > { %v5274_v49 = vcombine.low %v2866_v18, %v2869_v59  ;;  %v2876_v50 = vsel %vm6710_vm7, %v2874_v1, %v2875_v8  ;;  %v5260_v12 = vrot.slane %v5244_v20, 9  ;;  %v2886_v63 = vrot.slane %v5188_v31, 5  ;;  %v6970_v7 = vld [vmem:[%s8168_s1 + $0x6] sm:$0x3]  ;;  %v5192_v10 = vld [vmem:[%s6458_s27 + $0xb0] sm:$0x1] }
  0x91   : > { %v5275_v4 = vcombine.low %v2873_v38, %v2876_v50  ;;  %v2889_v58 = vrot.slane %v5189_v60, 5  ;;  %v1453_v61 = vsel %vm734_vm0, %v6317_v54, 0  ;;  %v2880_v41 = vsel %vm6710_vm7, %v5259_v48, %v2879_v28  ;;  %v5245_v11 = vld [vmem:[%s6458_s27 + $0xa8] sm:$0xe]  ;;  %v5195_v25 = vld [vmem:[%s6458_s27 + $0xbc] sm:$0x1] }
  0x92   : > { %v2888_v6 = vrot.slane %v2886_v63, 4  ;;  %v2883_v17 = vsel %vm6710_vm7, %v2881_v51, %v2882_v62  ;;  %v2893_v8 = vrot.slane %v5191_v57, 5  ;;  %v2887_v23 = vsel %vm6710_vm7, %v5260_v12, %v2886_v63  ;;  %v5246_v31 = vld [vmem:[%s6458_s27 + $0xb4] sm:$0xe]  ;;  %v6318_v38 = vld [vmem:[%s6458_s27 + $0x24] sm:$0xf] }
  0x93   : > { %v2900_v21 = vrot.slane %v5194_v2, 5  ;;  %v6991_v1 = vld [vmem:[%s6458_s27 + $0x28] sm:$0xf]  ;;  %v5276_v60 = vcombine.low %v2880_v41, %v2883_v17  ;;  %v5261_v44 = vrot.slane %v5245_v11, 9  ;;  %v2896_v59 = vrot.slane %v5192_v10, 5 }
  0x94   : > { %v2890_v18 = vsel %vm6710_vm7, %v2888_v6, %v2889_v58  ;;  %v5008_v28 = vcombine.low %v6318_v38, %v6991_v1  ;;  %v6320_v47 = vld [vmem:[%s6458_s27 + $0x30] sm:$0xf]  ;;  %v2903_v51 = vrot.slane %v5195_v25, 5  ;;  %v5197_v62 = vld [vmem:[%s6458_s27 + $0xc4] sm:$0xf]  ;;  %v2288_v25 = vshrl.u32 %v6918_v40, 16 }
  0x95   : > { %5852 = vmatmul.mubr.msk.bf16.gmra.mrb[16].mxu0 %vm685_vm3, %v5274_v49  ;;  %v5277_v20 = vcombine.low %v2887_v23, %v2890_v18  ;;  %v5262_v49 = vrot.slane %v5246_v31, 9  ;;  %v2902_v50 = vrot.slane %v2900_v21, 4  ;;  %v2894_v57 = vsel %vm6710_vm7, %v5261_v44, %v2893_v8  ;;  %v5247_v12 = vld [vmem:[%s6458_s27 + $0xc0] sm:$0xe]  ;;  %v6322_v41 = vld [vmem:[%s6458_s27 + $0x3c] sm:$0xf] }
  0x96   : > { %5700 = vmatmul.mubr.msk.bf16.vlgmr.msra.gmra.mrb[0].mxu1 %vm685_vm3, %v5006_v45  ;;  %5855 = vmatprep.mubr.msk.bf16.mxu0 %vm685_vm3, %v5275_v4  ;;  %v2895_v45 = vrot.slane %v2893_v8, 4  ;;  %v2907_v63 = vrot.slane %v5197_v62, 5  ;;  %v5263_v6 = vrot.slane %v5247_v12, 9  ;;  %v7016_v17 = vld [vmem:[%s6458_s27 + $0x40] sm:$0xf]  ;;  %v5011_v18 = vcombine.low %v6623_v27, %v6626_v36  ;;  %v6274_v62 = vld [vmem:[%s6458_s27 + $0x24] sm:$0xff]  }
  0x97   : > { %5732 = vmatpush3.bf16.msra.mxu1 %v1453_v61  ;;  %5703 = vmatprep.mubr.msk.bf16.mxu1 %vm685_vm3, %v5007_v26  ;;  %v6996_v26 = vld [vmem:[%s6458_s27 + $0x34] sm:$0xf]  ;;  %v2901_v58 = vsel %vm6710_vm7, %v5262_v49, %v2900_v21  ;;  %v2904_v54 = vsel %vm6710_vm7, %v2902_v50, %v2903_v51  ;;  %v5198_v61 = vld [vmem:[%s6458_s27 + $0xc8] sm:$0x1]  ;;  %v5010_v10 = vcombine.low %v6322_v41, %v7016_v17  ;;  %v2284_v21 = vshll.u32 %v6918_v40, 16 }
  0x98   : > { %6230 = vmatprep.subr.msk.bf16.mxu1 %vm734_vm0, %v6970_v7  ;;  %v5009_v48 = vcombine.low %v6320_v47, %v6996_v26  ;;  %v2897_v4 = vsel %vm6710_vm7, %v2895_v45, %v2896_v59  ;;  %v5279_v11 = vcombine.low %v2901_v58, %v2904_v54  ;;  %v2909_v8 = vrot.slane %v2907_v63, 4  ;;  %v1191_v45 = vld [vmem:[%s6458_s27] sm:$0xe]  ;;  %v1192_v59 = vld [vmem:[%s6458_s27 + $0xc] sm:$0xe] }
  0x99   : > { %v5278_v2 = vcombine.low %v2894_v57, %v2897_v4  ;;  %v2910_v23 = vrot.slane %v5198_v61, 5  ;;  %v2908_v31 = vsel %vm6710_vm7, %v5263_v6, %v2907_v63  ;;  %v7031_v27 = vrot.slane %v2284_v21, 5  ;;  %v1195_v41 = vld [vmem:[%s6458_s27 + $0x30] sm:$0xe] }
  0x9a   : > { %v2290_v36 = vrot.slane %v2288_v25, 4  ;;  %v5013_v44 = vcombine.low %v6683_v19, %v6689_v35  ;;  %v2294_v47 = vshll.u32 %v6921_v55, 16  ;;  %v5037_v19 = vrot.slane %v1191_v45, 9 }
  0x9b   : > { %v2911_v38 = vsel %vm6710_vm7, %v2909_v8, %v2910_v23  ;;  %8189 = vst [vmem:[#allocation3_spill] sm:$0xff] %v7031_v27  ;;  %v5038_v35 = vrot.slane %v1192_v59, 9  ;;  %v1258_v4 = vrot.slane %v6955_v9, 5  ;;  %v1265_v12 = vrot.slane %v6991_v1, 5  ;;  %v1196_v8 = vld [vmem:[%s6458_s27 + $0x3c] sm:$0xe] }
  0x9c   : > { %v5280_v40 = vcombine.low %v2908_v31, %v2911_v38  ;;  %v2291_v49 = vor.u32 %v2290_v36, %v7031_v27  ;;  %v7051_v51 = vrot.slane %v2294_v47, 5  ;;  %v5014_v58 = vcombine.low %v6704_v0, %v6717_v29  ;;  %v1197_v31 = vld [vmem:[%s6458_s27 + $0x48] sm:$0xe]  ;;  %v6328_v59 = vld [vmem:[%s6458_s27 + $0x38] sm:$0x1] }
  0x9d   : > { %5856 = vmatmul.mubr.msk.bf16.gmra.mrb[20].mxu0 %vm685_vm3, %v5276_v60  ;;  %v5012_v60 = vcombine.low %v6652_v24, %v6658_v37  ;;  %v6325_v24 = vld [vmem:[%s6458_s27 + $0x14] sm:$0x1]  ;;  %v4099_v54 = vsel %vm734_vm0, %v6775_v22, 0  ;;  %v5015_v61 = vcombine.low %v6736_v53, %v6743_v16  ;;  %v5016_v6 = vcombine.low %v6762_v39, %v6770_v43  ;;  %v6326_v16 = vld [vmem:[%s6458_s27 + $0x20] sm:$0x1] }
  0x9e   : > { %5704 = vmatmul.mubr.msk.bf16.gmra.mrb[4].mxu1 %vm685_vm3, %v5008_v28  ;;  %5859 = vmatprep.mubr.msk.bf16.mxu0 %vm685_vm3, %v5277_v20  ;;  %v1251_v28 = vrot.slane %v6948_v34, 5  ;;  %v6272_v20 = vld [vmem:[%s6458_s27 + $0x18] sm:$0xff]   ;;  %v6324_v34 = vld [vmem:[%s6458_s27 + $0x8] sm:$0x1]  ;;  %v1254_v37 = vrot.slane %v6325_v24, 5  ;;  %8190 = vst [vmem:[#allocation4_spill] sm:$0xff] %v7051_v51  ;;  %v5017_v9 = vcombine.low %v6794_v5, %v6806_v30 }
  0x9f   : > { %5707 = vmatprep.mubr.msk.bf16.mxu1 %vm685_vm3, %v5009_v48  ;;  %v1244_v48 = vrot.slane %v6914_v15, 5  ;;  %v1247_v50 = vrot.slane %v6324_v34, 5  ;;  %v1193_v15 = vld [vmem:[%s6458_s27 + $0x18] sm:$0xe]  ;;  %v7056_v63 = vrot.slane %v2291_v49, 4  ;;  %v1261_v22 = vrot.slane %v6326_v16, 5 }
  0xa0   : > { %v1253_v55 = vrot.slane %v1251_v28, 4  ;;  %v5039_v1 = vrot.slane %v1193_v15, 9  ;;  %v7078_v29 = vsel %vm6710_vm7, %v5038_v35, %v1251_v28  ;;  %v1267_v25 = vrot.slane %v1265_v12, 4  ;;  %v5362_v24 = vld [vmem:[%s6458_s27 + $0x18] sm:$0xf] }
  0xa1   : > { %v1246_v57 = vrot.slane %v1244_v48, 4  ;;  %8191 = vst [vmem:[#allocation5_spill] sm:$0xff] %v7056_v63  ;;  %v7074_v0 = vsel %vm6710_vm7, %v5037_v19, %v1244_v48  ;;  %v1275_v47 = vrot.slane %v6328_v59, 5  ;;  %v7115_v49 = vsel %vm734_vm0, %v6970_v7, 0  ;;  %v5363_v7 = vld [vmem:[%s6458_s27 + $0x1c] sm:$0xf] }
  0xa2   : > { %v7082_v53 = vsel %vm6710_vm7, %v1253_v55, %v1254_v37  ;;  %v7119_v34 = vsel %vm6710_vm7, %v5039_v1, %v1258_v4  ;;  %v6278_v37 = vld [vmem:[%s6458_s27 + $0x3c] sm:$0xff]   ;;  %v5042_v35 = vrot.slane %v1196_v8, 9  ;;  %v6329_v55 = vld [vmem:[%s6458_s27 + $0x44] sm:$0x1]  ;;  %v3620_v8 = vshll.u32 %v5362_v24, 16 }
  0xa3   : > { %v7093_v23 = vsel %vm6710_vm7, %v1246_v57, %v1247_v50  ;;  %v1198_v50 = vld [vmem:[%s6458_s27 + $0x54] sm:$0xe]  ;;  %v1282_v15 = vrot.slane %v6329_v55, 5  ;;  %v5366_v39 = vld [vmem:[%s6458_s27 + $0x28] sm:$0xf] }
  0xa4   : > { %v6336_v5 = vld [vmem:[%s6458_s27 + $0x70] sm:$0xf] }
  0xa5   : > { %5860 = vmatmul.mubr.msk.bf16.gmra.mrb[24].mxu0 %vm685_vm3, %v5278_v2  ;;  %v1194_v2 = vld [vmem:[%s6458_s27 + $0x24] sm:$0xe]  ;;  %v1307_v30 = vrot.slane %v6336_v5, 5 }
  0xa6   : > { %5708 = vmatmul.mubr.msk.bf16.gmra.mrb[8].mxu1 %vm685_vm3, %v5010_v10  ;;  %5863 = vmatprep.mubr.msk.bf16.mxu0 %vm685_vm3, %v5279_v11  ;;  %v1272_v10 = vrot.slane %v6996_v26, 5  ;;  %v6276_v11 = vld [vmem:[%s6458_s27 + $0x30] sm:$0xff]   ;;  %v5040_v21 = vrot.slane %v1194_v2, 9 }
  0xa7   : > { %5711 = vmatprep.mubr.msk.bf16.mxu1 %vm685_vm3, %v5011_v18  ;;  %v7089_v26 = vld [vmem:[%s8168_s1 + $0x10] sm:$0x3]  ;;  %v1260_v18 = vrot.slane %v1258_v4, 4  ;;  %v1309_v48 = vrot.slane %v1307_v30, 4 }
  0xa8   : > { %v1274_v45 = vrot.slane %v1272_v10, 4  ;;  %v7126_v19 = vsel %vm6710_vm7, %v5040_v21, %v1265_v12  ;;  %v3630_v21 = vshrl.u32 %v5363_v7, 16 }
  0xa9   : > { %v7135_v4 = vsel %vm6710_vm7, %v1260_v18, %v1261_v22  ;;  %v3617_v22 = vshrl.u32 %v5362_v24, 16  ;;  %v3626_v18 = vshll.u32 %v5363_v7, 16  ;;  %v5365_v24 = vld [vmem:[%s6458_s27 + $0x24] sm:$0xf] }
  0xaa   : > { %v7148_v1 = vsel %vm6710_vm7, %v1274_v45, %v1275_v47 }
  0xab   : > { %v3619_v43 = vrot.slane %v3617_v22, 4  ;;  %v7190_v7 = vrot.slane %v3626_v18, 5  ;;  %v3644_v22 = vshll.u32 %v5365_v24, 16  ;;  %v3654_v18 = vshrl.u32 %v5366_v39, 16 }
  0xad   : > { %5864 = vmatmul.mubr.msk.bf16.gmra.mrb[28].mxu0 %vm685_vm3, %v5280_v40  ;;  %v6327_v40 = vld [vmem:[%s6458_s27 + $0x2c] sm:$0x1]  ;;  %v3646_v27 = vrot.slane %v3644_v22, 5 }
  0xae   : > { %5712 = vmatmul.mubr.msk.bf16.gmra.mrb[12].mxu1 %vm685_vm3, %v5012_v60  ;;  %5869 = vmatprep.mubr.msk.bf16.mxu0 %vm685_vm3, %v6272_v20  ;;  %v1268_v28 = vrot.slane %v6327_v40, 5  ;;  %v1279_v60 = vrot.slane %v7016_v17, 5  ;;  %v6332_v40 = vld [vmem:[%s6458_s27 + $0x50] sm:$0x1]  ;;  %v6337_v17 = vld [vmem:[%s6458_s27 + $0x74] sm:$0x1] }
  0xaf   : > { %5715 = vmatprep.mubr.msk.bf16.mxu1 %vm685_vm3, %v5013_v44  ;;  %v5041_v44 = vrot.slane %v1195_v41, 9  ;;  %v5044_v41 = vrot.slane %v1198_v50, 9  ;;  %v1199_v50 = vld [vmem:[%s6458_s27 + $0x60] sm:$0xe]  ;;  %v5367_v20 = vld [vmem:[%s6458_s27 + $0x2c] sm:$0x1] }
  0xb0   : > { %v1281_v12 = vrot.slane %v1279_v60, 4  ;;  %v7161_v45 = vsel %vm6710_vm7, %v5042_v35, %v1279_v60  ;;  %v6333_v35 = vld [vmem:[%s6458_s27 + $0x5c] sm:$0x1] }
  0xb1   : > { %v7144_v2 = vsel %vm6710_vm7, %v5041_v44, %v1272_v10  ;;  %v1296_v55 = vrot.slane %v6333_v35, 5  ;;  %v1200_v35 = vld [vmem:[%s6458_s27 + $0x6c] sm:$0xe] }
  0xb2   : > { %v7165_v59 = vsel %vm6710_vm7, %v1281_v12, %v1282_v15  ;;  %v6334_v15 = vld [vmem:[%s6458_s27 + $0x64] sm:$0xf]  ;;  %v3632_v12 = vrot.slane %v3630_v21, 4  ;;  %v5046_v5 = vrot.slane %v1200_v35, 9 }
  0xb3   : > { %v6284_v21 = vld [vmem:[%s6458_s27 + $0x60] sm:$0xff]  }
  0xb5   : > { %5870 = vmatmul.mubr.msk.bf16.vlgmr.msra.gmra.mrb[0].mxu0 %vm685_vm3, %v6274_v62  ;;  %v6330_v62 = vld [vmem:[%s6458_s27 + $0x4c] sm:$0xf] }
  0xb6   : > { %5716 = vmatmul.mubr.msk.bf16.gmra.mrb[16].mxu1 %vm685_vm3, %v5014_v58  ;;  %5902 = vmatpush3.bf16.msra.mxu0 %v4099_v54  ;;  %v1286_v57 = vrot.slane %v6330_v62, 5  ;;  %v7139_v58 = vsel %vm6710_vm7, %v1267_v25, %v1268_v28  ;;  %v5043_v54 = vrot.slane %v1197_v31, 9  ;;  %v1289_v28 = vrot.slane %v6332_v40, 5 }
  0xb7   : > { %5719 = vmatprep.mubr.msk.bf16.mxu1 %vm685_vm3, %v5015_v61  ;;  %5873 = vmatprep.mubr.msk.bf16.mxu0 %vm685_vm3, %v6276_v11  ;;  %v6280_v61 = vld [vmem:[%s6458_s27 + $0x48] sm:$0xff]   ;;  %v6331_v11 = vld [vmem:[%s6458_s27 + $0x58] sm:$0xf]  ;;  %v1300_v62 = vrot.slane %v6334_v15, 5  ;;  %v5369_v15 = vld [vmem:[%s6458_s27 + $0x34] sm:$0xf] }
  0xb8   : > { %6236 = vmatprep.subr.msk.bf16.mxu0 %vm734_vm0, %v7089_v26  ;;  %v1293_v16 = vrot.slane %v6331_v11, 5  ;;  %v1288_v31 = vrot.slane %v1286_v57, 4  ;;  %v7169_v47 = vsel %vm6710_vm7, %v5043_v54, %v1286_v57  ;;  %v5364_v57 = vld [vmem:[%s6458_s27 + $0x20] sm:$0x1]  ;;  %v5368_v54 = vld [vmem:[%s6458_s27 + $0x30] sm:$0xf] }
  0xb9   : > { %v5045_v11 = vrot.slane %v1199_v50, 9  ;;  %v3668_v50 = vshll.u32 %v5368_v54, 16  ;;  %v3636_v25 = vshll.u32 %v5364_v57, 16  ;;  %v3674_v36 = vshll.u32 %v5369_v15, 16 }
  0xba   : > { %v7180_v60 = vsel %vm6710_vm7, %v5044_v41, %v1293_v16  ;;  %v7196_v41 = vsel %vm6710_vm7, %v1288_v31, %v1289_v28  ;;  %v1302_v31 = vrot.slane %v1300_v62, 4  ;;  %v3665_v28 = vshrl.u32 %v5368_v54, 16 }
  0xbb   : > { %v7238_v35 = vrot.slane %v3674_v36, 5 }
  0xbd   : > { %5874 = vmatmul.mubr.msk.bf16.gmra.mrb[4].mxu0 %vm685_vm3, %v6278_v37  ;;  %v1295_v37 = vrot.slane %v1293_v16, 4  ;;  %v6335_v16 = vld [vmem:[%s6458_s27 + $0x68] sm:$0x1] }
  0xbe   : > { %5720 = vmatmul.mubr.msk.bf16.gmra.mrb[20].mxu1 %vm685_vm3, %v5016_v6  ;;  %5877 = vmatprep.mubr.msk.bf16.mxu0 %vm685_vm3, %v6280_v61  ;;  %v3622_v6 = vrot.slane %v3620_v8, 5  ;;  %v6282_v61 = vld [vmem:[%s6458_s27 + $0x54] sm:$0xff]   ;;  %v1303_v40 = vrot.slane %v6335_v16, 5  ;;  %v3650_v8 = vshll.u32 %v5366_v39, 16  ;;  %v3633_v16 = vor.u32 %v3632_v12, %v7190_v7 }
  0xbf   : > { %5723 = vmatprep.mubr.msk.bf16.mxu1 %vm685_vm3, %v5017_v9  ;;  %v3641_v9 = vshrl.u32 %v5365_v24, 16  ;;  %v7205_v44 = vsel %vm6710_vm7, %v1295_v37, %v1296_v55  ;;  %v1310_v24 = vrot.slane %v6337_v17, 5  ;;  %v3678_v39 = vshrl.u32 %v5369_v15, 16 }
  0xc0   : > { %v3623_v10 = vor.u32 %v3622_v6, %v3619_v43  ;;  %v7211_v37 = vrot.slane %v3650_v8, 5  ;;  %v3656_v55 = vrot.slane %v3654_v18, 4  ;;  %v8192_v43 = vcombine.low %v6815_v52, %v6826_v46  ;;  %v6338_v8 = vld [vmem:[%s6458_s27 + $0x7c] sm:$0xf]  ;;  %v7247_v18 = vld [vmem:[%s6458_s27 + $0x38] sm:$0x1] }
  0xc1   : > { %v3643_v38 = vrot.slane %v3641_v9, 4  ;;  %v7220_v17 = vsel %vm6710_vm7, %v5045_v11, %v1300_v62  ;;  %v7224_v57 = vsel %vm6710_vm7, %v1302_v31, %v1303_v40  ;;  %v3667_v6 = vrot.slane %v3665_v28, 4  ;;  %8194 = vst [vmem:[#allocation6_spill] sm:$0xff] %v7247_v18 }
  0xc2   : > { %v3670_v12 = vrot.slane %v3668_v50, 5  ;;  %v8193_v52 = vcombine.low %v6847_v33, %v6852_v56  ;;  %v3624_v46 = vrot.slane %v3623_v10, 4  ;;  %v3634_v54 = vrot.slane %v3633_v16, 4  ;;  %v6286_v33 = vld [vmem:[%s6458_s27 + $0x6c] sm:$0xff]   ;;  %v1202_v16 = vld [vmem:[%s6458_s27 + $0x84] sm:$0xe] }
  0xc3   : > { %v3660_v62 = vshll.u32 %v5367_v20, 16  ;;  %v7232_v11 = vsel %vm6710_vm7, %v5046_v5, %v1307_v30  ;;  %v7236_v40 = vsel %vm6710_vm7, %v1309_v48, %v1310_v24  ;;  %v3680_v9 = vrot.slane %v3678_v39, 4  ;;  %v6287_v48 = vld [vmem:[%s6458_s27 + $0x78] sm:$0xff]  }
  0xc4   : > { %v3647_v10 = vor.u32 %v3646_v27, %v3643_v38  ;;  %v3657_v20 = vor.u32 %v3656_v55, %v7211_v37  ;;  %v1314_v30 = vrot.slane %v6338_v8, 5  ;;  %v3671_v38 = vor.u32 %v3670_v12, %v3667_v6  ;;  %v5371_v5 = vld [vmem:[%s6458_s27 + $0x3c] sm:$0xf] }
  0xc5   : > { %5878 = vmatmul.mubr.msk.bf16.gmra.mrb[8].mxu0 %vm685_vm3, %v6282_v61  ;;  %v3638_v61 = vrot.slane %v3636_v25, 5  ;;  %v1201_v25 = vld [vmem:[%s6458_s27 + $0x78] sm:$0xe]  ;;  %v7263_v50 = vrot.slane %v3660_v62, 5  ;;  %v3681_v39 = vor.u32 %v3680_v9, %v7238_v35  ;;  %v3684_v55 = vshll.u32 %v7247_v18, 16 }
  0xc6   : > { %5724 = vmatmul.mubr.msk.bf16.gmra.mrb[24].mxu1 %vm685_vm3, %v8192_v43  ;;  %5881 = vmatprep.mubr.msk.bf16.mxu0 %vm685_vm3, %v6284_v21  ;;  %v3629_v21 = vsel %vm6484_vm4, %v3624_v46, %v7190_v7  ;;  %v5047_v24 = vrot.slane %v1201_v25, 9  ;;  %v6339_v43 = vld [vmem:[%s6458_s27 + $0x88] sm:$0xf]  ;;  %v7271_v7 = vld [vmem:[%s6458_s27 + $0x40] sm:$0xf]  ;;  %v3648_v12 = vrot.slane %v3647_v10, 4  ;;  %v8196_v62 = vcombine.low %v6867_v14, %v6876_v42 }
  0xc7   : > { %5727 = vmatprep.mubr.msk.bf16.mxu1 %vm685_vm3, %v8193_v52  ;;  %v3639_v31 = vsel %vm6484_vm4, %v3634_v54, %v3638_v61  ;;  %v1321_v6 = vrot.slane %v6339_v43, 5  ;;  %8195 = vst [vmem:[#allocation7_spill] sm:$0xff] %v7271_v7  ;;  %v3658_v52 = vrot.slane %v3657_v20, 4  ;;  %v1316_v46 = vrot.slane %v1314_v30, 4  ;;  %v6340_v54 = vld [vmem:[%s6458_s27 + $0x80] sm:$0x1] }
  0xc8   : > { %v1317_v61 = vrot.slane %v6340_v54, 5  ;;  %v3672_v9 = vrot.slane %v3671_v38, 4  ;;  %v5048_v25 = vrot.slane %v1202_v16, 9  ;;  %v3689_v8 = vshrl.u32 %v5371_v5, 16  ;;  %v6288_v10 = vld [vmem:[%s6458_s27 + $0x84] sm:$0xff]  }
  0xc9   : > { %v3692_v43 = vshll.u32 %v5371_v5, 16  ;;  %v7285_v20 = vcombine.low %v3629_v21, %v3639_v31  ;;  %v7289_v14 = vsel %vm734_vm0, %v7089_v26, 0  ;;  %v3702_v38 = vshrl.u32 %v7271_v7, 16  ;;  %v6289_v21 = vld [vmem:[%s6458_s27 + $0x90] sm:$0xff]   ;;  %v6345_v18 = vld [vmem:[%s6458_s27 + $0xa0] sm:$0xf] }
  0xca   : > { %v3682_v16 = vrot.slane %v3681_v39, 4  ;;  %v3686_v5 = vrot.slane %v3684_v55, 5  ;;  %v1323_v54 = vrot.slane %v1321_v6, 4  ;;  %v3653_v31 = vsel %vm6484_vm4, %v3648_v12, %v7211_v37 }
  0xcb   : > { %v3663_v26 = vsel %vm6484_vm4, %v3658_v52, %v7263_v50  ;;  %v7304_v39 = vsel %vm6710_vm7, %v5047_v24, %v1314_v30  ;;  %v7308_v55 = vsel %vm6710_vm7, %v1316_v46, %v1317_v61  ;;  %v3677_v37 = vsel %vm6484_vm4, %v3672_v9, %v7238_v35  ;;  %v5377_v30 = vld [vmem:[%s6458_s27 + $0x54] sm:$0xf]  ;;  %v7325_v24 = vld [vmem:[%s6458_s27 + $0x58] sm:$0xf]  ;;  %v7330_v61 = vld [vmem:[%s6458_s27 + $0x90] sm:$0xe] }
  0xcc   : > { %v7321_v12 = vsel %vm6710_vm7, %v5048_v25, %v1321_v6  ;;  %v3691_v50 = vrot.slane %v3689_v8, 4  ;;  %v3694_v52 = vrot.slane %v3692_v43, 5  ;;  %v3704_v46 = vrot.slane %v3702_v38, 4 }
  0xcd   : > { %5882 = vmatmul.mubr.msk.bf16.gmra.mrb[12].mxu0 %vm685_vm3, %v6286_v33  ;;  %v8197_v33 = vcombine.low %v7074_v0, %v7093_v23  ;;  %v6341_v0 = vld [vmem:[%s6458_s27 + $0x8c] sm:$0x1]  ;;  %v3687_v36 = vsel %vm6484_vm4, %v3682_v16, %v3686_v5  ;;  %v3737_v25 = vshrl.u32 %v5377_v30, 16  ;;  %v3740_v8 = vshll.u32 %v5377_v30, 16 }
  0xce   : > { %5728 = vmatmul.mubr.msk.bf16.gmra.mrb[28].mxu1 %vm685_vm3, %v8196_v62  ;;  %5885 = vmatprep.mubr.msk.bf16.mxu0 %vm685_vm3, %v6287_v48  ;;  %v3698_v48 = vshll.u32 %v7271_v7, 16  ;;  %v1324_v23 = vrot.slane %v6341_v0, 5  ;;  %v5374_v62 = vld [vmem:[%s6458_s27 + $0x48] sm:$0xf]  ;;  %v7314_v0 = vld [vmem:[%s6458_s27 + $0x4c] sm:$0xf]  ;;  %v8199_v38 = vcombine.low %v7078_v29, %v7082_v53  ;;  %v7348_v16 = vcombine.low %v3653_v31, %v3663_v26 }
  0xcf   : > { %5733 = vmatprep.mubr.msk.bf16.mxu1 %vm685_vm3, %v8197_v33  ;;  %v7311_v33 = vld [vmem:[%s6458_s27 + $0x44] sm:$0x1]  ;;  %v3713_v27 = vshrl.u32 %v5374_v62, 16  ;;  %v3716_v15 = vshll.u32 %v5374_v62, 16  ;;  %v3722_v6 = vshll.u32 %v7314_v0, 16  ;;  %v3726_v9 = vshrl.u32 %v7314_v0, 16 }
  0xd0   : > { %8198 = vst [vmem:[#allocation8_spill] sm:$0xff] %v7311_v33  ;;  %v7327_v28 = vrot.slane %v3698_v48, 5  ;;  %v7336_v35 = vsel %vm6710_vm7, %v1323_v54, %v1324_v23  ;;  %v3746_v43 = vshll.u32 %v7325_v24, 16  ;;  %v3750_v48 = vshrl.u32 %v7325_v24, 16  ;;  %v5380_v31 = vld [vmem:[%s6458_s27 + $0x60] sm:$0xf] }
  0xd1   : > { %v3708_v5 = vshll.u32 %v7311_v33, 16  ;;  %v5049_v54 = vrot.slane %v7330_v61, 9  ;;  %v8200_v23 = vcombine.low %v7119_v34, %v7135_v4  ;;  %v7359_v29 = vcombine.low %v3677_v37, %v3687_v36  ;;  %v6290_v26 = vld [vmem:[%s6458_s27 + $0x9c] sm:$0xff]   ;;  %v6291_v30 = vld [vmem:[%s6458_s27 + $0xa8] sm:$0xff]  }
  0xd2   : > { %v3695_v53 = vor.u32 %v3694_v52, %v3691_v50  ;;  %v3715_v62 = vrot.slane %v3713_v27, 4  ;;  %v7370_v34 = vrot.slane %v3722_v6, 5  ;;  %v3728_v4 = vrot.slane %v3726_v9, 4  ;;  %v6342_v36 = vld [vmem:[%s8168_s1 + $0x8] sm:$0x3] }
  0xd3   : > { %v3739_v27 = vrot.slane %v3737_v25, 4  ;;  %v3742_v37 = vrot.slane %v3740_v8, 5  ;;  %v7379_v50 = vrot.slane %v3746_v43, 5  ;;  %v3752_v52 = vrot.slane %v3750_v48, 4  ;;  %v6343_v6 = vld [vmem:[%s6458_s27 + $0x94] sm:$0xf] }
  0xd4   : > { %v7385_v9 = vld [vmem:[%s6458_s27 + $0x64] sm:$0xf]  ;;  %v3761_v61 = vshrl.u32 %v5380_v31, 16  ;;  %v7387_v22 = vrot.slane %v3695_v53, 4  ;;  %v1335_v25 = vrot.slane %v6345_v18, 5  ;;  %v3729_v43 = vor.u32 %v3728_v4, %v7370_v34 }
  0xd5   : > { %5886 = vmatmul.mubr.msk.bf16.gmra.mrb[16].mxu0 %vm685_vm3, %v6288_v10  ;;  %8201 = vst [vmem:[#allocation9_spill] sm:$0xff] %v7385_v9  ;;  %v3764_v10 = vshll.u32 %v5380_v31, 16  ;;  %v3743_v31 = vor.u32 %v3742_v37, %v3739_v27  ;;  %v3753_v53 = vor.u32 %v3752_v52, %v7379_v50  ;;  %v8202_v18 = vcombine.low %v7126_v19, %v7139_v58  ;;  %v6292_v37 = vld [vmem:[%s6458_s27 + $0xb4] sm:$0xff]  }
  0xd6   : > { %5734 = vmatmul.mubr.msk.bf16.vlgmr.msra.gmra.mrb[0].mxu1 %vm685_vm3, %v8199_v38  ;;  %5889 = vmatprep.mubr.msk.bf16.mxu0 %vm685_vm3, %v6289_v21  ;;  %v3718_v21 = vrot.slane %v3716_v15, 5  ;;  %v7368_v38 = vld [vmem:[%s6458_s27 + $0x50] sm:$0x1]  ;;  %v7377_v15 = vld [vmem:[%s6458_s27 + $0x5c] sm:$0x1]  ;;  %v8203_v27 = vcombine.low %v7144_v2, %v7148_v1  ;;  %v1337_v52 = vrot.slane %v1335_v25, 4 }
  0xd7   : > { %5766 = vmatpush3.bf16.msra.mxu1 %v7115_v49  ;;  %5737 = vmatprep.mubr.msk.bf16.mxu1 %vm685_vm3, %v8200_v23  ;;  %v3705_v49 = vor.u32 %v3704_v46, %v7327_v28  ;;  %v7381_v46 = vrot.slane %v3708_v5, 5  ;;  %v1328_v23 = vrot.slane %v6343_v6, 5  ;;  %v3732_v48 = vshll.u32 %v7368_v38, 16  ;;  %v1204_v5 = vld [vmem:[%s6458_s27 + $0x9c] sm:$0xe] }
  0xd8   : > { %6232 = vmatprep.subr.msk.bf16.mxu1 %vm734_vm0, %v6342_v36  ;;  %v6344_v36 = vld [vmem:[%s6458_s27 + $0x98] sm:$0x1]  ;;  %v3719_v7 = vor.u32 %v3718_v21, %v3715_v62  ;;  %v3756_v6 = vshll.u32 %v7377_v15, 16  ;;  %v3774_v62 = vshrl.u32 %v7385_v9, 16  ;;  %v3766_v4 = vrot.slane %v3764_v10, 5 }
  0xd9   : > { %v1331_v33 = vrot.slane %v6344_v36, 5  ;;  %v3706_v8 = vrot.slane %v3705_v49, 4  ;;  %v3770_v36 = vshll.u32 %v7385_v9, 16  ;;  %v7406_v21 = vsel %vm6710_vm7, %v5049_v54, %v1328_v23  ;;  %v7417_v2 = vld [vmem:[%s6458_s27 + $0x68] sm:$0x1] }
  0xda   : > { %v3763_v49 = vrot.slane %v3761_v61, 4  ;;  %v3720_v19 = vrot.slane %v3719_v7, 4  ;;  %v5050_v58 = vrot.slane %v1204_v5, 9  ;;  %v3730_v3 = vrot.slane %v3729_v43, 4  ;;  %8204 = vst [vmem:[#allocation10_spill] sm:$0xff] %v7417_v2  ;;  %v6293_v5 = vld [vmem:[%s6458_s27 + $0xc0] sm:$0xff]  }
  0xdb   : > { %v3734_v54 = vrot.slane %v3732_v48, 5  ;;  %v3758_v63 = vrot.slane %v3756_v6, 5  ;;  %v1342_v61 = vrot.slane %v6852_v56, 5  ;;  %v3744_v10 = vrot.slane %v3743_v31, 4  ;;  %v1206_v31 = vld [vmem:[%s6458_s27 + $0xb4] sm:$0xe] }
  0xdc   : > { %v3754_v51 = vrot.slane %v3753_v53, 4  ;;  %v7419_v1 = vrot.slane %v3770_v36, 5  ;;  %v3776_v7 = vrot.slane %v3774_v62, 4  ;;  %v3701_v43 = vsel %vm6484_vm4, %v7387_v22, %v7327_v28  ;;  %v6347_v62 = vld [vmem:[%s6458_s27 + $0xb0] sm:$0x1] }
  0xdd   : > { %5890 = vmatmul.mubr.msk.bf16.gmra.mrb[20].mxu0 %vm685_vm3, %v6290_v26  ;;  %v1330_v26 = vrot.slane %v1328_v23, 4  ;;  %v1205_v23 = vld [vmem:[%s6458_s27 + $0xa8] sm:$0xe]  ;;  %v3711_v48 = vsel %vm6484_vm4, %v3706_v8, %v7381_v46  ;;  %v3767_v6 = vor.u32 %v3766_v4, %v3763_v49  ;;  %v3725_v53 = vsel %vm6484_vm4, %v3720_v19, %v7370_v34  ;;  %v5383_v46 = vld [vmem:[%s6458_s27 + $0x6c] sm:$0xf] }
  0xde   : > { %5738 = vmatmul.mubr.msk.bf16.gmra.mrb[4].mxu1 %vm685_vm3, %v8202_v18  ;;  %5893 = vmatprep.mubr.msk.bf16.mxu0 %vm685_vm3, %v6291_v30  ;;  %v6346_v18 = vld [vmem:[%s6458_s27 + $0xa4] sm:$0x1]  ;;  %v7439_v36 = vsel %vm6710_vm7, %v5050_v58, %v1335_v25  ;;  %v5051_v28 = vrot.slane %v1205_v23, 9  ;;  %v1344_v8 = vrot.slane %v1342_v61, 4  ;;  %v3780_v49 = vshll.u32 %v7417_v2, 16 }
  0xdf   : > { %5741 = vmatprep.mubr.msk.bf16.mxu1 %vm685_vm3, %v8203_v27  ;;  %v1338_v30 = vrot.slane %v6346_v18, 5  ;;  %v7431_v56 = vsel %vm6710_vm7, %v1330_v26, %v1331_v33  ;;  %v3735_v33 = vsel %vm6484_vm4, %v3730_v3, %v3734_v54  ;;  %v1345_v26 = vrot.slane %v6347_v62, 5  ;;  %v5386_v18 = vld [vmem:[%s6458_s27 + $0x78] sm:$0xf]  ;;  %v7494_v54 = vld [vmem:[%s6458_s27 + $0xbc] sm:$0x1] }
  0xe0   : > { %v3749_v34 = vsel %vm6484_vm4, %v3744_v10, %v7379_v50  ;;  %v3759_v25 = vsel %vm6484_vm4, %v3754_v51, %v3758_v63  ;;  %v3777_v4 = vor.u32 %v3776_v7, %v7419_v1  ;;  %v5052_v27 = vrot.slane %v1206_v31, 9  ;;  %v7468_v51 = vld [vmem:[%s6458_s27 + $0x70] sm:$0xf]  ;;  %v7498_v10 = vld [vmem:[%s6458_s27 + $0x7c] sm:$0xf] }
  0xe1   : > { %v7443_v22 = vsel %vm6710_vm7, %v1337_v52, %v1338_v30  ;;  %v8206_v3 = vcombine.low %v7161_v45, %v7165_v59  ;;  %v7464_v19 = vrot.slane %v3767_v6, 4  ;;  %v1349_v50 = vrot.slane %v6876_v42, 5  ;;  %8207 = vst [vmem:[#allocation12_spill] sm:$0xff] %v7468_v51  ;;  %8209 = vst [vmem:[#allocation13_spill] sm:$0xff] %v7498_v10  ;;  %v5389_v7 = vld [vmem:[%s6458_s27 + $0x84] sm:$0xf] }
  0xe2   : > { %8205 = vst [vmem:[#allocation11_spill] sm:$0xff] %v7443_v22  ;;  %v3785_v63 = vshrl.u32 %v5383_v46, 16  ;;  %v8208_v45 = vcombine.low %v7169_v47, %v7196_v41  ;;  %v7476_v58 = vcombine.low %v3725_v53, %v3735_v33  ;;  %v7482_v42 = vsel %vm6710_vm7, %v5051_v28, %v1342_v61  ;;  %v6294_v61 = vld [vmem:[%s6458_s27 + $0xcc] sm:$0xff]   ;;  %v7510_v31 = vld [vmem:[%s6458_s27 + $0x88] sm:$0xf] }
  0xe3   : > { %v7485_v30 = vcombine.low %v3749_v34, %v3759_v25  ;;  %v7489_v47 = vsel %vm6710_vm7, %v1344_v8, %v1345_v26  ;;  %v7491_v41 = vrot.slane %v3780_v49, 5  ;;  %v3794_v6 = vshll.u32 %v7468_v51, 16  ;;  %8210 = vst [vmem:[#allocation14_spill] sm:$0xff] %v7510_v31  ;;  %v5392_v62 = vld [vmem:[%s6458_s27 + $0x90] sm:$0xf] }
  0xe4   : > { %v7516_v28 = vrot.slane %v1349_v50, 4  ;;  %v7518_v33 = vrot.slane %v3785_v63, 4  ;;  %v3798_v8 = vshrl.u32 %v7468_v51, 16  ;;  %v3809_v26 = vshrl.u32 %v5386_v18, 16  ;;  %v7525_v25 = vld [vmem:[%s6458_s27 + $0x94] sm:$0xf] }
  0xe5   : > { %5894 = vmatmul.mubr.msk.bf16.gmra.mrb[24].mxu0 %vm685_vm3, %v6292_v37  ;;  %v7462_v37 = vcombine.low %v3701_v43, %v3711_v48  ;;  %v7506_v43 = vsel %vm6710_vm7, %v5052_v27, %v1349_v50  ;;  %v3788_v48 = vshll.u32 %v5383_v46, 16  ;;  %v3812_v49 = vshll.u32 %v5386_v18, 16  ;;  %8211 = vst [vmem:[#allocation15_spill] sm:$0xff] %v7525_v25  ;;  %v7563_v2 = vld [vmem:[%s6458_s27 + $0x8c] sm:$0x1] }
  0xe6   : > { %5742 = vmatmul.mubr.msk.bf16.gmra.mrb[8].mxu1 %vm685_vm3, %v8206_v3  ;;  %5897 = vmatprep.mubr.msk.bf16.mxu0 %vm685_vm3, %v6293_v5  ;;  %v7502_v5 = vrot.slane %v3777_v4, 4  ;;  %v3818_v46 = vshll.u32 %v7498_v10, 16  ;;  %v3822_v34 = vshrl.u32 %v7498_v10, 16  ;;  %v3833_v4 = vshrl.u32 %v5389_v7, 16 }
  0xe7   : > { %5745 = vmatprep.mubr.msk.bf16.mxu1 %vm685_vm3, %v8208_v45  ;;  %v3836_v27 = vshll.u32 %v5389_v7, 16  ;;  %v3842_v3 = vshll.u32 %v7510_v31, 16  ;;  %v3846_v50 = vshrl.u32 %v7510_v31, 16  ;;  %v7535_v45 = vld [vmem:[%s6458_s27 + $0x74] sm:$0x1]  ;;  %v3790_v18 = vrot.slane %v3788_v48, 5 }
  0xe8   : > { %v3857_v52 = vshrl.u32 %v5392_v62, 16  ;;  %v3860_v53 = vshll.u32 %v5392_v62, 16  ;;  %v8212_v7 = vcombine.low %v7180_v60, %v7205_v44  ;;  %v3800_v59 = vrot.slane %v3798_v8, 4  ;;  %v5395_v48 = vld [vmem:[%s6458_s27 + $0x9c] sm:$0xf] }
  0xe9   : > { %v3866_v63 = vshll.u32 %v7525_v25, 16  ;;  %v3870_v23 = vshrl.u32 %v7525_v25, 16  ;;  %v8213_v62 = vcombine.low %v7220_v17, %v7224_v57  ;;  %v7553_v44 = vld [vmem:[%s6458_s27 + $0x80] sm:$0x1]  ;;  %v3811_v60 = vrot.slane %v3809_v26, 4 }
  0xea   : > { %8214 = vst [vmem:[#allocation16_spill] sm:$0xff] %v7553_v44  ;;  %v3835_v31 = vrot.slane %v3833_v4, 4  ;;  %v3838_v8 = vrot.slane %v3836_v27, 5  ;;  %v7557_v10 = vrot.slane %v3842_v3, 5  ;;  %v3848_v51 = vrot.slane %v3846_v50, 4 }
  0xeb   : > { %v7560_v25 = vld [vmem:[%s6458_s27 + $0xa0] sm:$0xf]  ;;  %v3859_v17 = vrot.slane %v3857_v52, 4  ;;  %v3862_v57 = vrot.slane %v3860_v53, 5  ;;  %v3884_v9 = vshll.u32 %v5395_v48, 16  ;;  %v3791_v26 = vor.u32 %v3790_v18, %v7518_v33 }
  0xec   : > { %v3828_v27 = vshll.u32 %v7553_v44, 16  ;;  %v7572_v3 = vld [vmem:[%s6458_s27 + $0x98] sm:$0x1]  ;;  %v3890_v50 = vshll.u32 %v7560_v25, 16  ;;  %v3894_v52 = vshrl.u32 %v7560_v25, 16  ;;  %v3839_v22 = vor.u32 %v3838_v8, %v3835_v31 }
  0xed   : > { %5898 = vmatmul.mubr.msk.bf16.gmra.mrb[28].mxu0 %vm685_vm3, %v6294_v61  ;;  %v7543_v61 = vrot.slane %v3794_v6, 5  ;;  %v3824_v6 = vrot.slane %v3822_v34, 4  ;;  %v3872_v34 = vrot.slane %v3870_v23, 4  ;;  %v3852_v33 = vshll.u32 %v7563_v2, 16 }
  0xee   : > { %5746 = vmatmul.mubr.msk.bf16.gmra.mrb[12].mxu1 %vm685_vm3, %v8212_v7  ;;  %5903 = vmatprep.mubr.msk.bf16.mxu0 %vm685_vm3, %v7285_v20  ;;  %v3814_v7 = vrot.slane %v3812_v49, 5  ;;  %v7555_v20 = vrot.slane %v3818_v46, 5  ;;  %v3804_v49 = vshll.u32 %v7535_v45, 16  ;;  %v7567_v46 = vrot.slane %v3866_v63, 5 }
  0xef   : > { %5749 = vmatprep.mubr.msk.bf16.mxu1 %vm685_vm3, %v8213_v62  ;;  %v3881_v62 = vshrl.u32 %v5395_v48, 16  ;;  %v3801_v4 = vor.u32 %v3800_v59, %v7543_v61  ;;  %v3849_v23 = vor.u32 %v3848_v51, %v7557_v10  ;;  %v3863_v59 = vor.u32 %v3862_v57, %v3859_v17  ;;  %v7605_v57 = vld [vmem:[%s6458_s27 + $0xa4] sm:$0x1] }
  0xf0   : > { %v3815_v53 = vor.u32 %v3814_v7, %v3811_v60  ;;  %v3825_v48 = vor.u32 %v3824_v6, %v7555_v20  ;;  %v3886_v18 = vrot.slane %v3884_v9, 5  ;;  %v8215_v44 = vcombine.low %v7232_v11, %v7236_v40 }
  0xf1   : > { %v3883_v63 = vrot.slane %v3881_v62, 4  ;;  %v8216_v31 = vrot.slane %v7494_v54, 5  ;;  %v3806_v51 = vrot.slane %v3804_v49, 5  ;;  %v3873_v60 = vor.u32 %v3872_v34, %v7567_v46  ;;  %v7608_v34 = vld [vmem:[%s6458_s27 + $0xac] sm:$0xf] }
  0xf2   : > { %v3876_v9 = vshll.u32 %v7572_v3, 16  ;;  %v8217_v11 = vcombine.low %v7304_v39, %v7308_v55  ;;  %v3792_v40 = vrot.slane %v3791_v26, 4  ;;  %v7601_v54 = vrot.slane %v3890_v50, 5 }
  0xf3   : > { %v3816_v7 = vrot.slane %v3815_v53, 4  ;;  %v3826_v6 = vrot.slane %v3825_v48, 4  ;;  %v3830_v8 = vrot.slane %v3828_v27, 5  ;;  %v3854_v17 = vrot.slane %v3852_v33, 5  ;;  %v7618_v48 = vld [vmem:[%s6458_s27 + $0xb0] sm:$0x1] }
  0xf4   : > { %v3840_v39 = vrot.slane %v3839_v22, 4  ;;  %v3850_v55 = vrot.slane %v3849_v23, 4  ;;  %v3864_v62 = vrot.slane %v3863_v59, 4  ;;  %v3887_v49 = vor.u32 %v3886_v18, %v3883_v63 }
  0xf5   : > { %5904 = vmatmul.mubr.msk.bf16.vlgmr.msra.gmra.mrb[0].mxu0 %vm685_vm3, %v7348_v16  ;;  %v7591_v16 = vsel %vm6710_vm7, %v7516_v28, %v8216_v31  ;;  %v3896_v28 = vrot.slane %v3894_v52, 4  ;;  %v3878_v26 = vrot.slane %v3876_v9, 5  ;;  %v3797_v52 = vsel %vm6484_vm4, %v3792_v40, %v7543_v61 }
  0xf6   : > { %5750 = vmatmul.mubr.msk.bf16.gmra.mrb[16].mxu1 %vm685_vm3, %v8215_v44  ;;  %5936 = vmatpush3.bf16.msra.mxu0 %v7289_v14  ;;  %v3802_v14 = vrot.slane %v3801_v4, 4  ;;  %v5398_v44 = vld [vmem:[%s6458_s27 + $0xa8] sm:$0xf]  ;;  %v3900_v22 = vshll.u32 %v7605_v57, 16  ;;  %v3821_v33 = vsel %vm6484_vm4, %v3816_v7, %v7555_v20  ;;  %v3831_v23 = vsel %vm6484_vm4, %v3826_v6, %v3830_v8 }
  0xf7   : > { %5753 = vmatprep.mubr.msk.bf16.mxu1 %vm685_vm3, %v8217_v11  ;;  %5907 = vmatprep.mubr.msk.bf16.mxu0 %vm685_vm3, %v7359_v29  ;;  %v3874_v29 = vrot.slane %v3873_v60, 4  ;;  %v3905_v4 = vshrl.u32 %v5398_v44, 16  ;;  %v3908_v50 = vshll.u32 %v5398_v44, 16  ;;  %v3897_v53 = vor.u32 %v3896_v28, %v7601_v54  ;;  %v5447_v11 = vld [vmem:[%s6458_s27 + $0x48] sm:$0xe] }
  0xf8   : > { %v3807_v27 = vsel %vm6484_vm4, %v3802_v14, %v3806_v51  ;;  %v3914_v59 = vshll.u32 %v7608_v34, 16  ;;  %v3918_v61 = vshrl.u32 %v7608_v34, 16  ;;  %v3845_v63 = vsel %vm6484_vm4, %v3840_v39, %v7557_v10  ;;  %v7683_v39 = vld [vmem:[%s6458_s27 + $0xb8] sm:$0xf] }
  0xf9   : > { %v3855_v18 = vsel %vm6484_vm4, %v3850_v55, %v3854_v17  ;;  %v3869_v20 = vsel %vm6484_vm4, %v3864_v62, %v7567_v46  ;;  %v3888_v31 = vrot.slane %v3887_v49, 4  ;;  %v8218_v51 = vcombine.low %v7321_v12, %v7336_v35 }
  0xfa   : > { %v3907_v10 = vrot.slane %v3905_v4, 4  ;;  %v3910_v60 = vrot.slane %v3908_v50, 5  ;;  %v3924_v9 = vshll.u32 %v7618_v48, 16  ;;  %v8219_v46 = vcombine.low %v7406_v21, %v7431_v56  ;;  %v5401_v21 = vld [vmem:[%s6458_s27 + $0xb4] sm:$0xf] }
  0xfb   : > { %v5068_v12 = vcombine.low %v7482_v42, %v7489_v47  ;;  %v8220_v35 = vsel %vm6484_vm4, %v7502_v5, %v7491_v41  ;;  %v3898_v14 = vrot.slane %v3897_v53, 4  ;;  %v3902_v28 = vrot.slane %v3900_v22, 5  ;;  %v5449_v4 = vld [vmem:[%s6458_s27 + $0x60] sm:$0xe]  ;;  %v5450_v53 = vld [vmem:[%s6458_s27 + $0x6c] sm:$0xe] }
  0xfc   : > { %v5069_v56 = vcombine.low %v7506_v43, %v7591_v16  ;;  %v7666_v44 = vcombine.low %v3797_v52, %v3807_v27  ;;  %v7668_v42 = vrot.slane %v3914_v59, 5  ;;  %v3920_v47 = vrot.slane %v3918_v61, 4  ;;  %v8229_v16 = vld [vmem:[#allocation4_spill] sm:$0xff] }
  0xfd   : > { %5908 = vmatmul.mubr.msk.bf16.gmra.mrb[4].mxu0 %vm685_vm3, %v7462_v37  ;;  %v3879_v37 = vsel %vm6484_vm4, %v3874_v29, %v3878_v26  ;;  %v7670_v41 = vcombine.low %v3821_v33, %v3831_v23  ;;  %v7672_v5 = vcombine.low %v3845_v63, %v3855_v18  ;;  %v3893_v6 = vsel %vm6484_vm4, %v3888_v31, %v7601_v54  ;;  %v8222_v23 = vld [vmem:[#allocation11_spill] sm:$0xff]  ;;  %v5404_v63 = vld [vmem:[%s6458_s27 + $0xc0] sm:$0xf]  ;;  %v8224_v18 = vld [vmem:[#allocation9_spill] sm:$0xff] }
  0xfe   : > { %5754 = vmatmul.mubr.msk.bf16.gmra.mrb[20].mxu1 %vm685_vm3, %v8218_v51  ;;  %5911 = vmatprep.mubr.msk.bf16.mxu0 %vm685_vm3, %v7476_v58  ;;  %v8221_v58 = vsel %vm6484_vm4, %v7464_v19, %v7419_v1  ;;  %v7674_v7 = vcombine.low %v3869_v20, %v3879_v37  ;;  %v5463_v1 = vrot.slane %v5447_v11, 9  ;;  %v5448_v19 = vld [vmem:[%s6458_s27 + $0x54] sm:$0xe]  ;;  %v3911_v8 = vor.u32 %v3910_v60, %v3907_v10  ;;  %v8225_v31 = vld [vmem:[#allocation10_spill] sm:$0xff] }
  0xff   : > { %5757 = vmatprep.mubr.msk.bf16.mxu1 %vm685_vm3, %v8219_v46  ;;  %v5417_v40 = vcombine.low %v8221_v58, %v8220_v35  ;;  %v7680_v17 = vrot.slane %v3924_v9, 5  ;;  %v3929_v55 = vshrl.u32 %v5401_v21, 16  ;;  %v3903_v62 = vsel %vm6484_vm4, %v3898_v14, %v3902_v28  ;;  %v8226_v9 = vld [vmem:[#allocation12_spill] sm:$0xff]  ;;  %v7732_v35 = vld [vmem:[%s6458_s27 + $0xbc] sm:$0x1] }
 0x100   : > { %v3932_v49 = vshll.u32 %v5401_v21, 16  ;;  %v4388_v29 = vrot.slane %v7314_v0, 5  ;;  %v4391_v26 = vrot.slane %v7368_v38, 5  ;;  %v3921_v50 = vor.u32 %v3920_v47, %v7668_v42  ;;  %v7735_v58 = vld [vmem:[%s6458_s27 + $0xc4] sm:$0xf] }
 0x101   : > { %v5464_v52 = vrot.slane %v5448_v19, 9  ;;  %v4395_v54 = vrot.slane %v7325_v24, 5  ;;  %v4398_v27 = vrot.slane %v7377_v15, 5  ;;  %v3938_v22 = vshll.u32 %v7683_v39, 16  ;;  %v5451_v19 = vld [vmem:[%s6458_s27 + $0x78] sm:$0xe] }
 0x102   : > { %v3942_v33 = vshrl.u32 %v7683_v39, 16  ;;  %v7700_v0 = vsel %vm6710_vm7, %v5463_v1, %v4388_v29  ;;  %v4390_v38 = vrot.slane %v4388_v29, 4  ;;  %v8223_v59 = vcombine.low %v7439_v36, %v8222_v23  ;;  %v8227_v23 = vld [vmem:[#allocation13_spill] sm:$0xff] }
 0x103   : > { %v7707_v24 = vcombine.low %v3893_v6, %v3903_v62  ;;  %v7711_v15 = vsel %vm6710_vm7, %v5464_v52, %v4395_v54  ;;  %v5465_v61 = vrot.slane %v5449_v4, 9  ;;  %v4402_v20 = vrot.slane %v8224_v18, 5  ;;  %v6295_v6 = vld [vmem:[%s6458_s27 + $0xc] sm:$0xff]  }
 0x104   : > { %v7717_v36 = vsel %vm6710_vm7, %v4390_v38, %v4391_v26  ;;  %v4405_v51 = vrot.slane %v8225_v31, 5  ;;  %v5466_v37 = vrot.slane %v5450_v53, 9  ;;  %v4409_v11 = vrot.slane %v8226_v9, 5 }
 0x105   : > { %5912 = vmatmul.mubr.msk.bf16.gmra.mrb[8].mxu0 %vm685_vm3, %v7485_v30  ;;  %v4397_v30 = vrot.slane %v4395_v54, 4  ;;  %v5480_v10 = vcombine.low %v7700_v0, %v7717_v36  ;;  %v4412_v46 = vrot.slane %v7535_v45, 5  ;;  %v7741_v14 = vsel %vm6710_vm7, %v5465_v61, %v4402_v20 }
 0x106   : > { %5758 = vmatmul.mubr.msk.bf16.gmra.mrb[24].mxu1 %vm685_vm3, %v8223_v59  ;;  %5915 = vmatprep.mubr.msk.bf16.mxu0 %vm685_vm3, %v5417_v40  ;;  %v4404_v28 = vrot.slane %v4402_v20, 4  ;;  %v7743_v21 = vrot.slane %v3929_v55, 4  ;;  %v3953_v47 = vshrl.u32 %v5404_v63, 16  ;;  %v7747_v45 = vsel %vm6710_vm7, %v5466_v37, %v4409_v11  ;;  %v5178_v55 = vld [vmem:[%s6458_s27 + $0x78] sm:$0xf]  ;;  %v8228_v59 = vld [vmem:[#allocation16_spill] sm:$0xff] }
 0x107   : > { %5761 = vmatprep.mubr.msk.bf16.mxu1 %vm685_vm3, %v5068_v12  ;;  %v7725_v60 = vsel %vm6710_vm7, %v4397_v30, %v4398_v27  ;;  %v7729_v12 = vrot.slane %v3911_v8, 4  ;;  %v4411_v1 = vrot.slane %v4409_v11, 4  ;;  %v7751_v8 = vrot.slane %v3921_v50, 4 }
 0x108   : > { %v5481_v40 = vcombine.low %v7711_v15, %v7725_v60  ;;  %v7753_v62 = vrot.slane %v3932_v49, 5  ;;  %v3956_v29 = vshll.u32 %v5404_v63, 16  ;;  %v7757_v26 = vsel %vm6710_vm7, %v4404_v28, %v4405_v51  ;;  %v8231_v28 = vld [vmem:[#allocation14_spill] sm:$0xff] }
 0x109   : > { %v7760_v4 = vrot.slane %v3938_v22, 5  ;;  %v7762_v52 = vrot.slane %v3942_v33, 4  ;;  %v5482_v54 = vcombine.low %v7741_v14, %v7757_v26  ;;  %v7768_v27 = vsel %vm6710_vm7, %v4411_v1, %v4412_v46  ;;  %v5452_v33 = vld [vmem:[%s6458_s27 + $0x84] sm:$0xe]  ;;  %v6296_v1 = vld [vmem:[%s6458_s27 + $0x18] sm:$0xff]  }
 0x10a   : > { %v3948_v49 = vshll.u32 %v7732_v35, 16  ;;  %v3962_v50 = vshll.u32 %v7735_v58, 16  ;;  %v5483_v53 = vcombine.low %v7747_v45, %v7768_v27  ;;  %v5467_v22 = vrot.slane %v5451_v19, 9  ;;  %v6358_v60 = vld [vmem:[%s6458_s27 + $0xa0] sm:$0xf] }
 0x10b   : > { %v3955_v38 = vrot.slane %v3953_v47, 4  ;;  %v4419_v30 = vrot.slane %v8228_v59, 5  ;;  %v2275_v61 = vshrl.u32 %v5178_v55, 16  ;;  %v3958_v63 = vrot.slane %v3956_v29, 5  ;;  %v5407_v29 = vld [vmem:[%s6458_s27 + $0xcc] sm:$0xf] }
 0x10c   : > { %v3966_v18 = vshrl.u32 %v7735_v58, 16  ;;  %v2278_v43 = vshll.u32 %v5178_v55, 16  ;;  %v5468_v37 = vrot.slane %v5452_v33, 9  ;;  %v3917_v9 = vsel %vm6484_vm4, %v7729_v12, %v7668_v42  ;;  %v7811_v55 = vld [vmem:[%s6458_s27 + $0xd0] sm:$0xf] }
 0x10d   : > { %5916 = vmatmul.mubr.msk.bf16.gmra.mrb[12].mxu0 %vm685_vm3, %v7666_v44  ;;  %v4416_v44 = vrot.slane %v8227_v23, 5  ;;  %v2277_v51 = vrot.slane %v2275_v61, 4  ;;  %v3935_v11 = vor.u32 %v7753_v62, %v7743_v21  ;;  %v4423_v47 = vrot.slane %v8231_v28, 5  ;;  %v6297_v21 = vld [vmem:[%s6458_s27 + $0x24] sm:$0xff]   ;;  %v6362_v27 = vld [vmem:[%s6458_s27 + $0xac] sm:$0xf] }
 0x10e   : > { %5762 = vmatmul.mubr.msk.bf16.gmra.mrb[28].mxu1 %vm685_vm3, %v5069_v56  ;;  %5919 = vmatprep.mubr.msk.bf16.mxu0 %vm685_vm3, %v7670_v41  ;;  %v8230_v56 = vld [vmem:[#allocation5_spill] sm:$0xff]  ;;  %v2280_v46 = vrot.slane %v2278_v43, 5  ;;  %v3927_v19 = vsel %vm6484_vm4, %v7751_v8, %v7680_v17  ;;  %v4426_v12 = vrot.slane %v7563_v2, 5  ;;  %v7819_v62 = vrot.slane %v3962_v50, 5  ;;  %v5453_v8 = vld [vmem:[%s6458_s27 + $0x90] sm:$0xe] }
 0x10f   : > { %5767 = vmatprep.mubr.msk.bf16.mxu1 %vm685_vm3, %v6295_v6  ;;  %v2297_v41 = vsel %vm6484_vm4, %v8230_v56, %v8229_v16  ;;  %v7793_v20 = vsel %vm6710_vm7, %v5467_v22, %v4416_v44  ;;  %v4418_v31 = vrot.slane %v4416_v44, 4  ;;  %v3945_v6 = vor.u32 %v7762_v52, %v7760_v4  ;;  %v7825_v52 = vld [vmem:[%s6458_s27 + $0xc8] sm:$0x1]  ;;  %v8233_v16 = vld [vmem:[#allocation2_spill] sm:$0xff] }
 0x110   : > { %v3968_v22 = vrot.slane %v3966_v18, 4  ;;  %v2281_v17 = vor.u32 %v2280_v46, %v2277_v51  ;;  %v3950_v23 = vrot.slane %v3948_v49, 5  ;;  %v3959_v44 = vor.u32 %v3958_v63, %v3955_v38  ;;  %v8234_v51 = vld [vmem:[#allocation3_spill] sm:$0xff] }
 0x111   : > { %v7815_v42 = vsel %vm6710_vm7, %v4418_v31, %v4419_v30  ;;  %v7829_v59 = vsel %vm6710_vm7, %v5468_v37, %v4423_v47  ;;  %v4425_v30 = vrot.slane %v4423_v47, 4  ;;  %v3977_v2 = vshrl.u32 %v5407_v29, 16 }
 0x112   : > { %v5484_v33 = vcombine.low %v7793_v20, %v7815_v42  ;;  %v3980_v50 = vshll.u32 %v5407_v29, 16  ;;  %v3986_v61 = vshll.u32 %v7811_v55, 16  ;;  %v2282_v18 = vrot.slane %v2281_v17, 4  ;;  %v6298_v29 = vld [vmem:[%s6458_s27 + $0x30] sm:$0xff]  }
 0x113   : > { %v3990_v49 = vshrl.u32 %v7811_v55, 16  ;;  %v7840_v38 = vsel %vm6710_vm7, %v4425_v30, %v4426_v12  ;;  %v5469_v63 = vrot.slane %v5453_v8, 9  ;;  %v3969_v56 = vor.u32 %v3968_v22, %v7819_v62 }
 0x114   : > { %v3972_v31 = vshll.u32 %v7825_v52, 16  ;;  %v5485_v37 = vcombine.low %v7829_v59, %v7840_v38  ;;  %v5423_v46 = vcombine.low %v3917_v9, %v3927_v19  ;;  %v3936_v28 = vrot.slane %v3935_v11, 4  ;;  %v5454_v11 = vld [vmem:[%s6458_s27 + $0x9c] sm:$0xe] }
 0x115   : > { %5920 = vmatmul.mubr.msk.bf16.gmra.mrb[16].mxu0 %vm685_vm3, %v7672_v5  ;;  %v8232_v5 = vld [vmem:[#allocation15_spill] sm:$0xff]  ;;  %v3946_v47 = vrot.slane %v3945_v6, 4  ;;  %v3960_v12 = vrot.slane %v3959_v44, 4  ;;  %v4433_v8 = vrot.slane %v7572_v3, 5  ;;  %v3979_v30 = vrot.slane %v3977_v2, 4  ;;  %v6299_v19 = vld [vmem:[%s6458_s27 + $0x3c] sm:$0xff]  }
 0x116   : > { %5768 = vmatmul.mubr.msk.bf16.vlgmr.msra.gmra.mrb[0].mxu1 %vm685_vm3, %v6296_v1  ;;  %5923 = vmatprep.mubr.msk.bf16.mxu0 %vm685_vm3, %v7674_v7  ;;  %v4430_v43 = vrot.slane %v8232_v5, 5  ;;  %v2287_v7 = vsel %vm6484_vm4, %v2282_v18, %v8234_v51  ;;  %v3982_v18 = vrot.slane %v3980_v50, 5  ;;  %v7863_v5 = vrot.slane %v3986_v61, 5 }
 0x117   : > { %5970 = vmatpush3.bf16.msra.mxu1 %v8233_v16  ;;  %5771 = vmatprep.mubr.msk.bf16.mxu1 %vm685_vm3, %v6297_v21  ;;  %v7852_v1 = vcombine.low %v2287_v7, %v2297_v41  ;;  %v7856_v21 = vld [vmem:[%s6458_s27 + $0xd4] sm:$0x1]  ;;  %v3992_v9 = vrot.slane %v3990_v49, 4  ;;  %v3970_v41 = vrot.slane %v3969_v56, 4  ;;  %v3974_v6 = vrot.slane %v3972_v31, 5 }
 0x118   : > { %v7860_v22 = vsel %vm6710_vm7, %v5469_v63, %v4430_v43  ;;  %v4432_v17 = vrot.slane %v4430_v43, 4  ;;  %v3941_v63 = vsel %vm6484_vm4, %v3936_v28, %v7760_v4  ;;  %v3951_v2 = vsel %vm6484_vm4, %v3946_v47, %v3950_v23  ;;  %v6349_v16 = vld [vmem:[%s6458_s27 + $0x1c] sm:$0xf]  ;;  %v5455_v28 = vld [vmem:[%s6458_s27 + $0xa8] sm:$0xe] }
 0x119   : > { %v3996_v50 = vshll.u32 %v7856_v21, 16  ;;  %v5470_v61 = vrot.slane %v5454_v11, 9  ;;  %v4437_v49 = vrot.slane %v7560_v25, 5  ;;  %v3965_v4 = vsel %vm6484_vm4, %v3960_v12, %v7819_v62  ;;  %v5443_v62 = vld [vmem:[%s6458_s27 + $0x18] sm:$0xe]  ;;  %v6300_v47 = vld [vmem:[%s6458_s27 + $0x48] sm:$0xff]  }
 0x11a   : > { %v7869_v44 = vsel %vm6710_vm7, %v4432_v17, %v4433_v8  ;;  %v3993_v43 = vor.u32 %v3992_v9, %v7863_v5  ;;  %v4440_v23 = vrot.slane %v7605_v57, 5  ;;  %v3975_v25 = vsel %vm6484_vm4, %v3970_v41, %v3974_v6  ;;  %v6350_v11 = vld [vmem:[%s6458_s27 + $0x20] sm:$0x1] }
 0x11b   : > { %v5486_v3 = vcombine.low %v7860_v22, %v7869_v44  ;;  %v4360_v56 = vrot.slane %v6349_v16, 5  ;;  %v7895_v31 = vsel %vm6710_vm7, %v5470_v61, %v4437_v49  ;;  %v4439_v51 = vrot.slane %v4437_v49, 4  ;;  %v5456_v49 = vld [vmem:[%s6458_s27 + $0xb4] sm:$0xe] }
 0x11c   : > { %v5424_v7 = vcombine.low %v3941_v63, %v3951_v2  ;;  %v3994_v17 = vrot.slane %v3993_v43, 4  ;;  %v5471_v41 = vrot.slane %v5455_v28, 9  ;;  %v4444_v6 = vrot.slane %v7608_v34, 5  ;;  %v5444_v2 = vld [vmem:[%s6458_s27 + $0x24] sm:$0xe] }
 0x11d   : > { %5924 = vmatmul.mubr.msk.bf16.gmra.mrb[20].mxu0 %vm685_vm3, %v7707_v24  ;;  %v3983_v24 = vor.u32 %v3982_v18, %v3979_v30  ;;  %v7900_v57 = vsel %vm6710_vm7, %v4439_v51, %v4440_v23  ;;  %v6301_v30 = vld [vmem:[%s6458_s27 + $0x54] sm:$0xff]   ;;  %v5459_v18 = vrot.slane %v5443_v62, 9  ;;  %v4362_v9 = vrot.slane %v4360_v56, 4  ;;  %v6353_v28 = vld [vmem:[%s6458_s27 + $0x2c] sm:$0x1] }
 0x11e   : > { %5772 = vmatmul.mubr.msk.bf16.gmra.mrb[4].mxu1 %vm685_vm3, %v6298_v29  ;;  %5927 = vmatprep.mubr.msk.bf16.mxu0 %vm685_vm3, %v5423_v46  ;;  %v3998_v46 = vrot.slane %v3996_v50, 5  ;;  %v5425_v29 = vcombine.low %v3965_v4, %v3975_v25  ;;  %v5487_v8 = vcombine.low %v7895_v31, %v7900_v57  ;;  %v4447_v63 = vrot.slane %v7618_v48, 5  ;;  %v6351_v50 = vld [vmem:[%s6458_s27 + $0x28] sm:$0xf]  ;;  %v5445_v25 = vld [vmem:[%s6458_s27 + $0x30] sm:$0xe] }
 0x11f   : > { %5775 = vmatprep.mubr.msk.bf16.mxu1 %vm685_vm3, %v6299_v19  ;;  %v3984_v12 = vrot.slane %v3983_v24, 4  ;;  %v4363_v19 = vrot.slane %v6350_v11, 5  ;;  %v4367_v61 = vrot.slane %v6351_v50, 5  ;;  %v7923_v48 = vsel %vm6710_vm7, %v5471_v41, %v4444_v6  ;;  %v6303_v11 = vld [vmem:[%s6458_s27 + $0x6c] sm:$0xff]   ;;  %v8235_v41 = vld [vmem:[#allocation6_spill] sm:$0xff] }
 0x120   : > { %v3999_v34 = vsel %vm6484_vm4, %v3994_v17, %v3998_v46  ;;  %v4446_v24 = vrot.slane %v4444_v6, 4  ;;  %v4361_v43 = vsel %vm6710_vm7, %v5459_v18, %v4360_v56  ;;  %v5460_v51 = vrot.slane %v5444_v2, 9  ;;  %v5457_v50 = vld [vmem:[%s6458_s27 + $0xc0] sm:$0xe]  ;;  %v6367_v31 = vld [vmem:[%s6458_s27 + $0xc8] sm:$0x1] }
 0x121   : > { %v3989_v4 = vsel %vm6484_vm4, %v3984_v12, %v7863_v5  ;;  %v4364_v23 = vsel %vm6710_vm7, %v4362_v9, %v4363_v19  ;;  %v6352_v5 = vld [vmem:[%s6458_s27 + $0x34] sm:$0xf]  ;;  %v6302_v12 = vld [vmem:[%s6458_s27 + $0x60] sm:$0xff]   ;;  %v5461_v18 = vrot.slane %v5445_v25, 9  ;;  %v4454_v9 = vrot.slane %v7732_v35, 5 }
 0x122   : > { %v4374_v16 = vrot.slane %v6352_v5, 5  ;;  %v7934_v62 = vsel %vm6710_vm7, %v4446_v24, %v4447_v63  ;;  %v5426_v46 = vcombine.low %v3989_v4, %v3999_v34  ;;  %v5476_v17 = vcombine.low %v4361_v43, %v4364_v23  ;;  %v5446_v24 = vld [vmem:[%s6458_s27 + $0x3c] sm:$0xe] }
 0x123   : > { %v5488_v56 = vcombine.low %v7923_v48, %v7934_v62  ;;  %v4377_v6 = vrot.slane %v8235_v41, 5  ;;  %v4368_v35 = vsel %vm6710_vm7, %v5460_v51, %v4367_v61  ;;  %v5473_v5 = vrot.slane %v5457_v50, 9 }
 0x124   : > { %v4376_v19 = vrot.slane %v4374_v16, 4  ;;  %v4375_v23 = vsel %vm6710_vm7, %v5461_v18, %v4374_v16  ;;  %v4461_v51 = vrot.slane %v7825_v52, 5  ;;  %v2438_v57 = vshll.u32 %v6367_v31, 16 }
 0x125   : > { %5928 = vmatmul.mubr.msk.bf16.gmra.mrb[24].mxu0 %vm685_vm3, %v5424_v7  ;;  %v5472_v7 = vrot.slane %v5456_v49, 9 }
 0x126   : > { %5776 = vmatmul.mubr.msk.bf16.gmra.mrb[8].mxu1 %vm685_vm3, %v6300_v47  ;;  %5931 = vmatprep.mubr.msk.bf16.mxu0 %vm685_vm3, %v5425_v29  ;;  %v4370_v47 = vrot.slane %v6353_v28, 5  ;;  %v4451_v29 = vrot.slane %v7683_v39, 5  ;;  %v8236_v39 = vld [vmem:[#allocation7_spill] sm:$0xff]  ;;  %v4378_v25 = vsel %vm6710_vm7, %v4376_v19, %v4377_v6  ;;  %v5462_v28 = vrot.slane %v5446_v24, 9 }
 0x127   : > { %5779 = vmatprep.mubr.msk.bf16.mxu1 %vm685_vm3, %v6301_v30  ;;  %v4369_v30 = vrot.slane %v4367_v61, 4  ;;  %v4381_v49 = vrot.slane %v8236_v39, 5  ;;  %v4458_v61 = vrot.slane %v7735_v58, 5  ;;  %v6354_v39 = vld [vmem:[%s6458_s27 + $0x70] sm:$0xf]  ;;  %v4465_v24 = vrot.slane %v7811_v55, 5 }
 0x128   : > { %v7946_v63 = vsel %vm6710_vm7, %v5472_v7, %v4451_v29  ;;  %v4453_v2 = vrot.slane %v4451_v29, 4  ;;  %v5175_v7 = vld [vmem:[%s6458_s27 + $0x6c] sm:$0xf]  ;;  %v8237_v29 = vld [vmem:[#allocation8_spill] sm:$0xff] }
 0x129   : > { %v4371_v34 = vsel %vm6710_vm7, %v4369_v30, %v4370_v47  ;;  %v4383_v47 = vrot.slane %v4381_v49, 4  ;;  %v6304_v30 = vld [vmem:[%s6458_s27 + $0x78] sm:$0xff]   ;;  %v7977_v16 = vsel %vm6710_vm7, %v5473_v5, %v4458_v61  ;;  %v4460_v18 = vrot.slane %v4458_v61, 4 }
 0x12a   : > { %v7953_v4 = vsel %vm6710_vm7, %v4453_v2, %v4454_v9  ;;  %v5478_v9 = vcombine.low %v4375_v23, %v4378_v25  ;;  %v2251_v19 = vshrl.u32 %v5175_v7, 16  ;;  %v2254_v41 = vshll.u32 %v5175_v7, 16 }
 0x12b   : > { %v5489_v43 = vcombine.low %v7946_v63, %v7953_v4  ;;  %v7982_v58 = vsel %vm6710_vm7, %v4460_v18, %v4461_v51  ;;  %v4382_v6 = vsel %vm6710_vm7, %v5462_v28, %v4381_v49  ;;  %v4468_v49 = vrot.slane %v7856_v21, 5  ;;  %v6306_v51 = vld [vmem:[%s6458_s27 + $0x90] sm:$0xff]   ;;  %v6307_v21 = vld [vmem:[%s6458_s27 + $0x9c] sm:$0xff]  }
 0x12c   : > { %v5490_v50 = vcombine.low %v7977_v16, %v7982_v58  ;;  %v2253_v23 = vrot.slane %v2251_v19, 4  ;;  %v2256_v25 = vrot.slane %v2254_v41, 5  ;;  %v4467_v7 = vrot.slane %v4465_v24, 4 }
 0x12d   : > { %5932 = vmatmul.mubr.msk.bf16.gmra.mrb[28].mxu0 %vm685_vm3, %v5426_v46  ;;  %v5477_v46 = vcombine.low %v4368_v35, %v4371_v34  ;;  %v2260_v35 = vshll.u32 %v6354_v39, 16  ;;  %v2264_v34 = vshrl.u32 %v6354_v39, 16 }
 0x12e   : > { %5780 = vmatmul.mubr.msk.bf16.gmra.mrb[12].mxu1 %vm685_vm3, %v6302_v12  ;;  %5937 = vmatprep.mubr.msk.bf16.mxu0 %vm685_vm3, %v5476_v17  ;;  %v4384_v12 = vrot.slane %v8237_v29, 5  ;;  %v5458_v17 = vld [vmem:[%s6458_s27 + $0xcc] sm:$0xe]  ;;  %v8004_v55 = vsel %vm6710_vm7, %v4467_v7, %v4468_v49 }
 0x12f   : > { %5783 = vmatprep.mubr.msk.bf16.mxu1 %vm685_vm3, %v6303_v11  ;;  %v6305_v11 = vld [vmem:[%s6458_s27 + $0x84] sm:$0xff]   ;;  %v5474_v52 = vrot.slane %v5458_v17, 9  ;;  %v2266_v28 = vrot.slane %v2264_v34, 4  ;;  %v6355_v17 = vld [vmem:[%s6458_s27 + $0x74] sm:$0x1] }
 0x130   : > { %v4385_v2 = vsel %vm6710_vm7, %v4383_v47, %v4384_v12  ;;  %v5181_v47 = vld [vmem:[%s6458_s27 + $0x84] sm:$0xf]  ;;  %v2257_v12 = vor.u32 %v2256_v25, %v2253_v23  ;;  %v6309_v34 = vld [vmem:[%s6458_s27 + $0xb4] sm:$0xff]  }
 0x131   : > { %v7999_v5 = vsel %vm6710_vm7, %v5474_v52, %v4465_v24  ;;  %v5479_v61 = vcombine.low %v4382_v6, %v4385_v2  ;;  %v2302_v18 = vshll.u32 %v5181_v47, 16  ;;  %v5184_v6 = vld [vmem:[%s6458_s27 + $0x90] sm:$0xf]  ;;  %v6308_v2 = vld [vmem:[%s6458_s27 + $0xa8] sm:$0xff]  }
 0x132   : > { %v5491_v29 = vcombine.low %v7999_v5, %v8004_v55  ;;  %v2258_v52 = vrot.slane %v2257_v12, 4  ;;  %v2323_v23 = vshrl.u32 %v5184_v6, 16  ;;  %v2326_v25 = vshll.u32 %v5184_v6, 16 }
 0x133   : > { %v2356_v12 = vshll.u32 %v6358_v60, 16 }
 0x134   : > { %v2328_v14 = vrot.slane %v2326_v25, 5  ;;  %v6361_v25 = vld [vmem:[%s6458_s27 + $0xa4] sm:$0x1] }
 0x135   : > { %5938 = vmatmul.mubr.msk.bf16.vlgmr.msra.gmra.mrb[0].mxu0 %vm685_vm3, %v5477_v46  ;;  %v2262_v46 = vrot.slane %v2260_v35, 5  ;;  %v5187_v35 = vld [vmem:[%s6458_s27 + $0x9c] sm:$0xf]  ;;  %v8046_v6 = vrot.slane %v2356_v12, 5 }
 0x136   : > { %5784 = vmatmul.mubr.msk.bf16.gmra.mrb[16].mxu1 %vm685_vm3, %v6304_v30  ;;  %5941 = vmatprep.mubr.msk.bf16.mxu0 %vm685_vm3, %v5478_v9  ;;  %v2270_v30 = vshll.u32 %v6355_v17, 16  ;;  %v2299_v9 = vshrl.u32 %v5181_v47, 16  ;;  %v2350_v47 = vshll.u32 %v5187_v35, 16  ;;  %v6359_v17 = vld [vmem:[%s6458_s27 + $0x8c] sm:$0x1] }
 0x137   : > { %5787 = vmatprep.mubr.msk.bf16.mxu1 %vm685_vm3, %v6305_v11  ;;  %v2267_v13 = vor.u32 %v2266_v28, %v2262_v46  ;;  %v6356_v11 = vld [vmem:[%s6458_s27 + $0x88] sm:$0xf]  ;;  %v2263_v7 = vsel %vm6484_vm4, %v2258_v52, %v2262_v46 }
 0x138   : > { %v2308_v19 = vshll.u32 %v6356_v11, 16  ;;  %v2312_v41 = vshrl.u32 %v6356_v11, 16  ;;  %v2272_v0 = vrot.slane %v2270_v30, 5  ;;  %v2301_v36 = vrot.slane %v2299_v9, 4 }
 0x139   : > { %v2268_v39 = vrot.slane %v2267_v13, 4  ;;  %v2318_v30 = vshll.u32 %v6359_v17, 16  ;;  %v2325_v9 = vrot.slane %v2323_v23, 4  ;;  %v2352_v11 = vrot.slane %v2350_v47, 5 }
 0x13a   : > { %v8023_v24 = vrot.slane %v2308_v19, 5  ;;  %v2314_v49 = vrot.slane %v2312_v41, 4  ;;  %v6310_v19 = vld [vmem:[%s6458_s27 + $0xc0] sm:$0xff]  }
 0x13b   : > { %v2273_v46 = vsel %vm6484_vm4, %v2268_v39, %v2272_v0  ;;  %v5190_v39 = vld [vmem:[%s6458_s27 + $0xa8] sm:$0xf] }
 0x13c   : > { %v2315_v13 = vor.u32 %v2314_v49, %v8023_v24  ;;  %v5208_v41 = vcombine.low %v2263_v7, %v2273_v46  ;;  %v2366_v7 = vshll.u32 %v6361_v25, 16  ;;  %v2374_v45 = vshll.u32 %v5190_v39, 16 }
 0x13d   : > { %5942 = vmatmul.mubr.msk.bf16.gmra.mrb[4].mxu0 %vm685_vm3, %v5479_v61  ;;  %v6357_v61 = vld [vmem:[%s6458_s27 + $0x94] sm:$0xf] }
 0x13e   : > { %5788 = vmatmul.mubr.msk.bf16.gmra.mrb[20].mxu1 %vm685_vm3, %v6306_v51  ;;  %5945 = vmatprep.mubr.msk.bf16.mxu0 %vm685_vm3, %v5480_v10  ;;  %v2304_v10 = vrot.slane %v2302_v18, 5  ;;  %v2332_v51 = vshll.u32 %v6357_v61, 16  ;;  %v2336_v28 = vshrl.u32 %v6357_v61, 16  ;;  %v2316_v0 = vrot.slane %v2315_v13, 4 }
 0x13f   : > { %5791 = vmatprep.mubr.msk.bf16.mxu1 %vm685_vm3, %v6307_v21  ;;  %v2347_v21 = vshrl.u32 %v5187_v35, 16  ;;  %v6360_v35 = vld [vmem:[%s6458_s27 + $0x98] sm:$0x1]  ;;  %v2371_v61 = vshrl.u32 %v5190_v39, 16  ;;  %v5196_v39 = vld [vmem:[%s6458_s27 + $0xc0] sm:$0xf] }
 0x140   : > { %v2305_v15 = vor.u32 %v2304_v10, %v2301_v36  ;;  %v8043_v26 = vrot.slane %v2332_v51, 5  ;;  %v2320_v36 = vrot.slane %v2318_v30, 5  ;;  %v2329_v10 = vor.u32 %v2328_v14, %v2325_v9  ;;  %v5193_v51 = vld [vmem:[%s6458_s27 + $0xb4] sm:$0xf] }
 0x141   : > { %v2349_v18 = vrot.slane %v2347_v21, 4  ;;  %v2384_v21 = vshrl.u32 %v6362_v27, 16  ;;  %v2395_v20 = vshrl.u32 %v5193_v51, 16  ;;  %v2398_v42 = vshll.u32 %v5193_v51, 16 }
 0x142   : > { %v2306_v52 = vrot.slane %v2305_v15, 4  ;;  %v2321_v46 = vsel %vm6484_vm4, %v2316_v0, %v2320_v36  ;;  %v2330_v15 = vrot.slane %v2329_v10, 4  ;;  %v2368_v30 = vrot.slane %v2366_v7, 5 }
 0x143   : > { %v2353_v23 = vor.u32 %v2352_v11, %v2349_v18  ;;  %v2373_v9 = vrot.slane %v2371_v61, 4  ;;  %v2386_v11 = vrot.slane %v2384_v21, 4  ;;  %v6366_v61 = vld [vmem:[%s6458_s27 + $0xbc] sm:$0x1] }
 0x144   : > { %v2311_v47 = vsel %vm6484_vm4, %v2306_v52, %v8023_v24  ;;  %v2335_v0 = vsel %vm6484_vm4, %v2330_v15, %v8043_v26  ;;  %v2414_v22 = vshll.u32 %v6366_v61, 16 }
 0x145   : > { %5946 = vmatmul.mubr.msk.bf16.gmra.mrb[8].mxu0 %vm685_vm3, %v5481_v40  ;;  %v2360_v40 = vshrl.u32 %v6358_v60, 16  ;;  %v2354_v17 = vrot.slane %v2353_v23, 4  ;;  %v5210_v24 = vcombine.low %v2311_v47, %v2321_v46 }
 0x146   : > { %5792 = vmatmul.mubr.msk.bf16.gmra.mrb[24].mxu1 %vm685_vm3, %v6308_v2  ;;  %5949 = vmatprep.mubr.msk.bf16.mxu0 %vm685_vm3, %v5482_v54  ;;  %v2338_v54 = vrot.slane %v2336_v28, 4 }
 0x147   : > { %5795 = vmatprep.mubr.msk.bf16.mxu1 %vm685_vm3, %v6309_v34  ;;  %v2362_v2 = vrot.slane %v2360_v40, 4  ;;  %v2342_v34 = vshll.u32 %v6360_v35, 16  ;;  %v2359_v10 = vsel %vm6484_vm4, %v2354_v17, %v8046_v6  ;;  %v2440_v17 = vrot.slane %v2438_v57, 5 }
 0x148   : > { %v2339_v49 = vor.u32 %v2338_v54, %v8043_v26  ;;  %v2376_v54 = vrot.slane %v2374_v45, 5  ;;  %v6364_v26 = vld [vmem:[%s6458_s27 + $0xb0] sm:$0x1] }
 0x149   : > { %v2363_v28 = vor.u32 %v2362_v2, %v8046_v6  ;;  %v2344_v60 = vrot.slane %v2342_v34, 5  ;;  %v2390_v35 = vshll.u32 %v6364_v26, 16  ;;  %v2419_v34 = vshrl.u32 %v5196_v39, 16 }
 0x14a   : > { %v2340_v13 = vrot.slane %v2339_v49, 4  ;;  %v2377_v38 = vor.u32 %v2376_v54, %v2373_v9  ;;  %v2422_v6 = vshll.u32 %v5196_v39, 16  ;;  %v6365_v49 = vld [vmem:[%s6458_s27 + $0xc4] sm:$0xf] }
 0x14b   : > { %v2364_v14 = vrot.slane %v2363_v28, 4  ;;  %v2428_v23 = vshll.u32 %v6365_v49, 16  ;;  %v2432_v25 = vshrl.u32 %v6365_v49, 16  ;;  %v2392_v45 = vrot.slane %v2390_v35, 5 }
 0x14c   : > { %v2345_v36 = vsel %vm6484_vm4, %v2340_v13, %v2344_v60  ;;  %v2378_v51 = vrot.slane %v2377_v38, 4  ;;  %v2416_v60 = vrot.slane %v2414_v22, 5 }
 0x14d   : > { %5950 = vmatmul.mubr.msk.bf16.gmra.mrb[12].mxu0 %vm685_vm3, %v5483_v53  ;;  %v2380_v53 = vshll.u32 %v6362_v27, 16  ;;  %v2369_v59 = vsel %vm6484_vm4, %v2364_v14, %v2368_v30  ;;  %v5211_v44 = vcombine.low %v2335_v0, %v2345_v36  ;;  %v2421_v27 = vrot.slane %v2419_v34, 4 }
 0x14e   : > { %5796 = vmatmul.mubr.msk.bf16.gmra.mrb[28].mxu1 %vm685_vm3, %v6310_v19  ;;  %5953 = vmatprep.mubr.msk.bf16.mxu0 %vm685_vm3, %v5484_v33  ;;  %v6363_v33 = vld [vmem:[%s6458_s27 + $0xb8] sm:$0xf]  ;;  %v2397_v19 = vrot.slane %v2395_v20, 4  ;;  %v2430_v21 = vrot.slane %v2428_v23, 5  ;;  %v2434_v47 = vrot.slane %v2432_v25, 4 }
 0x14f   : > { %5817 = vmatprep.mubr.msk.bf16.mxu1 %vm685_vm3, %v5208_v41  ;;  %v2404_v12 = vshll.u32 %v6363_v33, 16  ;;  %v2408_v40 = vshrl.u32 %v6363_v33, 16  ;;  %v2382_v18 = vrot.slane %v2380_v53, 5  ;;  %v2400_v41 = vrot.slane %v2398_v42, 5 }
 0x150   : > { %v2424_v53 = vrot.slane %v2422_v6, 5 }
 0x151   : > { %v2406_v52 = vrot.slane %v2404_v12, 5  ;;  %v2410_v2 = vrot.slane %v2408_v40, 4  ;;  %v2383_v20 = vsel %vm6484_vm4, %v2378_v51, %v2382_v18  ;;  %v2435_v12 = vor.u32 %v2434_v47, %v2430_v21 }
 0x152   : > { %v2425_v33 = vor.u32 %v2424_v53, %v2421_v27 }
 0x153   : > { %v2411_v7 = vor.u32 %v2410_v2, %v2406_v52  ;;  %v2436_v13 = vrot.slane %v2435_v12, 4 }
 0x154   : > { %v2426_v40 = vrot.slane %v2425_v33, 4 }
 0x155   : > { %5954 = vmatmul.mubr.msk.bf16.gmra.mrb[16].mxu0 %vm685_vm3, %v5485_v37  ;;  %v2387_v37 = vor.u32 %v2386_v11, %v2382_v18  ;;  %v2412_v15 = vrot.slane %v2411_v7, 4  ;;  %v2441_v9 = vsel %vm6484_vm4, %v2436_v13, %v2440_v17 }
 0x156   : > { %5818 = vmatmul.mubr.msk.bf16.vlgmr.msra.gmra.mrb[16].mxu1 %vm685_vm3, %v7852_v1  ;;  %5957 = vmatprep.mubr.msk.bf16.mxu0 %vm685_vm3, %v5486_v3  ;;  %v2401_v1 = vor.u32 %v2400_v41, %v2397_v19  ;;  %v5212_v3 = vcombine.low %v2359_v10, %v2369_v59  ;;  %v2431_v30 = vsel %vm6484_vm4, %v2426_v40, %v2430_v21 }
 0x157   : > { %5821 = vmatprep.mubr.msk.bf16.mxu1 %vm685_vm3, %v5210_v24  ;;  %v2388_v28 = vrot.slane %v2387_v37, 4  ;;  %v2417_v48 = vsel %vm6484_vm4, %v2412_v15, %v2416_v60  ;;  %v5215_v14 = vcombine.low %v2431_v30, %v2441_v9 }
 0x158   : > { %v2402_v46 = vrot.slane %v2401_v1, 4 }
 0x159   : > { %v2393_v42 = vsel %vm6484_vm4, %v2388_v28, %v2392_v45 }
 0x15a   : > { %v5213_v62 = vcombine.low %v2383_v20, %v2393_v42 }
 0x15d   : > { %5958 = vmatmul.mubr.msk.bf16.gmra.mrb[20].mxu0 %vm685_vm3, %v5487_v8  ;;  %v2407_v8 = vsel %vm6484_vm4, %v2402_v46, %v2406_v52 }
 0x15e   : > { %5822 = vmatmul.mubr.msk.bf16.gmra.mrb[20].mxu1 %vm685_vm3, %v5211_v44  ;;  %5961 = vmatprep.mubr.msk.bf16.mxu0 %vm685_vm3, %v5488_v56  ;;  %v5214_v56 = vcombine.low %v2407_v8, %v2417_v48 }
 0x15f   : > { %5825 = vmatprep.mubr.msk.bf16.mxu1 %vm685_vm3, %v5212_v3 }
 0x165   : > { %5962 = vmatmul.mubr.msk.bf16.gmra.mrb[24].mxu0 %vm685_vm3, %v5489_v43 }
 0x166   : > { %5826 = vmatmul.mubr.msk.bf16.gmra.mrb[24].mxu1 %vm685_vm3, %v5213_v62  ;;  %5965 = vmatprep.mubr.msk.bf16.mxu0 %vm685_vm3, %v5490_v50 }
 0x167   : > { %5829 = vmatprep.mubr.msk.bf16.mxu1 %vm685_vm3, %v5214_v56 }
 0x16d   : > { %5966 = vmatmul.mubr.msk.bf16.gmra.mrb[28].mxu0 %vm685_vm3, %v5491_v29 }
 0x16e   : > { %5830 = vmatmul.mubr.msk.bf16.gmra.mrb[28].mxu1 %vm685_vm3, %v5215_v14 }
 0x1e9   : > { %v5769_v63 = vpop.f32.mrb[0].mxu1 }
 0x1ea   : > { %v1851_v4 = vpop.f32.mrb[1].mxu1 }
 0x1eb   : > { %v5770_v43 = vpop.f32.mrb[2].mxu1 }
 0x1ec   : > { %v1854_v16 = vpop.f32.mrb[3].mxu1 }
 0x1f1   : > { %v5773_v58 = vpop.f32.mrb[4].mxu1 }
 0x1f2   : > { %v1867_v50 = vpop.f32.mrb[5].mxu1 }
 0x1f3   : > { %v5774_v5 = vpop.f32.mrb[6].mxu1 }
 0x1f4   : > { %v1870_v55 = vpop.f32.mrb[7].mxu1 }
 0x1f9   : > { %v5777_v29 = vpop.f32.mrb[8].mxu1 }
 0x1fa   : > { %v1883_v54 = vpop.f32.mrb[9].mxu1 }
 0x1fb   : > { %v5778_v18 = vpop.f32.mrb[10].mxu1 }
 0x1fc   : > { %v1886_v11 = vpop.f32.mrb[11].mxu1 }
 0x201   : > { %v5781_v24 = vpop.f32.mrb[12].mxu1 }
 0x202   : > { %v1899_v19 = vpop.f32.mrb[13].mxu1 }
 0x203   : > { %v8148_v41 = vpop.f32.mrb[14].mxu1 }
 0x204   : > { %v8150_v52 = vpop.f32.mrb[15].mxu1 }
 0x208   : > { %v5939_v2 = vpop.f32.mrb[0].mxu0 }
 0x209   : > { %v5971_v39 = vadd.f32 %v5939_v2, %v5769_v63  ;;  %v4605_v0 = vpop.f32.mrb[1].mxu0 }
 0x20a   : > { %v5972_v36 = vadd.f32 %v4605_v0, %v1851_v4  ;;  %v5940_v10 = vpop.f32.mrb[2].mxu0 }
 0x20b   : > { %v5973_v59 = vadd.f32 %v5940_v10, %v5770_v43  ;;  %v4608_v38 = vpop.f32.mrb[3].mxu0  ;;  %v4807_v6 = vmul.f32 %v5971_v39, %v5971_v39 }
 0x20c   : > { %v5974_v37 = vadd.f32 %v4608_v38, %v1854_v16  ;;  %v4805_v26 = vmul.f32 %v5972_v36, %v5972_v36 }
 0x20d   : > { %v4808_v61 = vmul.f32 %v5973_v59, %v5973_v59 }
 0x20e   : > { %v4765_v35 = vadd.f32 %v5974_v37, %v5972_v36  ;;  %v4806_v34 = vmul.f32 %v5974_v37, %v5974_v37 }
 0x210   : > { %v4766_v49 = vadd.f32 %v5971_v39, %v4765_v35  ;;  %v4837_v23 = vadd.f32 %v4806_v34, %v4805_v26  ;;  %v5943_v25 = vpop.f32.mrb[4].mxu0 }
 0x211   : > { %v5975_v1 = vadd.f32 %v5943_v25, %v5773_v58  ;;  %v4621_v7 = vpop.f32.mrb[5].mxu0 }
 0x212   : > { %v4838_v22 = vadd.f32 %v4837_v23, %v4807_v6  ;;  %v5976_v44 = vadd.f32 %v4621_v7, %v1867_v50  ;;  %v4767_v3 = vadd.f32 %v5973_v59, %v4766_v49  ;;  %v5944_v51 = vpop.f32.mrb[6].mxu0 }
 0x213   : > { %v5977_v28 = vadd.f32 %v5944_v51, %v5774_v5  ;;  %v4624_v45 = vpop.f32.mrb[7].mxu0  ;;  %v4811_v20 = vmul.f32 %v5975_v1, %v5975_v1 }
 0x214   : > { %v4768_v27 = vadd.f32 %v5976_v44, %v4767_v3  ;;  %v4809_v53 = vmul.f32 %v5976_v44, %v5976_v44  ;;  %v4839_v21 = vadd.f32 %v4838_v22, %v4808_v61  ;;  %v5978_v47 = vadd.f32 %v4624_v45, %v1870_v55 }
 0x215   : > { %v4812_v8 = vmul.f32 %v5977_v28, %v5977_v28 }
 0x216   : > { %v4840_v46 = vadd.f32 %v4839_v21, %v4809_v53  ;;  %v4769_v15 = vadd.f32 %v5978_v47, %v4768_v27  ;;  %v4810_v60 = vmul.f32 %v5978_v47, %v5978_v47 }
 0x218   : > { %v4770_v42 = vadd.f32 %v5975_v1, %v4769_v15  ;;  %v4841_v33 = vadd.f32 %v4840_v46, %v4810_v60  ;;  %v5947_v12 = vpop.f32.mrb[8].mxu0 }
 0x219   : > { %v5979_v31 = vadd.f32 %v5947_v12, %v5777_v29  ;;  %v4637_v57 = vpop.f32.mrb[9].mxu0 }
 0x21a   : > { %v4842_v48 = vadd.f32 %v4841_v33, %v4811_v20  ;;  %v5980_v62 = vadd.f32 %v4637_v57, %v1883_v54  ;;  %v4771_v56 = vadd.f32 %v5977_v28, %v4770_v42  ;;  %v5948_v40 = vpop.f32.mrb[10].mxu0 }
 0x21b   : > { %v5981_v13 = vadd.f32 %v5948_v40, %v5778_v18  ;;  %v4640_v17 = vpop.f32.mrb[11].mxu0  ;;  %v4815_v16 = vmul.f32 %v5979_v31, %v5979_v31 }
 0x21c   : > { %v4772_v30 = vadd.f32 %v5980_v62, %v4771_v56  ;;  %v4813_v9 = vmul.f32 %v5980_v62, %v5980_v62  ;;  %v4843_v14 = vadd.f32 %v4842_v48, %v4812_v8  ;;  %v5982_v32 = vadd.f32 %v4640_v17, %v1886_v11 }
 0x21d   : > { %v4816_v2 = vmul.f32 %v5981_v13, %v5981_v13 }
 0x21e   : > { %v4844_v63 = vadd.f32 %v4843_v14, %v4813_v9  ;;  %v4773_v4 = vadd.f32 %v5982_v32, %v4772_v30  ;;  %v4814_v43 = vmul.f32 %v5982_v32, %v5982_v32 }
 0x220   : > { %v4774_v58 = vadd.f32 %v5979_v31, %v4773_v4  ;;  %v4845_v50 = vadd.f32 %v4844_v63, %v4814_v43  ;;  %v5951_v5 = vpop.f32.mrb[12].mxu0 }
 0x221   : > { %v5983_v55 = vadd.f32 %v5951_v5, %v5781_v24  ;;  %v4653_v29 = vpop.f32.mrb[13].mxu0 }
 0x222   : > { %v4846_v39 = vadd.f32 %v4845_v50, %v4815_v16  ;;  %v5984_v54 = vadd.f32 %v4653_v29, %v1899_v19  ;;  %v4775_v0 = vadd.f32 %v5981_v13, %v4774_v58  ;;  %v5952_v36 = vpop.f32.mrb[14].mxu0 }
 0x223   : > { %v5985_v18 = vadd.f32 %v5952_v36, %v8148_v41  ;;  %v4656_v10 = vpop.f32.mrb[15].mxu0  ;;  %v4819_v6 = vmul.f32 %v5983_v55, %v5983_v55 }
 0x224   : > { %v4776_v59 = vadd.f32 %v5984_v54, %v4775_v0  ;;  %v4817_v38 = vmul.f32 %v5984_v54, %v5984_v54  ;;  %v4847_v11 = vadd.f32 %v4846_v39, %v4816_v2  ;;  %v5986_v37 = vadd.f32 %v4656_v10, %v8150_v52 }
 0x225   : > { %v4820_v19 = vmul.f32 %v5985_v18, %v5985_v18 }
 0x226   : > { %v4848_v26 = vadd.f32 %v4847_v11, %v4817_v38  ;;  %v4777_v35 = vadd.f32 %v5986_v37, %v4776_v59  ;;  %v4818_v34 = vmul.f32 %v5986_v37, %v5986_v37 }
 0x228   : > { %v4778_v49 = vadd.f32 %v5983_v55, %v4777_v35  ;;  %v4849_v24 = vadd.f32 %v4848_v26, %v4818_v34  ;;  %v5955_v23 = vpop.f32.mrb[16].mxu0 }
 0x229   : > { %v5819_v25 = vpop.f32.mrb[16].mxu1  ;;  %v4669_v1 = vpop.f32.mrb[17].mxu0 }
 0x22a   : > { %v4850_v7 = vadd.f32 %v4849_v24, %v4819_v6  ;;  %v5987_v61 = vadd.f32 %v5955_v23, %v5819_v25  ;;  %v2641_v22 = vpop.f32.mrb[17].mxu1  ;;  %v4779_v41 = vadd.f32 %v5985_v18, %v4778_v49  ;;  %v5956_v44 = vpop.f32.mrb[18].mxu0 }
 0x22b   : > { %v5988_v3 = vadd.f32 %v4669_v1, %v2641_v22  ;;  %v5820_v51 = vpop.f32.mrb[18].mxu1  ;;  %v4672_v28 = vpop.f32.mrb[19].mxu0 }
 0x22c   : > { %v4851_v45 = vadd.f32 %v4850_v7, %v4820_v19  ;;  %v5989_v52 = vadd.f32 %v5956_v44, %v5820_v51  ;;  %v2644_v27 = vpop.f32.mrb[19].mxu1  ;;  %v4823_v42 = vmul.f32 %v5987_v61, %v5987_v61 }
 0x22d   : > { %v4780_v53 = vadd.f32 %v5988_v3, %v4779_v41  ;;  %v4821_v21 = vmul.f32 %v5988_v3, %v5988_v3  ;;  %v5990_v47 = vadd.f32 %v4672_v28, %v2644_v27 }
 0x22e   : > { %v4824_v56 = vmul.f32 %v5989_v52, %v5989_v52 }
 0x22f   : > { %v4852_v46 = vadd.f32 %v4851_v45, %v4821_v21  ;;  %v4781_v15 = vadd.f32 %v5990_v47, %v4780_v53  ;;  %v4822_v60 = vmul.f32 %v5990_v47, %v5990_v47 }
 0x230   : > { %v5959_v20 = vpop.f32.mrb[20].mxu0 }
 0x231   : > { %v4782_v33 = vadd.f32 %v5987_v61, %v4781_v15  ;;  %v4853_v12 = vadd.f32 %v4852_v46, %v4822_v60  ;;  %v5823_v31 = vpop.f32.mrb[20].mxu1  ;;  %v4685_v57 = vpop.f32.mrb[21].mxu0 }
 0x232   : > { %v5991_v8 = vadd.f32 %v5959_v20, %v5823_v31  ;;  %v2657_v48 = vpop.f32.mrb[21].mxu1  ;;  %v5960_v62 = vpop.f32.mrb[22].mxu0 }
 0x233   : > { %v4854_v40 = vadd.f32 %v4853_v12, %v4823_v42  ;;  %v5992_v13 = vadd.f32 %v4685_v57, %v2657_v48  ;;  %v4783_v17 = vadd.f32 %v5989_v52, %v4782_v33  ;;  %v5824_v30 = vpop.f32.mrb[22].mxu1  ;;  %v4688_v9 = vpop.f32.mrb[23].mxu0 }
 0x234   : > { %v5993_v14 = vadd.f32 %v5960_v62, %v5824_v30  ;;  %v2660_v32 = vpop.f32.mrb[23].mxu1  ;;  %v4827_v29 = vmul.f32 %v5991_v8, %v5991_v8 }
 0x235   : > { %v4784_v63 = vadd.f32 %v5992_v13, %v4783_v17  ;;  %v4825_v4 = vmul.f32 %v5992_v13, %v5992_v13  ;;  %v4855_v43 = vadd.f32 %v4854_v40, %v4824_v56  ;;  %v5994_v16 = vadd.f32 %v4688_v9, %v2660_v32 }
 0x236   : > { %v4828_v59 = vmul.f32 %v5993_v14, %v5993_v14 }
 0x237   : > { %v4856_v58 = vadd.f32 %v4855_v43, %v4825_v4  ;;  %v4785_v50 = vadd.f32 %v5994_v16, %v4784_v63  ;;  %v4826_v5 = vmul.f32 %v5994_v16, %v5994_v16 }
 0x238   : > { %v5963_v55 = vpop.f32.mrb[24].mxu0 }
 0x239   : > { %v4786_v2 = vadd.f32 %v5991_v8, %v4785_v50  ;;  %v4857_v39 = vadd.f32 %v4856_v58, %v4826_v5  ;;  %v5827_v54 = vpop.f32.mrb[24].mxu1  ;;  %v4701_v0 = vpop.f32.mrb[25].mxu0 }
 0x23a   : > { %v5995_v36 = vadd.f32 %v5963_v55, %v5827_v54  ;;  %v2673_v18 = vpop.f32.mrb[25].mxu1  ;;  %v5964_v10 = vpop.f32.mrb[26].mxu0  ;;  %v4764_v55 = vld [vmem:[%s8138_s21] sm:$0x1] }
 0x23b   : > { %v4858_v38 = vadd.f32 %v4857_v39, %v4827_v29  ;;  %v5996_v11 = vadd.f32 %v4701_v0, %v2673_v18  ;;  %v4787_v37 = vadd.f32 %v5993_v14, %v4786_v2  ;;  %v5828_v26 = vpop.f32.mrb[26].mxu1  ;;  %v4704_v35 = vpop.f32.mrb[27].mxu0  ;;  %v4804_v39 = vld [vmem:[%s8144_s24] sm:$0x1] }
 0x23c   : > { %v5997_v34 = vadd.f32 %v5964_v10, %v5828_v26  ;;  %v2676_v6 = vpop.f32.mrb[27].mxu1  ;;  %v4831_v22 = vmul.f32 %v5995_v36, %v5995_v36 }
 0x23d   : > { %v4788_v49 = vadd.f32 %v5996_v11, %v4787_v37  ;;  %v4829_v24 = vmul.f32 %v5996_v11, %v5996_v11  ;;  %v4859_v23 = vadd.f32 %v4858_v38, %v4828_v59  ;;  %v5998_v25 = vadd.f32 %v4704_v35, %v2676_v6 }
 0x23e   : > { %v4832_v27 = vmul.f32 %v5997_v34, %v5997_v34 }
 0x23f   : > { %v4860_v1 = vadd.f32 %v4859_v23, %v4829_v24  ;;  %v4789_v19 = vadd.f32 %v5998_v25, %v4788_v49  ;;  %v4830_v7 = vmul.f32 %v5998_v25, %v5998_v25 }
 0x240   : > { %v5967_v61 = vpop.f32.mrb[28].mxu0 }
 0x241   : > { %v4790_v41 = vadd.f32 %v5995_v36, %v4789_v19  ;;  %v4861_v44 = vadd.f32 %v4860_v1, %v4830_v7  ;;  %v5831_v3 = vpop.f32.mrb[28].mxu1  ;;  %v4717_v51 = vpop.f32.mrb[29].mxu0 }
 0x242   : > { %v5999_v28 = vadd.f32 %v5967_v61, %v5831_v3  ;;  %v2689_v45 = vpop.f32.mrb[29].mxu1  ;;  %v5968_v52 = vpop.f32.mrb[30].mxu0 }
 0x243   : > { %v4862_v53 = vadd.f32 %v4861_v44, %v4831_v22  ;;  %v6000_v21 = vadd.f32 %v4717_v51, %v2689_v45  ;;  %v4791_v47 = vadd.f32 %v5997_v34, %v4790_v41  ;;  %v5832_v46 = vpop.f32.mrb[30].mxu1  ;;  %v4720_v15 = vpop.f32.mrb[31].mxu0 }
 0x244   : > { %v6001_v60 = vadd.f32 %v5968_v52, %v5832_v46  ;;  %v2692_v20 = vpop.f32.mrb[31].mxu1  ;;  %v4835_v62 = vmul.f32 %v5999_v28, %v5999_v28 }
 0x245   : > { %v4792_v42 = vadd.f32 %v6000_v21, %v4791_v47  ;;  %v4833_v33 = vmul.f32 %v6000_v21, %v6000_v21  ;;  %v4863_v12 = vadd.f32 %v4862_v53, %v4832_v27  ;;  %v6002_v31 = vadd.f32 %v4720_v15, %v2692_v20 }
 0x246   : > { %v4836_v13 = vmul.f32 %v6001_v60, %v6001_v60 }
 0x247   : > { %v4864_v57 = vadd.f32 %v4863_v12, %v4833_v33  ;;  %v4793_v8 = vadd.f32 %v6002_v31, %v4792_v42  ;;  %v4834_v48 = vmul.f32 %v6002_v31, %v6002_v31 }
 0x249   : > { %v4794_v56 = vadd.f32 %v5999_v28, %v4793_v8  ;;  %v4865_v40 = vadd.f32 %v4864_v57, %v4834_v48 }
 0x24b   : > { %v4795_v17 = vadd.f32 %v6001_v60, %v4794_v56  ;;  %v4866_v30 = vadd.f32 %v4865_v40, %v4835_v62 }
 0x24d   : > { %v4796_v9 = vrot.slane %v4795_v17, 4  ;;  %v4867_v14 = vadd.f32 %v4866_v30, %v4836_v13 }
 0x24f   : > { %v4797_v32 = vadd.f32 %v4796_v9, %v4795_v17  ;;  %v4868_v63 = vrot.slane %v4867_v14, 4 }
 0x251   : > { %v4798_v4 = vrot.slane %v4797_v32, 2  ;;  %v4869_v43 = vadd.f32 %v4868_v63, %v4867_v14 }
 0x253   : > { %v4799_v16 = vadd.f32 %v4798_v4, %v4797_v32  ;;  %v4870_v58 = vrot.slane %v4869_v43, 2 }
 0x255   : > { %v4800_v50 = vrot.slane %v4799_v16, 1  ;;  %v4871_v5 = vadd.f32 %v4870_v58, %v4869_v43 }
 0x257   : > { %v4801_v29 = vadd.f32 %v4800_v50, %v4799_v16  ;;  %v4872_v2 = vrot.slane %v4871_v5, 1 }
 0x259   : > { %v4802_v54 = vadd.f32 %v4801_v29, %v4764_v55  ;;  %v4873_v0 = vadd.f32 %v4872_v2, %v4871_v5 }
 0x25b   : > { %4803 = vst [vmem:[%s8138_s21] sm:$0x1] %v4802_v54  ;;  %v4874_v36 = vadd.f32 %v4873_v0, %v4804_v39 }
 0x25d   : > { %4875 = vst [vmem:[%s8144_s24] sm:$0x1] %v4874_v36 }
 0x25e PF: > { %s14_s14 = sadd.s32 1, %s6390_s14   ;;  %s8238_s12 = smov %s6386_s13 }
 0x25f   : > { %p11_p5 = scmp.ge.s32.totalorder %s14_s14, 4   ;;  %s8239_s13 = smov %s8241_s15 }
 0x261   :  { %13 = sbr.rel (!%p11_p5) target bundleno = 2 (0x2), region = 85 }

// kernel: conv2d_bn_relu.3
= control target key start
LH: loop header
LB: loop body
LE: loop exit
PB: predicated region body
PF: predicated region fallthrough
CT: control target
= control target key end

     0   :  { %s6488_s15 = smov 0   ;;  %s6490_s16 = smov 0   ;;  %s8380_s0 = inlined_call_operand.vmem [shape: bf16[2,18,18,4], index: 0, kind: input, shape index: {}]   ;;  %s8381_s1 = inlined_call_operand.vmem [shape: bf16[3,3,4,128], index: 1, kind: input, shape index: {}]   ;;  %s8382_s2 = inlined_call_operand.vmem [shape: f32[1,128], index: 2, kind: input, shape index: {}]   ;;  %s8383_s3 = inlined_call_operand.vmem [shape: f32[1,128], index: 3, kind: input, shape index: {}]   ;;  %s8384_s4 = inlined_call_operand.vmem [shape: f32[2,16,16,8], index: 4, kind: output, shape index: {}]  }
   0x1   :  { %s6492_s17 = smov 0  }
   0x2 LB: > { %s26_s18 = sadd.s32 1, %s6457_s16  ;;  %p5037_p0 = scmp.ge.s32.totalorder %s6461_s17, 1  ;;  %s6461_s17 = sphi %s6492_s17, %s14_s17   ;;  %s6457_s16 = sphi %s6490_s16, %s8453_s16   ;;  %s6453_s15 = sphi %s6488_s15, %s8452_s15  }
   0x3   : > { %p28_p1 = scmp.ge.s32.totalorder %s26_s18, 2  ;;  %p176_p2 = scmp.lt.s32.totalorder %s6461_s17, 3 }
   0x5   : > { %s8455_s18 = smov (%p28_p1, %s26_s18), 0  ;;  %p177_p3 = pnand %p5037_p0, %p176_p2 }
   0x7   : > { %180 = sbr.rel (%p177_p3) target bundleno = 590 (0x24e), region = 36 }
   0xe   : > { %v5041_v0 = vld [vmem:[%s8381_s1 + $0x2] sm:$0x3]  ;;  %vm763_vm0 = vcmask 1041408   ;;  %v5268_v1 = vld [vmem:[%s8381_s1 + $0x8] sm:$0x3]  ;;  %p207_p4 = scmp.lt.s32.totalorder %s6453_s15, 1 }
   0xf   : > { %6299 = vmatprep.subr.msk.bf16.mxu1 %vm763_vm0, %v5041_v0  ;;  %6303 = vmatprep.subr.msk.bf16.mxu0 %vm763_vm0, %v5268_v1  ;;  %v765_v2 = vsel %vm763_vm0, %v5041_v0, 0  ;;  %v6516_v3 = vsel %vm763_vm0, %v5268_v1, 0  ;;  %v260_v4 = vld [vmem:[%s8381_s1] sm:$0x3]  ;;  %v5333_v5 = vld [vmem:[%s8381_s1 + $0xa] sm:$0x3] }
  0x10   : > { %8398 = vst [vmem:[#allocation2_spill] sm:$0xff] %v6516_v3  ;;  %5736 = vmatpush3.bf16.msra.mxu1 %v765_v2  ;;  %5872 = vmatpush3.bf16.msra.mxu0 %v6516_v3  ;;  %s8457_s15 = smov (!%p207_p4, %s6453_s15), 1  ;;  %vm277_vm1 = vsmask.f32 3328  ;;  %vm278_vm2 = vsmask.f32 7440 }
  0x11   : > { %6300 = vmatprep.subr.msk.bf16.mxu1 %vm763_vm0, %v260_v4  ;;  %6305 = vmatprep.subr.msk.bf16.mxu0 %vm763_vm0, %v5333_v5  ;;  %s6309_s27 = smul.u32 216, %s8457_s15  ;;  %vm714_vm3 = vcmask 31744   ;;  %v6546_v17 = vsel %vm763_vm0, %v260_v4, 0  ;;  %v6552_v26 = vld [vmem:[%s8381_s1 + $0xc] sm:$0x3]  ;;  %vm6559_vm4 = vmor %vm277_vm1, %vm278_vm2  ;;  %v6565_v37 = vsel %vm763_vm0, %v5333_v5, 0 }
  0x12   : > { %v6569_v41 = vsel %vm763_vm0, %v6552_v26, 0  ;;  %vm1268_vm5 = vcmask 1042432   ;;  %vm1269_vm6 = vcmask 1046532   ;;  %vm4903_vm8 = vcmask 64512  }
  0x13   : > { %s6533_s30 = scalar_lea.vmem %s8380_s0, %s6309_s27  ;;  %vm6785_vm7 = vmor %vm1268_vm5, %vm1269_vm6  ;;  %s5581_s27 = sshll.u32 %s8457_s15, 8 }
  0x14   : > { %v228_v6 = vld [vmem:[%s6533_s30] sm:$0xf]  ;;  %v229_v7 = vld [vmem:[%s6533_s30 + $0x4] sm:$0xf]  ;;  %v261_v8 = vld [vmem:[%s6533_s30 + $0x8] sm:$0x1] }
  0x15   : > { %v281_v9 = vshrl.u32 %v228_v6, 16  ;;  %v284_v10 = vshll.u32 %v228_v6, 16  ;;  %v290_v11 = vshll.u32 %v229_v7, 16  ;;  %v294_v12 = vshrl.u32 %v229_v7, 16  ;;  %v5220_v13 = vld [vmem:[%s6533_s30 + $0xc] sm:$0xf] }
  0x16   : > { %v300_v14 = vshll.u32 %v261_v8, 16  ;;  %v6540_v15 = vld [vmem:[%s6533_s30 + $0x10] sm:$0xf]  ;;  %v6543_v16 = vld [vmem:[%s6533_s30 + $0x14] sm:$0x1]  ;;  %v2088_v23 = vshrl.u32 %v5220_v13, 16 }
  0x17   : > { %v283_v18 = vrot.slane %v281_v9, 4  ;;  %v286_v19 = vrot.slane %v284_v10, 5  ;;  %v292_v20 = vrot.slane %v290_v11, 5  ;;  %v296_v21 = vrot.slane %v294_v12, 4  ;;  %v230_v31 = vld [vmem:[%s6533_s30 + $0xc] sm:$0xf] }
  0x18   : > { %v302_v22 = vrot.slane %v300_v14, 5  ;;  %v2091_v24 = vshll.u32 %v5220_v13, 16  ;;  %v2097_v25 = vshll.u32 %v6540_v15, 16  ;;  %v2101_v29 = vshrl.u32 %v6540_v15, 16  ;;  %v231_v36 = vld [vmem:[%s6533_s30 + $0x10] sm:$0xf] }
  0x19   : > { %v287_v27 = vor.u32 %v286_v19, %v283_v18  ;;  %v297_v28 = vor.u32 %v296_v21, %v292_v20  ;;  %v2107_v30 = vshll.u32 %v6543_v16, 16  ;;  %v2090_v33 = vrot.slane %v2088_v23, 4  ;;  %v262_v44 = vld [vmem:[%s6533_s30 + $0x14] sm:$0x1]  ;;  %v5223_v55 = vld [vmem:[%s6533_s30 + $0x18] sm:$0xf] }
  0x1a   : > { %v2093_v34 = vrot.slane %v2091_v24, 5  ;;  %v2099_v35 = vrot.slane %v2097_v25, 5  ;;  %v2103_v40 = vrot.slane %v2101_v29, 4  ;;  %v305_v45 = vshrl.u32 %v230_v31, 16  ;;  %v6578_v60 = vld [vmem:[%s6533_s30 + $0x1c] sm:$0xf] }
  0x1b   : > { %v288_v38 = vrot.slane %v287_v27, 4  ;;  %v298_v39 = vrot.slane %v297_v28, 4  ;;  %v2109_v43 = vrot.slane %v2107_v30, 5  ;;  %v308_v46 = vshll.u32 %v230_v31, 16  ;;  %v6586_v1 = vld [vmem:[%s6533_s30 + $0x20] sm:$0x1] }
  0x1c   : > { %v2094_v42 = vor.u32 %v2093_v34, %v2090_v33  ;;  %v2104_v49 = vor.u32 %v2103_v40, %v2099_v35  ;;  %v314_v50 = vshll.u32 %v231_v36, 16  ;;  %v307_v53 = vrot.slane %v305_v45, 4  ;;  %v232_v18 = vld [vmem:[%s6533_s30 + $0x18] sm:$0xf]  ;;  %v233_v23 = vld [vmem:[%s6533_s30 + $0x1c] sm:$0xf] }
  0x1d   : > { %v293_v47 = vsel %vm6559_vm4, %v288_v38, %v292_v20  ;;  %v303_v48 = vsel %vm6559_vm4, %v298_v39, %v302_v22  ;;  %v310_v54 = vrot.slane %v308_v46, 5  ;;  %v318_v58 = vshrl.u32 %v231_v36, 16  ;;  %v263_v31 = vld [vmem:[%s6533_s30 + $0x20] sm:$0x1]  ;;  %v5226_v40 = vld [vmem:[%s6533_s30 + $0x24] sm:$0xf] }
  0x1e   : > { %v5042_v51 = vcombine.low %v293_v47, %v303_v48  ;;  %v2095_v52 = vrot.slane %v2094_v42, 4  ;;  %v2105_v56 = vrot.slane %v2104_v49, 4  ;;  %v316_v57 = vrot.slane %v314_v50, 5  ;;  %v6609_v46 = vld [vmem:[%s6533_s30 + $0x28] sm:$0xf] }
  0x1f   : > { %v324_v59 = vshll.u32 %v262_v44, 16  ;;  %v2831_v62 = vrot.slane %v6540_v15, 5  ;;  %v2834_v63 = vrot.slane %v6543_v16, 5  ;;  %v311_v0 = vor.u32 %v310_v54, %v307_v53  ;;  %v6618_v54 = vld [vmem:[%s6533_s30 + $0x2c] sm:$0x1] }
  0x20   : > { %5737 = vmatprep.mubr.msk.bf16.mxu1 %vm714_vm3, %v5042_v51  ;;  %v2100_v61 = vsel %vm6559_vm4, %v2095_v52, %v2099_v35  ;;  %v2110_v2 = vsel %vm6559_vm4, %v2105_v56, %v2109_v43  ;;  %v320_v4 = vrot.slane %v318_v58, 4  ;;  %v2112_v6 = vshrl.u32 %v5223_v55, 16  ;;  %v5122_v51 = vld [vmem:[%s8381_s1 + $0x4] sm:$0x3]  ;;  %v6818_v16 = vld [vmem:[%s6533_s30 + $0x7c] sm:$0xf] }
  0x21   : > { %v326_v5 = vrot.slane %v324_v59, 5  ;;  %v5269_v7 = vcombine.low %v2100_v61, %v2110_v2  ;;  %v312_v8 = vrot.slane %v311_v0, 4  ;;  %v2115_v9 = vshll.u32 %v5223_v55, 16  ;;  %v234_v0 = vld [vmem:[%s6533_s30 + $0x24] sm:$0xf] }
  0x22   : > { %v2121_v10 = vshll.u32 %v6578_v60, 16  ;;  %v321_v11 = vor.u32 %v320_v4, %v316_v57  ;;  %v2114_v12 = vrot.slane %v2112_v6, 4  ;;  %v2125_v13 = vshrl.u32 %v6578_v60, 16 }
  0x23   : > { %v2131_v14 = vshll.u32 %v6586_v1, 16  ;;  %5873 = vmatprep.mubr.msk.bf16.mxu0 %vm714_vm3, %v5269_v7  ;;  %v317_v19 = vsel %vm6559_vm4, %v312_v8, %v316_v57  ;;  %v2117_v20 = vrot.slane %v2115_v9, 5  ;;  %v2838_v22 = vrot.slane %v6578_v60, 5  ;;  %v235_v7 = vld [vmem:[%s6533_s30 + $0x28] sm:$0xf] }
  0x24   : > { %v2123_v21 = vrot.slane %v2121_v10, 5  ;;  %v322_v24 = vrot.slane %v321_v11, 4  ;;  %v2127_v25 = vrot.slane %v2125_v13, 4  ;;  %v2841_v28 = vrot.slane %v6586_v1, 5  ;;  %v264_v13 = vld [vmem:[%s6533_s30 + $0x2c] sm:$0x1] }
  0x25   : > { %v2133_v27 = vrot.slane %v2131_v14, 5  ;;  %v2118_v29 = vor.u32 %v2117_v20, %v2114_v12  ;;  %v6602_v30 = vrot.slane %v2838_v22, 4  ;;  %v329_v33 = vshrl.u32 %v232_v18, 16 }
  0x26   : > { %v332_v34 = vshll.u32 %v232_v18, 16  ;;  %v327_v35 = vsel %vm6559_vm4, %v322_v24, %v326_v5  ;;  %v2128_v36 = vor.u32 %v2127_v25, %v2123_v21  ;;  %v338_v38 = vshll.u32 %v233_v23, 16  ;;  %v5229_v24 = vld [vmem:[%s6533_s30 + $0x30] sm:$0xf] }
  0x27   : > { %v342_v39 = vshrl.u32 %v233_v23, 16  ;;  %v5043_v42 = vcombine.low %v317_v19, %v327_v35  ;;  %v2119_v43 = vrot.slane %v2118_v29, 4  ;;  %v331_v44 = vrot.slane %v329_v33, 4  ;;  %v6638_v33 = vld [vmem:[%s6533_s30 + $0x34] sm:$0xf] }
  0x28   : > { %v334_v45 = vrot.slane %v332_v34, 5  ;;  %v2129_v47 = vrot.slane %v2128_v36, 4  ;;  %v340_v48 = vrot.slane %v338_v38, 5  ;;  %v348_v50 = vshll.u32 %v263_v31, 16 }
  0x29   : > { %v344_v49 = vrot.slane %v342_v39, 4  ;;  %5738 = vmatmul.mubr.msk.bf16.vlgmr.msra.gmra.mrb[0].mxu1 %vm714_vm3, %v5043_v42  ;;  %v2124_v52 = vsel %vm6559_vm4, %v2119_v43, %v2123_v21  ;;  %v2136_v55 = vshrl.u32 %v5226_v40, 16  ;;  %v2139_v56 = vshll.u32 %v5226_v40, 16  ;;  %v6646_v40 = vld [vmem:[%s6533_s30 + $0x38] sm:$0x1] }
  0x2a   : > { %v335_v53 = vor.u32 %v334_v45, %v331_v44  ;;  %5770 = vmatpush3.bf16.msra.mxu1 %v6546_v17  ;;  %v2134_v57 = vsel %vm6559_vm4, %v2129_v47, %v2133_v27  ;;  %v350_v59 = vrot.slane %v348_v50, 5  ;;  %v2145_v61 = vshll.u32 %v6609_v46, 16 }
  0x2b   : > { %v345_v58 = vor.u32 %v344_v49, %v340_v48  ;;  %v5270_v2 = vcombine.low %v2124_v52, %v2134_v57  ;;  %v2138_v5 = vrot.slane %v2136_v55, 4  ;;  %v2141_v6 = vrot.slane %v2139_v56, 5  ;;  %6301 = vmatprep.subr.msk.bf16.mxu1 %vm763_vm0, %v5122_v51  ;;  %v236_v52 = vld [vmem:[%s6533_s30 + $0x30] sm:$0xf] }
  0x2c   : > { %v336_v4 = vrot.slane %v335_v53, 4  ;;  %v2147_v9 = vrot.slane %v2145_v61, 5  ;;  %v2149_v17 = vshrl.u32 %v6609_v46, 16  ;;  %v2155_v10 = vshll.u32 %v6618_v54, 16 }
  0x2d   : > { %v346_v8 = vrot.slane %v345_v58, 4  ;;  %5874 = vmatmul.mubr.msk.bf16.vlgmr.msra.gmra.mrb[0].mxu0 %vm714_vm3, %v5270_v2  ;;  %v2142_v12 = vor.u32 %v2141_v6, %v2138_v5  ;;  %v353_v14 = vshrl.u32 %v234_v0, 16  ;;  %v356_v18 = vshll.u32 %v234_v0, 16  ;;  %v237_v58 = vld [vmem:[%s6533_s30 + $0x34] sm:$0xf] }
  0x2e   : > { %v341_v11 = vsel %vm6559_vm4, %v336_v4, %v340_v48  ;;  %5906 = vmatpush3.bf16.msra.mxu0 %v6565_v37  ;;  %v2151_v20 = vrot.slane %v2149_v17, 4  ;;  %v2157_v21 = vrot.slane %v2155_v10, 5  ;;  %v362_v23 = vshll.u32 %v235_v7, 16  ;;  %v265_v4 = vld [vmem:[%s6533_s30 + $0x38] sm:$0x1] }
  0x2f   : > { %v351_v19 = vsel %vm6559_vm4, %v346_v8, %v350_v59  ;;  %v2143_v27 = vrot.slane %v2142_v12, 4  ;;  %v355_v29 = vrot.slane %v353_v14, 4  ;;  %v358_v31 = vrot.slane %v356_v18, 5  ;;  %6306 = vmatprep.subr.msk.bf16.mxu0 %vm763_vm0, %v6552_v26  ;;  %v5232_v12 = vld [vmem:[%s6533_s30 + $0x3c] sm:$0xf] }
  0x30   : > { %v5044_v25 = vcombine.low %v341_v11, %v351_v19  ;;  %v2152_v34 = vor.u32 %v2151_v20, %v2147_v9  ;;  %v364_v35 = vrot.slane %v362_v23, 5  ;;  %v366_v37 = vshrl.u32 %v235_v7, 16  ;;  %v6663_v20 = vld [vmem:[%s6533_s30 + $0x40] sm:$0xf] }
  0x31   : > { %v372_v36 = vshll.u32 %v264_v13, 16  ;;  %v2148_v38 = vsel %vm6559_vm4, %v2143_v27, %v2147_v9  ;;  %v359_v39 = vor.u32 %v358_v31, %v355_v29  ;;  %v2160_v42 = vshrl.u32 %v5229_v24, 16 }
  0x32   : > { %5741 = vmatprep.mubr.msk.bf16.mxu1 %vm714_vm3, %v5044_v25  ;;  %v2163_v43 = vshll.u32 %v5229_v24, 16  ;;  %v2153_v44 = vrot.slane %v2152_v34, 4  ;;  %v368_v45 = vrot.slane %v366_v37, 4  ;;  %v2169_v26 = vshll.u32 %v6638_v33, 16  ;;  %v6668_v34 = vld [vmem:[%s6533_s30 + $0x44] sm:$0x1] }
  0x33   : > { %v374_v47 = vrot.slane %v372_v36, 5  ;;  %v360_v48 = vrot.slane %v359_v39, 4  ;;  %v2162_v49 = vrot.slane %v2160_v42, 4  ;;  %v2173_v51 = vshrl.u32 %v6638_v33, 16  ;;  %v238_v42 = vld [vmem:[%s6533_s30 + $0x3c] sm:$0xf] }
  0x34   : > { %v2165_v50 = vrot.slane %v2163_v43, 5  ;;  %v2158_v53 = vsel %vm6559_vm4, %v2153_v44, %v2157_v21  ;;  %v369_v55 = vor.u32 %v368_v45, %v364_v35  ;;  %v2171_v56 = vrot.slane %v2169_v26, 5  ;;  %v239_v26 = vld [vmem:[%s6533_s30 + $0x40] sm:$0xf] }
  0x35   : > { %v2179_v57 = vshll.u32 %v6646_v40, 16  ;;  %v5271_v59 = vcombine.low %v2148_v38, %v2158_v53  ;;  %v365_v61 = vsel %vm6559_vm4, %v360_v48, %v364_v35  ;;  %v2175_v2 = vrot.slane %v2173_v51, 4 }
  0x36   : > { %v2166_v0 = vor.u32 %v2165_v50, %v2162_v49  ;;  %v370_v5 = vrot.slane %v369_v55, 4  ;;  %v377_v7 = vshrl.u32 %v236_v52, 16  ;;  %v380_v8 = vshll.u32 %v236_v52, 16 }
  0x37   : > { %v2181_v6 = vrot.slane %v2179_v57, 5  ;;  %5877 = vmatprep.mubr.msk.bf16.mxu0 %vm714_vm3, %v5271_v59  ;;  %v2176_v17 = vor.u32 %v2175_v2, %v2171_v56  ;;  %v386_v10 = vshll.u32 %v237_v58, 16  ;;  %v390_v11 = vshrl.u32 %v237_v58, 16  ;;  %v5235_v2 = vld [vmem:[%s6533_s30 + $0x48] sm:$0xf] }
  0x38   : > { %v2167_v9 = vrot.slane %v2166_v0, 4  ;;  %v375_v13 = vsel %vm6559_vm4, %v370_v5, %v374_v47  ;;  %v379_v14 = vrot.slane %v377_v7, 4  ;;  %v382_v18 = vrot.slane %v380_v8, 5  ;;  %v6686_v8 = vld [vmem:[%s6533_s30 + $0x4c] sm:$0xf] }
  0x39   : > { %v396_v19 = vshll.u32 %v265_v4, 16  ;;  %v5045_v21 = vcombine.low %v365_v61, %v375_v13  ;;  %v2177_v24 = vrot.slane %v2176_v17, 4  ;;  %v388_v25 = vrot.slane %v386_v10, 5  ;;  %v266_v61 = vld [vmem:[%s6533_s30 + $0x44] sm:$0x1] }
  0x3a   : > { %v2172_v23 = vsel %vm6559_vm4, %v2167_v9, %v2171_v56  ;;  %v383_v27 = vor.u32 %v382_v18, %v379_v14  ;;  %v392_v29 = vrot.slane %v390_v11, 4  ;;  %v2184_v35 = vshrl.u32 %v5232_v12, 16 }
  0x3b   : > { %v398_v31 = vrot.slane %v396_v19, 5  ;;  %5742 = vmatmul.mubr.msk.bf16.gmra.mrb[4].mxu1 %vm714_vm3, %v5045_v21  ;;  %v2182_v37 = vsel %vm6559_vm4, %v2177_v24, %v2181_v6  ;;  %v2187_v36 = vshll.u32 %v5232_v12, 16  ;;  %v2193_v38 = vshll.u32 %v6663_v20, 16 }
  0x3c   : > { %v2197_v39 = vshrl.u32 %v6663_v20, 16  ;;  %v5272_v43 = vcombine.low %v2172_v23, %v2182_v37  ;;  %v384_v44 = vrot.slane %v383_v27, 4  ;;  %v393_v45 = vor.u32 %v392_v29, %v388_v25  ;;  %v6694_v23 = vld [vmem:[%s6533_s30 + $0x50] sm:$0x1]  ;;  %v6698_v27 = vld [vmem:[%s6533_s30 + $0x48] sm:$0xf] }
  0x3d   : > { %v2186_v47 = vrot.slane %v2184_v35, 4  ;;  %v2189_v48 = vrot.slane %v2187_v36, 5  ;;  %v2195_v49 = vrot.slane %v2193_v38, 5  ;;  %v2203_v51 = vshll.u32 %v6668_v34, 16  ;;  %v6701_v36 = vld [vmem:[%s6533_s30 + $0x4c] sm:$0xf] }
  0x3e   : > { %v2199_v50 = vrot.slane %v2197_v39, 4  ;;  %5878 = vmatmul.mubr.msk.bf16.gmra.mrb[4].mxu0 %vm714_vm3, %v5272_v43  ;;  %v389_v52 = vsel %vm6559_vm4, %v384_v44, %v388_v25  ;;  %v394_v53 = vrot.slane %v393_v45, 4  ;;  %v401_v55 = vshrl.u32 %v238_v42, 16 }
  0x3f   : > { %v404_v56 = vshll.u32 %v238_v42, 16  ;;  %v2190_v57 = vor.u32 %v2189_v48, %v2186_v47  ;;  %v2205_v59 = vrot.slane %v2203_v51, 5  ;;  %v410_v0 = vshll.u32 %v239_v26, 16 }
  0x40   : > { %v2200_v58 = vor.u32 %v2199_v50, %v2195_v49  ;;  %v399_v4 = vsel %vm6559_vm4, %v394_v53, %v398_v31  ;;  %v403_v5 = vrot.slane %v401_v55, 4  ;;  %v414_v7 = vshrl.u32 %v239_v26, 16  ;;  %v267_v26 = vld [vmem:[%s6533_s30 + $0x50] sm:$0x1]  ;;  %v5238_v53 = vld [vmem:[%s6533_s30 + $0x54] sm:$0xf] }
  0x41   : > { %v406_v6 = vrot.slane %v404_v56, 5  ;;  %v5046_v9 = vcombine.low %v389_v52, %v399_v4  ;;  %v2191_v17 = vrot.slane %v2190_v57, 4  ;;  %v412_v11 = vrot.slane %v410_v0, 5  ;;  %v6717_v4 = vld [vmem:[%s6533_s30 + $0x58] sm:$0xf] }
  0x42   : > { %v2201_v10 = vrot.slane %v2200_v58, 4  ;;  %v416_v13 = vrot.slane %v414_v7, 4  ;;  %v420_v14 = vshll.u32 %v266_v61, 16  ;;  %v2208_v18 = vshrl.u32 %v5235_v2, 16 }
  0x43   : > { %v407_v12 = vor.u32 %v406_v6, %v403_v5  ;;  %5745 = vmatprep.mubr.msk.bf16.mxu1 %vm714_vm3, %v5046_v9  ;;  %v2196_v19 = vsel %vm6559_vm4, %v2191_v17, %v2195_v49  ;;  %v2211_v24 = vshll.u32 %v5235_v2, 16  ;;  %v2217_v25 = vshll.u32 %v6686_v8, 16 }
  0x44   : > { %v2206_v21 = vsel %vm6559_vm4, %v2201_v10, %v2205_v59  ;;  %v417_v35 = vor.u32 %v416_v13, %v412_v11  ;;  %v422_v37 = vrot.slane %v420_v14, 5  ;;  %v2210_v38 = vrot.slane %v2208_v18, 4 }
  0x45   : > { %v5273_v29 = vcombine.low %v2196_v19, %v2206_v21  ;;  %v408_v31 = vrot.slane %v407_v12, 4  ;;  %v2213_v39 = vrot.slane %v2211_v24, 5  ;;  %v2219_v42 = vrot.slane %v2217_v25, 5  ;;  %v6723_v12 = vld [vmem:[%s6533_s30 + $0x5c] sm:$0x1] }
  0x46   : > { %v2221_v43 = vshrl.u32 %v6686_v8, 16  ;;  %v418_v45 = vrot.slane %v417_v35, 4  ;;  %v2227_v47 = vshll.u32 %v6694_v23, 16  ;;  %v425_v48 = vshrl.u32 %v6698_v27, 16  ;;  %v6727_v24 = vld [vmem:[%s6533_s30 + $0x54] sm:$0xf] }
  0x47   : > { %5881 = vmatprep.mubr.msk.bf16.mxu0 %vm714_vm3, %v5273_v29  ;;  %v413_v44 = vsel %vm6559_vm4, %v408_v31, %v412_v11  ;;  %v2214_v49 = vor.u32 %v2213_v39, %v2210_v38  ;;  %v428_v51 = vshll.u32 %v6698_v27, 16  ;;  %v434_v52 = vshll.u32 %v6701_v36, 16 }
  0x48   : > { %v2223_v50 = vrot.slane %v2221_v43, 4  ;;  %v423_v55 = vsel %vm6559_vm4, %v418_v45, %v422_v37  ;;  %v2229_v56 = vrot.slane %v2227_v47, 5  ;;  %v427_v57 = vrot.slane %v425_v48, 4  ;;  %v6733_v37 = vld [vmem:[%s6533_s30 + $0x58] sm:$0xf] }
  0x49   : > { %v438_v58 = vshrl.u32 %v6701_v36, 16  ;;  %v5047_v59 = vcombine.low %v413_v44, %v423_v55  ;;  %v2215_v61 = vrot.slane %v2214_v49, 4  ;;  %v430_v2 = vrot.slane %v428_v51, 5 }
  0x4a   : > { %v2224_v0 = vor.u32 %v2223_v50, %v2219_v42  ;;  %v436_v5 = vrot.slane %v434_v52, 5  ;;  %v444_v7 = vshll.u32 %v267_v26, 16  ;;  %v2232_v9 = vshrl.u32 %v5238_v53, 16  ;;  %v268_v26 = vld [vmem:[%s6533_s30 + $0x5c] sm:$0x1] }
  0x4b   : > { %v440_v6 = vrot.slane %v438_v58, 4  ;;  %5746 = vmatmul.mubr.msk.bf16.gmra.mrb[8].mxu1 %vm714_vm3, %v5047_v59  ;;  %v2220_v17 = vsel %vm6559_vm4, %v2215_v61, %v2219_v42  ;;  %v431_v11 = vor.u32 %v430_v2, %v427_v57  ;;  %v2235_v13 = vshll.u32 %v5238_v53, 16  ;;  %v5241_v53 = vld [vmem:[%s6533_s30 + $0x60] sm:$0xf]  ;;  %v6747_v59 = vld [vmem:[%s6533_s30 + $0x64] sm:$0xf] }
  0x4c   : > { %v2225_v10 = vrot.slane %v2224_v0, 4  ;;  %v446_v18 = vrot.slane %v444_v7, 5  ;;  %v2234_v19 = vrot.slane %v2232_v9, 4  ;;  %v2241_v21 = vshll.u32 %v6717_v4, 16  ;;  %v6754_v9 = vld [vmem:[%s6533_s30 + $0x68] sm:$0x1] }
  0x4d   : > { %v441_v14 = vor.u32 %v440_v6, %v436_v5  ;;  %v432_v29 = vrot.slane %v431_v11, 4  ;;  %v2237_v31 = vrot.slane %v2235_v13, 5  ;;  %v2245_v35 = vshrl.u32 %v6717_v4, 16 }
  0x4e   : > { %v2230_v25 = vsel %vm6559_vm4, %v2225_v10, %v2229_v56  ;;  %v2243_v42 = vrot.slane %v2241_v21, 5  ;;  %v2251_v43 = vshll.u32 %v6723_v12, 16  ;;  %v449_v48 = vshrl.u32 %v6727_v24, 16 }
  0x4f   : > { %v5274_v38 = vcombine.low %v2220_v17, %v2230_v25  ;;  %v442_v39 = vrot.slane %v441_v14, 4  ;;  %v437_v44 = vsel %vm6559_vm4, %v432_v29, %v436_v5  ;;  %v2238_v45 = vor.u32 %v2237_v31, %v2234_v19  ;;  %v6758_v19 = vld [vmem:[%s6533_s30 + $0x60] sm:$0xf] }
  0x50   : > { %v2247_v47 = vrot.slane %v2245_v35, 4  ;;  %v2253_v50 = vrot.slane %v2251_v43, 5  ;;  %v452_v51 = vshll.u32 %v6727_v24, 16  ;;  %v458_v52 = vshll.u32 %v6733_v37, 16  ;;  %v6764_v35 = vld [vmem:[%s6533_s30 + $0x64] sm:$0xf] }
  0x51   : > { %5882 = vmatmul.mubr.msk.bf16.gmra.mrb[8].mxu0 %vm714_vm3, %v5274_v38  ;;  %v447_v49 = vsel %vm6559_vm4, %v442_v39, %v446_v18  ;;  %v2239_v56 = vrot.slane %v2238_v45, 4  ;;  %v451_v58 = vrot.slane %v449_v48, 4  ;;  %v462_v2 = vshrl.u32 %v6733_v37, 16 }
  0x52   : > { %v5048_v55 = vcombine.low %v437_v44, %v447_v49  ;;  %v2248_v57 = vor.u32 %v2247_v47, %v2243_v42  ;;  %v454_v61 = vrot.slane %v452_v51, 5  ;;  %v460_v0 = vrot.slane %v458_v52, 5 }
  0x53   : > { %v468_v5 = vshll.u32 %v268_v26, 16  ;;  %v2244_v6 = vsel %vm6559_vm4, %v2239_v56, %v2243_v42  ;;  %v2256_v17 = vshrl.u32 %v5241_v53, 16  ;;  %v2259_v10 = vshll.u32 %v5241_v53, 16 }
  0x54   : > { %5749 = vmatprep.mubr.msk.bf16.mxu1 %vm714_vm3, %v5048_v55  ;;  %v2249_v7 = vrot.slane %v2248_v57, 4  ;;  %v455_v11 = vor.u32 %v454_v61, %v451_v58  ;;  %v464_v13 = vrot.slane %v462_v2, 4  ;;  %v2265_v18 = vshll.u32 %v6747_v59, 16  ;;  %v5301_v58 = vld [vmem:[%s6533_s30 + $0xc] sm:$0xe] }
  0x55   : > { %v470_v14 = vrot.slane %v468_v5, 5  ;;  %v2258_v25 = vrot.slane %v2256_v17, 4  ;;  %v2261_v29 = vrot.slane %v2259_v10, 5  ;;  %v2269_v31 = vshrl.u32 %v6747_v59, 16 }
  0x56   : > { %v2254_v21 = vsel %vm6559_vm4, %v2249_v7, %v2253_v50  ;;  %v456_v39 = vrot.slane %v455_v11, 4  ;;  %v465_v42 = vor.u32 %v464_v13, %v460_v0  ;;  %v2267_v43 = vrot.slane %v2265_v18, 5  ;;  %v269_v50 = vld [vmem:[%s6533_s30 + $0x68] sm:$0x1] }
  0x57   : > { %v5275_v38 = vcombine.low %v2244_v6, %v2254_v21  ;;  %v2262_v44 = vor.u32 %v2261_v29, %v2258_v25  ;;  %v2271_v45 = vrot.slane %v2269_v31, 4  ;;  %v2275_v47 = vshll.u32 %v6754_v9, 16  ;;  %v6792_v29 = vld [vmem:[%s6533_s30 + $0x70] sm:$0xf] }
  0x58   : > { %v473_v26 = vshrl.u32 %v6758_v19, 16  ;;  %v461_v48 = vsel %vm6559_vm4, %v456_v39, %v460_v0  ;;  %v466_v49 = vrot.slane %v465_v42, 4  ;;  %v476_v51 = vshll.u32 %v6758_v19, 16  ;;  %v6779_v0 = vld [vmem:[%s6533_s30 + $0x6c] sm:$0xf] }
  0x59   : > { %5885 = vmatprep.mubr.msk.bf16.mxu0 %vm714_vm3, %v5275_v38  ;;  %v482_v52 = vshll.u32 %v6764_v35, 16  ;;  %v2263_v53 = vrot.slane %v2262_v44, 4  ;;  %v2272_v55 = vor.u32 %v2271_v45, %v2267_v43  ;;  %v2277_v56 = vrot.slane %v2275_v47, 5 }
  0x5a   : > { %v475_v57 = vrot.slane %v473_v26, 4  ;;  %v471_v61 = vsel %vm6559_vm4, %v466_v49, %v470_v14  ;;  %v478_v2 = vrot.slane %v476_v51, 5  ;;  %v486_v6 = vshrl.u32 %v6764_v35, 16  ;;  %v270_v26 = vld [vmem:[%s6533_s30 + $0x74] sm:$0x1] }
  0x5b   : > { %v484_v5 = vrot.slane %v482_v52, 5  ;;  %v5049_v7 = vcombine.low %v461_v48, %v471_v61  ;;  %v2268_v17 = vsel %vm6559_vm4, %v2263_v53, %v2267_v43  ;;  %v2273_v10 = vrot.slane %v2272_v55, 4  ;;  %v5302_v48 = vld [vmem:[%s6533_s30 + $0x18] sm:$0xe] }
  0x5c   : > { %v492_v11 = vshll.u32 %v269_v50, 16  ;;  %v479_v14 = vor.u32 %v478_v2, %v475_v57  ;;  %v488_v18 = vrot.slane %v486_v6, 4  ;;  %v5317_v21 = vrot.slane %v5301_v58, 9  ;;  %v6811_v53 = vld [vmem:[%s6533_s30 + $0x78] sm:$0xf] }
  0x5d   : > { %v2833_v25 = vrot.slane %v2831_v62, 4  ;;  %5750 = vmatmul.mubr.msk.bf16.gmra.mrb[12].mxu1 %vm714_vm3, %v5049_v7  ;;  %v2278_v31 = vsel %vm6559_vm4, %v2273_v10, %v2277_v56  ;;  %v497_v39 = vshrl.u32 %v6779_v0, 16  ;;  %v500_v42 = vshll.u32 %v6779_v0, 16  ;;  %v271_v57 = vld [vmem:[%s6533_s30 + $0x80] sm:$0x1] }
  0x5e   : > { %v494_v38 = vrot.slane %v492_v11, 5  ;;  %v5276_v43 = vcombine.low %v2268_v17, %v2278_v31  ;;  %v480_v44 = vrot.slane %v479_v14, 4  ;;  %v489_v45 = vor.u32 %v488_v18, %v484_v5  ;;  %v5303_v10 = vld [vmem:[%s6533_s30 + $0x24] sm:$0xe] }
  0x5f   : > { %v2832_v47 = vsel %vm6785_vm7, %v5317_v21, %v2831_v62  ;;  %v2835_v49 = vsel %vm6785_vm7, %v2833_v25, %v2834_v63  ;;  %v499_v50 = vrot.slane %v497_v39, 4  ;;  %v502_v51 = vrot.slane %v500_v42, 5  ;;  %v6837_v39 = vld [vmem:[%s6533_s30 + $0x84] sm:$0xf] }
  0x60   : > { %v506_v52 = vshll.u32 %v6792_v29, 16  ;;  %5886 = vmatmul.mubr.msk.bf16.gmra.mrb[12].mxu0 %vm714_vm3, %v5276_v43  ;;  %v485_v15 = vsel %vm6559_vm4, %v480_v44, %v484_v5  ;;  %v490_v62 = vrot.slane %v489_v45, 4  ;;  %v5334_v55 = vcombine.low %v2832_v47, %v2835_v49  ;;  %v6845_v43 = vld [vmem:[%s6533_s30 + $0x88] sm:$0xf] }
  0x61   : > { %v510_v56 = vshrl.u32 %v6792_v29, 16  ;;  %v503_v63 = vor.u32 %v502_v51, %v499_v50  ;;  %v516_v61 = vshll.u32 %v270_v26, 16  ;;  %v5318_v2 = vrot.slane %v5302_v48, 9 }
  0x62   : > { %v508_v58 = vrot.slane %v506_v52, 5  ;;  %v495_v6 = vsel %vm6559_vm4, %v490_v62, %v494_v38  ;;  %5907 = vmatprep.mubr.msk.bf16.mxu0 %vm714_vm3, %v5334_v55  ;;  %v2842_v5 = vsel %vm6785_vm7, %v6602_v30, %v2841_v28  ;;  %v521_v17 = vshrl.u32 %v6811_v53, 16  ;;  %v272_v52 = vld [vmem:[%s6533_s30 + $0x8c] sm:$0x1] }
  0x63   : > { %v512_v7 = vrot.slane %v510_v56, 4  ;;  %v5050_v11 = vcombine.low %v485_v15, %v495_v6  ;;  %v504_v14 = vrot.slane %v503_v63, 4  ;;  %v518_v18 = vrot.slane %v516_v61, 5 }
  0x64   : > { %v2839_v21 = vsel %vm6785_vm7, %v5318_v2, %v2838_v22  ;;  %v523_v38 = vrot.slane %v521_v17, 4  ;;  %v524_v1 = vshll.u32 %v6811_v53, 16  ;;  %v530_v30 = vshll.u32 %v6818_v16, 16  ;;  %v6850_v22 = vld [vmem:[%s8381_s1 + $0xe] sm:$0x3] }
  0x65   : > { %v513_v25 = vor.u32 %v512_v7, %v508_v58  ;;  %v5335_v31 = vcombine.low %v2839_v21, %v2842_v5  ;;  %5753 = vmatprep.mubr.msk.bf16.mxu1 %vm714_vm3, %v5050_v11  ;;  %v509_v28 = vsel %vm6559_vm4, %v504_v14, %v508_v58  ;;  %v534_v60 = vshrl.u32 %v6818_v16, 16  ;;  %v6869_v5 = vld [vmem:[%s6533_s30 + $0x90] sm:$0xf] }
  0x66   : > { %v540_v42 = vshll.u32 %v271_v57, 16  ;;  %v526_v45 = vrot.slane %v524_v1, 5  ;;  %v5319_v47 = vrot.slane %v5303_v10, 9  ;;  %v2845_v26 = vrot.slane %v6609_v46, 5  ;;  %v5304_v57 = vld [vmem:[%s6533_s30 + $0x30] sm:$0xe] }
  0x67   : > { %v514_v44 = vrot.slane %v513_v25, 4  ;;  %v532_v48 = vrot.slane %v530_v30, 5  ;;  %v536_v49 = vrot.slane %v534_v60, 4  ;;  %v2848_v51 = vrot.slane %v6618_v54, 5  ;;  %v6881_v30 = vld [vmem:[%s6533_s30 + $0x94] sm:$0xf] }
  0x68   : > { %v542_v50 = vrot.slane %v540_v42, 5  ;;  %5908 = vmatmul.mubr.msk.bf16.vlgmr.msra.gmra.mrb[0].mxu0 %vm714_vm3, %v5335_v31  ;;  %v527_v62 = vor.u32 %v526_v45, %v523_v38  ;;  %v2846_v55 = vsel %vm6785_vm7, %v5319_v47, %v2845_v26  ;;  %v2847_v56 = vrot.slane %v2845_v26, 4  ;;  %v273_v60 = vld [vmem:[%s6533_s30 + $0x98] sm:$0x1]  ;;  %v5305_v26 = vld [vmem:[%s6533_s30 + $0x3c] sm:$0xe] }
  0x69   : > { %v519_v15 = vsel %vm6559_vm4, %v514_v44, %v518_v18  ;;  %5940 = vmatpush3.bf16.msra.mxu0 %v6569_v41  ;;  %v537_v46 = vor.u32 %v536_v49, %v532_v48  ;;  %v545_v58 = vshrl.u32 %v6837_v39, 16  ;;  %v548_v54 = vshll.u32 %v6837_v39, 16 }
  0x6a   : > { %v5051_v63 = vcombine.low %v509_v28, %v519_v15  ;;  %v528_v61 = vrot.slane %v527_v62, 4  ;;  %v2849_v2 = vsel %vm6785_vm7, %v2847_v56, %v2848_v51  ;;  %v554_v6 = vshll.u32 %v6845_v43, 16  ;;  %6307 = vmatprep.subr.msk.bf16.mxu0 %vm763_vm0, %v6850_v22 }
  0x6b   : > { %v558_v7 = vshrl.u32 %v6845_v43, 16  ;;  %v538_v41 = vrot.slane %v537_v46, 4  ;;  %v5336_v17 = vcombine.low %v2846_v55, %v2849_v2  ;;  %v547_v10 = vrot.slane %v545_v58, 4  ;;  %v6901_v46 = vld [vmem:[%s6533_s30 + $0xa0] sm:$0xf] }
  0x6c   : > { %5754 = vmatmul.mubr.msk.bf16.gmra.mrb[16].mxu1 %vm714_vm3, %v5051_v63  ;;  %v550_v11 = vrot.slane %v548_v54, 5  ;;  %v533_v14 = vsel %vm6559_vm4, %v528_v61, %v532_v48  ;;  %v556_v18 = vrot.slane %v554_v6, 5  ;;  %v564_v25 = vshll.u32 %v272_v52, 16  ;;  %v6890_v52 = vld [vmem:[%s6533_s30 + $0x9c] sm:$0xf] }
  0x6d   : > { %v560_v21 = vrot.slane %v558_v7, 4  ;;  %v543_v31 = vsel %vm6559_vm4, %v538_v41, %v542_v50  ;;  %5911 = vmatprep.mubr.msk.bf16.mxu0 %vm714_vm3, %v5336_v17  ;;  %v5320_v1 = vrot.slane %v5304_v57, 9  ;;  %v2852_v28 = vrot.slane %v6638_v33, 5 }
  0x6e   : > { %v551_v38 = vor.u32 %v550_v11, %v547_v10  ;;  %v5052_v42 = vcombine.low %v533_v14, %v543_v31  ;;  %v566_v45 = vrot.slane %v564_v25, 5  ;;  %v2855_v47 = vrot.slane %v6646_v40, 5  ;;  %v274_v10 = vld [vmem:[%s6533_s30 + $0xa4] sm:$0x1]  ;;  %v5306_v11 = vld [vmem:[%s6533_s30 + $0x48] sm:$0xe] }
  0x6f   : > { %v561_v44 = vor.u32 %v560_v21, %v556_v18  ;;  %v2853_v49 = vsel %vm6785_vm7, %v5320_v1, %v2852_v28  ;;  %v2854_v50 = vrot.slane %v2852_v28, 4  ;;  %v569_v51 = vshrl.u32 %v6869_v5, 16 }
  0x70   : > { %v552_v48 = vrot.slane %v551_v38, 4  ;;  %5757 = vmatprep.mubr.msk.bf16.mxu1 %vm714_vm3, %v5052_v42  ;;  %v572_v15 = vshll.u32 %v6869_v5, 16  ;;  %v578_v62 = vshll.u32 %v6881_v30, 16  ;;  %v582_v40 = vshrl.u32 %v6881_v30, 16 }
  0x71   : > { %v562_v33 = vrot.slane %v561_v44, 4  ;;  %v2856_v56 = vsel %vm6785_vm7, %v2854_v50, %v2855_v47  ;;  %v571_v57 = vrot.slane %v569_v51, 4  ;;  %v588_v63 = vshll.u32 %v273_v60, 16 }
  0x72   : > { %v557_v55 = vsel %vm6559_vm4, %v552_v48, %v556_v18  ;;  %v5337_v54 = vcombine.low %v2853_v49, %v2856_v56  ;;  %v574_v61 = vrot.slane %v572_v15, 5  ;;  %v580_v2 = vrot.slane %v578_v62, 5  ;;  %v6927_v56 = vld [vmem:[%s6533_s30 + $0xac] sm:$0xf] }
  0x73   : > { %v567_v58 = vsel %vm6559_vm4, %v562_v33, %v566_v45  ;;  %v584_v7 = vrot.slane %v582_v40, 4  ;;  %v590_v41 = vrot.slane %v588_v63, 5  ;;  %v5321_v17 = vrot.slane %v5305_v26, 9  ;;  %v6922_v33 = vld [vmem:[%s6533_s30 + $0xa8] sm:$0xf] }
  0x74   : > { %v5053_v6 = vcombine.low %v557_v55, %v567_v58  ;;  %5912 = vmatmul.mubr.msk.bf16.gmra.mrb[4].mxu0 %vm714_vm3, %v5337_v54  ;;  %v575_v14 = vor.u32 %v574_v61, %v571_v57  ;;  %v2859_v18 = vrot.slane %v6663_v20, 5  ;;  %v2862_v21 = vrot.slane %v6668_v34, 5  ;;  %v275_v61 = vld [vmem:[%s6533_s30 + $0xb0] sm:$0x1] }
  0x75   : > { %v593_v25 = vshrl.u32 %v6890_v52, 16  ;;  %v585_v31 = vor.u32 %v584_v7, %v580_v2  ;;  %v596_v38 = vshll.u32 %v6890_v52, 16  ;;  %v602_v1 = vshll.u32 %v6901_v46, 16 }
  0x76   : > { %5758 = vmatmul.mubr.msk.bf16.gmra.mrb[20].mxu1 %vm714_vm3, %v5053_v6  ;;  %v606_v28 = vshrl.u32 %v6901_v46, 16  ;;  %v576_v60 = vrot.slane %v575_v14, 4  ;;  %v2860_v42 = vsel %vm6785_vm7, %v5321_v17, %v2859_v18  ;;  %v2861_v20 = vrot.slane %v2859_v18, 4  ;;  %v6942_v14 = vld [vmem:[%s6533_s30 + $0xb4] sm:$0xf] }
  0x77   : > { %v595_v44 = vrot.slane %v593_v25, 4  ;;  %v586_v34 = vrot.slane %v585_v31, 4  ;;  %v598_v45 = vrot.slane %v596_v38, 5  ;;  %v604_v47 = vrot.slane %v602_v1, 5 }
  0x78   : > { %v608_v26 = vrot.slane %v606_v28, 4  ;;  %v581_v48 = vsel %vm6559_vm4, %v576_v60, %v580_v2  ;;  %v2863_v49 = vsel %vm6785_vm7, %v2861_v20, %v2862_v21  ;;  %v612_v50 = vshll.u32 %v274_v10, 16  ;;  %v5307_v2 = vld [vmem:[%s6533_s30 + $0x54] sm:$0xe] }
  0x79   : > { %v5322_v51 = vrot.slane %v5306_v11, 9  ;;  %v591_v15 = vsel %vm6559_vm4, %v586_v34, %v590_v41  ;;  %v5338_v62 = vcombine.low %v2860_v42, %v2863_v49  ;;  %v599_v40 = vor.u32 %v598_v45, %v595_v44  ;;  %v6951_v42 = vld [vmem:[%s6533_s30 + $0xb8] sm:$0xf]  ;;  %v276_v49 = vld [vmem:[%s6533_s30 + $0xbc] sm:$0x1] }
  0x7a   : > { %v609_v55 = vor.u32 %v608_v26, %v604_v47  ;;  %v5054_v57 = vcombine.low %v581_v48, %v591_v15  ;;  %v614_v63 = vrot.slane %v612_v50, 5  ;;  %v2866_v58 = vrot.slane %v6686_v8, 5 }
  0x7b   : > { %v2869_v54 = vrot.slane %v6694_v23, 5  ;;  %5915 = vmatprep.mubr.msk.bf16.mxu0 %vm714_vm3, %v5338_v62  ;;  %v600_v6 = vrot.slane %v599_v40, 4  ;;  %v617_v41 = vshrl.u32 %v6922_v33, 16  ;;  %v620_v17 = vshll.u32 %v6922_v33, 16 }
  0x7c   : > { %v610_v7 = vrot.slane %v609_v55, 4  ;;  %5761 = vmatprep.mubr.msk.bf16.mxu1 %vm714_vm3, %v5054_v57  ;;  %v2867_v10 = vsel %vm6785_vm7, %v5322_v51, %v2866_v58  ;;  %v2868_v11 = vrot.slane %v2866_v58, 4  ;;  %v626_v8 = vshll.u32 %v6927_v56, 16  ;;  %v5308_v55 = vld [vmem:[%s6533_s30 + $0x60] sm:$0xe] }
  0x7d   : > { %v630_v23 = vshrl.u32 %v6927_v56, 16  ;;  %v605_v18 = vsel %vm6559_vm4, %v600_v6, %v604_v47  ;;  %v619_v25 = vrot.slane %v617_v41, 4  ;;  %v622_v31 = vrot.slane %v620_v17, 5  ;;  %v5309_v6 = vld [vmem:[%s6533_s30 + $0x6c] sm:$0xe] }
  0x7e   : > { %v615_v21 = vsel %vm6559_vm4, %v610_v7, %v614_v63  ;;  %v2870_v1 = vsel %vm6785_vm7, %v2868_v11, %v2869_v54  ;;  %v628_v28 = vrot.slane %v626_v8, 5  ;;  %v636_v34 = vshll.u32 %v275_v61, 16  ;;  %v5245_v11 = vld [vmem:[%s6533_s30 + $0x70] sm:$0xf]  ;;  %v5246_v8 = vld [vmem:[%s6533_s30 + $0x74] sm:$0x1] }
  0x7f   : > { %v5055_v38 = vcombine.low %v605_v18, %v615_v21  ;;  %v632_v60 = vrot.slane %v630_v23, 4  ;;  %v5339_v20 = vcombine.low %v2867_v10, %v2870_v1  ;;  %v623_v44 = vor.u32 %v622_v31, %v619_v25 }
  0x80   : > { %v5323_v45 = vrot.slane %v5307_v2, 9  ;;  %v2873_v26 = vrot.slane %v6717_v4, 5  ;;  %v2876_v48 = vrot.slane %v6723_v12, 5  ;;  %v641_v50 = vshrl.u32 %v6942_v14, 16 }
  0x81   : > { %5762 = vmatmul.mubr.msk.bf16.gmra.mrb[24].mxu1 %vm714_vm3, %v5055_v38  ;;  %v633_v47 = vor.u32 %v632_v60, %v628_v28  ;;  %5916 = vmatmul.mubr.msk.bf16.gmra.mrb[8].mxu0 %vm714_vm3, %v5339_v20  ;;  %v624_v51 = vrot.slane %v623_v44, 4  ;;  %v638_v15 = vrot.slane %v636_v34, 5  ;;  %v644_v62 = vshll.u32 %v6942_v14, 16 }
  0x82   : > { %v650_v40 = vshll.u32 %v6951_v42, 16  ;;  %v2874_v4 = vsel %vm6785_vm7, %v5323_v45, %v2873_v26  ;;  %v2875_v12 = vrot.slane %v2873_v26, 4  ;;  %v643_v63 = vrot.slane %v641_v50, 4 }
  0x83   : > { %v634_v57 = vrot.slane %v633_v47, 4  ;;  %v629_v58 = vsel %vm6559_vm4, %v624_v51, %v628_v28  ;;  %v646_v54 = vrot.slane %v644_v62, 5  ;;  %v654_v2 = vshrl.u32 %v6951_v42, 16  ;;  %v5310_v47 = vld [vmem:[%s6533_s30 + $0x78] sm:$0xe] }
  0x84   : > { %v652_v61 = vrot.slane %v650_v40, 5  ;;  %v2877_v41 = vsel %vm6785_vm7, %v2875_v12, %v2876_v48  ;;  %v660_v17 = vshll.u32 %v276_v49, 16  ;;  %v5324_v10 = vrot.slane %v5308_v55, 9  ;;  %v6382_v51 = vld [vmem:[%s6533_s30] sm:$0xf] }
  0x85   : > { %v639_v7 = vsel %vm6559_vm4, %v634_v57, %v638_v15  ;;  %v5340_v18 = vcombine.low %v2874_v4, %v2877_v41  ;;  %v647_v21 = vor.u32 %v646_v54, %v643_v63  ;;  %v656_v25 = vrot.slane %v654_v2, 4  ;;  %v6989_v15 = vld [vmem:[%s6533_s30 + $0x4] sm:$0xf]  ;;  %v6993_v40 = vld [vmem:[%s6533_s30 + $0x7c] sm:$0xf] }
  0x86   : > { %v5056_v23 = vcombine.low %v629_v58, %v639_v7  ;;  %v662_v31 = vrot.slane %v660_v17, 5  ;;  %v2880_v38 = vrot.slane %v6747_v59, 5  ;;  %v2883_v1 = vrot.slane %v6754_v9, 5  ;;  %v6996_v55 = vld [vmem:[%s6533_s30 + $0x80] sm:$0x1] }
  0x87   : > { %v5325_v28 = vrot.slane %v5309_v6, 9  ;;  %5919 = vmatprep.mubr.msk.bf16.mxu0 %vm714_vm3, %v5340_v18  ;;  %v648_v60 = vrot.slane %v647_v21, 4  ;;  %v657_v20 = vor.u32 %v656_v25, %v652_v61  ;;  %v2887_v44 = vrot.slane %v5245_v11, 5  ;;  %v5251_v57 = vld [vmem:[%s6533_s30 + $0x88] sm:$0xf] }
  0x88   : > { %5765 = vmatprep.mubr.msk.bf16.mxu1 %vm714_vm3, %v5056_v23  ;;  %v2890_v34 = vrot.slane %v5246_v8, 5  ;;  %v2881_v45 = vsel %vm6785_vm7, %v5324_v10, %v2880_v38  ;;  %v2882_v59 = vrot.slane %v2880_v38, 4  ;;  %v5074_v62 = vcombine.low %v6382_v51, %v6989_v15  ;;  %v5252_v54 = vld [vmem:[%s6533_s30 + $0x8c] sm:$0x1]  ;;  %v5254_v17 = vld [vmem:[%s6533_s30 + $0x94] sm:$0xf] }
  0x89   : > { %v653_v9 = vsel %vm6559_vm4, %v648_v60, %v652_v61  ;;  %v658_v26 = vrot.slane %v657_v20, 4  ;;  %v2888_v48 = vsel %vm6785_vm7, %v5325_v28, %v2887_v44  ;;  %v2889_v49 = vrot.slane %v2887_v44, 4  ;;  %v5311_v61 = vld [vmem:[%s6533_s30 + $0x84] sm:$0xe]  ;;  %v5312_v23 = vld [vmem:[%s6533_s30 + $0x90] sm:$0xe] }
  0x8a   : > { %v2884_v50 = vsel %vm6785_vm7, %v2882_v59, %v2883_v1  ;;  %v5326_v58 = vrot.slane %v5310_v47, 9  ;;  %v2894_v7 = vrot.slane %v6993_v40, 5  ;;  %v2897_v41 = vrot.slane %v6996_v55, 5  ;;  %v5255_v25 = vld [vmem:[%s6533_s30 + $0x98] sm:$0x1] }
  0x8b   : > { %v663_v4 = vsel %vm6559_vm4, %v658_v26, %v662_v31  ;;  %v5341_v12 = vcombine.low %v2881_v45, %v2884_v50  ;;  %v2891_v63 = vsel %vm6785_vm7, %v2889_v49, %v2890_v34  ;;  %v5327_v10 = vrot.slane %v5311_v61, 9  ;;  %v5257_v31 = vld [vmem:[%s6533_s30 + $0xa0] sm:$0xf]  ;;  %v5258_v60 = vld [vmem:[%s6533_s30 + $0xa4] sm:$0x1] }
  0x8c   : > { %v5057_v2 = vcombine.low %v653_v9, %v663_v4  ;;  %v5342_v6 = vcombine.low %v2888_v48, %v2891_v63  ;;  %v2901_v11 = vrot.slane %v5251_v57, 5  ;;  %v2904_v8 = vrot.slane %v5252_v54, 5  ;;  %v5313_v20 = vld [vmem:[%s6533_s30 + $0x9c] sm:$0xe]  ;;  %v6384_v44 = vld [vmem:[%s6533_s30 + $0xc] sm:$0xf] }
  0x8d   : > { %5920 = vmatmul.mubr.msk.bf16.gmra.mrb[12].mxu0 %vm714_vm3, %v5341_v12  ;;  %v2895_v18 = vsel %vm6785_vm7, %v5326_v58, %v2894_v7  ;;  %v2896_v21 = vrot.slane %v2894_v7, 4  ;;  %v2908_v28 = vrot.slane %v5254_v17, 5  ;;  %v7023_v34 = vld [vmem:[%s6533_s30 + $0x10] sm:$0xf]  ;;  %v6386_v47 = vld [vmem:[%s6533_s30 + $0x18] sm:$0xf] }
  0x8e   : > { %5766 = vmatmul.mubr.msk.bf16.gmra.mrb[28].mxu1 %vm714_vm3, %v5057_v2  ;;  %5923 = vmatprep.mubr.msk.bf16.mxu0 %vm714_vm3, %v5342_v6  ;;  %v2902_v38 = vsel %vm6785_vm7, %v5327_v10, %v2901_v11  ;;  %v2903_v1 = vrot.slane %v2901_v11, 4  ;;  %v5075_v45 = vcombine.low %v6384_v44, %v7023_v34  ;;  %v7030_v9 = vld [vmem:[%s6533_s30 + $0x1c] sm:$0xf]  ;;  %v5328_v48 = vrot.slane %v5312_v23, 9  ;;  %v5260_v57 = vld [vmem:[%s6533_s30 + $0xac] sm:$0xf] }
  0x8f   : > { %5771 = vmatprep.mubr.msk.bf16.mxu1 %vm714_vm3, %v5074_v62  ;;  %v2898_v59 = vsel %vm6785_vm7, %v2896_v21, %v2897_v41  ;;  %v5076_v26 = vcombine.low %v6386_v47, %v7030_v9  ;;  %v2910_v51 = vrot.slane %v2908_v28, 4  ;;  %v2911_v62 = vrot.slane %v5255_v25, 5  ;;  %v6388_v54 = vld [vmem:[%s8381_s1 + $0x4] sm:$0x3]  ;;  %v5263_v2 = vld [vmem:[%s6533_s30 + $0xb8] sm:$0xf] }
  0x90   : > { %v5343_v49 = vcombine.low %v2895_v18, %v2898_v59  ;;  %v2905_v50 = vsel %vm6785_vm7, %v2903_v1, %v2904_v8  ;;  %v5329_v12 = vrot.slane %v5313_v20, 9  ;;  %v2915_v63 = vrot.slane %v5257_v31, 5  ;;  %v7045_v7 = vld [vmem:[%s8381_s1 + $0x6] sm:$0x3]  ;;  %v5261_v10 = vld [vmem:[%s6533_s30 + $0xb0] sm:$0x1] }
  0x91   : > { %v5344_v4 = vcombine.low %v2902_v38, %v2905_v50  ;;  %v2918_v58 = vrot.slane %v5258_v60, 5  ;;  %v1482_v61 = vsel %vm763_vm0, %v6388_v54, 0  ;;  %v2909_v41 = vsel %vm6785_vm7, %v5328_v48, %v2908_v28  ;;  %v5314_v11 = vld [vmem:[%s6533_s30 + $0xa8] sm:$0xe]  ;;  %v5264_v25 = vld [vmem:[%s6533_s30 + $0xbc] sm:$0x1] }
  0x92   : > { %v2917_v6 = vrot.slane %v2915_v63, 4  ;;  %v2912_v17 = vsel %vm6785_vm7, %v2910_v51, %v2911_v62  ;;  %v2922_v8 = vrot.slane %v5260_v57, 5  ;;  %v2916_v23 = vsel %vm6785_vm7, %v5329_v12, %v2915_v63  ;;  %v5315_v31 = vld [vmem:[%s6533_s30 + $0xb4] sm:$0xe]  ;;  %v6389_v38 = vld [vmem:[%s6533_s30 + $0x24] sm:$0xf] }
  0x93   : > { %v2929_v21 = vrot.slane %v5263_v2, 5  ;;  %v7066_v1 = vld [vmem:[%s6533_s30 + $0x28] sm:$0xf]  ;;  %v5345_v60 = vcombine.low %v2909_v41, %v2912_v17  ;;  %v5330_v44 = vrot.slane %v5314_v11, 9  ;;  %v2925_v59 = vrot.slane %v5261_v10, 5 }
  0x94   : > { %v2919_v18 = vsel %vm6785_vm7, %v2917_v6, %v2918_v58  ;;  %v5077_v28 = vcombine.low %v6389_v38, %v7066_v1  ;;  %v6391_v47 = vld [vmem:[%s6533_s30 + $0x30] sm:$0xf]  ;;  %v2932_v51 = vrot.slane %v5264_v25, 5  ;;  %v5266_v62 = vld [vmem:[%s6533_s30 + $0xc4] sm:$0xf]  ;;  %v2317_v25 = vshrl.u32 %v6993_v40, 16 }
  0x95   : > { %5924 = vmatmul.mubr.msk.bf16.gmra.mrb[16].mxu0 %vm714_vm3, %v5343_v49  ;;  %v5346_v20 = vcombine.low %v2916_v23, %v2919_v18  ;;  %v5331_v49 = vrot.slane %v5315_v31, 9  ;;  %v2931_v50 = vrot.slane %v2929_v21, 4  ;;  %v2923_v57 = vsel %vm6785_vm7, %v5330_v44, %v2922_v8  ;;  %v5316_v12 = vld [vmem:[%s6533_s30 + $0xc0] sm:$0xe]  ;;  %v6393_v41 = vld [vmem:[%s6533_s30 + $0x3c] sm:$0xf] }
  0x96   : > { %5772 = vmatmul.mubr.msk.bf16.vlgmr.msra.gmra.mrb[0].mxu1 %vm714_vm3, %v5075_v45  ;;  %5927 = vmatprep.mubr.msk.bf16.mxu0 %vm714_vm3, %v5344_v4  ;;  %v2924_v45 = vrot.slane %v2922_v8, 4  ;;  %v2936_v63 = vrot.slane %v5266_v62, 5  ;;  %v5332_v6 = vrot.slane %v5316_v12, 9  ;;  %v7091_v17 = vld [vmem:[%s6533_s30 + $0x40] sm:$0xf]  ;;  %v5080_v18 = vcombine.low %v6698_v27, %v6701_v36  ;;  %v6345_v62 = vld [vmem:[%s6533_s30 + $0x24] sm:$0xff]  }
  0x97   : > { %5804 = vmatpush3.bf16.msra.mxu1 %v1482_v61  ;;  %5775 = vmatprep.mubr.msk.bf16.mxu1 %vm714_vm3, %v5076_v26  ;;  %v7071_v26 = vld [vmem:[%s6533_s30 + $0x34] sm:$0xf]  ;;  %v2930_v58 = vsel %vm6785_vm7, %v5331_v49, %v2929_v21  ;;  %v2933_v54 = vsel %vm6785_vm7, %v2931_v50, %v2932_v51  ;;  %v5267_v61 = vld [vmem:[%s6533_s30 + $0xc8] sm:$0x1]  ;;  %v5079_v10 = vcombine.low %v6393_v41, %v7091_v17  ;;  %v2313_v21 = vshll.u32 %v6993_v40, 16 }
  0x98   : > { %6302 = vmatprep.subr.msk.bf16.mxu1 %vm763_vm0, %v7045_v7  ;;  %v5078_v48 = vcombine.low %v6391_v47, %v7071_v26  ;;  %v2926_v4 = vsel %vm6785_vm7, %v2924_v45, %v2925_v59  ;;  %v5348_v11 = vcombine.low %v2930_v58, %v2933_v54  ;;  %v2938_v8 = vrot.slane %v2936_v63, 4  ;;  %v1220_v45 = vld [vmem:[%s6533_s30] sm:$0xe]  ;;  %v1221_v59 = vld [vmem:[%s6533_s30 + $0xc] sm:$0xe] }
  0x99   : > { %v5347_v2 = vcombine.low %v2923_v57, %v2926_v4  ;;  %v2939_v23 = vrot.slane %v5267_v61, 5  ;;  %v2937_v31 = vsel %vm6785_vm7, %v5332_v6, %v2936_v63  ;;  %v7106_v27 = vrot.slane %v2313_v21, 5  ;;  %v1224_v41 = vld [vmem:[%s6533_s30 + $0x30] sm:$0xe] }
  0x9a   : > { %v2319_v36 = vrot.slane %v2317_v25, 4  ;;  %v5082_v44 = vcombine.low %v6758_v19, %v6764_v35  ;;  %v2323_v47 = vshll.u32 %v6996_v55, 16  ;;  %v5106_v19 = vrot.slane %v1220_v45, 9 }
  0x9b   : > { %v2940_v38 = vsel %vm6785_vm7, %v2938_v8, %v2939_v23  ;;  %8403 = vst [vmem:[#allocation3_spill] sm:$0xff] %v7106_v27  ;;  %v5107_v35 = vrot.slane %v1221_v59, 9  ;;  %v1287_v4 = vrot.slane %v7030_v9, 5  ;;  %v1294_v12 = vrot.slane %v7066_v1, 5  ;;  %v1225_v8 = vld [vmem:[%s6533_s30 + $0x3c] sm:$0xe] }
  0x9c   : > { %v5349_v40 = vcombine.low %v2937_v31, %v2940_v38  ;;  %v2320_v49 = vor.u32 %v2319_v36, %v7106_v27  ;;  %v7126_v51 = vrot.slane %v2323_v47, 5  ;;  %v5083_v58 = vcombine.low %v6779_v0, %v6792_v29  ;;  %v1226_v31 = vld [vmem:[%s6533_s30 + $0x48] sm:$0xe]  ;;  %v6399_v59 = vld [vmem:[%s6533_s30 + $0x38] sm:$0x1] }
  0x9d   : > { %5928 = vmatmul.mubr.msk.bf16.gmra.mrb[20].mxu0 %vm714_vm3, %v5345_v60  ;;  %v5081_v60 = vcombine.low %v6727_v24, %v6733_v37  ;;  %v6396_v24 = vld [vmem:[%s6533_s30 + $0x14] sm:$0x1]  ;;  %v4128_v54 = vsel %vm763_vm0, %v6850_v22, 0  ;;  %v5084_v61 = vcombine.low %v6811_v53, %v6818_v16  ;;  %v5085_v6 = vcombine.low %v6837_v39, %v6845_v43  ;;  %v6397_v16 = vld [vmem:[%s6533_s30 + $0x20] sm:$0x1] }
  0x9e   : > { %5776 = vmatmul.mubr.msk.bf16.gmra.mrb[4].mxu1 %vm714_vm3, %v5077_v28  ;;  %5931 = vmatprep.mubr.msk.bf16.mxu0 %vm714_vm3, %v5346_v20  ;;  %v1280_v28 = vrot.slane %v7023_v34, 5  ;;  %v6343_v20 = vld [vmem:[%s6533_s30 + $0x18] sm:$0xff]   ;;  %v6395_v34 = vld [vmem:[%s6533_s30 + $0x8] sm:$0x1]  ;;  %v1283_v37 = vrot.slane %v6396_v24, 5  ;;  %8404 = vst [vmem:[#allocation4_spill] sm:$0xff] %v7126_v51  ;;  %v5086_v9 = vcombine.low %v6869_v5, %v6881_v30 }
  0x9f   : > { %5779 = vmatprep.mubr.msk.bf16.mxu1 %vm714_vm3, %v5078_v48  ;;  %v1273_v48 = vrot.slane %v6989_v15, 5  ;;  %v1276_v50 = vrot.slane %v6395_v34, 5  ;;  %v1222_v15 = vld [vmem:[%s6533_s30 + $0x18] sm:$0xe]  ;;  %v7131_v63 = vrot.slane %v2320_v49, 4  ;;  %v1290_v22 = vrot.slane %v6397_v16, 5 }
  0xa0   : > { %v1282_v55 = vrot.slane %v1280_v28, 4  ;;  %v5108_v1 = vrot.slane %v1222_v15, 9  ;;  %v7153_v29 = vsel %vm6785_vm7, %v5107_v35, %v1280_v28  ;;  %v1296_v25 = vrot.slane %v1294_v12, 4  ;;  %v5431_v24 = vld [vmem:[%s6533_s30 + $0x18] sm:$0xf] }
  0xa1   : > { %v1275_v57 = vrot.slane %v1273_v48, 4  ;;  %8405 = vst [vmem:[#allocation5_spill] sm:$0xff] %v7131_v63  ;;  %v7149_v0 = vsel %vm6785_vm7, %v5106_v19, %v1273_v48  ;;  %v1304_v47 = vrot.slane %v6399_v59, 5  ;;  %v7190_v49 = vsel %vm763_vm0, %v7045_v7, 0  ;;  %v5432_v7 = vld [vmem:[%s6533_s30 + $0x1c] sm:$0xf] }
  0xa2   : > { %v7157_v53 = vsel %vm6785_vm7, %v1282_v55, %v1283_v37  ;;  %v7194_v34 = vsel %vm6785_vm7, %v5108_v1, %v1287_v4  ;;  %v6349_v37 = vld [vmem:[%s6533_s30 + $0x3c] sm:$0xff]   ;;  %v5111_v35 = vrot.slane %v1225_v8, 9  ;;  %v6400_v55 = vld [vmem:[%s6533_s30 + $0x44] sm:$0x1]  ;;  %v3649_v8 = vshll.u32 %v5431_v24, 16 }
  0xa3   : > { %v7168_v23 = vsel %vm6785_vm7, %v1275_v57, %v1276_v50  ;;  %v1227_v50 = vld [vmem:[%s6533_s30 + $0x54] sm:$0xe]  ;;  %v1311_v15 = vrot.slane %v6400_v55, 5  ;;  %v5435_v39 = vld [vmem:[%s6533_s30 + $0x28] sm:$0xf] }
  0xa4   : > { %v6407_v5 = vld [vmem:[%s6533_s30 + $0x70] sm:$0xf] }
  0xa5   : > { %5932 = vmatmul.mubr.msk.bf16.gmra.mrb[24].mxu0 %vm714_vm3, %v5347_v2  ;;  %v1223_v2 = vld [vmem:[%s6533_s30 + $0x24] sm:$0xe]  ;;  %v1336_v30 = vrot.slane %v6407_v5, 5 }
  0xa6   : > { %5780 = vmatmul.mubr.msk.bf16.gmra.mrb[8].mxu1 %vm714_vm3, %v5079_v10  ;;  %5935 = vmatprep.mubr.msk.bf16.mxu0 %vm714_vm3, %v5348_v11  ;;  %v1301_v10 = vrot.slane %v7071_v26, 5  ;;  %v6347_v11 = vld [vmem:[%s6533_s30 + $0x30] sm:$0xff]   ;;  %v5109_v21 = vrot.slane %v1223_v2, 9 }
  0xa7   : > { %5783 = vmatprep.mubr.msk.bf16.mxu1 %vm714_vm3, %v5080_v18  ;;  %v7164_v26 = vld [vmem:[%s8381_s1 + $0x10] sm:$0x3]  ;;  %v1289_v18 = vrot.slane %v1287_v4, 4  ;;  %v1338_v48 = vrot.slane %v1336_v30, 4 }
  0xa8   : > { %v1303_v45 = vrot.slane %v1301_v10, 4  ;;  %v7201_v19 = vsel %vm6785_vm7, %v5109_v21, %v1294_v12  ;;  %v3659_v21 = vshrl.u32 %v5432_v7, 16 }
  0xa9   : > { %v7210_v4 = vsel %vm6785_vm7, %v1289_v18, %v1290_v22  ;;  %v3646_v22 = vshrl.u32 %v5431_v24, 16  ;;  %v3655_v18 = vshll.u32 %v5432_v7, 16  ;;  %v5434_v24 = vld [vmem:[%s6533_s30 + $0x24] sm:$0xf] }
  0xaa   : > { %v7223_v1 = vsel %vm6785_vm7, %v1303_v45, %v1304_v47 }
  0xab   : > { %v3648_v43 = vrot.slane %v3646_v22, 4  ;;  %v7265_v7 = vrot.slane %v3655_v18, 5  ;;  %v3673_v22 = vshll.u32 %v5434_v24, 16  ;;  %v3683_v18 = vshrl.u32 %v5435_v39, 16 }
  0xad   : > { %5936 = vmatmul.mubr.msk.bf16.gmra.mrb[28].mxu0 %vm714_vm3, %v5349_v40  ;;  %v6398_v40 = vld [vmem:[%s6533_s30 + $0x2c] sm:$0x1]  ;;  %v3675_v27 = vrot.slane %v3673_v22, 5 }
  0xae   : > { %5784 = vmatmul.mubr.msk.bf16.gmra.mrb[12].mxu1 %vm714_vm3, %v5081_v60  ;;  %5941 = vmatprep.mubr.msk.bf16.mxu0 %vm714_vm3, %v6343_v20  ;;  %v1297_v28 = vrot.slane %v6398_v40, 5  ;;  %v1308_v60 = vrot.slane %v7091_v17, 5  ;;  %v6403_v40 = vld [vmem:[%s6533_s30 + $0x50] sm:$0x1]  ;;  %v6408_v17 = vld [vmem:[%s6533_s30 + $0x74] sm:$0x1] }
  0xaf   : > { %5787 = vmatprep.mubr.msk.bf16.mxu1 %vm714_vm3, %v5082_v44  ;;  %v5110_v44 = vrot.slane %v1224_v41, 9  ;;  %v5113_v41 = vrot.slane %v1227_v50, 9  ;;  %v1228_v50 = vld [vmem:[%s6533_s30 + $0x60] sm:$0xe]  ;;  %v5436_v20 = vld [vmem:[%s6533_s30 + $0x2c] sm:$0x1] }
  0xb0   : > { %v1310_v12 = vrot.slane %v1308_v60, 4  ;;  %v7236_v45 = vsel %vm6785_vm7, %v5111_v35, %v1308_v60  ;;  %v6404_v35 = vld [vmem:[%s6533_s30 + $0x5c] sm:$0x1] }
  0xb1   : > { %v7219_v2 = vsel %vm6785_vm7, %v5110_v44, %v1301_v10  ;;  %v1325_v55 = vrot.slane %v6404_v35, 5  ;;  %v1229_v35 = vld [vmem:[%s6533_s30 + $0x6c] sm:$0xe] }
  0xb2   : > { %v7240_v59 = vsel %vm6785_vm7, %v1310_v12, %v1311_v15  ;;  %v6405_v15 = vld [vmem:[%s6533_s30 + $0x64] sm:$0xf]  ;;  %v3661_v12 = vrot.slane %v3659_v21, 4  ;;  %v5115_v5 = vrot.slane %v1229_v35, 9 }
  0xb3   : > { %v6355_v21 = vld [vmem:[%s6533_s30 + $0x60] sm:$0xff]  }
  0xb5   : > { %5942 = vmatmul.mubr.msk.bf16.vlgmr.msra.gmra.mrb[0].mxu0 %vm714_vm3, %v6345_v62  ;;  %v6401_v62 = vld [vmem:[%s6533_s30 + $0x4c] sm:$0xf] }
  0xb6   : > { %5788 = vmatmul.mubr.msk.bf16.gmra.mrb[16].mxu1 %vm714_vm3, %v5083_v58  ;;  %5974 = vmatpush3.bf16.msra.mxu0 %v4128_v54  ;;  %v1315_v57 = vrot.slane %v6401_v62, 5  ;;  %v7214_v58 = vsel %vm6785_vm7, %v1296_v25, %v1297_v28  ;;  %v5112_v54 = vrot.slane %v1226_v31, 9  ;;  %v1318_v28 = vrot.slane %v6403_v40, 5 }
  0xb7   : > { %5791 = vmatprep.mubr.msk.bf16.mxu1 %vm714_vm3, %v5084_v61  ;;  %5945 = vmatprep.mubr.msk.bf16.mxu0 %vm714_vm3, %v6347_v11  ;;  %v6351_v61 = vld [vmem:[%s6533_s30 + $0x48] sm:$0xff]   ;;  %v6402_v11 = vld [vmem:[%s6533_s30 + $0x58] sm:$0xf]  ;;  %v1329_v62 = vrot.slane %v6405_v15, 5  ;;  %v5438_v15 = vld [vmem:[%s6533_s30 + $0x34] sm:$0xf] }
  0xb8   : > { %6308 = vmatprep.subr.msk.bf16.mxu0 %vm763_vm0, %v7164_v26  ;;  %v1322_v16 = vrot.slane %v6402_v11, 5  ;;  %v1317_v31 = vrot.slane %v1315_v57, 4  ;;  %v7244_v47 = vsel %vm6785_vm7, %v5112_v54, %v1315_v57  ;;  %v5433_v57 = vld [vmem:[%s6533_s30 + $0x20] sm:$0x1]  ;;  %v5437_v54 = vld [vmem:[%s6533_s30 + $0x30] sm:$0xf] }
  0xb9   : > { %v5114_v11 = vrot.slane %v1228_v50, 9  ;;  %v3697_v50 = vshll.u32 %v5437_v54, 16  ;;  %v3665_v25 = vshll.u32 %v5433_v57, 16  ;;  %v3703_v36 = vshll.u32 %v5438_v15, 16 }
  0xba   : > { %v7255_v60 = vsel %vm6785_vm7, %v5113_v41, %v1322_v16  ;;  %v7271_v41 = vsel %vm6785_vm7, %v1317_v31, %v1318_v28  ;;  %v1331_v31 = vrot.slane %v1329_v62, 4  ;;  %v3694_v28 = vshrl.u32 %v5437_v54, 16 }
  0xbb   : > { %v7313_v35 = vrot.slane %v3703_v36, 5 }
  0xbd   : > { %5946 = vmatmul.mubr.msk.bf16.gmra.mrb[4].mxu0 %vm714_vm3, %v6349_v37  ;;  %v1324_v37 = vrot.slane %v1322_v16, 4  ;;  %v6406_v16 = vld [vmem:[%s6533_s30 + $0x68] sm:$0x1] }
  0xbe   : > { %5792 = vmatmul.mubr.msk.bf16.gmra.mrb[20].mxu1 %vm714_vm3, %v5085_v6  ;;  %5949 = vmatprep.mubr.msk.bf16.mxu0 %vm714_vm3, %v6351_v61  ;;  %v3651_v6 = vrot.slane %v3649_v8, 5  ;;  %v6353_v61 = vld [vmem:[%s6533_s30 + $0x54] sm:$0xff]   ;;  %v1332_v40 = vrot.slane %v6406_v16, 5  ;;  %v3679_v8 = vshll.u32 %v5435_v39, 16  ;;  %v3662_v16 = vor.u32 %v3661_v12, %v7265_v7 }
  0xbf   : > { %5795 = vmatprep.mubr.msk.bf16.mxu1 %vm714_vm3, %v5086_v9  ;;  %v3670_v9 = vshrl.u32 %v5434_v24, 16  ;;  %v7280_v44 = vsel %vm6785_vm7, %v1324_v37, %v1325_v55  ;;  %v1339_v24 = vrot.slane %v6408_v17, 5  ;;  %v3707_v39 = vshrl.u32 %v5438_v15, 16 }
  0xc0   : > { %v3652_v10 = vor.u32 %v3651_v6, %v3648_v43  ;;  %v7286_v37 = vrot.slane %v3679_v8, 5  ;;  %v3685_v55 = vrot.slane %v3683_v18, 4  ;;  %v8406_v43 = vcombine.low %v6890_v52, %v6901_v46  ;;  %v6409_v8 = vld [vmem:[%s6533_s30 + $0x7c] sm:$0xf]  ;;  %v7322_v18 = vld [vmem:[%s6533_s30 + $0x38] sm:$0x1] }
  0xc1   : > { %v3672_v38 = vrot.slane %v3670_v9, 4  ;;  %v7295_v17 = vsel %vm6785_vm7, %v5114_v11, %v1329_v62  ;;  %v7299_v57 = vsel %vm6785_vm7, %v1331_v31, %v1332_v40  ;;  %v3696_v6 = vrot.slane %v3694_v28, 4  ;;  %8408 = vst [vmem:[#allocation6_spill] sm:$0xff] %v7322_v18 }
  0xc2   : > { %v3699_v12 = vrot.slane %v3697_v50, 5  ;;  %v8407_v52 = vcombine.low %v6922_v33, %v6927_v56  ;;  %v3653_v46 = vrot.slane %v3652_v10, 4  ;;  %v3663_v54 = vrot.slane %v3662_v16, 4  ;;  %v6357_v33 = vld [vmem:[%s6533_s30 + $0x6c] sm:$0xff]   ;;  %v1231_v16 = vld [vmem:[%s6533_s30 + $0x84] sm:$0xe] }
  0xc3   : > { %v3689_v62 = vshll.u32 %v5436_v20, 16  ;;  %v7307_v11 = vsel %vm6785_vm7, %v5115_v5, %v1336_v30  ;;  %v7311_v40 = vsel %vm6785_vm7, %v1338_v48, %v1339_v24  ;;  %v3709_v9 = vrot.slane %v3707_v39, 4  ;;  %v6358_v48 = vld [vmem:[%s6533_s30 + $0x78] sm:$0xff]  }
  0xc4   : > { %v3676_v10 = vor.u32 %v3675_v27, %v3672_v38  ;;  %v3686_v20 = vor.u32 %v3685_v55, %v7286_v37  ;;  %v1343_v30 = vrot.slane %v6409_v8, 5  ;;  %v3700_v38 = vor.u32 %v3699_v12, %v3696_v6  ;;  %v5440_v5 = vld [vmem:[%s6533_s30 + $0x3c] sm:$0xf] }
  0xc5   : > { %5950 = vmatmul.mubr.msk.bf16.gmra.mrb[8].mxu0 %vm714_vm3, %v6353_v61  ;;  %v3667_v61 = vrot.slane %v3665_v25, 5  ;;  %v1230_v25 = vld [vmem:[%s6533_s30 + $0x78] sm:$0xe]  ;;  %v7338_v50 = vrot.slane %v3689_v62, 5  ;;  %v3710_v39 = vor.u32 %v3709_v9, %v7313_v35  ;;  %v3713_v55 = vshll.u32 %v7322_v18, 16 }
  0xc6   : > { %5796 = vmatmul.mubr.msk.bf16.gmra.mrb[24].mxu1 %vm714_vm3, %v8406_v43  ;;  %5953 = vmatprep.mubr.msk.bf16.mxu0 %vm714_vm3, %v6355_v21  ;;  %v3658_v21 = vsel %vm6559_vm4, %v3653_v46, %v7265_v7  ;;  %v5116_v24 = vrot.slane %v1230_v25, 9  ;;  %v6410_v43 = vld [vmem:[%s6533_s30 + $0x88] sm:$0xf]  ;;  %v7346_v7 = vld [vmem:[%s6533_s30 + $0x40] sm:$0xf]  ;;  %v3677_v12 = vrot.slane %v3676_v10, 4  ;;  %v8410_v62 = vcombine.low %v6942_v14, %v6951_v42 }
  0xc7   : > { %5799 = vmatprep.mubr.msk.bf16.mxu1 %vm714_vm3, %v8407_v52  ;;  %v3668_v31 = vsel %vm6559_vm4, %v3663_v54, %v3667_v61  ;;  %v1350_v6 = vrot.slane %v6410_v43, 5  ;;  %8409 = vst [vmem:[#allocation7_spill] sm:$0xff] %v7346_v7  ;;  %v3687_v52 = vrot.slane %v3686_v20, 4  ;;  %v1345_v46 = vrot.slane %v1343_v30, 4  ;;  %v6411_v54 = vld [vmem:[%s6533_s30 + $0x80] sm:$0x1] }
  0xc8   : > { %v1346_v61 = vrot.slane %v6411_v54, 5  ;;  %v3701_v9 = vrot.slane %v3700_v38, 4  ;;  %v5117_v25 = vrot.slane %v1231_v16, 9  ;;  %v3718_v8 = vshrl.u32 %v5440_v5, 16  ;;  %v6359_v10 = vld [vmem:[%s6533_s30 + $0x84] sm:$0xff]  }
  0xc9   : > { %v3721_v43 = vshll.u32 %v5440_v5, 16  ;;  %v7360_v20 = vcombine.low %v3658_v21, %v3668_v31  ;;  %v7364_v14 = vsel %vm763_vm0, %v7164_v26, 0  ;;  %v3731_v38 = vshrl.u32 %v7346_v7, 16  ;;  %v6360_v21 = vld [vmem:[%s6533_s30 + $0x90] sm:$0xff]   ;;  %v6416_v18 = vld [vmem:[%s6533_s30 + $0xa0] sm:$0xf] }
  0xca   : > { %v3711_v16 = vrot.slane %v3710_v39, 4  ;;  %v3715_v5 = vrot.slane %v3713_v55, 5  ;;  %v1352_v54 = vrot.slane %v1350_v6, 4  ;;  %v3682_v31 = vsel %vm6559_vm4, %v3677_v12, %v7286_v37 }
  0xcb   : > { %v3692_v26 = vsel %vm6559_vm4, %v3687_v52, %v7338_v50  ;;  %v7379_v39 = vsel %vm6785_vm7, %v5116_v24, %v1343_v30  ;;  %v7383_v55 = vsel %vm6785_vm7, %v1345_v46, %v1346_v61  ;;  %v3706_v37 = vsel %vm6559_vm4, %v3701_v9, %v7313_v35  ;;  %v5446_v30 = vld [vmem:[%s6533_s30 + $0x54] sm:$0xf]  ;;  %v7400_v24 = vld [vmem:[%s6533_s30 + $0x58] sm:$0xf]  ;;  %v7405_v61 = vld [vmem:[%s6533_s30 + $0x90] sm:$0xe] }
  0xcc   : > { %v7396_v12 = vsel %vm6785_vm7, %v5117_v25, %v1350_v6  ;;  %v3720_v50 = vrot.slane %v3718_v8, 4  ;;  %v3723_v52 = vrot.slane %v3721_v43, 5  ;;  %v3733_v46 = vrot.slane %v3731_v38, 4 }
  0xcd   : > { %5954 = vmatmul.mubr.msk.bf16.gmra.mrb[12].mxu0 %vm714_vm3, %v6357_v33  ;;  %v8411_v33 = vcombine.low %v7149_v0, %v7168_v23  ;;  %v6412_v0 = vld [vmem:[%s6533_s30 + $0x8c] sm:$0x1]  ;;  %v3716_v36 = vsel %vm6559_vm4, %v3711_v16, %v3715_v5  ;;  %v3766_v25 = vshrl.u32 %v5446_v30, 16  ;;  %v3769_v8 = vshll.u32 %v5446_v30, 16 }
  0xce   : > { %5800 = vmatmul.mubr.msk.bf16.gmra.mrb[28].mxu1 %vm714_vm3, %v8410_v62  ;;  %5957 = vmatprep.mubr.msk.bf16.mxu0 %vm714_vm3, %v6358_v48  ;;  %v3727_v48 = vshll.u32 %v7346_v7, 16  ;;  %v1353_v23 = vrot.slane %v6412_v0, 5  ;;  %v5443_v62 = vld [vmem:[%s6533_s30 + $0x48] sm:$0xf]  ;;  %v7389_v0 = vld [vmem:[%s6533_s30 + $0x4c] sm:$0xf]  ;;  %v8413_v38 = vcombine.low %v7153_v29, %v7157_v53  ;;  %v7423_v16 = vcombine.low %v3682_v31, %v3692_v26 }
  0xcf   : > { %5805 = vmatprep.mubr.msk.bf16.mxu1 %vm714_vm3, %v8411_v33  ;;  %v7386_v33 = vld [vmem:[%s6533_s30 + $0x44] sm:$0x1]  ;;  %v3742_v27 = vshrl.u32 %v5443_v62, 16  ;;  %v3745_v15 = vshll.u32 %v5443_v62, 16  ;;  %v3751_v6 = vshll.u32 %v7389_v0, 16  ;;  %v3755_v9 = vshrl.u32 %v7389_v0, 16 }
  0xd0   : > { %8412 = vst [vmem:[#allocation8_spill] sm:$0xff] %v7386_v33  ;;  %v7402_v28 = vrot.slane %v3727_v48, 5  ;;  %v7411_v35 = vsel %vm6785_vm7, %v1352_v54, %v1353_v23  ;;  %v3775_v43 = vshll.u32 %v7400_v24, 16  ;;  %v3779_v48 = vshrl.u32 %v7400_v24, 16  ;;  %v5449_v31 = vld [vmem:[%s6533_s30 + $0x60] sm:$0xf] }
  0xd1   : > { %v3737_v5 = vshll.u32 %v7386_v33, 16  ;;  %v5118_v54 = vrot.slane %v7405_v61, 9  ;;  %v8414_v23 = vcombine.low %v7194_v34, %v7210_v4  ;;  %v7434_v29 = vcombine.low %v3706_v37, %v3716_v36  ;;  %v6361_v26 = vld [vmem:[%s6533_s30 + $0x9c] sm:$0xff]   ;;  %v6362_v30 = vld [vmem:[%s6533_s30 + $0xa8] sm:$0xff]  }
  0xd2   : > { %v3724_v53 = vor.u32 %v3723_v52, %v3720_v50  ;;  %v3744_v62 = vrot.slane %v3742_v27, 4  ;;  %v7445_v34 = vrot.slane %v3751_v6, 5  ;;  %v3757_v4 = vrot.slane %v3755_v9, 4  ;;  %v6413_v36 = vld [vmem:[%s8381_s1 + $0x8] sm:$0x3] }
  0xd3   : > { %v3768_v27 = vrot.slane %v3766_v25, 4  ;;  %v3771_v37 = vrot.slane %v3769_v8, 5  ;;  %v7454_v50 = vrot.slane %v3775_v43, 5  ;;  %v3781_v52 = vrot.slane %v3779_v48, 4  ;;  %v6414_v6 = vld [vmem:[%s6533_s30 + $0x94] sm:$0xf] }
  0xd4   : > { %v7460_v9 = vld [vmem:[%s6533_s30 + $0x64] sm:$0xf]  ;;  %v3790_v61 = vshrl.u32 %v5449_v31, 16  ;;  %v7462_v22 = vrot.slane %v3724_v53, 4  ;;  %v1364_v25 = vrot.slane %v6416_v18, 5  ;;  %v3758_v43 = vor.u32 %v3757_v4, %v7445_v34 }
  0xd5   : > { %5958 = vmatmul.mubr.msk.bf16.gmra.mrb[16].mxu0 %vm714_vm3, %v6359_v10  ;;  %8415 = vst [vmem:[#allocation9_spill] sm:$0xff] %v7460_v9  ;;  %v3793_v10 = vshll.u32 %v5449_v31, 16  ;;  %v3772_v31 = vor.u32 %v3771_v37, %v3768_v27  ;;  %v3782_v53 = vor.u32 %v3781_v52, %v7454_v50  ;;  %v8416_v18 = vcombine.low %v7201_v19, %v7214_v58  ;;  %v6363_v37 = vld [vmem:[%s6533_s30 + $0xb4] sm:$0xff]  }
  0xd6   : > { %5806 = vmatmul.mubr.msk.bf16.vlgmr.msra.gmra.mrb[0].mxu1 %vm714_vm3, %v8413_v38  ;;  %5961 = vmatprep.mubr.msk.bf16.mxu0 %vm714_vm3, %v6360_v21  ;;  %v3747_v21 = vrot.slane %v3745_v15, 5  ;;  %v7443_v38 = vld [vmem:[%s6533_s30 + $0x50] sm:$0x1]  ;;  %v7452_v15 = vld [vmem:[%s6533_s30 + $0x5c] sm:$0x1]  ;;  %v8417_v27 = vcombine.low %v7219_v2, %v7223_v1  ;;  %v1366_v52 = vrot.slane %v1364_v25, 4 }
  0xd7   : > { %5838 = vmatpush3.bf16.msra.mxu1 %v7190_v49  ;;  %5809 = vmatprep.mubr.msk.bf16.mxu1 %vm714_vm3, %v8414_v23  ;;  %v3734_v49 = vor.u32 %v3733_v46, %v7402_v28  ;;  %v7456_v46 = vrot.slane %v3737_v5, 5  ;;  %v1357_v23 = vrot.slane %v6414_v6, 5  ;;  %v3761_v48 = vshll.u32 %v7443_v38, 16  ;;  %v1233_v5 = vld [vmem:[%s6533_s30 + $0x9c] sm:$0xe] }
  0xd8   : > { %6304 = vmatprep.subr.msk.bf16.mxu1 %vm763_vm0, %v6413_v36  ;;  %v6415_v36 = vld [vmem:[%s6533_s30 + $0x98] sm:$0x1]  ;;  %v3748_v7 = vor.u32 %v3747_v21, %v3744_v62  ;;  %v3785_v6 = vshll.u32 %v7452_v15, 16  ;;  %v3803_v62 = vshrl.u32 %v7460_v9, 16  ;;  %v3795_v4 = vrot.slane %v3793_v10, 5 }
  0xd9   : > { %v1360_v33 = vrot.slane %v6415_v36, 5  ;;  %v3735_v8 = vrot.slane %v3734_v49, 4  ;;  %v3799_v36 = vshll.u32 %v7460_v9, 16  ;;  %v7481_v21 = vsel %vm6785_vm7, %v5118_v54, %v1357_v23  ;;  %v7492_v2 = vld [vmem:[%s6533_s30 + $0x68] sm:$0x1] }
  0xda   : > { %v3792_v49 = vrot.slane %v3790_v61, 4  ;;  %v3749_v19 = vrot.slane %v3748_v7, 4  ;;  %v5119_v58 = vrot.slane %v1233_v5, 9  ;;  %v3759_v3 = vrot.slane %v3758_v43, 4  ;;  %8418 = vst [vmem:[#allocation10_spill] sm:$0xff] %v7492_v2  ;;  %v6364_v5 = vld [vmem:[%s6533_s30 + $0xc0] sm:$0xff]  }
  0xdb   : > { %v3763_v54 = vrot.slane %v3761_v48, 5  ;;  %v3787_v63 = vrot.slane %v3785_v6, 5  ;;  %v1371_v61 = vrot.slane %v6927_v56, 5  ;;  %v3773_v10 = vrot.slane %v3772_v31, 4  ;;  %v1235_v31 = vld [vmem:[%s6533_s30 + $0xb4] sm:$0xe] }
  0xdc   : > { %v3783_v51 = vrot.slane %v3782_v53, 4  ;;  %v7494_v1 = vrot.slane %v3799_v36, 5  ;;  %v3805_v7 = vrot.slane %v3803_v62, 4  ;;  %v3730_v43 = vsel %vm6559_vm4, %v7462_v22, %v7402_v28  ;;  %v6418_v62 = vld [vmem:[%s6533_s30 + $0xb0] sm:$0x1] }
  0xdd   : > { %5962 = vmatmul.mubr.msk.bf16.gmra.mrb[20].mxu0 %vm714_vm3, %v6361_v26  ;;  %v1359_v26 = vrot.slane %v1357_v23, 4  ;;  %v1234_v23 = vld [vmem:[%s6533_s30 + $0xa8] sm:$0xe]  ;;  %v3740_v48 = vsel %vm6559_vm4, %v3735_v8, %v7456_v46  ;;  %v3796_v6 = vor.u32 %v3795_v4, %v3792_v49  ;;  %v3754_v53 = vsel %vm6559_vm4, %v3749_v19, %v7445_v34  ;;  %v5452_v46 = vld [vmem:[%s6533_s30 + $0x6c] sm:$0xf] }
  0xde   : > { %5810 = vmatmul.mubr.msk.bf16.gmra.mrb[4].mxu1 %vm714_vm3, %v8416_v18  ;;  %5965 = vmatprep.mubr.msk.bf16.mxu0 %vm714_vm3, %v6362_v30  ;;  %v6417_v18 = vld [vmem:[%s6533_s30 + $0xa4] sm:$0x1]  ;;  %v7514_v36 = vsel %vm6785_vm7, %v5119_v58, %v1364_v25  ;;  %v5120_v28 = vrot.slane %v1234_v23, 9  ;;  %v1373_v8 = vrot.slane %v1371_v61, 4  ;;  %v3809_v49 = vshll.u32 %v7492_v2, 16 }
  0xdf   : > { %5813 = vmatprep.mubr.msk.bf16.mxu1 %vm714_vm3, %v8417_v27  ;;  %v1367_v30 = vrot.slane %v6417_v18, 5  ;;  %v7506_v56 = vsel %vm6785_vm7, %v1359_v26, %v1360_v33  ;;  %v3764_v33 = vsel %vm6559_vm4, %v3759_v3, %v3763_v54  ;;  %v1374_v26 = vrot.slane %v6418_v62, 5  ;;  %v5455_v18 = vld [vmem:[%s6533_s30 + $0x78] sm:$0xf]  ;;  %v7569_v54 = vld [vmem:[%s6533_s30 + $0xbc] sm:$0x1] }
  0xe0   : > { %v3778_v34 = vsel %vm6559_vm4, %v3773_v10, %v7454_v50  ;;  %v3788_v25 = vsel %vm6559_vm4, %v3783_v51, %v3787_v63  ;;  %v3806_v4 = vor.u32 %v3805_v7, %v7494_v1  ;;  %v5121_v27 = vrot.slane %v1235_v31, 9  ;;  %v7543_v51 = vld [vmem:[%s6533_s30 + $0x70] sm:$0xf]  ;;  %v7573_v10 = vld [vmem:[%s6533_s30 + $0x7c] sm:$0xf] }
  0xe1   : > { %v7518_v22 = vsel %vm6785_vm7, %v1366_v52, %v1367_v30  ;;  %v8420_v3 = vcombine.low %v7236_v45, %v7240_v59  ;;  %v7539_v19 = vrot.slane %v3796_v6, 4  ;;  %v1378_v50 = vrot.slane %v6951_v42, 5  ;;  %8421 = vst [vmem:[#allocation12_spill] sm:$0xff] %v7543_v51  ;;  %8423 = vst [vmem:[#allocation13_spill] sm:$0xff] %v7573_v10  ;;  %v5458_v7 = vld [vmem:[%s6533_s30 + $0x84] sm:$0xf] }
  0xe2   : > { %8419 = vst [vmem:[#allocation11_spill] sm:$0xff] %v7518_v22  ;;  %v3814_v63 = vshrl.u32 %v5452_v46, 16  ;;  %v8422_v45 = vcombine.low %v7244_v47, %v7271_v41  ;;  %v7551_v58 = vcombine.low %v3754_v53, %v3764_v33  ;;  %v7557_v42 = vsel %vm6785_vm7, %v5120_v28, %v1371_v61  ;;  %v6365_v61 = vld [vmem:[%s6533_s30 + $0xcc] sm:$0xff]   ;;  %v7585_v31 = vld [vmem:[%s6533_s30 + $0x88] sm:$0xf] }
  0xe3   : > { %v7560_v30 = vcombine.low %v3778_v34, %v3788_v25  ;;  %v7564_v47 = vsel %vm6785_vm7, %v1373_v8, %v1374_v26  ;;  %v7566_v41 = vrot.slane %v3809_v49, 5  ;;  %v3823_v6 = vshll.u32 %v7543_v51, 16  ;;  %8424 = vst [vmem:[#allocation14_spill] sm:$0xff] %v7585_v31  ;;  %v5461_v62 = vld [vmem:[%s6533_s30 + $0x90] sm:$0xf] }
  0xe4   : > { %v7591_v28 = vrot.slane %v1378_v50, 4  ;;  %v7593_v33 = vrot.slane %v3814_v63, 4  ;;  %v3827_v8 = vshrl.u32 %v7543_v51, 16  ;;  %v3838_v26 = vshrl.u32 %v5455_v18, 16  ;;  %v7600_v25 = vld [vmem:[%s6533_s30 + $0x94] sm:$0xf] }
  0xe5   : > { %5966 = vmatmul.mubr.msk.bf16.gmra.mrb[24].mxu0 %vm714_vm3, %v6363_v37  ;;  %v7537_v37 = vcombine.low %v3730_v43, %v3740_v48  ;;  %v7581_v43 = vsel %vm6785_vm7, %v5121_v27, %v1378_v50  ;;  %v3817_v48 = vshll.u32 %v5452_v46, 16  ;;  %v3841_v49 = vshll.u32 %v5455_v18, 16  ;;  %8425 = vst [vmem:[#allocation15_spill] sm:$0xff] %v7600_v25  ;;  %v7638_v2 = vld [vmem:[%s6533_s30 + $0x8c] sm:$0x1] }
  0xe6   : > { %5814 = vmatmul.mubr.msk.bf16.gmra.mrb[8].mxu1 %vm714_vm3, %v8420_v3  ;;  %5969 = vmatprep.mubr.msk.bf16.mxu0 %vm714_vm3, %v6364_v5  ;;  %v7577_v5 = vrot.slane %v3806_v4, 4  ;;  %v3847_v46 = vshll.u32 %v7573_v10, 16  ;;  %v3851_v34 = vshrl.u32 %v7573_v10, 16  ;;  %v3862_v4 = vshrl.u32 %v5458_v7, 16 }
  0xe7   : > { %5817 = vmatprep.mubr.msk.bf16.mxu1 %vm714_vm3, %v8422_v45  ;;  %v3865_v27 = vshll.u32 %v5458_v7, 16  ;;  %v3871_v3 = vshll.u32 %v7585_v31, 16  ;;  %v3875_v50 = vshrl.u32 %v7585_v31, 16  ;;  %v7610_v45 = vld [vmem:[%s6533_s30 + $0x74] sm:$0x1]  ;;  %v3819_v18 = vrot.slane %v3817_v48, 5 }
  0xe8   : > { %v3886_v52 = vshrl.u32 %v5461_v62, 16  ;;  %v3889_v53 = vshll.u32 %v5461_v62, 16  ;;  %v8426_v7 = vcombine.low %v7255_v60, %v7280_v44  ;;  %v3829_v59 = vrot.slane %v3827_v8, 4  ;;  %v5464_v48 = vld [vmem:[%s6533_s30 + $0x9c] sm:$0xf] }
  0xe9   : > { %v3895_v63 = vshll.u32 %v7600_v25, 16  ;;  %v3899_v23 = vshrl.u32 %v7600_v25, 16  ;;  %v8427_v62 = vcombine.low %v7295_v17, %v7299_v57  ;;  %v7628_v44 = vld [vmem:[%s6533_s30 + $0x80] sm:$0x1]  ;;  %v3840_v60 = vrot.slane %v3838_v26, 4 }
  0xea   : > { %8428 = vst [vmem:[#allocation16_spill] sm:$0xff] %v7628_v44  ;;  %v3864_v31 = vrot.slane %v3862_v4, 4  ;;  %v3867_v8 = vrot.slane %v3865_v27, 5  ;;  %v7632_v10 = vrot.slane %v3871_v3, 5  ;;  %v3877_v51 = vrot.slane %v3875_v50, 4 }
  0xeb   : > { %v7635_v25 = vld [vmem:[%s6533_s30 + $0xa0] sm:$0xf]  ;;  %v3888_v17 = vrot.slane %v3886_v52, 4  ;;  %v3891_v57 = vrot.slane %v3889_v53, 5  ;;  %v3913_v9 = vshll.u32 %v5464_v48, 16  ;;  %v3820_v26 = vor.u32 %v3819_v18, %v7593_v33 }
  0xec   : > { %v3857_v27 = vshll.u32 %v7628_v44, 16  ;;  %v7647_v3 = vld [vmem:[%s6533_s30 + $0x98] sm:$0x1]  ;;  %v3919_v50 = vshll.u32 %v7635_v25, 16  ;;  %v3923_v52 = vshrl.u32 %v7635_v25, 16  ;;  %v3868_v22 = vor.u32 %v3867_v8, %v3864_v31 }
  0xed   : > { %5970 = vmatmul.mubr.msk.bf16.gmra.mrb[28].mxu0 %vm714_vm3, %v6365_v61  ;;  %v7618_v61 = vrot.slane %v3823_v6, 5  ;;  %v3853_v6 = vrot.slane %v3851_v34, 4  ;;  %v3901_v34 = vrot.slane %v3899_v23, 4  ;;  %v3881_v33 = vshll.u32 %v7638_v2, 16 }
  0xee   : > { %5818 = vmatmul.mubr.msk.bf16.gmra.mrb[12].mxu1 %vm714_vm3, %v8426_v7  ;;  %5975 = vmatprep.mubr.msk.bf16.mxu0 %vm714_vm3, %v7360_v20  ;;  %v3843_v7 = vrot.slane %v3841_v49, 5  ;;  %v7630_v20 = vrot.slane %v3847_v46, 5  ;;  %v3833_v49 = vshll.u32 %v7610_v45, 16  ;;  %v7642_v46 = vrot.slane %v3895_v63, 5 }
  0xef   : > { %5821 = vmatprep.mubr.msk.bf16.mxu1 %vm714_vm3, %v8427_v62  ;;  %v3910_v62 = vshrl.u32 %v5464_v48, 16  ;;  %v3830_v4 = vor.u32 %v3829_v59, %v7618_v61  ;;  %v3878_v23 = vor.u32 %v3877_v51, %v7632_v10  ;;  %v3892_v59 = vor.u32 %v3891_v57, %v3888_v17  ;;  %v7680_v57 = vld [vmem:[%s6533_s30 + $0xa4] sm:$0x1] }
  0xf0   : > { %v3844_v53 = vor.u32 %v3843_v7, %v3840_v60  ;;  %v3854_v48 = vor.u32 %v3853_v6, %v7630_v20  ;;  %v3915_v18 = vrot.slane %v3913_v9, 5  ;;  %v8429_v44 = vcombine.low %v7307_v11, %v7311_v40 }
  0xf1   : > { %v3912_v63 = vrot.slane %v3910_v62, 4  ;;  %v8430_v31 = vrot.slane %v7569_v54, 5  ;;  %v3835_v51 = vrot.slane %v3833_v49, 5  ;;  %v3902_v60 = vor.u32 %v3901_v34, %v7642_v46  ;;  %v7683_v34 = vld [vmem:[%s6533_s30 + $0xac] sm:$0xf] }
  0xf2   : > { %v3905_v9 = vshll.u32 %v7647_v3, 16  ;;  %v8431_v11 = vcombine.low %v7379_v39, %v7383_v55  ;;  %v3821_v40 = vrot.slane %v3820_v26, 4  ;;  %v7676_v54 = vrot.slane %v3919_v50, 5 }
  0xf3   : > { %v3845_v7 = vrot.slane %v3844_v53, 4  ;;  %v3855_v6 = vrot.slane %v3854_v48, 4  ;;  %v3859_v8 = vrot.slane %v3857_v27, 5  ;;  %v3883_v17 = vrot.slane %v3881_v33, 5  ;;  %v7693_v48 = vld [vmem:[%s6533_s30 + $0xb0] sm:$0x1] }
  0xf4   : > { %v3869_v39 = vrot.slane %v3868_v22, 4  ;;  %v3879_v55 = vrot.slane %v3878_v23, 4  ;;  %v3893_v62 = vrot.slane %v3892_v59, 4  ;;  %v3916_v49 = vor.u32 %v3915_v18, %v3912_v63 }
  0xf5   : > { %5976 = vmatmul.mubr.msk.bf16.vlgmr.msra.gmra.mrb[0].mxu0 %vm714_vm3, %v7423_v16  ;;  %v7666_v16 = vsel %vm6785_vm7, %v7591_v28, %v8430_v31  ;;  %v3925_v28 = vrot.slane %v3923_v52, 4  ;;  %v3907_v26 = vrot.slane %v3905_v9, 5  ;;  %v3826_v52 = vsel %vm6559_vm4, %v3821_v40, %v7618_v61 }
  0xf6   : > { %5822 = vmatmul.mubr.msk.bf16.gmra.mrb[16].mxu1 %vm714_vm3, %v8429_v44  ;;  %6008 = vmatpush3.bf16.msra.mxu0 %v7364_v14  ;;  %v3831_v14 = vrot.slane %v3830_v4, 4  ;;  %v5467_v44 = vld [vmem:[%s6533_s30 + $0xa8] sm:$0xf]  ;;  %v3929_v22 = vshll.u32 %v7680_v57, 16  ;;  %v3850_v33 = vsel %vm6559_vm4, %v3845_v7, %v7630_v20  ;;  %v3860_v23 = vsel %vm6559_vm4, %v3855_v6, %v3859_v8 }
  0xf7   : > { %5825 = vmatprep.mubr.msk.bf16.mxu1 %vm714_vm3, %v8431_v11  ;;  %5979 = vmatprep.mubr.msk.bf16.mxu0 %vm714_vm3, %v7434_v29  ;;  %v3903_v29 = vrot.slane %v3902_v60, 4  ;;  %v3934_v4 = vshrl.u32 %v5467_v44, 16  ;;  %v3937_v50 = vshll.u32 %v5467_v44, 16  ;;  %v3926_v53 = vor.u32 %v3925_v28, %v7676_v54  ;;  %v5516_v11 = vld [vmem:[%s6533_s30 + $0x48] sm:$0xe] }
  0xf8   : > { %v3836_v27 = vsel %vm6559_vm4, %v3831_v14, %v3835_v51  ;;  %v3943_v59 = vshll.u32 %v7683_v34, 16  ;;  %v3947_v61 = vshrl.u32 %v7683_v34, 16  ;;  %v3874_v63 = vsel %vm6559_vm4, %v3869_v39, %v7632_v10  ;;  %v7758_v39 = vld [vmem:[%s6533_s30 + $0xb8] sm:$0xf] }
  0xf9   : > { %v3884_v18 = vsel %vm6559_vm4, %v3879_v55, %v3883_v17  ;;  %v3898_v20 = vsel %vm6559_vm4, %v3893_v62, %v7642_v46  ;;  %v3917_v31 = vrot.slane %v3916_v49, 4  ;;  %v8432_v51 = vcombine.low %v7396_v12, %v7411_v35 }
  0xfa   : > { %v3936_v10 = vrot.slane %v3934_v4, 4  ;;  %v3939_v60 = vrot.slane %v3937_v50, 5  ;;  %v3953_v9 = vshll.u32 %v7693_v48, 16  ;;  %v8433_v46 = vcombine.low %v7481_v21, %v7506_v56  ;;  %v5470_v21 = vld [vmem:[%s6533_s30 + $0xb4] sm:$0xf] }
  0xfb   : > { %v5137_v12 = vcombine.low %v7557_v42, %v7564_v47  ;;  %v8434_v35 = vsel %vm6559_vm4, %v7577_v5, %v7566_v41  ;;  %v3927_v14 = vrot.slane %v3926_v53, 4  ;;  %v3931_v28 = vrot.slane %v3929_v22, 5  ;;  %v5518_v4 = vld [vmem:[%s6533_s30 + $0x60] sm:$0xe]  ;;  %v5519_v53 = vld [vmem:[%s6533_s30 + $0x6c] sm:$0xe] }
  0xfc   : > { %v5138_v56 = vcombine.low %v7581_v43, %v7666_v16  ;;  %v7741_v44 = vcombine.low %v3826_v52, %v3836_v27  ;;  %v7743_v42 = vrot.slane %v3943_v59, 5  ;;  %v3949_v47 = vrot.slane %v3947_v61, 4  ;;  %v8443_v16 = vld [vmem:[#allocation4_spill] sm:$0xff] }
  0xfd   : > { %5980 = vmatmul.mubr.msk.bf16.gmra.mrb[4].mxu0 %vm714_vm3, %v7537_v37  ;;  %v3908_v37 = vsel %vm6559_vm4, %v3903_v29, %v3907_v26  ;;  %v7745_v41 = vcombine.low %v3850_v33, %v3860_v23  ;;  %v7747_v5 = vcombine.low %v3874_v63, %v3884_v18  ;;  %v3922_v6 = vsel %vm6559_vm4, %v3917_v31, %v7676_v54  ;;  %v8436_v23 = vld [vmem:[#allocation11_spill] sm:$0xff]  ;;  %v5473_v63 = vld [vmem:[%s6533_s30 + $0xc0] sm:$0xf]  ;;  %v8438_v18 = vld [vmem:[#allocation9_spill] sm:$0xff] }
  0xfe   : > { %5826 = vmatmul.mubr.msk.bf16.gmra.mrb[20].mxu1 %vm714_vm3, %v8432_v51  ;;  %5983 = vmatprep.mubr.msk.bf16.mxu0 %vm714_vm3, %v7551_v58  ;;  %v8435_v58 = vsel %vm6559_vm4, %v7539_v19, %v7494_v1  ;;  %v7749_v7 = vcombine.low %v3898_v20, %v3908_v37  ;;  %v5532_v1 = vrot.slane %v5516_v11, 9  ;;  %v5517_v19 = vld [vmem:[%s6533_s30 + $0x54] sm:$0xe]  ;;  %v3940_v8 = vor.u32 %v3939_v60, %v3936_v10  ;;  %v8439_v31 = vld [vmem:[#allocation10_spill] sm:$0xff] }
  0xff   : > { %5829 = vmatprep.mubr.msk.bf16.mxu1 %vm714_vm3, %v8433_v46  ;;  %v5486_v40 = vcombine.low %v8435_v58, %v8434_v35  ;;  %v7755_v17 = vrot.slane %v3953_v9, 5  ;;  %v3958_v55 = vshrl.u32 %v5470_v21, 16  ;;  %v3932_v62 = vsel %vm6559_vm4, %v3927_v14, %v3931_v28  ;;  %v8440_v9 = vld [vmem:[#allocation12_spill] sm:$0xff]  ;;  %v7807_v35 = vld [vmem:[%s6533_s30 + $0xbc] sm:$0x1] }
 0x100   : > { %v3961_v49 = vshll.u32 %v5470_v21, 16  ;;  %v4417_v29 = vrot.slane %v7389_v0, 5  ;;  %v4420_v26 = vrot.slane %v7443_v38, 5  ;;  %v3950_v50 = vor.u32 %v3949_v47, %v7743_v42  ;;  %v7810_v58 = vld [vmem:[%s6533_s30 + $0xc4] sm:$0xf] }
 0x101   : > { %v5533_v52 = vrot.slane %v5517_v19, 9  ;;  %v4424_v54 = vrot.slane %v7400_v24, 5  ;;  %v4427_v27 = vrot.slane %v7452_v15, 5  ;;  %v3967_v22 = vshll.u32 %v7758_v39, 16  ;;  %v5520_v19 = vld [vmem:[%s6533_s30 + $0x78] sm:$0xe] }
 0x102   : > { %v3971_v33 = vshrl.u32 %v7758_v39, 16  ;;  %v7775_v0 = vsel %vm6785_vm7, %v5532_v1, %v4417_v29  ;;  %v4419_v38 = vrot.slane %v4417_v29, 4  ;;  %v8437_v59 = vcombine.low %v7514_v36, %v8436_v23  ;;  %v8441_v23 = vld [vmem:[#allocation13_spill] sm:$0xff] }
 0x103   : > { %v7782_v24 = vcombine.low %v3922_v6, %v3932_v62  ;;  %v7786_v15 = vsel %vm6785_vm7, %v5533_v52, %v4424_v54  ;;  %v5534_v61 = vrot.slane %v5518_v4, 9  ;;  %v4431_v20 = vrot.slane %v8438_v18, 5  ;;  %v6366_v6 = vld [vmem:[%s6533_s30 + $0xc] sm:$0xff]  }
 0x104   : > { %v7792_v36 = vsel %vm6785_vm7, %v4419_v38, %v4420_v26  ;;  %v4434_v51 = vrot.slane %v8439_v31, 5  ;;  %v5535_v37 = vrot.slane %v5519_v53, 9  ;;  %v4438_v11 = vrot.slane %v8440_v9, 5 }
 0x105   : > { %5984 = vmatmul.mubr.msk.bf16.gmra.mrb[8].mxu0 %vm714_vm3, %v7560_v30  ;;  %v4426_v30 = vrot.slane %v4424_v54, 4  ;;  %v5549_v10 = vcombine.low %v7775_v0, %v7792_v36  ;;  %v4441_v46 = vrot.slane %v7610_v45, 5  ;;  %v7816_v14 = vsel %vm6785_vm7, %v5534_v61, %v4431_v20 }
 0x106   : > { %5830 = vmatmul.mubr.msk.bf16.gmra.mrb[24].mxu1 %vm714_vm3, %v8437_v59  ;;  %5987 = vmatprep.mubr.msk.bf16.mxu0 %vm714_vm3, %v5486_v40  ;;  %v4433_v28 = vrot.slane %v4431_v20, 4  ;;  %v7818_v21 = vrot.slane %v3958_v55, 4  ;;  %v3982_v47 = vshrl.u32 %v5473_v63, 16  ;;  %v7822_v45 = vsel %vm6785_vm7, %v5535_v37, %v4438_v11  ;;  %v5247_v55 = vld [vmem:[%s6533_s30 + $0x78] sm:$0xf]  ;;  %v8442_v59 = vld [vmem:[#allocation16_spill] sm:$0xff] }
 0x107   : > { %5833 = vmatprep.mubr.msk.bf16.mxu1 %vm714_vm3, %v5137_v12  ;;  %v7800_v60 = vsel %vm6785_vm7, %v4426_v30, %v4427_v27  ;;  %v7804_v12 = vrot.slane %v3940_v8, 4  ;;  %v4440_v1 = vrot.slane %v4438_v11, 4  ;;  %v7826_v8 = vrot.slane %v3950_v50, 4 }
 0x108   : > { %v5550_v40 = vcombine.low %v7786_v15, %v7800_v60  ;;  %v7828_v62 = vrot.slane %v3961_v49, 5  ;;  %v3985_v29 = vshll.u32 %v5473_v63, 16  ;;  %v7832_v26 = vsel %vm6785_vm7, %v4433_v28, %v4434_v51  ;;  %v8445_v28 = vld [vmem:[#allocation14_spill] sm:$0xff] }
 0x109   : > { %v7835_v4 = vrot.slane %v3967_v22, 5  ;;  %v7837_v52 = vrot.slane %v3971_v33, 4  ;;  %v5551_v54 = vcombine.low %v7816_v14, %v7832_v26  ;;  %v7843_v27 = vsel %vm6785_vm7, %v4440_v1, %v4441_v46  ;;  %v5521_v33 = vld [vmem:[%s6533_s30 + $0x84] sm:$0xe]  ;;  %v6367_v1 = vld [vmem:[%s6533_s30 + $0x18] sm:$0xff]  }
 0x10a   : > { %v3977_v49 = vshll.u32 %v7807_v35, 16  ;;  %v3991_v50 = vshll.u32 %v7810_v58, 16  ;;  %v5552_v53 = vcombine.low %v7822_v45, %v7843_v27  ;;  %v5536_v22 = vrot.slane %v5520_v19, 9  ;;  %v6429_v60 = vld [vmem:[%s6533_s30 + $0xa0] sm:$0xf] }
 0x10b   : > { %v3984_v38 = vrot.slane %v3982_v47, 4  ;;  %v4448_v30 = vrot.slane %v8442_v59, 5  ;;  %v2304_v61 = vshrl.u32 %v5247_v55, 16  ;;  %v3987_v63 = vrot.slane %v3985_v29, 5  ;;  %v5476_v29 = vld [vmem:[%s6533_s30 + $0xcc] sm:$0xf] }
 0x10c   : > { %v3995_v18 = vshrl.u32 %v7810_v58, 16  ;;  %v2307_v43 = vshll.u32 %v5247_v55, 16  ;;  %v5537_v37 = vrot.slane %v5521_v33, 9  ;;  %v3946_v9 = vsel %vm6559_vm4, %v7804_v12, %v7743_v42  ;;  %v7886_v55 = vld [vmem:[%s6533_s30 + $0xd0] sm:$0xf] }
 0x10d   : > { %5988 = vmatmul.mubr.msk.bf16.gmra.mrb[12].mxu0 %vm714_vm3, %v7741_v44  ;;  %v4445_v44 = vrot.slane %v8441_v23, 5  ;;  %v2306_v51 = vrot.slane %v2304_v61, 4  ;;  %v3964_v11 = vor.u32 %v7828_v62, %v7818_v21  ;;  %v4452_v47 = vrot.slane %v8445_v28, 5  ;;  %v6368_v21 = vld [vmem:[%s6533_s30 + $0x24] sm:$0xff]   ;;  %v6433_v27 = vld [vmem:[%s6533_s30 + $0xac] sm:$0xf] }
 0x10e   : > { %5834 = vmatmul.mubr.msk.bf16.gmra.mrb[28].mxu1 %vm714_vm3, %v5138_v56  ;;  %5991 = vmatprep.mubr.msk.bf16.mxu0 %vm714_vm3, %v7745_v41  ;;  %v8444_v56 = vld [vmem:[#allocation5_spill] sm:$0xff]  ;;  %v2309_v46 = vrot.slane %v2307_v43, 5  ;;  %v3956_v19 = vsel %vm6559_vm4, %v7826_v8, %v7755_v17  ;;  %v4455_v12 = vrot.slane %v7638_v2, 5  ;;  %v7894_v62 = vrot.slane %v3991_v50, 5  ;;  %v5522_v8 = vld [vmem:[%s6533_s30 + $0x90] sm:$0xe] }
 0x10f   : > { %5839 = vmatprep.mubr.msk.bf16.mxu1 %vm714_vm3, %v6366_v6  ;;  %v2326_v41 = vsel %vm6559_vm4, %v8444_v56, %v8443_v16  ;;  %v7868_v20 = vsel %vm6785_vm7, %v5536_v22, %v4445_v44  ;;  %v4447_v31 = vrot.slane %v4445_v44, 4  ;;  %v3974_v6 = vor.u32 %v7837_v52, %v7835_v4  ;;  %v7900_v52 = vld [vmem:[%s6533_s30 + $0xc8] sm:$0x1]  ;;  %v8447_v16 = vld [vmem:[#allocation2_spill] sm:$0xff] }
 0x110   : > { %v3997_v22 = vrot.slane %v3995_v18, 4  ;;  %v2310_v17 = vor.u32 %v2309_v46, %v2306_v51  ;;  %v3979_v23 = vrot.slane %v3977_v49, 5  ;;  %v3988_v44 = vor.u32 %v3987_v63, %v3984_v38  ;;  %v8448_v51 = vld [vmem:[#allocation3_spill] sm:$0xff] }
 0x111   : > { %v7890_v42 = vsel %vm6785_vm7, %v4447_v31, %v4448_v30  ;;  %v7904_v59 = vsel %vm6785_vm7, %v5537_v37, %v4452_v47  ;;  %v4454_v30 = vrot.slane %v4452_v47, 4  ;;  %v4006_v2 = vshrl.u32 %v5476_v29, 16 }
 0x112   : > { %v5553_v33 = vcombine.low %v7868_v20, %v7890_v42  ;;  %v4009_v50 = vshll.u32 %v5476_v29, 16  ;;  %v4015_v61 = vshll.u32 %v7886_v55, 16  ;;  %v2311_v18 = vrot.slane %v2310_v17, 4  ;;  %v6369_v29 = vld [vmem:[%s6533_s30 + $0x30] sm:$0xff]  }
 0x113   : > { %v4019_v49 = vshrl.u32 %v7886_v55, 16  ;;  %v7915_v38 = vsel %vm6785_vm7, %v4454_v30, %v4455_v12  ;;  %v5538_v63 = vrot.slane %v5522_v8, 9  ;;  %v3998_v56 = vor.u32 %v3997_v22, %v7894_v62 }
 0x114   : > { %v4001_v31 = vshll.u32 %v7900_v52, 16  ;;  %v5554_v37 = vcombine.low %v7904_v59, %v7915_v38  ;;  %v5492_v46 = vcombine.low %v3946_v9, %v3956_v19  ;;  %v3965_v28 = vrot.slane %v3964_v11, 4  ;;  %v5523_v11 = vld [vmem:[%s6533_s30 + $0x9c] sm:$0xe] }
 0x115   : > { %5992 = vmatmul.mubr.msk.bf16.gmra.mrb[16].mxu0 %vm714_vm3, %v7747_v5  ;;  %v8446_v5 = vld [vmem:[#allocation15_spill] sm:$0xff]  ;;  %v3975_v47 = vrot.slane %v3974_v6, 4  ;;  %v3989_v12 = vrot.slane %v3988_v44, 4  ;;  %v4462_v8 = vrot.slane %v7647_v3, 5  ;;  %v4008_v30 = vrot.slane %v4006_v2, 4  ;;  %v6370_v19 = vld [vmem:[%s6533_s30 + $0x3c] sm:$0xff]  }
 0x116   : > { %5840 = vmatmul.mubr.msk.bf16.vlgmr.msra.gmra.mrb[0].mxu1 %vm714_vm3, %v6367_v1  ;;  %5995 = vmatprep.mubr.msk.bf16.mxu0 %vm714_vm3, %v7749_v7  ;;  %v4459_v43 = vrot.slane %v8446_v5, 5  ;;  %v2316_v7 = vsel %vm6559_vm4, %v2311_v18, %v8448_v51  ;;  %v4011_v18 = vrot.slane %v4009_v50, 5  ;;  %v7938_v5 = vrot.slane %v4015_v61, 5 }
 0x117   : > { %6042 = vmatpush3.bf16.msra.mxu1 %v8447_v16  ;;  %5843 = vmatprep.mubr.msk.bf16.mxu1 %vm714_vm3, %v6368_v21  ;;  %v7927_v1 = vcombine.low %v2316_v7, %v2326_v41  ;;  %v7931_v21 = vld [vmem:[%s6533_s30 + $0xd4] sm:$0x1]  ;;  %v4021_v9 = vrot.slane %v4019_v49, 4  ;;  %v3999_v41 = vrot.slane %v3998_v56, 4  ;;  %v4003_v6 = vrot.slane %v4001_v31, 5 }
 0x118   : > { %v7935_v22 = vsel %vm6785_vm7, %v5538_v63, %v4459_v43  ;;  %v4461_v17 = vrot.slane %v4459_v43, 4  ;;  %v3970_v63 = vsel %vm6559_vm4, %v3965_v28, %v7835_v4  ;;  %v3980_v2 = vsel %vm6559_vm4, %v3975_v47, %v3979_v23  ;;  %v6420_v16 = vld [vmem:[%s6533_s30 + $0x1c] sm:$0xf]  ;;  %v5524_v28 = vld [vmem:[%s6533_s30 + $0xa8] sm:$0xe] }
 0x119   : > { %v4025_v50 = vshll.u32 %v7931_v21, 16  ;;  %v5539_v61 = vrot.slane %v5523_v11, 9  ;;  %v4466_v49 = vrot.slane %v7635_v25, 5  ;;  %v3994_v4 = vsel %vm6559_vm4, %v3989_v12, %v7894_v62  ;;  %v5512_v62 = vld [vmem:[%s6533_s30 + $0x18] sm:$0xe]  ;;  %v6371_v47 = vld [vmem:[%s6533_s30 + $0x48] sm:$0xff]  }
 0x11a   : > { %v7944_v44 = vsel %vm6785_vm7, %v4461_v17, %v4462_v8  ;;  %v4022_v43 = vor.u32 %v4021_v9, %v7938_v5  ;;  %v4469_v23 = vrot.slane %v7680_v57, 5  ;;  %v4004_v25 = vsel %vm6559_vm4, %v3999_v41, %v4003_v6  ;;  %v6421_v11 = vld [vmem:[%s6533_s30 + $0x20] sm:$0x1] }
 0x11b   : > { %v5555_v3 = vcombine.low %v7935_v22, %v7944_v44  ;;  %v4389_v56 = vrot.slane %v6420_v16, 5  ;;  %v7970_v31 = vsel %vm6785_vm7, %v5539_v61, %v4466_v49  ;;  %v4468_v51 = vrot.slane %v4466_v49, 4  ;;  %v5525_v49 = vld [vmem:[%s6533_s30 + $0xb4] sm:$0xe] }
 0x11c   : > { %v5493_v7 = vcombine.low %v3970_v63, %v3980_v2  ;;  %v4023_v17 = vrot.slane %v4022_v43, 4  ;;  %v5540_v41 = vrot.slane %v5524_v28, 9  ;;  %v4473_v6 = vrot.slane %v7683_v34, 5  ;;  %v5513_v2 = vld [vmem:[%s6533_s30 + $0x24] sm:$0xe] }
 0x11d   : > { %5996 = vmatmul.mubr.msk.bf16.gmra.mrb[20].mxu0 %vm714_vm3, %v7782_v24  ;;  %v4012_v24 = vor.u32 %v4011_v18, %v4008_v30  ;;  %v7975_v57 = vsel %vm6785_vm7, %v4468_v51, %v4469_v23  ;;  %v6372_v30 = vld [vmem:[%s6533_s30 + $0x54] sm:$0xff]   ;;  %v5528_v18 = vrot.slane %v5512_v62, 9  ;;  %v4391_v9 = vrot.slane %v4389_v56, 4  ;;  %v6424_v28 = vld [vmem:[%s6533_s30 + $0x2c] sm:$0x1] }
 0x11e   : > { %5844 = vmatmul.mubr.msk.bf16.gmra.mrb[4].mxu1 %vm714_vm3, %v6369_v29  ;;  %5999 = vmatprep.mubr.msk.bf16.mxu0 %vm714_vm3, %v5492_v46  ;;  %v4027_v46 = vrot.slane %v4025_v50, 5  ;;  %v5494_v29 = vcombine.low %v3994_v4, %v4004_v25  ;;  %v5556_v8 = vcombine.low %v7970_v31, %v7975_v57  ;;  %v4476_v63 = vrot.slane %v7693_v48, 5  ;;  %v6422_v50 = vld [vmem:[%s6533_s30 + $0x28] sm:$0xf]  ;;  %v5514_v25 = vld [vmem:[%s6533_s30 + $0x30] sm:$0xe] }
 0x11f   : > { %5847 = vmatprep.mubr.msk.bf16.mxu1 %vm714_vm3, %v6370_v19  ;;  %v4013_v12 = vrot.slane %v4012_v24, 4  ;;  %v4392_v19 = vrot.slane %v6421_v11, 5  ;;  %v4396_v61 = vrot.slane %v6422_v50, 5  ;;  %v7998_v48 = vsel %vm6785_vm7, %v5540_v41, %v4473_v6  ;;  %v6374_v11 = vld [vmem:[%s6533_s30 + $0x6c] sm:$0xff]   ;;  %v8449_v41 = vld [vmem:[#allocation6_spill] sm:$0xff] }
 0x120   : > { %v4028_v34 = vsel %vm6559_vm4, %v4023_v17, %v4027_v46  ;;  %v4475_v24 = vrot.slane %v4473_v6, 4  ;;  %v4390_v43 = vsel %vm6785_vm7, %v5528_v18, %v4389_v56  ;;  %v5529_v51 = vrot.slane %v5513_v2, 9  ;;  %v5526_v50 = vld [vmem:[%s6533_s30 + $0xc0] sm:$0xe]  ;;  %v6438_v31 = vld [vmem:[%s6533_s30 + $0xc8] sm:$0x1] }
 0x121   : > { %v4018_v4 = vsel %vm6559_vm4, %v4013_v12, %v7938_v5  ;;  %v4393_v23 = vsel %vm6785_vm7, %v4391_v9, %v4392_v19  ;;  %v6423_v5 = vld [vmem:[%s6533_s30 + $0x34] sm:$0xf]  ;;  %v6373_v12 = vld [vmem:[%s6533_s30 + $0x60] sm:$0xff]   ;;  %v5530_v18 = vrot.slane %v5514_v25, 9  ;;  %v4483_v9 = vrot.slane %v7807_v35, 5 }
 0x122   : > { %v4403_v16 = vrot.slane %v6423_v5, 5  ;;  %v8009_v62 = vsel %vm6785_vm7, %v4475_v24, %v4476_v63  ;;  %v5495_v46 = vcombine.low %v4018_v4, %v4028_v34  ;;  %v5545_v17 = vcombine.low %v4390_v43, %v4393_v23  ;;  %v5515_v24 = vld [vmem:[%s6533_s30 + $0x3c] sm:$0xe] }
 0x123   : > { %v5557_v56 = vcombine.low %v7998_v48, %v8009_v62  ;;  %v4406_v6 = vrot.slane %v8449_v41, 5  ;;  %v4397_v35 = vsel %vm6785_vm7, %v5529_v51, %v4396_v61  ;;  %v5542_v5 = vrot.slane %v5526_v50, 9 }
 0x124   : > { %v4405_v19 = vrot.slane %v4403_v16, 4  ;;  %v4404_v23 = vsel %vm6785_vm7, %v5530_v18, %v4403_v16  ;;  %v4490_v51 = vrot.slane %v7900_v52, 5  ;;  %v2467_v57 = vshll.u32 %v6438_v31, 16 }
 0x125   : > { %6000 = vmatmul.mubr.msk.bf16.gmra.mrb[24].mxu0 %vm714_vm3, %v5493_v7  ;;  %v5541_v7 = vrot.slane %v5525_v49, 9 }
 0x126   : > { %5848 = vmatmul.mubr.msk.bf16.gmra.mrb[8].mxu1 %vm714_vm3, %v6371_v47  ;;  %6003 = vmatprep.mubr.msk.bf16.mxu0 %vm714_vm3, %v5494_v29  ;;  %v4399_v47 = vrot.slane %v6424_v28, 5  ;;  %v4480_v29 = vrot.slane %v7758_v39, 5  ;;  %v8450_v39 = vld [vmem:[#allocation7_spill] sm:$0xff]  ;;  %v4407_v25 = vsel %vm6785_vm7, %v4405_v19, %v4406_v6  ;;  %v5531_v28 = vrot.slane %v5515_v24, 9 }
 0x127   : > { %5851 = vmatprep.mubr.msk.bf16.mxu1 %vm714_vm3, %v6372_v30  ;;  %v4398_v30 = vrot.slane %v4396_v61, 4  ;;  %v4410_v49 = vrot.slane %v8450_v39, 5  ;;  %v4487_v61 = vrot.slane %v7810_v58, 5  ;;  %v6425_v39 = vld [vmem:[%s6533_s30 + $0x70] sm:$0xf]  ;;  %v4494_v24 = vrot.slane %v7886_v55, 5 }
 0x128   : > { %v8021_v63 = vsel %vm6785_vm7, %v5541_v7, %v4480_v29  ;;  %v4482_v2 = vrot.slane %v4480_v29, 4  ;;  %v5244_v7 = vld [vmem:[%s6533_s30 + $0x6c] sm:$0xf]  ;;  %v8451_v29 = vld [vmem:[#allocation8_spill] sm:$0xff] }
 0x129   : > { %v4400_v34 = vsel %vm6785_vm7, %v4398_v30, %v4399_v47  ;;  %v4412_v47 = vrot.slane %v4410_v49, 4  ;;  %v6375_v30 = vld [vmem:[%s6533_s30 + $0x78] sm:$0xff]   ;;  %v8052_v16 = vsel %vm6785_vm7, %v5542_v5, %v4487_v61  ;;  %v4489_v18 = vrot.slane %v4487_v61, 4 }
 0x12a   : > { %v8028_v4 = vsel %vm6785_vm7, %v4482_v2, %v4483_v9  ;;  %v5547_v9 = vcombine.low %v4404_v23, %v4407_v25  ;;  %v2280_v19 = vshrl.u32 %v5244_v7, 16  ;;  %v2283_v41 = vshll.u32 %v5244_v7, 16 }
 0x12b   : > { %v5558_v43 = vcombine.low %v8021_v63, %v8028_v4  ;;  %v8057_v58 = vsel %vm6785_vm7, %v4489_v18, %v4490_v51  ;;  %v4411_v6 = vsel %vm6785_vm7, %v5531_v28, %v4410_v49  ;;  %v4497_v49 = vrot.slane %v7931_v21, 5  ;;  %v6377_v51 = vld [vmem:[%s6533_s30 + $0x90] sm:$0xff]   ;;  %v6378_v21 = vld [vmem:[%s6533_s30 + $0x9c] sm:$0xff]  }
 0x12c   : > { %v5559_v50 = vcombine.low %v8052_v16, %v8057_v58  ;;  %v2282_v23 = vrot.slane %v2280_v19, 4  ;;  %v2285_v25 = vrot.slane %v2283_v41, 5  ;;  %v4496_v7 = vrot.slane %v4494_v24, 4 }
 0x12d   : > { %6004 = vmatmul.mubr.msk.bf16.gmra.mrb[28].mxu0 %vm714_vm3, %v5495_v46  ;;  %v5546_v46 = vcombine.low %v4397_v35, %v4400_v34  ;;  %v2289_v35 = vshll.u32 %v6425_v39, 16  ;;  %v2293_v34 = vshrl.u32 %v6425_v39, 16 }
 0x12e   : > { %5852 = vmatmul.mubr.msk.bf16.gmra.mrb[12].mxu1 %vm714_vm3, %v6373_v12  ;;  %6009 = vmatprep.mubr.msk.bf16.mxu0 %vm714_vm3, %v5545_v17  ;;  %v4413_v12 = vrot.slane %v8451_v29, 5  ;;  %v5527_v17 = vld [vmem:[%s6533_s30 + $0xcc] sm:$0xe]  ;;  %v8079_v55 = vsel %vm6785_vm7, %v4496_v7, %v4497_v49 }
 0x12f   : > { %5855 = vmatprep.mubr.msk.bf16.mxu1 %vm714_vm3, %v6374_v11  ;;  %v6376_v11 = vld [vmem:[%s6533_s30 + $0x84] sm:$0xff]   ;;  %v5543_v52 = vrot.slane %v5527_v17, 9  ;;  %v2295_v28 = vrot.slane %v2293_v34, 4  ;;  %v6426_v17 = vld [vmem:[%s6533_s30 + $0x74] sm:$0x1] }
 0x130   : > { %v4414_v2 = vsel %vm6785_vm7, %v4412_v47, %v4413_v12  ;;  %v5250_v47 = vld [vmem:[%s6533_s30 + $0x84] sm:$0xf]  ;;  %v2286_v12 = vor.u32 %v2285_v25, %v2282_v23  ;;  %v6380_v34 = vld [vmem:[%s6533_s30 + $0xb4] sm:$0xff]  }
 0x131   : > { %v8074_v5 = vsel %vm6785_vm7, %v5543_v52, %v4494_v24  ;;  %v5548_v61 = vcombine.low %v4411_v6, %v4414_v2  ;;  %v2331_v18 = vshll.u32 %v5250_v47, 16  ;;  %v5253_v6 = vld [vmem:[%s6533_s30 + $0x90] sm:$0xf]  ;;  %v6379_v2 = vld [vmem:[%s6533_s30 + $0xa8] sm:$0xff]  }
 0x132   : > { %v5560_v29 = vcombine.low %v8074_v5, %v8079_v55  ;;  %v2287_v52 = vrot.slane %v2286_v12, 4  ;;  %v2352_v23 = vshrl.u32 %v5253_v6, 16  ;;  %v2355_v25 = vshll.u32 %v5253_v6, 16 }
 0x133   : > { %v2385_v12 = vshll.u32 %v6429_v60, 16 }
 0x134   : > { %v2357_v14 = vrot.slane %v2355_v25, 5  ;;  %v6432_v25 = vld [vmem:[%s6533_s30 + $0xa4] sm:$0x1] }
 0x135   : > { %6010 = vmatmul.mubr.msk.bf16.vlgmr.msra.gmra.mrb[0].mxu0 %vm714_vm3, %v5546_v46  ;;  %v2291_v46 = vrot.slane %v2289_v35, 5  ;;  %v5256_v35 = vld [vmem:[%s6533_s30 + $0x9c] sm:$0xf]  ;;  %v8121_v6 = vrot.slane %v2385_v12, 5 }
 0x136   : > { %5856 = vmatmul.mubr.msk.bf16.gmra.mrb[16].mxu1 %vm714_vm3, %v6375_v30  ;;  %6013 = vmatprep.mubr.msk.bf16.mxu0 %vm714_vm3, %v5547_v9  ;;  %v2299_v30 = vshll.u32 %v6426_v17, 16  ;;  %v2328_v9 = vshrl.u32 %v5250_v47, 16  ;;  %v2379_v47 = vshll.u32 %v5256_v35, 16  ;;  %v6430_v17 = vld [vmem:[%s6533_s30 + $0x8c] sm:$0x1] }
 0x137   : > { %5859 = vmatprep.mubr.msk.bf16.mxu1 %vm714_vm3, %v6376_v11  ;;  %v2296_v13 = vor.u32 %v2295_v28, %v2291_v46  ;;  %v6427_v11 = vld [vmem:[%s6533_s30 + $0x88] sm:$0xf]  ;;  %v2292_v7 = vsel %vm6559_vm4, %v2287_v52, %v2291_v46 }
 0x138   : > { %v2337_v19 = vshll.u32 %v6427_v11, 16  ;;  %v2341_v41 = vshrl.u32 %v6427_v11, 16  ;;  %v2301_v0 = vrot.slane %v2299_v30, 5  ;;  %v2330_v36 = vrot.slane %v2328_v9, 4 }
 0x139   : > { %v2297_v39 = vrot.slane %v2296_v13, 4  ;;  %v2347_v30 = vshll.u32 %v6430_v17, 16  ;;  %v2354_v9 = vrot.slane %v2352_v23, 4  ;;  %v2381_v11 = vrot.slane %v2379_v47, 5 }
 0x13a   : > { %v8098_v24 = vrot.slane %v2337_v19, 5  ;;  %v2343_v49 = vrot.slane %v2341_v41, 4  ;;  %v6381_v19 = vld [vmem:[%s6533_s30 + $0xc0] sm:$0xff]  }
 0x13b   : > { %v2302_v46 = vsel %vm6559_vm4, %v2297_v39, %v2301_v0  ;;  %v5259_v39 = vld [vmem:[%s6533_s30 + $0xa8] sm:$0xf] }
 0x13c   : > { %v2344_v13 = vor.u32 %v2343_v49, %v8098_v24  ;;  %v5277_v41 = vcombine.low %v2292_v7, %v2302_v46  ;;  %v2395_v7 = vshll.u32 %v6432_v25, 16  ;;  %v2403_v45 = vshll.u32 %v5259_v39, 16 }
 0x13d   : > { %6014 = vmatmul.mubr.msk.bf16.gmra.mrb[4].mxu0 %vm714_vm3, %v5548_v61  ;;  %v6428_v61 = vld [vmem:[%s6533_s30 + $0x94] sm:$0xf] }
 0x13e   : > { %5860 = vmatmul.mubr.msk.bf16.gmra.mrb[20].mxu1 %vm714_vm3, %v6377_v51  ;;  %6017 = vmatprep.mubr.msk.bf16.mxu0 %vm714_vm3, %v5549_v10  ;;  %v2333_v10 = vrot.slane %v2331_v18, 5  ;;  %v2361_v51 = vshll.u32 %v6428_v61, 16  ;;  %v2365_v28 = vshrl.u32 %v6428_v61, 16  ;;  %v2345_v0 = vrot.slane %v2344_v13, 4 }
 0x13f   : > { %5863 = vmatprep.mubr.msk.bf16.mxu1 %vm714_vm3, %v6378_v21  ;;  %v2376_v21 = vshrl.u32 %v5256_v35, 16  ;;  %v6431_v35 = vld [vmem:[%s6533_s30 + $0x98] sm:$0x1]  ;;  %v2400_v61 = vshrl.u32 %v5259_v39, 16  ;;  %v5265_v39 = vld [vmem:[%s6533_s30 + $0xc0] sm:$0xf] }
 0x140   : > { %v2334_v15 = vor.u32 %v2333_v10, %v2330_v36  ;;  %v8118_v26 = vrot.slane %v2361_v51, 5  ;;  %v2349_v36 = vrot.slane %v2347_v30, 5  ;;  %v2358_v10 = vor.u32 %v2357_v14, %v2354_v9  ;;  %v5262_v51 = vld [vmem:[%s6533_s30 + $0xb4] sm:$0xf] }
 0x141   : > { %v2378_v18 = vrot.slane %v2376_v21, 4  ;;  %v2413_v21 = vshrl.u32 %v6433_v27, 16  ;;  %v2424_v20 = vshrl.u32 %v5262_v51, 16  ;;  %v2427_v42 = vshll.u32 %v5262_v51, 16 }
 0x142   : > { %v2335_v52 = vrot.slane %v2334_v15, 4  ;;  %v2350_v46 = vsel %vm6559_vm4, %v2345_v0, %v2349_v36  ;;  %v2359_v15 = vrot.slane %v2358_v10, 4  ;;  %v2397_v30 = vrot.slane %v2395_v7, 5 }
 0x143   : > { %v2382_v23 = vor.u32 %v2381_v11, %v2378_v18  ;;  %v2402_v9 = vrot.slane %v2400_v61, 4  ;;  %v2415_v11 = vrot.slane %v2413_v21, 4  ;;  %v6437_v61 = vld [vmem:[%s6533_s30 + $0xbc] sm:$0x1] }
 0x144   : > { %v2340_v47 = vsel %vm6559_vm4, %v2335_v52, %v8098_v24  ;;  %v2364_v0 = vsel %vm6559_vm4, %v2359_v15, %v8118_v26  ;;  %v2443_v22 = vshll.u32 %v6437_v61, 16 }
 0x145   : > { %6018 = vmatmul.mubr.msk.bf16.gmra.mrb[8].mxu0 %vm714_vm3, %v5550_v40  ;;  %v2389_v40 = vshrl.u32 %v6429_v60, 16  ;;  %v2383_v17 = vrot.slane %v2382_v23, 4  ;;  %v5279_v24 = vcombine.low %v2340_v47, %v2350_v46 }
 0x146   : > { %5864 = vmatmul.mubr.msk.bf16.gmra.mrb[24].mxu1 %vm714_vm3, %v6379_v2  ;;  %6021 = vmatprep.mubr.msk.bf16.mxu0 %vm714_vm3, %v5551_v54  ;;  %v2367_v54 = vrot.slane %v2365_v28, 4 }
 0x147   : > { %5867 = vmatprep.mubr.msk.bf16.mxu1 %vm714_vm3, %v6380_v34  ;;  %v2391_v2 = vrot.slane %v2389_v40, 4  ;;  %v2371_v34 = vshll.u32 %v6431_v35, 16  ;;  %v2388_v10 = vsel %vm6559_vm4, %v2383_v17, %v8121_v6  ;;  %v2469_v17 = vrot.slane %v2467_v57, 5 }
 0x148   : > { %v2368_v49 = vor.u32 %v2367_v54, %v8118_v26  ;;  %v2405_v54 = vrot.slane %v2403_v45, 5  ;;  %v6435_v26 = vld [vmem:[%s6533_s30 + $0xb0] sm:$0x1] }
 0x149   : > { %v2392_v28 = vor.u32 %v2391_v2, %v8121_v6  ;;  %v2373_v60 = vrot.slane %v2371_v34, 5  ;;  %v2419_v35 = vshll.u32 %v6435_v26, 16  ;;  %v2448_v34 = vshrl.u32 %v5265_v39, 16 }
 0x14a   : > { %v2369_v13 = vrot.slane %v2368_v49, 4  ;;  %v2406_v38 = vor.u32 %v2405_v54, %v2402_v9  ;;  %v2451_v6 = vshll.u32 %v5265_v39, 16  ;;  %v6436_v49 = vld [vmem:[%s6533_s30 + $0xc4] sm:$0xf] }
 0x14b   : > { %v2393_v14 = vrot.slane %v2392_v28, 4  ;;  %v2457_v23 = vshll.u32 %v6436_v49, 16  ;;  %v2461_v25 = vshrl.u32 %v6436_v49, 16  ;;  %v2421_v45 = vrot.slane %v2419_v35, 5 }
 0x14c   : > { %v2374_v36 = vsel %vm6559_vm4, %v2369_v13, %v2373_v60  ;;  %v2407_v51 = vrot.slane %v2406_v38, 4  ;;  %v2445_v60 = vrot.slane %v2443_v22, 5 }
 0x14d   : > { %6022 = vmatmul.mubr.msk.bf16.gmra.mrb[12].mxu0 %vm714_vm3, %v5552_v53  ;;  %v2409_v53 = vshll.u32 %v6433_v27, 16  ;;  %v2398_v59 = vsel %vm6559_vm4, %v2393_v14, %v2397_v30  ;;  %v5280_v44 = vcombine.low %v2364_v0, %v2374_v36  ;;  %v2450_v27 = vrot.slane %v2448_v34, 4  ;;  %v8229_v36 = vld [vmem:[%s8383_s3] ss:$0 sm:$0xff] }
 0x14e   : > { %5868 = vmatmul.mubr.msk.bf16.gmra.mrb[28].mxu1 %vm714_vm3, %v6381_v19  ;;  %6025 = vmatprep.mubr.msk.bf16.mxu0 %vm714_vm3, %v5553_v33  ;;  %v6434_v33 = vld [vmem:[%s6533_s30 + $0xb8] sm:$0xf]  ;;  %v2426_v19 = vrot.slane %v2424_v20, 4  ;;  %v2459_v21 = vrot.slane %v2457_v23, 5  ;;  %v2463_v47 = vrot.slane %v2461_v25, 4  ;;  %s8239_s30 = scalar_lea.vmem %s8384_s4, %s5581_s27 }
 0x14f   : > { %5889 = vmatprep.mubr.msk.bf16.mxu1 %vm714_vm3, %v5277_v41  ;;  %v2433_v12 = vshll.u32 %v6434_v33, 16  ;;  %v2437_v40 = vshrl.u32 %v6434_v33, 16  ;;  %v2411_v18 = vrot.slane %v2409_v53, 5  ;;  %v2429_v41 = vrot.slane %v2427_v42, 5 }
 0x150   : > { %v2453_v53 = vrot.slane %v2451_v6, 5 }
 0x151   : > { %v2435_v52 = vrot.slane %v2433_v12, 5  ;;  %v2439_v2 = vrot.slane %v2437_v40, 4  ;;  %v2412_v20 = vsel %vm6559_vm4, %v2407_v51, %v2411_v18  ;;  %v2464_v12 = vor.u32 %v2463_v47, %v2459_v21 }
 0x152   : > { %v2454_v33 = vor.u32 %v2453_v53, %v2450_v27 }
 0x153   : > { %v2440_v7 = vor.u32 %v2439_v2, %v2435_v52  ;;  %v2465_v13 = vrot.slane %v2464_v12, 4  ;;  %v8224_v2 = vld [vmem:[%s8382_s2] ss:$0 sm:$0xff] }
 0x154   : > { %v2455_v40 = vrot.slane %v2454_v33, 4 }
 0x155   : > { %6026 = vmatmul.mubr.msk.bf16.gmra.mrb[16].mxu0 %vm714_vm3, %v5554_v37  ;;  %v2416_v37 = vor.u32 %v2415_v11, %v2411_v18  ;;  %v2441_v15 = vrot.slane %v2440_v7, 4  ;;  %v2470_v9 = vsel %vm6559_vm4, %v2465_v13, %v2469_v17 }
 0x156   : > { %5890 = vmatmul.mubr.msk.bf16.vlgmr.msra.gmra.mrb[16].mxu1 %vm714_vm3, %v7927_v1  ;;  %6029 = vmatprep.mubr.msk.bf16.mxu0 %vm714_vm3, %v5555_v3  ;;  %v2430_v1 = vor.u32 %v2429_v41, %v2426_v19  ;;  %v5281_v3 = vcombine.low %v2388_v10, %v2398_v59  ;;  %v2460_v30 = vsel %vm6559_vm4, %v2455_v40, %v2459_v21 }
 0x157   : > { %5893 = vmatprep.mubr.msk.bf16.mxu1 %vm714_vm3, %v5279_v24  ;;  %v2417_v28 = vrot.slane %v2416_v37, 4  ;;  %v2446_v48 = vsel %vm6559_vm4, %v2441_v15, %v2445_v60  ;;  %v5284_v14 = vcombine.low %v2460_v30, %v2470_v9 }
 0x158   : > { %v2431_v46 = vrot.slane %v2430_v1, 4 }
 0x159   : > { %v2422_v42 = vsel %vm6559_vm4, %v2417_v28, %v2421_v45 }
 0x15a   : > { %v5282_v62 = vcombine.low %v2412_v20, %v2422_v42 }
 0x15d   : > { %6030 = vmatmul.mubr.msk.bf16.gmra.mrb[20].mxu0 %vm714_vm3, %v5556_v8  ;;  %v2436_v8 = vsel %vm6559_vm4, %v2431_v46, %v2435_v52 }
 0x15e   : > { %5894 = vmatmul.mubr.msk.bf16.gmra.mrb[20].mxu1 %vm714_vm3, %v5280_v44  ;;  %6033 = vmatprep.mubr.msk.bf16.mxu0 %vm714_vm3, %v5557_v56  ;;  %v5283_v56 = vcombine.low %v2436_v8, %v2446_v48 }
 0x15f   : > { %5897 = vmatprep.mubr.msk.bf16.mxu1 %vm714_vm3, %v5281_v3 }
 0x165   : > { %6034 = vmatmul.mubr.msk.bf16.gmra.mrb[24].mxu0 %vm714_vm3, %v5558_v43 }
 0x166   : > { %5898 = vmatmul.mubr.msk.bf16.gmra.mrb[24].mxu1 %vm714_vm3, %v5282_v62  ;;  %6037 = vmatprep.mubr.msk.bf16.mxu0 %vm714_vm3, %v5559_v50 }
 0x167   : > { %5901 = vmatprep.mubr.msk.bf16.mxu1 %vm714_vm3, %v5283_v56 }
 0x16d   : > { %6038 = vmatmul.mubr.msk.bf16.gmra.mrb[28].mxu0 %vm714_vm3, %v5560_v29 }
 0x16e   : > { %5902 = vmatmul.mubr.msk.bf16.gmra.mrb[28].mxu1 %vm714_vm3, %v5284_v14 }
 0x1e9   : > { %v5841_v63 = vpop.f32.mrb[0].mxu1 }
 0x1ea   : > { %v1880_v4 = vpop.f32.mrb[1].mxu1 }
 0x1eb   : > { %v5842_v43 = vpop.f32.mrb[2].mxu1 }
 0x1ec   : > { %v1883_v16 = vpop.f32.mrb[3].mxu1 }
 0x1f1   : > { %v5845_v58 = vpop.f32.mrb[4].mxu1 }
 0x1f2   : > { %v1896_v50 = vpop.f32.mrb[5].mxu1 }
 0x1f3   : > { %v5846_v54 = vpop.f32.mrb[6].mxu1 }
 0x1f4   : > { %v1899_v18 = vpop.f32.mrb[7].mxu1 }
 0x1f9   : > { %v5849_v11 = vpop.f32.mrb[8].mxu1 }
 0x1fa   : > { %v1912_v32 = vpop.f32.mrb[9].mxu1 }
 0x1fb   : > { %v8209_v24 = vpop.f32.mrb[10].mxu1 }
 0x1fc   : > { %v8211_v19 = vpop.f32.mrb[11].mxu1 }
 0x201   : > { %v8213_v5 = vpop.f32.mrb[12].mxu1 }
 0x202   : > { %v8215_v55 = vpop.f32.mrb[13].mxu1 }
 0x203   : > { %v8217_v29 = vpop.f32.mrb[14].mxu1 }
 0x204   : > { %v8219_v41 = vpop.f32.mrb[15].mxu1 }
 0x208   : > { %v6011_v52 = vpop.f32.mrb[0].mxu0 }
 0x209   : > { %v6043_v39 = vadd.f32 %v6011_v52, %v5841_v63  ;;  %v4634_v0 = vpop.f32.mrb[1].mxu0 }
 0x20a   : > { %v6044_v10 = vadd.f32 %v4634_v0, %v1880_v4  ;;  %v6012_v59 = vpop.f32.mrb[2].mxu0 }
 0x20b   : > { %v4802_v38 = vmul.f32 %v6043_v39, %v8224_v2  ;;  %v6045_v37 = vadd.f32 %v6012_v59, %v5842_v43  ;;  %v4637_v26 = vpop.f32.mrb[3].mxu0 }
 0x20c   : > { %v4800_v35 = vmul.f32 %v6044_v10, %v8224_v2  ;;  %v6046_v34 = vadd.f32 %v4637_v26, %v1883_v16 }
 0x20d   : > { %v4841_v6 = vadd.f32 %v8229_v36, %v4802_v38  ;;  %v4803_v49 = vmul.f32 %v6045_v37, %v8224_v2 }
 0x20e   : > { %v4839_v23 = vadd.f32 %v8229_v36, %v4800_v35  ;;  %v4801_v25 = vmul.f32 %v6046_v34, %v8224_v2 }
 0x20f   : > { %v4873_v1 = vmax.f32 %v4841_v6, 0.0  ;;  %v4842_v7 = vadd.f32 %v8229_v36, %v4803_v49 }
 0x210   : > { %v4871_v61 = vmax.f32 %v4839_v23, 0.0  ;;  %v4840_v22 = vadd.f32 %v8229_v36, %v4801_v25  ;;  %v6015_v44 = vpop.f32.mrb[4].mxu0 }
 0x211   : > { %4906 = vst.msk [vmem:[%s8239_s30 + $0x10] sm:$0xff] %vm4903_vm8, %v4873_v1  ;;  %v4874_v3 = vmax.f32 %v4842_v7, 0.0  ;;  %v6047_v51 = vadd.f32 %v6015_v44, %v5845_v58  ;;  %v4650_v28 = vpop.f32.mrb[5].mxu0 }
 0x212   : > { %4904 = vst.msk [vmem:[%s8239_s30] sm:$0xff] %vm4903_vm8, %v4871_v61  ;;  %v4872_v45 = vmax.f32 %v4840_v22, 0.0  ;;  %v6048_v27 = vadd.f32 %v4650_v28, %v1896_v50  ;;  %v6016_v53 = vpop.f32.mrb[6].mxu0 }
 0x213   : > { %4907 = vst.msk [vmem:[%s8239_s30 + $0x18] sm:$0xff] %vm4903_vm8, %v4874_v3  ;;  %v4806_v21 = vmul.f32 %v6047_v51, %v8224_v2  ;;  %v6049_v47 = vadd.f32 %v6016_v53, %v5846_v54  ;;  %v4653_v46 = vpop.f32.mrb[7].mxu0 }
 0x214   : > { %4905 = vst.msk [vmem:[%s8239_s30 + $0x8] sm:$0xff] %vm4903_vm8, %v4872_v45  ;;  %v4804_v15 = vmul.f32 %v6048_v27, %v8224_v2  ;;  %v6050_v60 = vadd.f32 %v4653_v46, %v1899_v18 }
 0x215   : > { %v4845_v20 = vadd.f32 %v8229_v36, %v4806_v21  ;;  %v4807_v42 = vmul.f32 %v6049_v47, %v8224_v2 }
 0x216   : > { %v4843_v33 = vadd.f32 %v8229_v36, %v4804_v15  ;;  %v4805_v12 = vmul.f32 %v6050_v60, %v8224_v2 }
 0x217   : > { %v4877_v31 = vmax.f32 %v4845_v20, 0.0  ;;  %v4846_v57 = vadd.f32 %v8229_v36, %v4807_v42 }
 0x218   : > { %v4875_v8 = vmax.f32 %v4843_v33, 0.0  ;;  %v4844_v48 = vadd.f32 %v8229_v36, %v4805_v12  ;;  %v6019_v62 = vpop.f32.mrb[8].mxu0 }
 0x219   : > { %4910 = vst.msk [vmem:[%s8239_s30 + $0x30] sm:$0xff] %vm4903_vm8, %v4877_v31  ;;  %v4878_v56 = vmax.f32 %v4846_v57, 0.0  ;;  %v6051_v40 = vadd.f32 %v6019_v62, %v5849_v11  ;;  %v4666_v13 = vpop.f32.mrb[9].mxu0 }
 0x21a   : > { %4908 = vst.msk [vmem:[%s8239_s30 + $0x20] sm:$0xff] %vm4903_vm8, %v4875_v8  ;;  %v4876_v17 = vmax.f32 %v4844_v48, 0.0  ;;  %v6052_v30 = vadd.f32 %v4666_v13, %v1912_v32  ;;  %v6020_v9 = vpop.f32.mrb[10].mxu0 }
 0x21b   : > { %4911 = vst.msk [vmem:[%s8239_s30 + $0x38] sm:$0xff] %vm4903_vm8, %v4878_v56  ;;  %v4810_v14 = vmul.f32 %v6051_v40, %v8224_v2  ;;  %v6053_v63 = vadd.f32 %v6020_v9, %v8209_v24  ;;  %v4669_v4 = vpop.f32.mrb[11].mxu0 }
 0x21c   : > { %4909 = vst.msk [vmem:[%s8239_s30 + $0x28] sm:$0xff] %vm4903_vm8, %v4876_v17  ;;  %v4808_v43 = vmul.f32 %v6052_v30, %v8224_v2  ;;  %v6054_v16 = vadd.f32 %v4669_v4, %v8211_v19 }
 0x21d   : > { %v4849_v58 = vadd.f32 %v8229_v36, %v4810_v14  ;;  %v4811_v50 = vmul.f32 %v6053_v63, %v8224_v2 }
 0x21e   : > { %v4847_v54 = vadd.f32 %v8229_v36, %v4808_v43  ;;  %v4809_v18 = vmul.f32 %v6054_v16, %v8224_v2 }
 0x21f   : > { %v4881_v11 = vmax.f32 %v4849_v58, 0.0  ;;  %v4850_v32 = vadd.f32 %v8229_v36, %v4811_v50 }
 0x220   : > { %v4879_v24 = vmax.f32 %v4847_v54, 0.0  ;;  %v4848_v52 = vadd.f32 %v8229_v36, %v4809_v18  ;;  %v6023_v39 = vpop.f32.mrb[12].mxu0 }
 0x221   : > { %4914 = vst.msk [vmem:[%s8239_s30 + $0x50] sm:$0xff] %vm4903_vm8, %v4881_v11  ;;  %v4882_v19 = vmax.f32 %v4850_v32, 0.0  ;;  %v6055_v0 = vadd.f32 %v6023_v39, %v8213_v5  ;;  %v4682_v10 = vpop.f32.mrb[13].mxu0 }
 0x222   : > { %4912 = vst.msk [vmem:[%s8239_s30 + $0x40] sm:$0xff] %vm4903_vm8, %v4879_v24  ;;  %v4880_v59 = vmax.f32 %v4848_v52, 0.0  ;;  %v6056_v38 = vadd.f32 %v4682_v10, %v8215_v55  ;;  %v6024_v37 = vpop.f32.mrb[14].mxu0 }
 0x223   : > { %4915 = vst.msk [vmem:[%s8239_s30 + $0x58] sm:$0xff] %vm4903_vm8, %v4882_v19  ;;  %v4814_v26 = vmul.f32 %v6055_v0, %v8224_v2  ;;  %v6057_v35 = vadd.f32 %v6024_v37, %v8217_v29  ;;  %v4685_v34 = vpop.f32.mrb[15].mxu0 }
 0x224   : > { %4913 = vst.msk [vmem:[%s8239_s30 + $0x48] sm:$0xff] %vm4903_vm8, %v4880_v59  ;;  %v4812_v5 = vmul.f32 %v6056_v38, %v8224_v2  ;;  %v6058_v6 = vadd.f32 %v4685_v34, %v8219_v41 }
 0x225   : > { %v4853_v49 = vadd.f32 %v8229_v36, %v4814_v26  ;;  %v4815_v55 = vmul.f32 %v6057_v35, %v8224_v2 }
 0x226   : > { %v4851_v23 = vadd.f32 %v8229_v36, %v4812_v5  ;;  %v4813_v25 = vmul.f32 %v6058_v6, %v8224_v2 }
 0x227   : > { %v4885_v1 = vmax.f32 %v4853_v49, 0.0  ;;  %v4854_v29 = vadd.f32 %v8229_v36, %v4815_v55 }
 0x228   : > { %v4883_v7 = vmax.f32 %v4851_v23, 0.0  ;;  %v4852_v61 = vadd.f32 %v8229_v36, %v4813_v25  ;;  %v6027_v22 = vpop.f32.mrb[16].mxu0 }
 0x229   : > { %4918 = vst.msk [vmem:[%s8239_s30 + $0x70] sm:$0xff] %vm4903_vm8, %v4885_v1  ;;  %v4886_v41 = vmax.f32 %v4854_v29, 0.0  ;;  %v5891_v44 = vpop.f32.mrb[16].mxu1  ;;  %v4698_v3 = vpop.f32.mrb[17].mxu0 }
 0x22a   : > { %4916 = vst.msk [vmem:[%s8239_s30 + $0x60] sm:$0xff] %vm4903_vm8, %v4883_v7  ;;  %v4884_v51 = vmax.f32 %v4852_v61, 0.0  ;;  %v6059_v28 = vadd.f32 %v6027_v22, %v5891_v44  ;;  %v2670_v45 = vpop.f32.mrb[17].mxu1  ;;  %v6028_v27 = vpop.f32.mrb[18].mxu0 }
 0x22b   : > { %4919 = vst.msk [vmem:[%s8239_s30 + $0x78] sm:$0xff] %vm4903_vm8, %v4886_v41  ;;  %v6060_v53 = vadd.f32 %v4698_v3, %v2670_v45  ;;  %v5892_v21 = vpop.f32.mrb[18].mxu1  ;;  %v4701_v47 = vpop.f32.mrb[19].mxu0 }
 0x22c   : > { %4917 = vst.msk [vmem:[%s8239_s30 + $0x68] sm:$0xff] %vm4903_vm8, %v4884_v51  ;;  %v4818_v46 = vmul.f32 %v6059_v28, %v8224_v2  ;;  %v6061_v15 = vadd.f32 %v6028_v27, %v5892_v21  ;;  %v2673_v60 = vpop.f32.mrb[19].mxu1 }
 0x22d   : > { %v4816_v20 = vmul.f32 %v6060_v53, %v8224_v2  ;;  %v6062_v42 = vadd.f32 %v4701_v47, %v2673_v60 }
 0x22e   : > { %v4857_v33 = vadd.f32 %v8229_v36, %v4818_v46  ;;  %v4819_v12 = vmul.f32 %v6061_v15, %v8224_v2 }
 0x22f   : > { %v4855_v31 = vadd.f32 %v8229_v36, %v4816_v20  ;;  %v4817_v57 = vmul.f32 %v6062_v42, %v8224_v2 }
 0x230   : > { %v4889_v8 = vmax.f32 %v4857_v33, 0.0  ;;  %v4858_v48 = vadd.f32 %v8229_v36, %v4819_v12  ;;  %v6031_v62 = vpop.f32.mrb[20].mxu0 }
 0x231   : > { %v4887_v56 = vmax.f32 %v4855_v31, 0.0  ;;  %v4856_v40 = vadd.f32 %v8229_v36, %v4817_v57  ;;  %v5895_v13 = vpop.f32.mrb[20].mxu1  ;;  %v4714_v17 = vpop.f32.mrb[21].mxu0 }
 0x232   : > { %4922 = vst.msk [vmem:[%s8239_s30 + $0x90] sm:$0xff] %vm4903_vm8, %v4889_v8  ;;  %v4890_v30 = vmax.f32 %v4858_v48, 0.0  ;;  %v6063_v9 = vadd.f32 %v6031_v62, %v5895_v13  ;;  %v2686_v14 = vpop.f32.mrb[21].mxu1  ;;  %v6032_v63 = vpop.f32.mrb[22].mxu0 }
 0x233   : > { %4920 = vst.msk [vmem:[%s8239_s30 + $0x80] sm:$0xff] %vm4903_vm8, %v4887_v56  ;;  %v4888_v4 = vmax.f32 %v4856_v40, 0.0  ;;  %v6064_v43 = vadd.f32 %v4714_v17, %v2686_v14  ;;  %v5896_v16 = vpop.f32.mrb[22].mxu1  ;;  %v4717_v58 = vpop.f32.mrb[23].mxu0 }
 0x234   : > { %4923 = vst.msk [vmem:[%s8239_s30 + $0x98] sm:$0xff] %vm4903_vm8, %v4890_v30  ;;  %v4822_v50 = vmul.f32 %v6063_v9, %v8224_v2  ;;  %v6065_v54 = vadd.f32 %v6032_v63, %v5896_v16  ;;  %v2689_v18 = vpop.f32.mrb[23].mxu1 }
 0x235   : > { %4921 = vst.msk [vmem:[%s8239_s30 + $0x88] sm:$0xff] %vm4903_vm8, %v4888_v4  ;;  %v4820_v11 = vmul.f32 %v6064_v43, %v8224_v2  ;;  %v6066_v32 = vadd.f32 %v4717_v58, %v2689_v18 }
 0x236   : > { %v4861_v24 = vadd.f32 %v8229_v36, %v4822_v50  ;;  %v4823_v52 = vmul.f32 %v6065_v54, %v8224_v2 }
 0x237   : > { %v4859_v39 = vadd.f32 %v8229_v36, %v4820_v11  ;;  %v4821_v19 = vmul.f32 %v6066_v32, %v8224_v2 }
 0x238   : > { %v4893_v0 = vmax.f32 %v4861_v24, 0.0  ;;  %v4862_v10 = vadd.f32 %v8229_v36, %v4823_v52  ;;  %v6035_v59 = vpop.f32.mrb[24].mxu0 }
 0x239   : > { %v4891_v38 = vmax.f32 %v4859_v39, 0.0  ;;  %v4860_v37 = vadd.f32 %v8229_v36, %v4821_v19  ;;  %v5899_v26 = vpop.f32.mrb[24].mxu1  ;;  %v4730_v35 = vpop.f32.mrb[25].mxu0 }
 0x23a   : > { %4926 = vst.msk [vmem:[%s8239_s30 + $0xb0] sm:$0xff] %vm4903_vm8, %v4893_v0  ;;  %v4894_v34 = vmax.f32 %v4862_v10, 0.0  ;;  %v6067_v5 = vadd.f32 %v6035_v59, %v5899_v26  ;;  %v2702_v6 = vpop.f32.mrb[25].mxu1  ;;  %v6036_v49 = vpop.f32.mrb[26].mxu0 }
 0x23b   : > { %4924 = vst.msk [vmem:[%s8239_s30 + $0xa0] sm:$0xff] %vm4903_vm8, %v4891_v38  ;;  %v4892_v55 = vmax.f32 %v4860_v37, 0.0  ;;  %v6068_v23 = vadd.f32 %v4730_v35, %v2702_v6  ;;  %v5900_v25 = vpop.f32.mrb[26].mxu1  ;;  %v4733_v1 = vpop.f32.mrb[27].mxu0 }
 0x23c   : > { %4927 = vst.msk [vmem:[%s8239_s30 + $0xb8] sm:$0xff] %vm4903_vm8, %v4894_v34  ;;  %v4826_v29 = vmul.f32 %v6067_v5, %v8224_v2  ;;  %v6069_v7 = vadd.f32 %v6036_v49, %v5900_v25  ;;  %v2705_v61 = vpop.f32.mrb[27].mxu1 }
 0x23d   : > { %4925 = vst.msk [vmem:[%s8239_s30 + $0xa8] sm:$0xff] %vm4903_vm8, %v4892_v55  ;;  %v4824_v22 = vmul.f32 %v6068_v23, %v8224_v2  ;;  %v6070_v41 = vadd.f32 %v4733_v1, %v2705_v61 }
 0x23e   : > { %v4865_v44 = vadd.f32 %v8229_v36, %v4826_v29  ;;  %v4827_v3 = vmul.f32 %v6069_v7, %v8224_v2 }
 0x23f   : > { %v4863_v51 = vadd.f32 %v8229_v36, %v4824_v22  ;;  %v4825_v28 = vmul.f32 %v6070_v41, %v8224_v2 }
 0x240   : > { %v4897_v45 = vmax.f32 %v4865_v44, 0.0  ;;  %v4866_v27 = vadd.f32 %v8229_v36, %v4827_v3  ;;  %v6039_v53 = vpop.f32.mrb[28].mxu0 }
 0x241   : > { %v4895_v21 = vmax.f32 %v4863_v51, 0.0  ;;  %v4864_v47 = vadd.f32 %v8229_v36, %v4825_v28  ;;  %v5903_v46 = vpop.f32.mrb[28].mxu1  ;;  %v4746_v15 = vpop.f32.mrb[29].mxu0 }
 0x242   : > { %4930 = vst.msk [vmem:[%s8239_s30 + $0xd0] sm:$0xff] %vm4903_vm8, %v4897_v45  ;;  %v4898_v60 = vmax.f32 %v4866_v27, 0.0  ;;  %v6071_v20 = vadd.f32 %v6039_v53, %v5903_v46  ;;  %v2718_v42 = vpop.f32.mrb[29].mxu1  ;;  %v6040_v33 = vpop.f32.mrb[30].mxu0 }
 0x243   : > { %4928 = vst.msk [vmem:[%s8239_s30 + $0xc0] sm:$0xff] %vm4903_vm8, %v4895_v21  ;;  %v4896_v12 = vmax.f32 %v4864_v47, 0.0  ;;  %v6072_v31 = vadd.f32 %v4746_v15, %v2718_v42  ;;  %v5904_v57 = vpop.f32.mrb[30].mxu1  ;;  %v4749_v8 = vpop.f32.mrb[31].mxu0 }
 0x244   : > { %4931 = vst.msk [vmem:[%s8239_s30 + $0xd8] sm:$0xff] %vm4903_vm8, %v4898_v60  ;;  %v4830_v48 = vmul.f32 %v6071_v20, %v8224_v2  ;;  %v6073_v62 = vadd.f32 %v6040_v33, %v5904_v57  ;;  %v2721_v56 = vpop.f32.mrb[31].mxu1 }
 0x245   : > { %4929 = vst.msk [vmem:[%s8239_s30 + $0xc8] sm:$0xff] %vm4903_vm8, %v4896_v12  ;;  %v4828_v40 = vmul.f32 %v6072_v31, %v8224_v2  ;;  %v6074_v13 = vadd.f32 %v4749_v8, %v2721_v56 }
 0x246   : > { %v4869_v17 = vadd.f32 %v8229_v36, %v4830_v48  ;;  %v4831_v30 = vmul.f32 %v6073_v62, %v8224_v2 }
 0x247   : > { %v4867_v9 = vadd.f32 %v8229_v36, %v4828_v40  ;;  %v4829_v14 = vmul.f32 %v6074_v13, %v8224_v2 }
 0x248   : > { %v4901_v63 = vmax.f32 %v4869_v17, 0.0  ;;  %v4870_v4 = vadd.f32 %v8229_v36, %v4831_v30 }
 0x249   : > { %v4899_v43 = vmax.f32 %v4867_v9, 0.0  ;;  %v4868_v16 = vadd.f32 %v8229_v36, %v4829_v14 }
 0x24a   : > { %4934 = vst.msk [vmem:[%s8239_s30 + $0xf0] sm:$0xff] %vm4903_vm8, %v4901_v63  ;;  %v4902_v58 = vmax.f32 %v4870_v4, 0.0 }
 0x24b   : > { %4932 = vst.msk [vmem:[%s8239_s30 + $0xe0] sm:$0xff] %vm4903_vm8, %v4899_v43  ;;  %v4900_v50 = vmax.f32 %v4868_v16, 0.0 }
 0x24c   : > { %4935 = vst.msk [vmem:[%s8239_s30 + $0xf8] sm:$0xff] %vm4903_vm8, %v4902_v58 }
 0x24d   : > { %4933 = vst.msk [vmem:[%s8239_s30 + $0xe8] sm:$0xff] %vm4903_vm8, %v4900_v50 }
 0x24e PF: > { %s14_s17 = sadd.s32 1, %s6461_s17   ;;  %s8452_s15 = smov %s6457_s16 }
 0x24f   : > { %p11_p5 = scmp.ge.s32.totalorder %s14_s17, 4   ;;  %s8453_s16 = smov %s8455_s18 }
 0x251   :  { %13 = sbr.rel (!%p11_p5) target bundleno = 2 (0x2), region = 77 }

</bundles_post_ra>
